<compile_context>
chip_gen: v7x
topology: tpu7x:2x2x1
jax: 0.10.0
libtpu: 0.0.40
codegen_flags: <defaults>
</compile_context>

<pallas_src>
import jax
import jax.numpy as jnp
from jax import lax
from jax.experimental import pallas as pl
from jax.experimental.pallas import tpu as pltpu

SQRT2 = 2.0 ** 0.5


# ----------------------------- fused kernel ----------------------------------

def fused_block_kernel(xs_ref, w1_ref, b1_ref, w2_ref, b2_ref, ws_ref, o_ref,
                       a_scr, acc1_ref, acc2_ref):
    # xs_ref : (4, Hq, Wq, Cin)  parity planes of the 1-padded input xp:
    #          plane 2*pr+pc holds xp[2a+pr, 2b+pc]      (Hq=Ho+1, Wq=Wo+1)
    # w1_ref : (9, Cin, Cin)   conv1 taps, index 3*dy+dx (HWIO matricized)
    # b1_ref : (1, Cin)
    # w2_ref : (9, Cin, Cout)  conv2 taps
    # b2_ref : (1, Cout)
    # ws_ref : (Cin, Cout)     1x1 stride-2 skip conv
    # o_ref  : (1, Ho, Wo, Cout)
    # a_scr  : (4, Hq, Wq, Cin) f32 scratch -- parity planes of the padded
    #          conv1 activation y1p (zero borders = conv2's padding)
    # acc1_ref: (Ho*Wo, Cin) f32, acc2_ref: (Ho*Wo, Cout) f32
    Ho, Wo, Cout = o_ref.shape[1], o_ref.shape[2], o_ref.shape[3]
    Cin = xs_ref.shape[3]

    # Zero the activation planes: this writes the zero-padding border rows/cols
    # that conv2 sees, and must be redone every grid step (scratch persists).
    a_scr[...] = jnp.zeros_like(a_scr)
    acc2_ref[...] = jnp.zeros_like(acc2_ref)

    # ---- conv1 (3x3, s1, p1) + leaky_relu(0.2)*sqrt(2), per parity plane ----
    for pr in range(2):
        for pc in range(2):
            a0, b0 = 1 - pr, 1 - pc          # interior offset inside the plane
            acc1_ref[...] = jnp.zeros_like(acc1_ref)
            for dy in range(3):
                for dx in range(3):
                    u, v = pr - 1 + dy, pc - 1 + dx
                    su, sv = u & 1, v & 1            # source plane parity
                    rs = a0 + (u - su) // 2          # slice starts in {0, 1}
                    cs = b0 + (v - sv) // 2
                    patch = xs_ref[2 * su + sv,
                                   rs:rs + Ho,
                                   cs:cs + Wo, :].reshape(Ho * Wo, Cin)
                    acc1_ref[...] += jnp.dot(
                        patch, w1_ref[3 * dy + dx],
                        preferred_element_type=jnp.float32)
            z = acc1_ref[...] + b1_ref[...]
            act = jnp.where(z > 0, z, 0.2 * z) * jnp.float32(SQRT2)
            a_scr[2 * pr + pc, a0:a0 + Ho, b0:b0 + Wo, :] = act.reshape(
                Ho, Wo, Cin)

    # ---- conv2 (3x3, s2, p1): stride-2 taps are contiguous plane slices ----
    for dy in range(3):
        for dx in range(3):
            plane = 2 * (dy & 1) + (dx & 1)
            r0, c0 = dy // 2, dx // 2
            patch = a_scr[plane,
                          r0:r0 + Ho,
                          c0:c0 + Wo, :].reshape(Ho * Wo, Cin)
            acc2_ref[...] += jnp.dot(patch, w2_ref[3 * dy + dx],
                                     preferred_element_type=jnp.float32)
    z2 = acc2_ref[...] + b2_ref[...]
    a2 = jnp.where(z2 > 0, z2, 0.2 * z2) * jnp.float32(SQRT2)

    # ---- 1x1 / stride-2 skip: x[2io, 2jo] = xp[2io+1, 2jo+1] = plane(1,1) ---
    xskip = xs_ref[3, 0:Ho, 0:Wo, :].reshape(Ho * Wo, Cin)
    s = jnp.dot(xskip, ws_ref[...], preferred_element_type=jnp.float32)

    out = (a2 + s) * jnp.float32(1.0 / SQRT2)
    o_ref[0] = out.reshape(Ho, Wo, Cout).astype(o_ref.dtype)


# ----------------------------- wrapper ---------------------------------------

def sp_norm_res_block(x_nchw, params):
    """Forward pass of SPNormResBlock.  Input/output are NCHW float32."""
    w1, b1, w2, b2, ws = params               # weights are HWIO, already SN'ed
    x = jnp.transpose(x_nchw, (0, 2, 3, 1))   # -> NHWC
    B, H, W, Cin = x.shape
    Cout = w2.shape[-1]
    Ho, Wo = H // 2, W // 2
    Hq, Wq = Ho + 1, Wo + 1

    # Only remaining XLA glue: pad by 1 and space-to-depth parity split
    # (single pass over x).  Plane 2*pr+pc holds xp[2a+pr, 2b+pc].
    xp = jnp.pad(x, ((0, 0), (1, 1), (1, 1), (0, 0)))
    xs = xp.reshape(B, Hq, 2, Wq, 2, Cin)
    xs = jnp.transpose(xs, (0, 2, 4, 1, 3, 5)).reshape(B * 4, Hq, Wq, Cin)

    w1f = w1.reshape(9, Cin, Cin)
    b1r = b1.reshape(1, Cin)
    w2f = w2.reshape(9, Cin, Cout)
    b2r = b2.reshape(1, Cout)
    wsf = ws.reshape(Cin, Cout)

    out = pl.pallas_call(
        fused_block_kernel,
        out_shape=jax.ShapeDtypeStruct((B, Ho, Wo, Cout), jnp.float32),
        grid_spec=pltpu.PrefetchScalarGridSpec(
            num_scalar_prefetch=0,
            grid=(B,),
            in_specs=[
                pl.BlockSpec((4, Hq, Wq, Cin), lambda b: (b, 0, 0, 0)),
                pl.BlockSpec((9, Cin, Cin), lambda b: (0, 0, 0)),
                pl.BlockSpec((1, Cin), lambda b: (0, 0)),
                pl.BlockSpec((9, Cin, Cout), lambda b: (0, 0, 0)),
                pl.BlockSpec((1, Cout), lambda b: (0, 0)),
                pl.BlockSpec((Cin, Cout), lambda b: (0, 0)),
            ],
            out_specs=pl.BlockSpec((1, Ho, Wo, Cout), lambda b: (b, 0, 0, 0)),
            scratch_shapes=[
                pltpu.VMEM((4, Hq, Wq, Cin), jnp.float32),
                pltpu.VMEM((Ho * Wo, Cin), jnp.float32),
                pltpu.VMEM((Ho * Wo, Cout), jnp.float32),
            ],
        ),
        compiler_params=pltpu.CompilerParams(
            dimension_semantics=("parallel",),
            vmem_limit_bytes=32 * 1024 * 1024,
        ),
    )(xs, w1f, b1r, w2f, b2r, wsf)

    return jnp.transpose(out, (0, 3, 1, 2))   # back to NCHW


# ----------------------------- parameter setup --------------------------------

def spectral_normalize(w_hwio, key, n_iter=30):
    """Divide a conv weight by its largest singular value (torch spectral_norm
    semantics: matricized with out_channels as one axis).  Power iteration."""
    cout = w_hwio.shape[-1]
    w_mat = w_hwio.reshape(-1, cout).T            # (Cout, rest)
    u = jax.random.normal(key, (cout,), jnp.float32)
    u = u / (jnp.linalg.norm(u) + 1e-12)
    v = None
    for _ in range(n_iter):
        v = w_mat.T @ u
        v = v / (jnp.linalg.norm(v) + 1e-12)
        u = w_mat @ v
        u = u / (jnp.linalg.norm(u) + 1e-12)
    sigma = u @ (w_mat @ v)
    return w_hwio / sigma


def ref_forward(x_nhwc, params):
    """Pure-JAX reference of the torch forward pass (NHWC), full precision."""
    w1, b1, w2, b2, ws = params
    dn = ("NHWC", "HWIO", "NHWC")
    hp = lax.Precision.HIGHEST
    y = lax.conv_general_dilated(x_nhwc, w1, (1, 1), ((1, 1), (1, 1)),
                                 dimension_numbers=dn, precision=hp) + b1
    y = jnp.where(y > 0, y, 0.2 * y) * SQRT2
    y = lax.conv_general_dilated(y, w2, (2, 2), ((1, 1), (1, 1)),
                                 dimension_numbers=dn, precision=hp) + b2
    y = jnp.where(y > 0, y, 0.2 * y) * SQRT2
    s = lax.conv_general_dilated(x_nhwc, ws, (2, 2), ((0, 0), (0, 0)),
                                 dimension_numbers=dn, precision=hp)
    return (y + s) / SQRT2


# ----------------------------- main ------------------------------------------

if __name__ == "__main__":
    B, Cin, Cout, H, W = 2, 4, 8, 16, 16

    key = jax.random.PRNGKey(0)
    kx, k1, k2, k3, k4, k5, ku1, ku2, ku3 = jax.random.split(key, 9)

    x_nchw = jax.random.normal(kx, (B, Cin, H, W), jnp.float32)

    # Synthetic parameters (HWIO conv weights): conv1 3x3 Cin->Cin (+bias),
    # conv2 3x3 Cin->Cout (+bias), skip 1x1 Cin->Cout (no bias), spectral-
    # normalized as in the torch module.
    w1 = 0.2 * jax.random.normal(k1, (3, 3, Cin, Cin), jnp.float32)
    b1 = 0.1 * jax.random.normal(k2, (Cin,), jnp.float32)
    w2 = 0.2 * jax.random.normal(k3, (3, 3, Cin, Cout), jnp.float32)
    b2 = 0.1 * jax.random.normal(k4, (Cout,), jnp.float32)
    ws = 0.2 * jax.random.normal(k5, (1, 1, Cin, Cout), jnp.float32)

    w1 = spectral_normalize(w1, ku1)
    w2 = spectral_normalize(w2, ku2)
    ws = spectral_normalize(ws, ku3)
    params = (w1, b1, w2, b2, ws)

    out = jax.jit(sp_norm_res_block)(x_nchw, params)
    out = jax.block_until_ready(out)

    assert out.shape == (B, Cout, H // 2, W // 2), out.shape

    # Correctness check against a full-precision pure-JAX reference.  The
    # kernel uses default (single-pass) MXU precision, so allow a small
    # bf16-rounding tolerance; real indexing bugs give O(1) errors.
    x_nhwc = jnp.transpose(x_nchw, (0, 2, 3, 1))
    ref_nchw = jnp.transpose(ref_forward(x_nhwc, params), (0, 3, 1, 2))
    max_err = float(jnp.max(jnp.abs(out - ref_nchw)))
    if max_err > 5e-2:
        raise AssertionError(f"Pallas output mismatch, max abs err = {max_err}")

    print("KERNEL_OK")
</pallas_src>

<mosaic_0001>
module attributes {stable_mosaic.version = 11 : i64} {
  func.func @fused_block_kernel(%arg0: i32, %arg1: memref<4x9x9x4xf32, #tpu.memory_space<vmem>>, %arg2: memref<9x4x4xf32, #tpu.memory_space<vmem>>, %arg3: memref<1x4xf32, #tpu.memory_space<vmem>>, %arg4: memref<9x4x8xf32, #tpu.memory_space<vmem>>, %arg5: memref<1x8xf32, #tpu.memory_space<vmem>>, %arg6: memref<4x8xf32, #tpu.memory_space<vmem>>, %arg7: memref<1x8x8x8xf32, #tpu.memory_space<vmem>>, %arg8: memref<4x9x9x4xf32, #tpu.memory_space<vmem>>, %arg9: memref<64x4xf32, #tpu.memory_space<vmem>>, %arg10: memref<64x8xf32, #tpu.memory_space<vmem>>) attributes {dimension_semantics = [#tpu.dimension_semantics<parallel>], iteration_bounds = array<i64: 2>, scalar_prefetch = 0 : i64, scratch_operands = 3 : i64, tpu.core_type = #tpu.core_type<tc>, window_params = [{transform_indices = @transform_0, window_bounds = array<i64: 4, 9, 9, 4>}, {pipeline_mode = #tpu.pipeline_mode<synchronous>, transform_indices = @transform_1, window_bounds = array<i64: 9, 4, 4>}, {pipeline_mode = #tpu.pipeline_mode<synchronous>, transform_indices = @transform_2, window_bounds = array<i64: 1, 4>}, {pipeline_mode = #tpu.pipeline_mode<synchronous>, transform_indices = @transform_3, window_bounds = array<i64: 9, 4, 8>}, {pipeline_mode = #tpu.pipeline_mode<synchronous>, transform_indices = @transform_4, window_bounds = array<i64: 1, 8>}, {pipeline_mode = #tpu.pipeline_mode<synchronous>, transform_indices = @transform_5, window_bounds = array<i64: 4, 8>}, {transform_indices = @transform_6, window_bounds = array<i64: 1, 8, 8, 8>}]} {
    %cst = arith.constant 0.000000e+00 : f32
    %0 = vector.broadcast %cst : f32 to vector<4x9x9x4xf32>
    %c0 = arith.constant 0 : index
    %c0_0 = arith.constant 0 : index
    %c0_1 = arith.constant 0 : index
    %c0_2 = arith.constant 0 : index
    %1 = vector.load %arg8[%c0, %c0_0, %c0_1, %c0_2] : memref<4x9x9x4xf32, #tpu.memory_space<vmem>>, vector<4x9x9x4xf32>
    tpu.vector_store %arg8[%c0, %c0_0, %c0_1, %c0_2], %0 {strides = array<i32>} : memref<4x9x9x4xf32, #tpu.memory_space<vmem>>, vector<4x9x9x4xf32>,
    %cst_3 = arith.constant 0.000000e+00 : f32
    %2 = vector.broadcast %cst_3 : f32 to vector<64x8xf32>
    %c0_4 = arith.constant 0 : index
    %c0_5 = arith.constant 0 : index
    %3 = vector.load %arg10[%c0_4, %c0_5] : memref<64x8xf32, #tpu.memory_space<vmem>>, vector<64x8xf32>
    tpu.vector_store %arg10[%c0_4, %c0_5], %2 {strides = array<i32>} : memref<64x8xf32, #tpu.memory_space<vmem>>, vector<64x8xf32>,
    %cst_6 = arith.constant 0.000000e+00 : f32
    %4 = vector.broadcast %cst_6 : f32 to vector<64x4xf32>
    %c0_7 = arith.constant 0 : index
    %c0_8 = arith.constant 0 : index
    %5 = vector.load %arg9[%c0_7, %c0_8] : memref<64x4xf32, #tpu.memory_space<vmem>>, vector<64x4xf32>
    tpu.vector_store %arg9[%c0_7, %c0_8], %4 {strides = array<i32>} : memref<64x4xf32, #tpu.memory_space<vmem>>, vector<64x4xf32>,
    %c3 = arith.constant 3 : index
    %c0_9 = arith.constant 0 : index
    %c0_10 = arith.constant 0 : index
    %c0_11 = arith.constant 0 : index
    %6 = vector.load %arg1[%c3, %c0_9, %c0_10, %c0_11] : memref<4x9x9x4xf32, #tpu.memory_space<vmem>>, vector<1x8x8x4xf32>
    %7 = vector.shape_cast %6 : vector<1x8x8x4xf32> to vector<8x8x4xf32>
    %8 = vector.shape_cast %7 : vector<8x8x4xf32> to vector<64x4xf32>
    %c0_12 = arith.constant 0 : index
    %c0_13 = arith.constant 0 : index
    %9 = vector.load %arg9[%c0_12, %c0_13] : memref<64x4xf32, #tpu.memory_space<vmem>>, vector<64x4xf32>
    %c0_14 = arith.constant 0 : index
    %c0_15 = arith.constant 0 : index
    %c0_16 = arith.constant 0 : index
    %10 = vector.load %arg2[%c0_14, %c0_15, %c0_16] : memref<9x4x4xf32, #tpu.memory_space<vmem>>, vector<1x4x4xf32>
    %11 = vector.shape_cast %10 : vector<1x4x4xf32> to vector<4x4xf32>
    %cst_17 = arith.constant dense<0.000000e+00> : vector<64x4xf32>
    %12 = tpu.matmul %8, %11, %cst_17 {dimension_numbers = #tpu.dot_dimension_numbers<[1], [0], [0], [1], [0, 0, 1, 1], [], []>} : vector<64x4xf32>, vector<4x4xf32>, vector<64x4xf32> -> vector<64x4xf32>
    %13 = arith.addf %9, %12 : vector<64x4xf32>
    %c0_18 = arith.constant 0 : index
    %c0_19 = arith.constant 0 : index
    %14 = vector.load %arg9[%c0_18, %c0_19] : memref<64x4xf32, #tpu.memory_space<vmem>>, vector<64x4xf32>
    tpu.vector_store %arg9[%c0_18, %c0_19], %13 {strides = array<i32>} : memref<64x4xf32, #tpu.memory_space<vmem>>, vector<64x4xf32>,
    %c2 = arith.constant 2 : index
    %c0_20 = arith.constant 0 : index
    %c1 = arith.constant 1 : index
    %c0_21 = arith.constant 0 : index
    %15 = vector.load %arg1[%c2, %c0_20, %c1, %c0_21] : memref<4x9x9x4xf32, #tpu.memory_space<vmem>>, vector<1x8x8x4xf32>
    %16 = vector.shape_cast %15 : vector<1x8x8x4xf32> to vector<8x8x4xf32>
    %17 = vector.shape_cast %16 : vector<8x8x4xf32> to vector<64x4xf32>
    %c0_22 = arith.constant 0 : index
    %c0_23 = arith.constant 0 : index
    %18 = vector.load %arg9[%c0_22, %c0_23] : memref<64x4xf32, #tpu.memory_space<vmem>>, vector<64x4xf32>
    %c1_24 = arith.constant 1 : index
    %c0_25 = arith.constant 0 : index
    %c0_26 = arith.constant 0 : index
    %19 = vector.load %arg2[%c1_24, %c0_25, %c0_26] : memref<9x4x4xf32, #tpu.memory_space<vmem>>, vector<1x4x4xf32>
    %20 = vector.shape_cast %19 : vector<1x4x4xf32> to vector<4x4xf32>
    %cst_27 = arith.constant dense<0.000000e+00> : vector<64x4xf32>
    %21 = tpu.matmul %17, %20, %cst_27 {dimension_numbers = #tpu.dot_dimension_numbers<[1], [0], [0], [1], [0, 0, 1, 1], [], []>} : vector<64x4xf32>, vector<4x4xf32>, vector<64x4xf32> -> vector<64x4xf32>
    %22 = arith.addf %18, %21 : vector<64x4xf32>
    %c0_28 = arith.constant 0 : index
    %c0_29 = arith.constant 0 : index
    %23 = vector.load %arg9[%c0_28, %c0_29] : memref<64x4xf32, #tpu.memory_space<vmem>>, vector<64x4xf32>
    tpu.vector_store %arg9[%c0_28, %c0_29], %22 {strides = array<i32>} : memref<64x4xf32, #tpu.memory_space<vmem>>, vector<64x4xf32>,
    %c3_30 = arith.constant 3 : index
    %c0_31 = arith.constant 0 : index
    %c1_32 = arith.constant 1 : index
    %c0_33 = arith.constant 0 : index
    %24 = vector.load %arg1[%c3_30, %c0_31, %c1_32, %c0_33] : memref<4x9x9x4xf32, #tpu.memory_space<vmem>>, vector<1x8x8x4xf32>
    %25 = vector.shape_cast %24 : vector<1x8x8x4xf32> to vector<8x8x4xf32>
    %26 = vector.shape_cast %25 : vector<8x8x4xf32> to vector<64x4xf32>
    %c0_34 = arith.constant 0 : index
    %c0_35 = arith.constant 0 : index
    %27 = vector.load %arg9[%c0_34, %c0_35] : memref<64x4xf32, #tpu.memory_space<vmem>>, vector<64x4xf32>
    %c2_36 = arith.constant 2 : index
    %c0_37 = arith.constant 0 : index
    %c0_38 = arith.constant 0 : index
    %28 = vector.load %arg2[%c2_36, %c0_37, %c0_38] : memref<9x4x4xf32, #tpu.memory_space<vmem>>, vector<1x4x4xf32>
    %29 = vector.shape_cast %28 : vector<1x4x4xf32> to vector<4x4xf32>
    %cst_39 = arith.constant dense<0.000000e+00> : vector<64x4xf32>
    %30 = tpu.matmul %26, %29, %cst_39 {dimension_numbers = #tpu.dot_dimension_numbers<[1], [0], [0], [1], [0, 0, 1, 1], [], []>} : vector<64x4xf32>, vector<4x4xf32>, vector<64x4xf32> -> vector<64x4xf32>
    %31 = arith.addf %27, %30 : vector<64x4xf32>
    %c0_40 = arith.constant 0 : index
    %c0_41 = arith.constant 0 : index
    %32 = vector.load %arg9[%c0_40, %c0_41] : memref<64x4xf32, #tpu.memory_space<vmem>>, vector<64x4xf32>
    tpu.vector_store %arg9[%c0_40, %c0_41], %31 {strides = array<i32>} : memref<64x4xf32, #tpu.memory_space<vmem>>, vector<64x4xf32>,
    %c1_42 = arith.constant 1 : index
    %c1_43 = arith.constant 1 : index
    %c0_44 = arith.constant 0 : index
    %c0_45 = arith.constant 0 : index
    %33 = vector.load %arg1[%c1_42, %c1_43, %c0_44, %c0_45] : memref<4x9x9x4xf32, #tpu.memory_space<vmem>>, vector<1x8x8x4xf32>
    %34 = vector.shape_cast %33 : vector<1x8x8x4xf32> to vector<8x8x4xf32>
    %35 = vector.shape_cast %34 : vector<8x8x4xf32> to vector<64x4xf32>
    %c0_46 = arith.constant 0 : index
    %c0_47 = arith.constant 0 : index
    %36 = vector.load %arg9[%c0_46, %c0_47] : memref<64x4xf32, #tpu.memory_space<vmem>>, vector<64x4xf32>
    %c3_48 = arith.constant 3 : index
    %c0_49 = arith.constant 0 : index
    %c0_50 = arith.constant 0 : index
    %37 = vector.load %arg2[%c3_48, %c0_49, %c0_50] : memref<9x4x4xf32, #tpu.memory_space<vmem>>, vector<1x4x4xf32>
    %38 = vector.shape_cast %37 : vector<1x4x4xf32> to vector<4x4xf32>
    %cst_51 = arith.constant dense<0.000000e+00> : vector<64x4xf32>
    %39 = tpu.matmul %35, %38, %cst_51 {dimension_numbers = #tpu.dot_dimension_numbers<[1], [0], [0], [1], [0, 0, 1, 1], [], []>} : vector<64x4xf32>, vector<4x4xf32>, vector<64x4xf32> -> vector<64x4xf32>
    %40 = arith.addf %36, %39 : vector<64x4xf32>
    %c0_52 = arith.constant 0 : index
    %c0_53 = arith.constant 0 : index
    %41 = vector.load %arg9[%c0_52, %c0_53] : memref<64x4xf32, #tpu.memory_space<vmem>>, vector<64x4xf32>
    tpu.vector_store %arg9[%c0_52, %c0_53], %40 {strides = array<i32>} : memref<64x4xf32, #tpu.memory_space<vmem>>, vector<64x4xf32>,
    %c0_54 = arith.constant 0 : index
    %c1_55 = arith.constant 1 : index
    %c1_56 = arith.constant 1 : index
    %c0_57 = arith.constant 0 : index
    %42 = vector.load %arg1[%c0_54, %c1_55, %c1_56, %c0_57] : memref<4x9x9x4xf32, #tpu.memory_space<vmem>>, vector<1x8x8x4xf32>
    %43 = vector.shape_cast %42 : vector<1x8x8x4xf32> to vector<8x8x4xf32>
    %44 = vector.shape_cast %43 : vector<8x8x4xf32> to vector<64x4xf32>
    %c0_58 = arith.constant 0 : index
    %c0_59 = arith.constant 0 : index
    %45 = vector.load %arg9[%c0_58, %c0_59] : memref<64x4xf32, #tpu.memory_space<vmem>>, vector<64x4xf32>
    %c4 = arith.constant 4 : index
    %c0_60 = arith.constant 0 : index
    %c0_61 = arith.constant 0 : index
    %46 = vector.load %arg2[%c4, %c0_60, %c0_61] : memref<9x4x4xf32, #tpu.memory_space<vmem>>, vector<1x4x4xf32>
    %47 = vector.shape_cast %46 : vector<1x4x4xf32> to vector<4x4xf32>
    %cst_62 = arith.constant dense<0.000000e+00> : vector<64x4xf32>
    %48 = tpu.matmul %44, %47, %cst_62 {dimension_numbers = #tpu.dot_dimension_numbers<[1], [0], [0], [1], [0, 0, 1, 1], [], []>} : vector<64x4xf32>, vector<4x4xf32>, vector<64x4xf32> -> vector<64x4xf32>
    %49 = arith.addf %45, %48 : vector<64x4xf32>
    %c0_63 = arith.constant 0 : index
    %c0_64 = arith.constant 0 : index
    %50 = vector.load %arg9[%c0_63, %c0_64] : memref<64x4xf32, #tpu.memory_space<vmem>>, vector<64x4xf32>
    tpu.vector_store %arg9[%c0_63, %c0_64], %49 {strides = array<i32>} : memref<64x4xf32, #tpu.memory_space<vmem>>, vector<64x4xf32>,
    %c1_65 = arith.constant 1 : index
    %c1_66 = arith.constant 1 : index
    %c1_67 = arith.constant 1 : index
    %c0_68 = arith.constant 0 : index
    %51 = vector.load %arg1[%c1_65, %c1_66, %c1_67, %c0_68] : memref<4x9x9x4xf32, #tpu.memory_space<vmem>>, vector<1x8x8x4xf32>
    %52 = vector.shape_cast %51 : vector<1x8x8x4xf32> to vector<8x8x4xf32>
    %53 = vector.shape_cast %52 : vector<8x8x4xf32> to vector<64x4xf32>
    %c0_69 = arith.constant 0 : index
    %c0_70 = arith.constant 0 : index
    %54 = vector.load %arg9[%c0_69, %c0_70] : memref<64x4xf32, #tpu.memory_space<vmem>>, vector<64x4xf32>
    %c5 = arith.constant 5 : index
    %c0_71 = arith.constant 0 : index
    %c0_72 = arith.constant 0 : index
    %55 = vector.load %arg2[%c5, %c0_71, %c0_72] : memref<9x4x4xf32, #tpu.memory_space<vmem>>, vector<1x4x4xf32>
    %56 = vector.shape_cast %55 : vector<1x4x4xf32> to vector<4x4xf32>
    %cst_73 = arith.constant dense<0.000000e+00> : vector<64x4xf32>
    %57 = tpu.matmul %53, %56, %cst_73 {dimension_numbers = #tpu.dot_dimension_numbers<[1], [0], [0], [1], [0, 0, 1, 1], [], []>} : vector<64x4xf32>, vector<4x4xf32>, vector<64x4xf32> -> vector<64x4xf32>
    %58 = arith.addf %54, %57 : vector<64x4xf32>
    %c0_74 = arith.constant 0 : index
    %c0_75 = arith.constant 0 : index
    %59 = vector.load %arg9[%c0_74, %c0_75] : memref<64x4xf32, #tpu.memory_space<vmem>>, vector<64x4xf32>
    tpu.vector_store %arg9[%c0_74, %c0_75], %58 {strides = array<i32>} : memref<64x4xf32, #tpu.memory_space<vmem>>, vector<64x4xf32>,
    %c3_76 = arith.constant 3 : index
    %c1_77 = arith.constant 1 : index
    %c0_78 = arith.constant 0 : index
    %c0_79 = arith.constant 0 : index
    %60 = vector.load %arg1[%c3_76, %c1_77, %c0_78, %c0_79] : memref<4x9x9x4xf32, #tpu.memory_space<vmem>>, vector<1x8x8x4xf32>
    %61 = vector.shape_cast %60 : vector<1x8x8x4xf32> to vector<8x8x4xf32>
    %62 = vector.shape_cast %61 : vector<8x8x4xf32> to vector<64x4xf32>
    %c0_80 = arith.constant 0 : index
    %c0_81 = arith.constant 0 : index
    %63 = vector.load %arg9[%c0_80, %c0_81] : memref<64x4xf32, #tpu.memory_space<vmem>>, vector<64x4xf32>
    %c6 = arith.constant 6 : index
    %c0_82 = arith.constant 0 : index
    %c0_83 = arith.constant 0 : index
    %64 = vector.load %arg2[%c6, %c0_82, %c0_83] : memref<9x4x4xf32, #tpu.memory_space<vmem>>, vector<1x4x4xf32>
    %65 = vector.shape_cast %64 : vector<1x4x4xf32> to vector<4x4xf32>
    %cst_84 = arith.constant dense<0.000000e+00> : vector<64x4xf32>
    %66 = tpu.matmul %62, %65, %cst_84 {dimension_numbers = #tpu.dot_dimension_numbers<[1], [0], [0], [1], [0, 0, 1, 1], [], []>} : vector<64x4xf32>, vector<4x4xf32>, vector<64x4xf32> -> vector<64x4xf32>
    %67 = arith.addf %63, %66 : vector<64x4xf32>
    %c0_85 = arith.constant 0 : index
    %c0_86 = arith.constant 0 : index
    %68 = vector.load %arg9[%c0_85, %c0_86] : memref<64x4xf32, #tpu.memory_space<vmem>>, vector<64x4xf32>
    tpu.vector_store %arg9[%c0_85, %c0_86], %67 {strides = array<i32>} : memref<64x4xf32, #tpu.memory_space<vmem>>, vector<64x4xf32>,
    %c2_87 = arith.constant 2 : index
    %c1_88 = arith.constant 1 : index
    %c1_89 = arith.constant 1 : index
    %c0_90 = arith.constant 0 : index
    %69 = vector.load %arg1[%c2_87, %c1_88, %c1_89, %c0_90] : memref<4x9x9x4xf32, #tpu.memory_space<vmem>>, vector<1x8x8x4xf32>
    %70 = vector.shape_cast %69 : vector<1x8x8x4xf32> to vector<8x8x4xf32>
    %71 = vector.shape_cast %70 : vector<8x8x4xf32> to vector<64x4xf32>
    %c0_91 = arith.constant 0 : index
    %c0_92 = arith.constant 0 : index
    %72 = vector.load %arg9[%c0_91, %c0_92] : memref<64x4xf32, #tpu.memory_space<vmem>>, vector<64x4xf32>
    %c7 = arith.constant 7 : index
    %c0_93 = arith.constant 0 : index
    %c0_94 = arith.constant 0 : index
    %73 = vector.load %arg2[%c7, %c0_93, %c0_94] : memref<9x4x4xf32, #tpu.memory_space<vmem>>, vector<1x4x4xf32>
    %74 = vector.shape_cast %73 : vector<1x4x4xf32> to vector<4x4xf32>
    %cst_95 = arith.constant dense<0.000000e+00> : vector<64x4xf32>
    %75 = tpu.matmul %71, %74, %cst_95 {dimension_numbers = #tpu.dot_dimension_numbers<[1], [0], [0], [1], [0, 0, 1, 1], [], []>} : vector<64x4xf32>, vector<4x4xf32>, vector<64x4xf32> -> vector<64x4xf32>
    %76 = arith.addf %72, %75 : vector<64x4xf32>
    %c0_96 = arith.constant 0 : index
    %c0_97 = arith.constant 0 : index
    %77 = vector.load %arg9[%c0_96, %c0_97] : memref<64x4xf32, #tpu.memory_space<vmem>>, vector<64x4xf32>
    tpu.vector_store %arg9[%c0_96, %c0_97], %76 {strides = array<i32>} : memref<64x4xf32, #tpu.memory_space<vmem>>, vector<64x4xf32>,
    %c3_98 = arith.constant 3 : index
    %c1_99 = arith.constant 1 : index
    %c1_100 = arith.constant 1 : index
    %c0_101 = arith.constant 0 : index
    %78 = vector.load %arg1[%c3_98, %c1_99, %c1_100, %c0_101] : memref<4x9x9x4xf32, #tpu.memory_space<vmem>>, vector<1x8x8x4xf32>
    %79 = vector.shape_cast %78 : vector<1x8x8x4xf32> to vector<8x8x4xf32>
    %80 = vector.shape_cast %79 : vector<8x8x4xf32> to vector<64x4xf32>
    %c0_102 = arith.constant 0 : index
    %c0_103 = arith.constant 0 : index
    %81 = vector.load %arg9[%c0_102, %c0_103] : memref<64x4xf32, #tpu.memory_space<vmem>>, vector<64x4xf32>
    %c8 = arith.constant 8 : index
    %c0_104 = arith.constant 0 : index
    %c0_105 = arith.constant 0 : index
    %82 = vector.load %arg2[%c8, %c0_104, %c0_105] : memref<9x4x4xf32, #tpu.memory_space<vmem>>, vector<1x4x4xf32>
    %83 = vector.shape_cast %82 : vector<1x4x4xf32> to vector<4x4xf32>
    %cst_106 = arith.constant dense<0.000000e+00> : vector<64x4xf32>
    %84 = tpu.matmul %80, %83, %cst_106 {dimension_numbers = #tpu.dot_dimension_numbers<[1], [0], [0], [1], [0, 0, 1, 1], [], []>} : vector<64x4xf32>, vector<4x4xf32>, vector<64x4xf32> -> vector<64x4xf32>
    %85 = arith.addf %81, %84 : vector<64x4xf32>
    %c0_107 = arith.constant 0 : index
    %c0_108 = arith.constant 0 : index
    %86 = vector.load %arg9[%c0_107, %c0_108] : memref<64x4xf32, #tpu.memory_space<vmem>>, vector<64x4xf32>
    tpu.vector_store %arg9[%c0_107, %c0_108], %85 {strides = array<i32>} : memref<64x4xf32, #tpu.memory_space<vmem>>, vector<64x4xf32>,
    %c0_109 = arith.constant 0 : index
    %c0_110 = arith.constant 0 : index
    %87 = vector.load %arg9[%c0_109, %c0_110] : memref<64x4xf32, #tpu.memory_space<vmem>>, vector<64x4xf32>
    %c0_111 = arith.constant 0 : index
    %c0_112 = arith.constant 0 : index
    %88 = vector.load %arg3[%c0_111, %c0_112] : memref<1x4xf32, #tpu.memory_space<vmem>>, vector<1x4xf32>
    %89 = vector.broadcast %88 : vector<1x4xf32> to vector<64x4xf32>
    %90 = arith.addf %87, %89 : vector<64x4xf32>
    %cst_113 = arith.constant 0.000000e+00 : f32
    %91 = vector.broadcast %cst_113 : f32 to vector<64x4xf32>
    %92 = arith.cmpf ogt, %90, %91 : vector<64x4xf32>
    %cst_114 = arith.constant 2.000000e-01 : f32
    %93 = vector.broadcast %cst_114 : f32 to vector<64x4xf32>
    %94 = arith.mulf %93, %90 : vector<64x4xf32>
    %95 = arith.select %92, %90, %94 : vector<64x4xi1>, vector<64x4xf32>
    %cst_115 = arith.constant 1.41421354 : f32
    %96 = vector.broadcast %cst_115 : f32 to vector<64x4xf32>
    %97 = arith.mulf %95, %96 : vector<64x4xf32>
    %98 = vector.shape_cast %97 : vector<64x4xf32> to vector<8x8x4xf32>
    %c0_116 = arith.constant 0 : index
    %c1_117 = arith.constant 1 : index
    %c1_118 = arith.constant 1 : index
    %c0_119 = arith.constant 0 : index
    %99 = vector.load %arg8[%c0_116, %c1_117, %c1_118, %c0_119] : memref<4x9x9x4xf32, #tpu.memory_space<vmem>>, vector<1x8x8x4xf32>
    %100 = vector.shape_cast %99 : vector<1x8x8x4xf32> to vector<8x8x4xf32>
    %101 = vector.shape_cast %98 : vector<8x8x4xf32> to vector<1x8x8x4xf32>
    tpu.vector_store %arg8[%c0_116, %c1_117, %c1_118, %c0_119], %101 {strides = array<i32>} : memref<4x9x9x4xf32, #tpu.memory_space<vmem>>, vector<1x8x8x4xf32>,
    %cst_120 = arith.constant 0.000000e+00 : f32
    %102 = vector.broadcast %cst_120 : f32 to vector<64x4xf32>
    %c0_121 = arith.constant 0 : index
    %c0_122 = arith.constant 0 : index
    %103 = vector.load %arg9[%c0_121, %c0_122] : memref<64x4xf32, #tpu.memory_space<vmem>>, vector<64x4xf32>
    tpu.vector_store %arg9[%c0_121, %c0_122], %102 {strides = array<i32>} : memref<64x4xf32, #tpu.memory_space<vmem>>, vector<64x4xf32>,
    %c2_123 = arith.constant 2 : index
    %c0_124 = arith.constant 0 : index
    %c0_125 = arith.constant 0 : index
    %c0_126 = arith.constant 0 : index
    %104 = vector.load %arg1[%c2_123, %c0_124, %c0_125, %c0_126] : memref<4x9x9x4xf32, #tpu.memory_space<vmem>>, vector<1x8x8x4xf32>
    %105 = vector.shape_cast %104 : vector<1x8x8x4xf32> to vector<8x8x4xf32>
    %106 = vector.shape_cast %105 : vector<8x8x4xf32> to vector<64x4xf32>
    %c0_127 = arith.constant 0 : index
    %c0_128 = arith.constant 0 : index
    %107 = vector.load %arg9[%c0_127, %c0_128] : memref<64x4xf32, #tpu.memory_space<vmem>>, vector<64x4xf32>
    %c0_129 = arith.constant 0 : index
    %c0_130 = arith.constant 0 : index
    %c0_131 = arith.constant 0 : index
    %108 = vector.load %arg2[%c0_129, %c0_130, %c0_131] : memref<9x4x4xf32, #tpu.memory_space<vmem>>, vector<1x4x4xf32>
    %109 = vector.shape_cast %108 : vector<1x4x4xf32> to vector<4x4xf32>
    %cst_132 = arith.constant dense<0.000000e+00> : vector<64x4xf32>
    %110 = tpu.matmul %106, %109, %cst_132 {dimension_numbers = #tpu.dot_dimension_numbers<[1], [0], [0], [1], [0, 0, 1, 1], [], []>} : vector<64x4xf32>, vector<4x4xf32>, vector<64x4xf32> -> vector<64x4xf32>
    %111 = arith.addf %107, %110 : vector<64x4xf32>
    %c0_133 = arith.constant 0 : index
    %c0_134 = arith.constant 0 : index
    %112 = vector.load %arg9[%c0_133, %c0_134] : memref<64x4xf32, #tpu.memory_space<vmem>>, vector<64x4xf32>
    tpu.vector_store %arg9[%c0_133, %c0_134], %111 {strides = array<i32>} : memref<64x4xf32, #tpu.memory_space<vmem>>, vector<64x4xf32>,
    %c3_135 = arith.constant 3 : index
    %c0_136 = arith.constant 0 : index
    %c0_137 = arith.constant 0 : index
    %c0_138 = arith.constant 0 : index
    %113 = vector.load %arg1[%c3_135, %c0_136, %c0_137, %c0_138] : memref<4x9x9x4xf32, #tpu.memory_space<vmem>>, vector<1x8x8x4xf32>
    %114 = vector.shape_cast %113 : vector<1x8x8x4xf32> to vector<8x8x4xf32>
    %115 = vector.shape_cast %114 : vector<8x8x4xf32> to vector<64x4xf32>
    %c0_139 = arith.constant 0 : index
    %c0_140 = arith.constant 0 : index
    %116 = vector.load %arg9[%c0_139, %c0_140] : memref<64x4xf32, #tpu.memory_space<vmem>>, vector<64x4xf32>
    %c1_141 = arith.constant 1 : index
    %c0_142 = arith.constant 0 : index
    %c0_143 = arith.constant 0 : index
    %117 = vector.load %arg2[%c1_141, %c0_142, %c0_143] : memref<9x4x4xf32, #tpu.memory_space<vmem>>, vector<1x4x4xf32>
    %118 = vector.shape_cast %117 : vector<1x4x4xf32> to vector<4x4xf32>
    %cst_144 = arith.constant dense<0.000000e+00> : vector<64x4xf32>
    %119 = tpu.matmul %115, %118, %cst_144 {dimension_numbers = #tpu.dot_dimension_numbers<[1], [0], [0], [1], [0, 0, 1, 1], [], []>} : vector<64x4xf32>, vector<4x4xf32>, vector<64x4xf32> -> vector<64x4xf32>
    %120 = arith.addf %116, %119 : vector<64x4xf32>
    %c0_145 = arith.constant 0 : index
    %c0_146 = arith.constant 0 : index
    %121 = vector.load %arg9[%c0_145, %c0_146] : memref<64x4xf32, #tpu.memory_space<vmem>>, vector<64x4xf32>
    tpu.vector_store %arg9[%c0_145, %c0_146], %120 {strides = array<i32>} : memref<64x4xf32, #tpu.memory_space<vmem>>, vector<64x4xf32>,
    %c2_147 = arith.constant 2 : index
    %c0_148 = arith.constant 0 : index
    %c1_149 = arith.constant 1 : index
    %c0_150 = arith.constant 0 : index
    %122 = vector.load %arg1[%c2_147, %c0_148, %c1_149, %c0_150] : memref<4x9x9x4xf32, #tpu.memory_space<vmem>>, vector<1x8x8x4xf32>
    %123 = vector.shape_cast %122 : vector<1x8x8x4xf32> to vector<8x8x4xf32>
    %124 = vector.shape_cast %123 : vector<8x8x4xf32> to vector<64x4xf32>
    %c0_151 = arith.constant 0 : index
    %c0_152 = arith.constant 0 : index
    %125 = vector.load %arg9[%c0_151, %c0_152] : memref<64x4xf32, #tpu.memory_space<vmem>>, vector<64x4xf32>
    %c2_153 = arith.constant 2 : index
    %c0_154 = arith.constant 0 : index
    %c0_155 = arith.constant 0 : index
    %126 = vector.load %arg2[%c2_153, %c0_154, %c0_155] : memref<9x4x4xf32, #tpu.memory_space<vmem>>, vector<1x4x4xf32>
    %127 = vector.shape_cast %126 : vector<1x4x4xf32> to vector<4x4xf32>
    %cst_156 = arith.constant dense<0.000000e+00> : vector<64x4xf32>
    %128 = tpu.matmul %124, %127, %cst_156 {dimension_numbers = #tpu.dot_dimension_numbers<[1], [0], [0], [1], [0, 0, 1, 1], [], []>} : vector<64x4xf32>, vector<4x4xf32>, vector<64x4xf32> -> vector<64x4xf32>
    %129 = arith.addf %125, %128 : vector<64x4xf32>
    %c0_157 = arith.constant 0 : index
    %c0_158 = arith.constant 0 : index
    %130 = vector.load %arg9[%c0_157, %c0_158] : memref<64x4xf32, #tpu.memory_space<vmem>>, vector<64x4xf32>
    tpu.vector_store %arg9[%c0_157, %c0_158], %129 {strides = array<i32>} : memref<64x4xf32, #tpu.memory_space<vmem>>, vector<64x4xf32>,
    %c0_159 = arith.constant 0 : index
    %c1_160 = arith.constant 1 : index
    %c0_161 = arith.constant 0 : index
    %c0_162 = arith.constant 0 : index
    %131 = vector.load %arg1[%c0_159, %c1_160, %c0_161, %c0_162] : memref<4x9x9x4xf32, #tpu.memory_space<vmem>>, vector<1x8x8x4xf32>
    %132 = vector.shape_cast %131 : vector<1x8x8x4xf32> to vector<8x8x4xf32>
    %133 = vector.shape_cast %132 : vector<8x8x4xf32> to vector<64x4xf32>
    %c0_163 = arith.constant 0 : index
    %c0_164 = arith.constant 0 : index
    %134 = vector.load %arg9[%c0_163, %c0_164] : memref<64x4xf32, #tpu.memory_space<vmem>>, vector<64x4xf32>
    %c3_165 = arith.constant 3 : index
    %c0_166 = arith.constant 0 : index
    %c0_167 = arith.constant 0 : index
    %135 = vector.load %arg2[%c3_165, %c0_166, %c0_167] : memref<9x4x4xf32, #tpu.memory_space<vmem>>, vector<1x4x4xf32>
    %136 = vector.shape_cast %135 : vector<1x4x4xf32> to vector<4x4xf32>
    %cst_168 = arith.constant dense<0.000000e+00> : vector<64x4xf32>
    %137 = tpu.matmul %133, %136, %cst_168 {dimension_numbers = #tpu.dot_dimension_numbers<[1], [0], [0], [1], [0, 0, 1, 1], [], []>} : vector<64x4xf32>, vector<4x4xf32>, vector<64x4xf32> -> vector<64x4xf32>
    %138 = arith.addf %134, %137 : vector<64x4xf32>
    %c0_169 = arith.constant 0 : index
    %c0_170 = arith.constant 0 : index
    %139 = vector.load %arg9[%c0_169, %c0_170] : memref<64x4xf32, #tpu.memory_space<vmem>>, vector<64x4xf32>
    tpu.vector_store %arg9[%c0_169, %c0_170], %138 {strides = array<i32>} : memref<64x4xf32, #tpu.memory_space<vmem>>, vector<64x4xf32>,
    %c1_171 = arith.constant 1 : index
    %c1_172 = arith.constant 1 : index
    %c0_173 = arith.constant 0 : index
    %c0_174 = arith.constant 0 : index
    %140 = vector.load %arg1[%c1_171, %c1_172, %c0_173, %c0_174] : memref<4x9x9x4xf32, #tpu.memory_space<vmem>>, vector<1x8x8x4xf32>
    %141 = vector.shape_cast %140 : vector<1x8x8x4xf32> to vector<8x8x4xf32>
    %142 = vector.shape_cast %141 : vector<8x8x4xf32> to vector<64x4xf32>
    %c0_175 = arith.constant 0 : index
    %c0_176 = arith.constant 0 : index
    %143 = vector.load %arg9[%c0_175, %c0_176] : memref<64x4xf32, #tpu.memory_space<vmem>>, vector<64x4xf32>
    %c4_177 = arith.constant 4 : index
    %c0_178 = arith.constant 0 : index
    %c0_179 = arith.constant 0 : index
    %144 = vector.load %arg2[%c4_177, %c0_178, %c0_179] : memref<9x4x4xf32, #tpu.memory_space<vmem>>, vector<1x4x4xf32>
    %145 = vector.shape_cast %144 : vector<1x4x4xf32> to vector<4x4xf32>
    %cst_180 = arith.constant dense<0.000000e+00> : vector<64x4xf32>
    %146 = tpu.matmul %142, %145, %cst_180 {dimension_numbers = #tpu.dot_dimension_numbers<[1], [0], [0], [1], [0, 0, 1, 1], [], []>} : vector<64x4xf32>, vector<4x4xf32>, vector<64x4xf32> -> vector<64x4xf32>
    %147 = arith.addf %143, %146 : vector<64x4xf32>
    %c0_181 = arith.constant 0 : index
    %c0_182 = arith.constant 0 : index
    %148 = vector.load %arg9[%c0_181, %c0_182] : memref<64x4xf32, #tpu.memory_space<vmem>>, vector<64x4xf32>
    tpu.vector_store %arg9[%c0_181, %c0_182], %147 {strides = array<i32>} : memref<64x4xf32, #tpu.memory_space<vmem>>, vector<64x4xf32>,
    %c0_183 = arith.constant 0 : index
    %c1_184 = arith.constant 1 : index
    %c1_185 = arith.constant 1 : index
    %c0_186 = arith.constant 0 : index
    %149 = vector.load %arg1[%c0_183, %c1_184, %c1_185, %c0_186] : memref<4x9x9x4xf32, #tpu.memory_space<vmem>>, vector<1x8x8x4xf32>
    %150 = vector.shape_cast %149 : vector<1x8x8x4xf32> to vector<8x8x4xf32>
    %151 = vector.shape_cast %150 : vector<8x8x4xf32> to vector<64x4xf32>
    %c0_187 = arith.constant 0 : index
    %c0_188 = arith.constant 0 : index
    %152 = vector.load %arg9[%c0_187, %c0_188] : memref<64x4xf32, #tpu.memory_space<vmem>>, vector<64x4xf32>
    %c5_189 = arith.constant 5 : index
    %c0_190 = arith.constant 0 : index
    %c0_191 = arith.constant 0 : index
    %153 = vector.load %arg2[%c5_189, %c0_190, %c0_191] : memref<9x4x4xf32, #tpu.memory_space<vmem>>, vector<1x4x4xf32>
    %154 = vector.shape_cast %153 : vector<1x4x4xf32> to vector<4x4xf32>
    %cst_192 = arith.constant dense<0.000000e+00> : vector<64x4xf32>
    %155 = tpu.matmul %151, %154, %cst_192 {dimension_numbers = #tpu.dot_dimension_numbers<[1], [0], [0], [1], [0, 0, 1, 1], [], []>} : vector<64x4xf32>, vector<4x4xf32>, vector<64x4xf32> -> vector<64x4xf32>
    %156 = arith.addf %152, %155 : vector<64x4xf32>
    %c0_193 = arith.constant 0 : index
    %c0_194 = arith.constant 0 : index
    %157 = vector.load %arg9[%c0_193, %c0_194] : memref<64x4xf32, #tpu.memory_space<vmem>>, vector<64x4xf32>
    tpu.vector_store %arg9[%c0_193, %c0_194], %156 {strides = array<i32>} : memref<64x4xf32, #tpu.memory_space<vmem>>, vector<64x4xf32>,
    %c2_195 = arith.constant 2 : index
    %c1_196 = arith.constant 1 : index
    %c0_197 = arith.constant 0 : index
    %c0_198 = arith.constant 0 : index
    %158 = vector.load %arg1[%c2_195, %c1_196, %c0_197, %c0_198] : memref<4x9x9x4xf32, #tpu.memory_space<vmem>>, vector<1x8x8x4xf32>
    %159 = vector.shape_cast %158 : vector<1x8x8x4xf32> to vector<8x8x4xf32>
    %160 = vector.shape_cast %159 : vector<8x8x4xf32> to vector<64x4xf32>
    %c0_199 = arith.constant 0 : index
    %c0_200 = arith.constant 0 : index
    %161 = vector.load %arg9[%c0_199, %c0_200] : memref<64x4xf32, #tpu.memory_space<vmem>>, vector<64x4xf32>
    %c6_201 = arith.constant 6 : index
    %c0_202 = arith.constant 0 : index
    %c0_203 = arith.constant 0 : index
    %162 = vector.load %arg2[%c6_201, %c0_202, %c0_203] : memref<9x4x4xf32, #tpu.memory_space<vmem>>, vector<1x4x4xf32>
    %163 = vector.shape_cast %162 : vector<1x4x4xf32> to vector<4x4xf32>
    %cst_204 = arith.constant dense<0.000000e+00> : vector<64x4xf32>
    %164 = tpu.matmul %160, %163, %cst_204 {dimension_numbers = #tpu.dot_dimension_numbers<[1], [0], [0], [1], [0, 0, 1, 1], [], []>} : vector<64x4xf32>, vector<4x4xf32>, vector<64x4xf32> -> vector<64x4xf32>
    %165 = arith.addf %161, %164 : vector<64x4xf32>
    %c0_205 = arith.constant 0 : index
    %c0_206 = arith.constant 0 : index
    %166 = vector.load %arg9[%c0_205, %c0_206] : memref<64x4xf32, #tpu.memory_space<vmem>>, vector<64x4xf32>
    tpu.vector_store %arg9[%c0_205, %c0_206], %165 {strides = array<i32>} : memref<64x4xf32, #tpu.memory_space<vmem>>, vector<64x4xf32>,
    %c3_207 = arith.constant 3 : index
    %c1_208 = arith.constant 1 : index
    %c0_209 = arith.constant 0 : index
    %c0_210 = arith.constant 0 : index
    %167 = vector.load %arg1[%c3_207, %c1_208, %c0_209, %c0_210] : memref<4x9x9x4xf32, #tpu.memory_space<vmem>>, vector<1x8x8x4xf32>
    %168 = vector.shape_cast %167 : vector<1x8x8x4xf32> to vector<8x8x4xf32>
    %169 = vector.shape_cast %168 : vector<8x8x4xf32> to vector<64x4xf32>
    %c0_211 = arith.constant 0 : index
    %c0_212 = arith.constant 0 : index
    %170 = vector.load %arg9[%c0_211, %c0_212] : memref<64x4xf32, #tpu.memory_space<vmem>>, vector<64x4xf32>
    %c7_213 = arith.constant 7 : index
    %c0_214 = arith.constant 0 : index
    %c0_215 = arith.constant 0 : index
    %171 = vector.load %arg2[%c7_213, %c0_214, %c0_215] : memref<9x4x4xf32, #tpu.memory_space<vmem>>, vector<1x4x4xf32>
    %172 = vector.shape_cast %171 : vector<1x4x4xf32> to vector<4x4xf32>
    %cst_216 = arith.constant dense<0.000000e+00> : vector<64x4xf32>
    %173 = tpu.matmul %169, %172, %cst_216 {dimension_numbers = #tpu.dot_dimension_numbers<[1], [0], [0], [1], [0, 0, 1, 1], [], []>} : vector<64x4xf32>, vector<4x4xf32>, vector<64x4xf32> -> vector<64x4xf32>
    %174 = arith.addf %170, %173 : vector<64x4xf32>
    %c0_217 = arith.constant 0 : index
    %c0_218 = arith.constant 0 : index
    %175 = vector.load %arg9[%c0_217, %c0_218] : memref<64x4xf32, #tpu.memory_space<vmem>>, vector<64x4xf32>
    tpu.vector_store %arg9[%c0_217, %c0_218], %174 {strides = array<i32>} : memref<64x4xf32, #tpu.memory_space<vmem>>, vector<64x4xf32>,
    %c2_219 = arith.constant 2 : index
    %c1_220 = arith.constant 1 : index
    %c1_221 = arith.constant 1 : index
    %c0_222 = arith.constant 0 : index
    %176 = vector.load %arg1[%c2_219, %c1_220, %c1_221, %c0_222] : memref<4x9x9x4xf32, #tpu.memory_space<vmem>>, vector<1x8x8x4xf32>
    %177 = vector.shape_cast %176 : vector<1x8x8x4xf32> to vector<8x8x4xf32>
    %178 = vector.shape_cast %177 : vector<8x8x4xf32> to vector<64x4xf32>
    %c0_223 = arith.constant 0 : index
    %c0_224 = arith.constant 0 : index
    %179 = vector.load %arg9[%c0_223, %c0_224] : memref<64x4xf32, #tpu.memory_space<vmem>>, vector<64x4xf32>
    %c8_225 = arith.constant 8 : index
    %c0_226 = arith.constant 0 : index
    %c0_227 = arith.constant 0 : index
    %180 = vector.load %arg2[%c8_225, %c0_226, %c0_227] : memref<9x4x4xf32, #tpu.memory_space<vmem>>, vector<1x4x4xf32>
    %181 = vector.shape_cast %180 : vector<1x4x4xf32> to vector<4x4xf32>
    %cst_228 = arith.constant dense<0.000000e+00> : vector<64x4xf32>
    %182 = tpu.matmul %178, %181, %cst_228 {dimension_numbers = #tpu.dot_dimension_numbers<[1], [0], [0], [1], [0, 0, 1, 1], [], []>} : vector<64x4xf32>, vector<4x4xf32>, vector<64x4xf32> -> vector<64x4xf32>
    %183 = arith.addf %179, %182 : vector<64x4xf32>
    %c0_229 = arith.constant 0 : index
    %c0_230 = arith.constant 0 : index
    %184 = vector.load %arg9[%c0_229, %c0_230] : memref<64x4xf32, #tpu.memory_space<vmem>>, vector<64x4xf32>
    tpu.vector_store %arg9[%c0_229, %c0_230], %183 {strides = array<i32>} : memref<64x4xf32, #tpu.memory_space<vmem>>, vector<64x4xf32>,
    %c0_231 = arith.constant 0 : index
    %c0_232 = arith.constant 0 : index
    %185 = vector.load %arg9[%c0_231, %c0_232] : memref<64x4xf32, #tpu.memory_space<vmem>>, vector<64x4xf32>
    %c0_233 = arith.constant 0 : index
    %c0_234 = arith.constant 0 : index
    %186 = vector.load %arg3[%c0_233, %c0_234] : memref<1x4xf32, #tpu.memory_space<vmem>>, vector<1x4xf32>
    %187 = vector.broadcast %186 : vector<1x4xf32> to vector<64x4xf32>
    %188 = arith.addf %185, %187 : vector<64x4xf32>
    %cst_235 = arith.constant 0.000000e+00 : f32
    %189 = vector.broadcast %cst_235 : f32 to vector<64x4xf32>
    %190 = arith.cmpf ogt, %188, %189 : vector<64x4xf32>
    %cst_236 = arith.constant 2.000000e-01 : f32
    %191 = vector.broadcast %cst_236 : f32 to vector<64x4xf32>
    %192 = arith.mulf %191, %188 : vector<64x4xf32>
    %193 = arith.select %190, %188, %192 : vector<64x4xi1>, vector<64x4xf32>
    %cst_237 = arith.constant 1.41421354 : f32
    %194 = vector.broadcast %cst_237 : f32 to vector<64x4xf32>
    %195 = arith.mulf %193, %194 : vector<64x4xf32>
    %196 = vector.shape_cast %195 : vector<64x4xf32> to vector<8x8x4xf32>
    %c1_238 = arith.constant 1 : index
    %c1_239 = arith.constant 1 : index
    %c0_240 = arith.constant 0 : index
    %c0_241 = arith.constant 0 : index
    %197 = vector.load %arg8[%c1_238, %c1_239, %c0_240, %c0_241] : memref<4x9x9x4xf32, #tpu.memory_space<vmem>>, vector<1x8x8x4xf32>
    %198 = vector.shape_cast %197 : vector<1x8x8x4xf32> to vector<8x8x4xf32>
    %199 = vector.shape_cast %196 : vector<8x8x4xf32> to vector<1x8x8x4xf32>
    tpu.vector_store %arg8[%c1_238, %c1_239, %c0_240, %c0_241], %199 {strides = array<i32>} : memref<4x9x9x4xf32, #tpu.memory_space<vmem>>, vector<1x8x8x4xf32>,
    %cst_242 = arith.constant 0.000000e+00 : f32
    %200 = vector.broadcast %cst_242 : f32 to vector<64x4xf32>
    %c0_243 = arith.constant 0 : index
    %c0_244 = arith.constant 0 : index
    %201 = vector.load %arg9[%c0_243, %c0_244] : memref<64x4xf32, #tpu.memory_space<vmem>>, vector<64x4xf32>
    tpu.vector_store %arg9[%c0_243, %c0_244], %200 {strides = array<i32>} : memref<64x4xf32, #tpu.memory_space<vmem>>, vector<64x4xf32>,
    %c1_245 = arith.constant 1 : index
    %c0_246 = arith.constant 0 : index
    %c0_247 = arith.constant 0 : index
    %c0_248 = arith.constant 0 : index
    %202 = vector.load %arg1[%c1_245, %c0_246, %c0_247, %c0_248] : memref<4x9x9x4xf32, #tpu.memory_space<vmem>>, vector<1x8x8x4xf32>
    %203 = vector.shape_cast %202 : vector<1x8x8x4xf32> to vector<8x8x4xf32>
    %204 = vector.shape_cast %203 : vector<8x8x4xf32> to vector<64x4xf32>
    %c0_249 = arith.constant 0 : index
    %c0_250 = arith.constant 0 : index
    %205 = vector.load %arg9[%c0_249, %c0_250] : memref<64x4xf32, #tpu.memory_space<vmem>>, vector<64x4xf32>
    %c0_251 = arith.constant 0 : index
    %c0_252 = arith.constant 0 : index
    %c0_253 = arith.constant 0 : index
    %206 = vector.load %arg2[%c0_251, %c0_252, %c0_253] : memref<9x4x4xf32, #tpu.memory_space<vmem>>, vector<1x4x4xf32>
    %207 = vector.shape_cast %206 : vector<1x4x4xf32> to vector<4x4xf32>
    %cst_254 = arith.constant dense<0.000000e+00> : vector<64x4xf32>
    %208 = tpu.matmul %204, %207, %cst_254 {dimension_numbers = #tpu.dot_dimension_numbers<[1], [0], [0], [1], [0, 0, 1, 1], [], []>} : vector<64x4xf32>, vector<4x4xf32>, vector<64x4xf32> -> vector<64x4xf32>
    %209 = arith.addf %205, %208 : vector<64x4xf32>
    %c0_255 = arith.constant 0 : index
    %c0_256 = arith.constant 0 : index
    %210 = vector.load %arg9[%c0_255, %c0_256] : memref<64x4xf32, #tpu.memory_space<vmem>>, vector<64x4xf32>
    tpu.vector_store %arg9[%c0_255, %c0_256], %209 {strides = array<i32>} : memref<64x4xf32, #tpu.memory_space<vmem>>, vector<64x4xf32>,
    %c0_257 = arith.constant 0 : index
    %c0_258 = arith.constant 0 : index
    %c1_259 = arith.constant 1 : index
    %c0_260 = arith.constant 0 : index
    %211 = vector.load %arg1[%c0_257, %c0_258, %c1_259, %c0_260] : memref<4x9x9x4xf32, #tpu.memory_space<vmem>>, vector<1x8x8x4xf32>
    %212 = vector.shape_cast %211 : vector<1x8x8x4xf32> to vector<8x8x4xf32>
    %213 = vector.shape_cast %212 : vector<8x8x4xf32> to vector<64x4xf32>
    %c0_261 = arith.constant 0 : index
    %c0_262 = arith.constant 0 : index
    %214 = vector.load %arg9[%c0_261, %c0_262] : memref<64x4xf32, #tpu.memory_space<vmem>>, vector<64x4xf32>
    %c1_263 = arith.constant 1 : index
    %c0_264 = arith.constant 0 : index
    %c0_265 = arith.constant 0 : index
    %215 = vector.load %arg2[%c1_263, %c0_264, %c0_265] : memref<9x4x4xf32, #tpu.memory_space<vmem>>, vector<1x4x4xf32>
    %216 = vector.shape_cast %215 : vector<1x4x4xf32> to vector<4x4xf32>
    %cst_266 = arith.constant dense<0.000000e+00> : vector<64x4xf32>
    %217 = tpu.matmul %213, %216, %cst_266 {dimension_numbers = #tpu.dot_dimension_numbers<[1], [0], [0], [1], [0, 0, 1, 1], [], []>} : vector<64x4xf32>, vector<4x4xf32>, vector<64x4xf32> -> vector<64x4xf32>
    %218 = arith.addf %214, %217 : vector<64x4xf32>
    %c0_267 = arith.constant 0 : index
    %c0_268 = arith.constant 0 : index
    %219 = vector.load %arg9[%c0_267, %c0_268] : memref<64x4xf32, #tpu.memory_space<vmem>>, vector<64x4xf32>
    tpu.vector_store %arg9[%c0_267, %c0_268], %218 {strides = array<i32>} : memref<64x4xf32, #tpu.memory_space<vmem>>, vector<64x4xf32>,
    %c1_269 = arith.constant 1 : index
    %c0_270 = arith.constant 0 : index
    %c1_271 = arith.constant 1 : index
    %c0_272 = arith.constant 0 : index
    %220 = vector.load %arg1[%c1_269, %c0_270, %c1_271, %c0_272] : memref<4x9x9x4xf32, #tpu.memory_space<vmem>>, vector<1x8x8x4xf32>
    %221 = vector.shape_cast %220 : vector<1x8x8x4xf32> to vector<8x8x4xf32>
    %222 = vector.shape_cast %221 : vector<8x8x4xf32> to vector<64x4xf32>
    %c0_273 = arith.constant 0 : index
    %c0_274 = arith.constant 0 : index
    %223 = vector.load %arg9[%c0_273, %c0_274] : memref<64x4xf32, #tpu.memory_space<vmem>>, vector<64x4xf32>
    %c2_275 = arith.constant 2 : index
    %c0_276 = arith.constant 0 : index
    %c0_277 = arith.constant 0 : index
    %224 = vector.load %arg2[%c2_275, %c0_276, %c0_277] : memref<9x4x4xf32, #tpu.memory_space<vmem>>, vector<1x4x4xf32>
    %225 = vector.shape_cast %224 : vector<1x4x4xf32> to vector<4x4xf32>
    %cst_278 = arith.constant dense<0.000000e+00> : vector<64x4xf32>
    %226 = tpu.matmul %222, %225, %cst_278 {dimension_numbers = #tpu.dot_dimension_numbers<[1], [0], [0], [1], [0, 0, 1, 1], [], []>} : vector<64x4xf32>, vector<4x4xf32>, vector<64x4xf32> -> vector<64x4xf32>
    %227 = arith.addf %223, %226 : vector<64x4xf32>
    %c0_279 = arith.constant 0 : index
    %c0_280 = arith.constant 0 : index
    %228 = vector.load %arg9[%c0_279, %c0_280] : memref<64x4xf32, #tpu.memory_space<vmem>>, vector<64x4xf32>
    tpu.vector_store %arg9[%c0_279, %c0_280], %227 {strides = array<i32>} : memref<64x4xf32, #tpu.memory_space<vmem>>, vector<64x4xf32>,
    %c3_281 = arith.constant 3 : index
    %c0_282 = arith.constant 0 : index
    %c0_283 = arith.constant 0 : index
    %c0_284 = arith.constant 0 : index
    %229 = vector.load %arg1[%c3_281, %c0_282, %c0_283, %c0_284] : memref<4x9x9x4xf32, #tpu.memory_space<vmem>>, vector<1x8x8x4xf32>
    %230 = vector.shape_cast %229 : vector<1x8x8x4xf32> to vector<8x8x4xf32>
    %231 = vector.shape_cast %230 : vector<8x8x4xf32> to vector<64x4xf32>
    %c0_285 = arith.constant 0 : index
    %c0_286 = arith.constant 0 : index
    %232 = vector.load %arg9[%c0_285, %c0_286] : memref<64x4xf32, #tpu.memory_space<vmem>>, vector<64x4xf32>
    %c3_287 = arith.constant 3 : index
    %c0_288 = arith.constant 0 : index
    %c0_289 = arith.constant 0 : index
    %233 = vector.load %arg2[%c3_287, %c0_288, %c0_289] : memref<9x4x4xf32, #tpu.memory_space<vmem>>, vector<1x4x4xf32>
    %234 = vector.shape_cast %233 : vector<1x4x4xf32> to vector<4x4xf32>
    %cst_290 = arith.constant dense<0.000000e+00> : vector<64x4xf32>
    %235 = tpu.matmul %231, %234, %cst_290 {dimension_numbers = #tpu.dot_dimension_numbers<[1], [0], [0], [1], [0, 0, 1, 1], [], []>} : vector<64x4xf32>, vector<4x4xf32>, vector<64x4xf32> -> vector<64x4xf32>
    %236 = arith.addf %232, %235 : vector<64x4xf32>
    %c0_291 = arith.constant 0 : index
    %c0_292 = arith.constant 0 : index
    %237 = vector.load %arg9[%c0_291, %c0_292] : memref<64x4xf32, #tpu.memory_space<vmem>>, vector<64x4xf32>
    tpu.vector_store %arg9[%c0_291, %c0_292], %236 {strides = array<i32>} : memref<64x4xf32, #tpu.memory_space<vmem>>, vector<64x4xf32>,
    %c2_293 = arith.constant 2 : index
    %c0_294 = arith.constant 0 : index
    %c1_295 = arith.constant 1 : index
    %c0_296 = arith.constant 0 : index
    %238 = vector.load %arg1[%c2_293, %c0_294, %c1_295, %c0_296] : memref<4x9x9x4xf32, #tpu.memory_space<vmem>>, vector<1x8x8x4xf32>
    %239 = vector.shape_cast %238 : vector<1x8x8x4xf32> to vector<8x8x4xf32>
    %240 = vector.shape_cast %239 : vector<8x8x4xf32> to vector<64x4xf32>
    %c0_297 = arith.constant 0 : index
    %c0_298 = arith.constant 0 : index
    %241 = vector.load %arg9[%c0_297, %c0_298] : memref<64x4xf32, #tpu.memory_space<vmem>>, vector<64x4xf32>
    %c4_299 = arith.constant 4 : index
    %c0_300 = arith.constant 0 : index
    %c0_301 = arith.constant 0 : index
    %242 = vector.load %arg2[%c4_299, %c0_300, %c0_301] : memref<9x4x4xf32, #tpu.memory_space<vmem>>, vector<1x4x4xf32>
    %243 = vector.shape_cast %242 : vector<1x4x4xf32> to vector<4x4xf32>
    %cst_302 = arith.constant dense<0.000000e+00> : vector<64x4xf32>
    %244 = tpu.matmul %240, %243, %cst_302 {dimension_numbers = #tpu.dot_dimension_numbers<[1], [0], [0], [1], [0, 0, 1, 1], [], []>} : vector<64x4xf32>, vector<4x4xf32>, vector<64x4xf32> -> vector<64x4xf32>
    %245 = arith.addf %241, %244 : vector<64x4xf32>
    %c0_303 = arith.constant 0 : index
    %c0_304 = arith.constant 0 : index
    %246 = vector.load %arg9[%c0_303, %c0_304] : memref<64x4xf32, #tpu.memory_space<vmem>>, vector<64x4xf32>
    tpu.vector_store %arg9[%c0_303, %c0_304], %245 {strides = array<i32>} : memref<64x4xf32, #tpu.memory_space<vmem>>, vector<64x4xf32>,
    %c3_305 = arith.constant 3 : index
    %c0_306 = arith.constant 0 : index
    %c1_307 = arith.constant 1 : index
    %c0_308 = arith.constant 0 : index
    %247 = vector.load %arg1[%c3_305, %c0_306, %c1_307, %c0_308] : memref<4x9x9x4xf32, #tpu.memory_space<vmem>>, vector<1x8x8x4xf32>
    %248 = vector.shape_cast %247 : vector<1x8x8x4xf32> to vector<8x8x4xf32>
    %249 = vector.shape_cast %248 : vector<8x8x4xf32> to vector<64x4xf32>
    %c0_309 = arith.constant 0 : index
    %c0_310 = arith.constant 0 : index
    %250 = vector.load %arg9[%c0_309, %c0_310] : memref<64x4xf32, #tpu.memory_space<vmem>>, vector<64x4xf32>
    %c5_311 = arith.constant 5 : index
    %c0_312 = arith.constant 0 : index
    %c0_313 = arith.constant 0 : index
    %251 = vector.load %arg2[%c5_311, %c0_312, %c0_313] : memref<9x4x4xf32, #tpu.memory_space<vmem>>, vector<1x4x4xf32>
    %252 = vector.shape_cast %251 : vector<1x4x4xf32> to vector<4x4xf32>
    %cst_314 = arith.constant dense<0.000000e+00> : vector<64x4xf32>
    %253 = tpu.matmul %249, %252, %cst_314 {dimension_numbers = #tpu.dot_dimension_numbers<[1], [0], [0], [1], [0, 0, 1, 1], [], []>} : vector<64x4xf32>, vector<4x4xf32>, vector<64x4xf32> -> vector<64x4xf32>
    %254 = arith.addf %250, %253 : vector<64x4xf32>
    %c0_315 = arith.constant 0 : index
    %c0_316 = arith.constant 0 : index
    %255 = vector.load %arg9[%c0_315, %c0_316] : memref<64x4xf32, #tpu.memory_space<vmem>>, vector<64x4xf32>
    tpu.vector_store %arg9[%c0_315, %c0_316], %254 {strides = array<i32>} : memref<64x4xf32, #tpu.memory_space<vmem>>, vector<64x4xf32>,
    %c1_317 = arith.constant 1 : index
    %c1_318 = arith.constant 1 : index
    %c0_319 = arith.constant 0 : index
    %c0_320 = arith.constant 0 : index
    %256 = vector.load %arg1[%c1_317, %c1_318, %c0_319, %c0_320] : memref<4x9x9x4xf32, #tpu.memory_space<vmem>>, vector<1x8x8x4xf32>
    %257 = vector.shape_cast %256 : vector<1x8x8x4xf32> to vector<8x8x4xf32>
    %258 = vector.shape_cast %257 : vector<8x8x4xf32> to vector<64x4xf32>
    %c0_321 = arith.constant 0 : index
    %c0_322 = arith.constant 0 : index
    %259 = vector.load %arg9[%c0_321, %c0_322] : memref<64x4xf32, #tpu.memory_space<vmem>>, vector<64x4xf32>
    %c6_323 = arith.constant 6 : index
    %c0_324 = arith.constant 0 : index
    %c0_325 = arith.constant 0 : index
    %260 = vector.load %arg2[%c6_323, %c0_324, %c0_325] : memref<9x4x4xf32, #tpu.memory_space<vmem>>, vector<1x4x4xf32>
    %261 = vector.shape_cast %260 : vector<1x4x4xf32> to vector<4x4xf32>
    %cst_326 = arith.constant dense<0.000000e+00> : vector<64x4xf32>
    %262 = tpu.matmul %258, %261, %cst_326 {dimension_numbers = #tpu.dot_dimension_numbers<[1], [0], [0], [1], [0, 0, 1, 1], [], []>} : vector<64x4xf32>, vector<4x4xf32>, vector<64x4xf32> -> vector<64x4xf32>
    %263 = arith.addf %259, %262 : vector<64x4xf32>
    %c0_327 = arith.constant 0 : index
    %c0_328 = arith.constant 0 : index
    %264 = vector.load %arg9[%c0_327, %c0_328] : memref<64x4xf32, #tpu.memory_space<vmem>>, vector<64x4xf32>
    tpu.vector_store %arg9[%c0_327, %c0_328], %263 {strides = array<i32>} : memref<64x4xf32, #tpu.memory_space<vmem>>, vector<64x4xf32>,
    %c0_329 = arith.constant 0 : index
    %c1_330 = arith.constant 1 : index
    %c1_331 = arith.constant 1 : index
    %c0_332 = arith.constant 0 : index
    %265 = vector.load %arg1[%c0_329, %c1_330, %c1_331, %c0_332] : memref<4x9x9x4xf32, #tpu.memory_space<vmem>>, vector<1x8x8x4xf32>
    %266 = vector.shape_cast %265 : vector<1x8x8x4xf32> to vector<8x8x4xf32>
    %267 = vector.shape_cast %266 : vector<8x8x4xf32> to vector<64x4xf32>
    %c0_333 = arith.constant 0 : index
    %c0_334 = arith.constant 0 : index
    %268 = vector.load %arg9[%c0_333, %c0_334] : memref<64x4xf32, #tpu.memory_space<vmem>>, vector<64x4xf32>
    %c7_335 = arith.constant 7 : index
    %c0_336 = arith.constant 0 : index
    %c0_337 = arith.constant 0 : index
    %269 = vector.load %arg2[%c7_335, %c0_336, %c0_337] : memref<9x4x4xf32, #tpu.memory_space<vmem>>, vector<1x4x4xf32>
    %270 = vector.shape_cast %269 : vector<1x4x4xf32> to vector<4x4xf32>
    %cst_338 = arith.constant dense<0.000000e+00> : vector<64x4xf32>
    %271 = tpu.matmul %267, %270, %cst_338 {dimension_numbers = #tpu.dot_dimension_numbers<[1], [0], [0], [1], [0, 0, 1, 1], [], []>} : vector<64x4xf32>, vector<4x4xf32>, vector<64x4xf32> -> vector<64x4xf32>
    %272 = arith.addf %268, %271 : vector<64x4xf32>
    %c0_339 = arith.constant 0 : index
    %c0_340 = arith.constant 0 : index
    %273 = vector.load %arg9[%c0_339, %c0_340] : memref<64x4xf32, #tpu.memory_space<vmem>>, vector<64x4xf32>
    tpu.vector_store %arg9[%c0_339, %c0_340], %272 {strides = array<i32>} : memref<64x4xf32, #tpu.memory_space<vmem>>, vector<64x4xf32>,
    %c1_341 = arith.constant 1 : index
    %c1_342 = arith.constant 1 : index
    %c1_343 = arith.constant 1 : index
    %c0_344 = arith.constant 0 : index
    %274 = vector.load %arg1[%c1_341, %c1_342, %c1_343, %c0_344] : memref<4x9x9x4xf32, #tpu.memory_space<vmem>>, vector<1x8x8x4xf32>
    %275 = vector.shape_cast %274 : vector<1x8x8x4xf32> to vector<8x8x4xf32>
    %276 = vector.shape_cast %275 : vector<8x8x4xf32> to vector<64x4xf32>
    %c0_345 = arith.constant 0 : index
    %c0_346 = arith.constant 0 : index
    %277 = vector.load %arg9[%c0_345, %c0_346] : memref<64x4xf32, #tpu.memory_space<vmem>>, vector<64x4xf32>
    %c8_347 = arith.constant 8 : index
    %c0_348 = arith.constant 0 : index
    %c0_349 = arith.constant 0 : index
    %278 = vector.load %arg2[%c8_347, %c0_348, %c0_349] : memref<9x4x4xf32, #tpu.memory_space<vmem>>, vector<1x4x4xf32>
    %279 = vector.shape_cast %278 : vector<1x4x4xf32> to vector<4x4xf32>
    %cst_350 = arith.constant dense<0.000000e+00> : vector<64x4xf32>
    %280 = tpu.matmul %276, %279, %cst_350 {dimension_numbers = #tpu.dot_dimension_numbers<[1], [0], [0], [1], [0, 0, 1, 1], [], []>} : vector<64x4xf32>, vector<4x4xf32>, vector<64x4xf32> -> vector<64x4xf32>
    %281 = arith.addf %277, %280 : vector<64x4xf32>
    %c0_351 = arith.constant 0 : index
    %c0_352 = arith.constant 0 : index
    %282 = vector.load %arg9[%c0_351, %c0_352] : memref<64x4xf32, #tpu.memory_space<vmem>>, vector<64x4xf32>
    tpu.vector_store %arg9[%c0_351, %c0_352], %281 {strides = array<i32>} : memref<64x4xf32, #tpu.memory_space<vmem>>, vector<64x4xf32>,
    %c0_353 = arith.constant 0 : index
    %c0_354 = arith.constant 0 : index
    %283 = vector.load %arg9[%c0_353, %c0_354] : memref<64x4xf32, #tpu.memory_space<vmem>>, vector<64x4xf32>
    %c0_355 = arith.constant 0 : index
    %c0_356 = arith.constant 0 : index
    %284 = vector.load %arg3[%c0_355, %c0_356] : memref<1x4xf32, #tpu.memory_space<vmem>>, vector<1x4xf32>
    %285 = vector.broadcast %284 : vector<1x4xf32> to vector<64x4xf32>
    %286 = arith.addf %283, %285 : vector<64x4xf32>
    %cst_357 = arith.constant 0.000000e+00 : f32
    %287 = vector.broadcast %cst_357 : f32 to vector<64x4xf32>
    %288 = arith.cmpf ogt, %286, %287 : vector<64x4xf32>
    %cst_358 = arith.constant 2.000000e-01 : f32
    %289 = vector.broadcast %cst_358 : f32 to vector<64x4xf32>
    %290 = arith.mulf %289, %286 : vector<64x4xf32>
    %291 = arith.select %288, %286, %290 : vector<64x4xi1>, vector<64x4xf32>
    %cst_359 = arith.constant 1.41421354 : f32
    %292 = vector.broadcast %cst_359 : f32 to vector<64x4xf32>
    %293 = arith.mulf %291, %292 : vector<64x4xf32>
    %294 = vector.shape_cast %293 : vector<64x4xf32> to vector<8x8x4xf32>
    %c2_360 = arith.constant 2 : index
    %c0_361 = arith.constant 0 : index
    %c1_362 = arith.constant 1 : index
    %c0_363 = arith.constant 0 : index
    %295 = vector.load %arg8[%c2_360, %c0_361, %c1_362, %c0_363] : memref<4x9x9x4xf32, #tpu.memory_space<vmem>>, vector<1x8x8x4xf32>
    %296 = vector.shape_cast %295 : vector<1x8x8x4xf32> to vector<8x8x4xf32>
    %297 = vector.shape_cast %294 : vector<8x8x4xf32> to vector<1x8x8x4xf32>
    tpu.vector_store %arg8[%c2_360, %c0_361, %c1_362, %c0_363], %297 {strides = array<i32>} : memref<4x9x9x4xf32, #tpu.memory_space<vmem>>, vector<1x8x8x4xf32>,
    %cst_364 = arith.constant 0.000000e+00 : f32
    %298 = vector.broadcast %cst_364 : f32 to vector<64x4xf32>
    %c0_365 = arith.constant 0 : index
    %c0_366 = arith.constant 0 : index
    %299 = vector.load %arg9[%c0_365, %c0_366] : memref<64x4xf32, #tpu.memory_space<vmem>>, vector<64x4xf32>
    tpu.vector_store %arg9[%c0_365, %c0_366], %298 {strides = array<i32>} : memref<64x4xf32, #tpu.memory_space<vmem>>, vector<64x4xf32>,
    %c0_367 = arith.constant 0 : index
    %c0_368 = arith.constant 0 : index
    %c0_369 = arith.constant 0 : index
    %c0_370 = arith.constant 0 : index
    %300 = vector.load %arg1[%c0_367, %c0_368, %c0_369, %c0_370] : memref<4x9x9x4xf32, #tpu.memory_space<vmem>>, vector<1x8x8x4xf32>
    %301 = vector.shape_cast %300 : vector<1x8x8x4xf32> to vector<8x8x4xf32>
    %302 = vector.shape_cast %301 : vector<8x8x4xf32> to vector<64x4xf32>
    %c0_371 = arith.constant 0 : index
    %c0_372 = arith.constant 0 : index
    %303 = vector.load %arg9[%c0_371, %c0_372] : memref<64x4xf32, #tpu.memory_space<vmem>>, vector<64x4xf32>
    %c0_373 = arith.constant 0 : index
    %c0_374 = arith.constant 0 : index
    %c0_375 = arith.constant 0 : index
    %304 = vector.load %arg2[%c0_373, %c0_374, %c0_375] : memref<9x4x4xf32, #tpu.memory_space<vmem>>, vector<1x4x4xf32>
    %305 = vector.shape_cast %304 : vector<1x4x4xf32> to vector<4x4xf32>
    %cst_376 = arith.constant dense<0.000000e+00> : vector<64x4xf32>
    %306 = tpu.matmul %302, %305, %cst_376 {dimension_numbers = #tpu.dot_dimension_numbers<[1], [0], [0], [1], [0, 0, 1, 1], [], []>} : vector<64x4xf32>, vector<4x4xf32>, vector<64x4xf32> -> vector<64x4xf32>
    %307 = arith.addf %303, %306 : vector<64x4xf32>
    %c0_377 = arith.constant 0 : index
    %c0_378 = arith.constant 0 : index
    %308 = vector.load %arg9[%c0_377, %c0_378] : memref<64x4xf32, #tpu.memory_space<vmem>>, vector<64x4xf32>
    tpu.vector_store %arg9[%c0_377, %c0_378], %307 {strides = array<i32>} : memref<64x4xf32, #tpu.memory_space<vmem>>, vector<64x4xf32>,
    %c1_379 = arith.constant 1 : index
    %c0_380 = arith.constant 0 : index
    %c0_381 = arith.constant 0 : index
    %c0_382 = arith.constant 0 : index
    %309 = vector.load %arg1[%c1_379, %c0_380, %c0_381, %c0_382] : memref<4x9x9x4xf32, #tpu.memory_space<vmem>>, vector<1x8x8x4xf32>
    %310 = vector.shape_cast %309 : vector<1x8x8x4xf32> to vector<8x8x4xf32>
    %311 = vector.shape_cast %310 : vector<8x8x4xf32> to vector<64x4xf32>
    %c0_383 = arith.constant 0 : index
    %c0_384 = arith.constant 0 : index
    %312 = vector.load %arg9[%c0_383, %c0_384] : memref<64x4xf32, #tpu.memory_space<vmem>>, vector<64x4xf32>
    %c1_385 = arith.constant 1 : index
    %c0_386 = arith.constant 0 : index
    %c0_387 = arith.constant 0 : index
    %313 = vector.load %arg2[%c1_385, %c0_386, %c0_387] : memref<9x4x4xf32, #tpu.memory_space<vmem>>, vector<1x4x4xf32>
    %314 = vector.shape_cast %313 : vector<1x4x4xf32> to vector<4x4xf32>
    %cst_388 = arith.constant dense<0.000000e+00> : vector<64x4xf32>
    %315 = tpu.matmul %311, %314, %cst_388 {dimension_numbers = #tpu.dot_dimension_numbers<[1], [0], [0], [1], [0, 0, 1, 1], [], []>} : vector<64x4xf32>, vector<4x4xf32>, vector<64x4xf32> -> vector<64x4xf32>
    %316 = arith.addf %312, %315 : vector<64x4xf32>
    %c0_389 = arith.constant 0 : index
    %c0_390 = arith.constant 0 : index
    %317 = vector.load %arg9[%c0_389, %c0_390] : memref<64x4xf32, #tpu.memory_space<vmem>>, vector<64x4xf32>
    tpu.vector_store %arg9[%c0_389, %c0_390], %316 {strides = array<i32>} : memref<64x4xf32, #tpu.memory_space<vmem>>, vector<64x4xf32>,
    %c0_391 = arith.constant 0 : index
    %c0_392 = arith.constant 0 : index
    %c1_393 = arith.constant 1 : index
    %c0_394 = arith.constant 0 : index
    %318 = vector.load %arg1[%c0_391, %c0_392, %c1_393, %c0_394] : memref<4x9x9x4xf32, #tpu.memory_space<vmem>>, vector<1x8x8x4xf32>
    %319 = vector.shape_cast %318 : vector<1x8x8x4xf32> to vector<8x8x4xf32>
    %320 = vector.shape_cast %319 : vector<8x8x4xf32> to vector<64x4xf32>
    %c0_395 = arith.constant 0 : index
    %c0_396 = arith.constant 0 : index
    %321 = vector.load %arg9[%c0_395, %c0_396] : memref<64x4xf32, #tpu.memory_space<vmem>>, vector<64x4xf32>
    %c2_397 = arith.constant 2 : index
    %c0_398 = arith.constant 0 : index
    %c0_399 = arith.constant 0 : index
    %322 = vector.load %arg2[%c2_397, %c0_398, %c0_399] : memref<9x4x4xf32, #tpu.memory_space<vmem>>, vector<1x4x4xf32>
    %323 = vector.shape_cast %322 : vector<1x4x4xf32> to vector<4x4xf32>
    %cst_400 = arith.constant dense<0.000000e+00> : vector<64x4xf32>
    %324 = tpu.matmul %320, %323, %cst_400 {dimension_numbers = #tpu.dot_dimension_numbers<[1], [0], [0], [1], [0, 0, 1, 1], [], []>} : vector<64x4xf32>, vector<4x4xf32>, vector<64x4xf32> -> vector<64x4xf32>
    %325 = arith.addf %321, %324 : vector<64x4xf32>
    %c0_401 = arith.constant 0 : index
    %c0_402 = arith.constant 0 : index
    %326 = vector.load %arg9[%c0_401, %c0_402] : memref<64x4xf32, #tpu.memory_space<vmem>>, vector<64x4xf32>
    tpu.vector_store %arg9[%c0_401, %c0_402], %325 {strides = array<i32>} : memref<64x4xf32, #tpu.memory_space<vmem>>, vector<64x4xf32>,
    %c2_403 = arith.constant 2 : index
    %c0_404 = arith.constant 0 : index
    %c0_405 = arith.constant 0 : index
    %c0_406 = arith.constant 0 : index
    %327 = vector.load %arg1[%c2_403, %c0_404, %c0_405, %c0_406] : memref<4x9x9x4xf32, #tpu.memory_space<vmem>>, vector<1x8x8x4xf32>
    %328 = vector.shape_cast %327 : vector<1x8x8x4xf32> to vector<8x8x4xf32>
    %329 = vector.shape_cast %328 : vector<8x8x4xf32> to vector<64x4xf32>
    %c0_407 = arith.constant 0 : index
    %c0_408 = arith.constant 0 : index
    %330 = vector.load %arg9[%c0_407, %c0_408] : memref<64x4xf32, #tpu.memory_space<vmem>>, vector<64x4xf32>
    %c3_409 = arith.constant 3 : index
    %c0_410 = arith.constant 0 : index
    %c0_411 = arith.constant 0 : index
    %331 = vector.load %arg2[%c3_409, %c0_410, %c0_411] : memref<9x4x4xf32, #tpu.memory_space<vmem>>, vector<1x4x4xf32>
    %332 = vector.shape_cast %331 : vector<1x4x4xf32> to vector<4x4xf32>
    %cst_412 = arith.constant dense<0.000000e+00> : vector<64x4xf32>
    %333 = tpu.matmul %329, %332, %cst_412 {dimension_numbers = #tpu.dot_dimension_numbers<[1], [0], [0], [1], [0, 0, 1, 1], [], []>} : vector<64x4xf32>, vector<4x4xf32>, vector<64x4xf32> -> vector<64x4xf32>
    %334 = arith.addf %330, %333 : vector<64x4xf32>
    %c0_413 = arith.constant 0 : index
    %c0_414 = arith.constant 0 : index
    %335 = vector.load %arg9[%c0_413, %c0_414] : memref<64x4xf32, #tpu.memory_space<vmem>>, vector<64x4xf32>
    tpu.vector_store %arg9[%c0_413, %c0_414], %334 {strides = array<i32>} : memref<64x4xf32, #tpu.memory_space<vmem>>, vector<64x4xf32>,
    %c3_415 = arith.constant 3 : index
    %c0_416 = arith.constant 0 : index
    %c0_417 = arith.constant 0 : index
    %c0_418 = arith.constant 0 : index
    %336 = vector.load %arg1[%c3_415, %c0_416, %c0_417, %c0_418] : memref<4x9x9x4xf32, #tpu.memory_space<vmem>>, vector<1x8x8x4xf32>
    %337 = vector.shape_cast %336 : vector<1x8x8x4xf32> to vector<8x8x4xf32>
    %338 = vector.shape_cast %337 : vector<8x8x4xf32> to vector<64x4xf32>
    %c0_419 = arith.constant 0 : index
    %c0_420 = arith.constant 0 : index
    %339 = vector.load %arg9[%c0_419, %c0_420] : memref<64x4xf32, #tpu.memory_space<vmem>>, vector<64x4xf32>
    %c4_421 = arith.constant 4 : index
    %c0_422 = arith.constant 0 : index
    %c0_423 = arith.constant 0 : index
    %340 = vector.load %arg2[%c4_421, %c0_422, %c0_423] : memref<9x4x4xf32, #tpu.memory_space<vmem>>, vector<1x4x4xf32>
    %341 = vector.shape_cast %340 : vector<1x4x4xf32> to vector<4x4xf32>
    %cst_424 = arith.constant dense<0.000000e+00> : vector<64x4xf32>
    %342 = tpu.matmul %338, %341, %cst_424 {dimension_numbers = #tpu.dot_dimension_numbers<[1], [0], [0], [1], [0, 0, 1, 1], [], []>} : vector<64x4xf32>, vector<4x4xf32>, vector<64x4xf32> -> vector<64x4xf32>
    %343 = arith.addf %339, %342 : vector<64x4xf32>
    %c0_425 = arith.constant 0 : index
    %c0_426 = arith.constant 0 : index
    %344 = vector.load %arg9[%c0_425, %c0_426] : memref<64x4xf32, #tpu.memory_space<vmem>>, vector<64x4xf32>
    tpu.vector_store %arg9[%c0_425, %c0_426], %343 {strides = array<i32>} : memref<64x4xf32, #tpu.memory_space<vmem>>, vector<64x4xf32>,
    %c2_427 = arith.constant 2 : index
    %c0_428 = arith.constant 0 : index
    %c1_429 = arith.constant 1 : index
    %c0_430 = arith.constant 0 : index
    %345 = vector.load %arg1[%c2_427, %c0_428, %c1_429, %c0_430] : memref<4x9x9x4xf32, #tpu.memory_space<vmem>>, vector<1x8x8x4xf32>
    %346 = vector.shape_cast %345 : vector<1x8x8x4xf32> to vector<8x8x4xf32>
    %347 = vector.shape_cast %346 : vector<8x8x4xf32> to vector<64x4xf32>
    %c0_431 = arith.constant 0 : index
    %c0_432 = arith.constant 0 : index
    %348 = vector.load %arg9[%c0_431, %c0_432] : memref<64x4xf32, #tpu.memory_space<vmem>>, vector<64x4xf32>
    %c5_433 = arith.constant 5 : index
    %c0_434 = arith.constant 0 : index
    %c0_435 = arith.constant 0 : index
    %349 = vector.load %arg2[%c5_433, %c0_434, %c0_435] : memref<9x4x4xf32, #tpu.memory_space<vmem>>, vector<1x4x4xf32>
    %350 = vector.shape_cast %349 : vector<1x4x4xf32> to vector<4x4xf32>
    %cst_436 = arith.constant dense<0.000000e+00> : vector<64x4xf32>
    %351 = tpu.matmul %347, %350, %cst_436 {dimension_numbers = #tpu.dot_dimension_numbers<[1], [0], [0], [1], [0, 0, 1, 1], [], []>} : vector<64x4xf32>, vector<4x4xf32>, vector<64x4xf32> -> vector<64x4xf32>
    %352 = arith.addf %348, %351 : vector<64x4xf32>
    %c0_437 = arith.constant 0 : index
    %c0_438 = arith.constant 0 : index
    %353 = vector.load %arg9[%c0_437, %c0_438] : memref<64x4xf32, #tpu.memory_space<vmem>>, vector<64x4xf32>
    tpu.vector_store %arg9[%c0_437, %c0_438], %352 {strides = array<i32>} : memref<64x4xf32, #tpu.memory_space<vmem>>, vector<64x4xf32>,
    %c0_439 = arith.constant 0 : index
    %c1_440 = arith.constant 1 : index
    %c0_441 = arith.constant 0 : index
    %c0_442 = arith.constant 0 : index
    %354 = vector.load %arg1[%c0_439, %c1_440, %c0_441, %c0_442] : memref<4x9x9x4xf32, #tpu.memory_space<vmem>>, vector<1x8x8x4xf32>
    %355 = vector.shape_cast %354 : vector<1x8x8x4xf32> to vector<8x8x4xf32>
    %356 = vector.shape_cast %355 : vector<8x8x4xf32> to vector<64x4xf32>
    %c0_443 = arith.constant 0 : index
    %c0_444 = arith.constant 0 : index
    %357 = vector.load %arg9[%c0_443, %c0_444] : memref<64x4xf32, #tpu.memory_space<vmem>>, vector<64x4xf32>
    %c6_445 = arith.constant 6 : index
    %c0_446 = arith.constant 0 : index
    %c0_447 = arith.constant 0 : index
    %358 = vector.load %arg2[%c6_445, %c0_446, %c0_447] : memref<9x4x4xf32, #tpu.memory_space<vmem>>, vector<1x4x4xf32>
    %359 = vector.shape_cast %358 : vector<1x4x4xf32> to vector<4x4xf32>
    %cst_448 = arith.constant dense<0.000000e+00> : vector<64x4xf32>
    %360 = tpu.matmul %356, %359, %cst_448 {dimension_numbers = #tpu.dot_dimension_numbers<[1], [0], [0], [1], [0, 0, 1, 1], [], []>} : vector<64x4xf32>, vector<4x4xf32>, vector<64x4xf32> -> vector<64x4xf32>
    %361 = arith.addf %357, %360 : vector<64x4xf32>
    %c0_449 = arith.constant 0 : index
    %c0_450 = arith.constant 0 : index
    %362 = vector.load %arg9[%c0_449, %c0_450] : memref<64x4xf32, #tpu.memory_space<vmem>>, vector<64x4xf32>
    tpu.vector_store %arg9[%c0_449, %c0_450], %361 {strides = array<i32>} : memref<64x4xf32, #tpu.memory_space<vmem>>, vector<64x4xf32>,
    %c1_451 = arith.constant 1 : index
    %c1_452 = arith.constant 1 : index
    %c0_453 = arith.constant 0 : index
    %c0_454 = arith.constant 0 : index
    %363 = vector.load %arg1[%c1_451, %c1_452, %c0_453, %c0_454] : memref<4x9x9x4xf32, #tpu.memory_space<vmem>>, vector<1x8x8x4xf32>
    %364 = vector.shape_cast %363 : vector<1x8x8x4xf32> to vector<8x8x4xf32>
    %365 = vector.shape_cast %364 : vector<8x8x4xf32> to vector<64x4xf32>
    %c0_455 = arith.constant 0 : index
    %c0_456 = arith.constant 0 : index
    %366 = vector.load %arg9[%c0_455, %c0_456] : memref<64x4xf32, #tpu.memory_space<vmem>>, vector<64x4xf32>
    %c7_457 = arith.constant 7 : index
    %c0_458 = arith.constant 0 : index
    %c0_459 = arith.constant 0 : index
    %367 = vector.load %arg2[%c7_457, %c0_458, %c0_459] : memref<9x4x4xf32, #tpu.memory_space<vmem>>, vector<1x4x4xf32>
    %368 = vector.shape_cast %367 : vector<1x4x4xf32> to vector<4x4xf32>
    %cst_460 = arith.constant dense<0.000000e+00> : vector<64x4xf32>
    %369 = tpu.matmul %365, %368, %cst_460 {dimension_numbers = #tpu.dot_dimension_numbers<[1], [0], [0], [1], [0, 0, 1, 1], [], []>} : vector<64x4xf32>, vector<4x4xf32>, vector<64x4xf32> -> vector<64x4xf32>
    %370 = arith.addf %366, %369 : vector<64x4xf32>
    %c0_461 = arith.constant 0 : index
    %c0_462 = arith.constant 0 : index
    %371 = vector.load %arg9[%c0_461, %c0_462] : memref<64x4xf32, #tpu.memory_space<vmem>>, vector<64x4xf32>
    tpu.vector_store %arg9[%c0_461, %c0_462], %370 {strides = array<i32>} : memref<64x4xf32, #tpu.memory_space<vmem>>, vector<64x4xf32>,
    %c0_463 = arith.constant 0 : index
    %c1_464 = arith.constant 1 : index
    %c1_465 = arith.constant 1 : index
    %c0_466 = arith.constant 0 : index
    %372 = vector.load %arg1[%c0_463, %c1_464, %c1_465, %c0_466] : memref<4x9x9x4xf32, #tpu.memory_space<vmem>>, vector<1x8x8x4xf32>
    %373 = vector.shape_cast %372 : vector<1x8x8x4xf32> to vector<8x8x4xf32>
    %374 = vector.shape_cast %373 : vector<8x8x4xf32> to vector<64x4xf32>
    %c0_467 = arith.constant 0 : index
    %c0_468 = arith.constant 0 : index
    %375 = vector.load %arg9[%c0_467, %c0_468] : memref<64x4xf32, #tpu.memory_space<vmem>>, vector<64x4xf32>
    %c8_469 = arith.constant 8 : index
    %c0_470 = arith.constant 0 : index
    %c0_471 = arith.constant 0 : index
    %376 = vector.load %arg2[%c8_469, %c0_470, %c0_471] : memref<9x4x4xf32, #tpu.memory_space<vmem>>, vector<1x4x4xf32>
    %377 = vector.shape_cast %376 : vector<1x4x4xf32> to vector<4x4xf32>
    %cst_472 = arith.constant dense<0.000000e+00> : vector<64x4xf32>
    %378 = tpu.matmul %374, %377, %cst_472 {dimension_numbers = #tpu.dot_dimension_numbers<[1], [0], [0], [1], [0, 0, 1, 1], [], []>} : vector<64x4xf32>, vector<4x4xf32>, vector<64x4xf32> -> vector<64x4xf32>
    %379 = arith.addf %375, %378 : vector<64x4xf32>
    %c0_473 = arith.constant 0 : index
    %c0_474 = arith.constant 0 : index
    %380 = vector.load %arg9[%c0_473, %c0_474] : memref<64x4xf32, #tpu.memory_space<vmem>>, vector<64x4xf32>
    tpu.vector_store %arg9[%c0_473, %c0_474], %379 {strides = array<i32>} : memref<64x4xf32, #tpu.memory_space<vmem>>, vector<64x4xf32>,
    %c0_475 = arith.constant 0 : index
    %c0_476 = arith.constant 0 : index
    %381 = vector.load %arg9[%c0_475, %c0_476] : memref<64x4xf32, #tpu.memory_space<vmem>>, vector<64x4xf32>
    %c0_477 = arith.constant 0 : index
    %c0_478 = arith.constant 0 : index
    %382 = vector.load %arg3[%c0_477, %c0_478] : memref<1x4xf32, #tpu.memory_space<vmem>>, vector<1x4xf32>
    %383 = vector.broadcast %382 : vector<1x4xf32> to vector<64x4xf32>
    %384 = arith.addf %381, %383 : vector<64x4xf32>
    %cst_479 = arith.constant 0.000000e+00 : f32
    %385 = vector.broadcast %cst_479 : f32 to vector<64x4xf32>
    %386 = arith.cmpf ogt, %384, %385 : vector<64x4xf32>
    %cst_480 = arith.constant 2.000000e-01 : f32
    %387 = vector.broadcast %cst_480 : f32 to vector<64x4xf32>
    %388 = arith.mulf %387, %384 : vector<64x4xf32>
    %389 = arith.select %386, %384, %388 : vector<64x4xi1>, vector<64x4xf32>
    %cst_481 = arith.constant 1.41421354 : f32
    %390 = vector.broadcast %cst_481 : f32 to vector<64x4xf32>
    %391 = arith.mulf %389, %390 : vector<64x4xf32>
    %392 = vector.shape_cast %391 : vector<64x4xf32> to vector<8x8x4xf32>
    %c3_482 = arith.constant 3 : index
    %c0_483 = arith.constant 0 : index
    %c0_484 = arith.constant 0 : index
    %c0_485 = arith.constant 0 : index
    %393 = vector.load %arg8[%c3_482, %c0_483, %c0_484, %c0_485] : memref<4x9x9x4xf32, #tpu.memory_space<vmem>>, vector<1x8x8x4xf32>
    %394 = vector.shape_cast %393 : vector<1x8x8x4xf32> to vector<8x8x4xf32>
    %395 = vector.shape_cast %392 : vector<8x8x4xf32> to vector<1x8x8x4xf32>
    tpu.vector_store %arg8[%c3_482, %c0_483, %c0_484, %c0_485], %395 {strides = array<i32>} : memref<4x9x9x4xf32, #tpu.memory_space<vmem>>, vector<1x8x8x4xf32>,
    %c0_486 = arith.constant 0 : index
    %c0_487 = arith.constant 0 : index
    %c0_488 = arith.constant 0 : index
    %c0_489 = arith.constant 0 : index
    %396 = vector.load %arg8[%c0_486, %c0_487, %c0_488, %c0_489] : memref<4x9x9x4xf32, #tpu.memory_space<vmem>>, vector<1x8x8x4xf32>
    %397 = vector.shape_cast %396 : vector<1x8x8x4xf32> to vector<8x8x4xf32>
    %398 = vector.shape_cast %397 : vector<8x8x4xf32> to vector<64x4xf32>
    %c0_490 = arith.constant 0 : index
    %c0_491 = arith.constant 0 : index
    %399 = vector.load %arg10[%c0_490, %c0_491] : memref<64x8xf32, #tpu.memory_space<vmem>>, vector<64x8xf32>
    %c0_492 = arith.constant 0 : index
    %c0_493 = arith.constant 0 : index
    %c0_494 = arith.constant 0 : index
    %400 = vector.load %arg4[%c0_492, %c0_493, %c0_494] : memref<9x4x8xf32, #tpu.memory_space<vmem>>, vector<1x4x8xf32>
    %401 = vector.shape_cast %400 : vector<1x4x8xf32> to vector<4x8xf32>
    %cst_495 = arith.constant dense<0.000000e+00> : vector<64x8xf32>
    %402 = tpu.matmul %398, %401, %cst_495 {dimension_numbers = #tpu.dot_dimension_numbers<[1], [0], [0], [1], [0, 0, 1, 1], [], []>} : vector<64x4xf32>, vector<4x8xf32>, vector<64x8xf32> -> vector<64x8xf32>
    %403 = arith.addf %399, %402 : vector<64x8xf32>
    %c0_496 = arith.constant 0 : index
    %c0_497 = arith.constant 0 : index
    %404 = vector.load %arg10[%c0_496, %c0_497] : memref<64x8xf32, #tpu.memory_space<vmem>>, vector<64x8xf32>
    tpu.vector_store %arg10[%c0_496, %c0_497], %403 {strides = array<i32>} : memref<64x8xf32, #tpu.memory_space<vmem>>, vector<64x8xf32>,
    %c1_498 = arith.constant 1 : index
    %c0_499 = arith.constant 0 : index
    %c0_500 = arith.constant 0 : index
    %c0_501 = arith.constant 0 : index
    %405 = vector.load %arg8[%c1_498, %c0_499, %c0_500, %c0_501] : memref<4x9x9x4xf32, #tpu.memory_space<vmem>>, vector<1x8x8x4xf32>
    %406 = vector.shape_cast %405 : vector<1x8x8x4xf32> to vector<8x8x4xf32>
    %407 = vector.shape_cast %406 : vector<8x8x4xf32> to vector<64x4xf32>
    %c0_502 = arith.constant 0 : index
    %c0_503 = arith.constant 0 : index
    %408 = vector.load %arg10[%c0_502, %c0_503] : memref<64x8xf32, #tpu.memory_space<vmem>>, vector<64x8xf32>
    %c1_504 = arith.constant 1 : index
    %c0_505 = arith.constant 0 : index
    %c0_506 = arith.constant 0 : index
    %409 = vector.load %arg4[%c1_504, %c0_505, %c0_506] : memref<9x4x8xf32, #tpu.memory_space<vmem>>, vector<1x4x8xf32>
    %410 = vector.shape_cast %409 : vector<1x4x8xf32> to vector<4x8xf32>
    %cst_507 = arith.constant dense<0.000000e+00> : vector<64x8xf32>
    %411 = tpu.matmul %407, %410, %cst_507 {dimension_numbers = #tpu.dot_dimension_numbers<[1], [0], [0], [1], [0, 0, 1, 1], [], []>} : vector<64x4xf32>, vector<4x8xf32>, vector<64x8xf32> -> vector<64x8xf32>
    %412 = arith.addf %408, %411 : vector<64x8xf32>
    %c0_508 = arith.constant 0 : index
    %c0_509 = arith.constant 0 : index
    %413 = vector.load %arg10[%c0_508, %c0_509] : memref<64x8xf32, #tpu.memory_space<vmem>>, vector<64x8xf32>
    tpu.vector_store %arg10[%c0_508, %c0_509], %412 {strides = array<i32>} : memref<64x8xf32, #tpu.memory_space<vmem>>, vector<64x8xf32>,
    %c0_510 = arith.constant 0 : index
    %c0_511 = arith.constant 0 : index
    %c1_512 = arith.constant 1 : index
    %c0_513 = arith.constant 0 : index
    %414 = vector.load %arg8[%c0_510, %c0_511, %c1_512, %c0_513] : memref<4x9x9x4xf32, #tpu.memory_space<vmem>>, vector<1x8x8x4xf32>
    %415 = vector.shape_cast %414 : vector<1x8x8x4xf32> to vector<8x8x4xf32>
    %416 = vector.shape_cast %415 : vector<8x8x4xf32> to vector<64x4xf32>
    %c0_514 = arith.constant 0 : index
    %c0_515 = arith.constant 0 : index
    %417 = vector.load %arg10[%c0_514, %c0_515] : memref<64x8xf32, #tpu.memory_space<vmem>>, vector<64x8xf32>
    %c2_516 = arith.constant 2 : index
    %c0_517 = arith.constant 0 : index
    %c0_518 = arith.constant 0 : index
    %418 = vector.load %arg4[%c2_516, %c0_517, %c0_518] : memref<9x4x8xf32, #tpu.memory_space<vmem>>, vector<1x4x8xf32>
    %419 = vector.shape_cast %418 : vector<1x4x8xf32> to vector<4x8xf32>
    %cst_519 = arith.constant dense<0.000000e+00> : vector<64x8xf32>
    %420 = tpu.matmul %416, %419, %cst_519 {dimension_numbers = #tpu.dot_dimension_numbers<[1], [0], [0], [1], [0, 0, 1, 1], [], []>} : vector<64x4xf32>, vector<4x8xf32>, vector<64x8xf32> -> vector<64x8xf32>
    %421 = arith.addf %417, %420 : vector<64x8xf32>
    %c0_520 = arith.constant 0 : index
    %c0_521 = arith.constant 0 : index
    %422 = vector.load %arg10[%c0_520, %c0_521] : memref<64x8xf32, #tpu.memory_space<vmem>>, vector<64x8xf32>
    tpu.vector_store %arg10[%c0_520, %c0_521], %421 {strides = array<i32>} : memref<64x8xf32, #tpu.memory_space<vmem>>, vector<64x8xf32>,
    %c2_522 = arith.constant 2 : index
    %c0_523 = arith.constant 0 : index
    %c0_524 = arith.constant 0 : index
    %c0_525 = arith.constant 0 : index
    %423 = vector.load %arg8[%c2_522, %c0_523, %c0_524, %c0_525] : memref<4x9x9x4xf32, #tpu.memory_space<vmem>>, vector<1x8x8x4xf32>
    %424 = vector.shape_cast %423 : vector<1x8x8x4xf32> to vector<8x8x4xf32>
    %425 = vector.shape_cast %424 : vector<8x8x4xf32> to vector<64x4xf32>
    %c0_526 = arith.constant 0 : index
    %c0_527 = arith.constant 0 : index
    %426 = vector.load %arg10[%c0_526, %c0_527] : memref<64x8xf32, #tpu.memory_space<vmem>>, vector<64x8xf32>
    %c3_528 = arith.constant 3 : index
    %c0_529 = arith.constant 0 : index
    %c0_530 = arith.constant 0 : index
    %427 = vector.load %arg4[%c3_528, %c0_529, %c0_530] : memref<9x4x8xf32, #tpu.memory_space<vmem>>, vector<1x4x8xf32>
    %428 = vector.shape_cast %427 : vector<1x4x8xf32> to vector<4x8xf32>
    %cst_531 = arith.constant dense<0.000000e+00> : vector<64x8xf32>
    %429 = tpu.matmul %425, %428, %cst_531 {dimension_numbers = #tpu.dot_dimension_numbers<[1], [0], [0], [1], [0, 0, 1, 1], [], []>} : vector<64x4xf32>, vector<4x8xf32>, vector<64x8xf32> -> vector<64x8xf32>
    %430 = arith.addf %426, %429 : vector<64x8xf32>
    %c0_532 = arith.constant 0 : index
    %c0_533 = arith.constant 0 : index
    %431 = vector.load %arg10[%c0_532, %c0_533] : memref<64x8xf32, #tpu.memory_space<vmem>>, vector<64x8xf32>
    tpu.vector_store %arg10[%c0_532, %c0_533], %430 {strides = array<i32>} : memref<64x8xf32, #tpu.memory_space<vmem>>, vector<64x8xf32>,
    %c3_534 = arith.constant 3 : index
    %c0_535 = arith.constant 0 : index
    %c0_536 = arith.constant 0 : index
    %c0_537 = arith.constant 0 : index
    %432 = vector.load %arg8[%c3_534, %c0_535, %c0_536, %c0_537] : memref<4x9x9x4xf32, #tpu.memory_space<vmem>>, vector<1x8x8x4xf32>
    %433 = vector.shape_cast %432 : vector<1x8x8x4xf32> to vector<8x8x4xf32>
    %434 = vector.shape_cast %433 : vector<8x8x4xf32> to vector<64x4xf32>
    %c0_538 = arith.constant 0 : index
    %c0_539 = arith.constant 0 : index
    %435 = vector.load %arg10[%c0_538, %c0_539] : memref<64x8xf32, #tpu.memory_space<vmem>>, vector<64x8xf32>
    %c4_540 = arith.constant 4 : index
    %c0_541 = arith.constant 0 : index
    %c0_542 = arith.constant 0 : index
    %436 = vector.load %arg4[%c4_540, %c0_541, %c0_542] : memref<9x4x8xf32, #tpu.memory_space<vmem>>, vector<1x4x8xf32>
    %437 = vector.shape_cast %436 : vector<1x4x8xf32> to vector<4x8xf32>
    %cst_543 = arith.constant dense<0.000000e+00> : vector<64x8xf32>
    %438 = tpu.matmul %434, %437, %cst_543 {dimension_numbers = #tpu.dot_dimension_numbers<[1], [0], [0], [1], [0, 0, 1, 1], [], []>} : vector<64x4xf32>, vector<4x8xf32>, vector<64x8xf32> -> vector<64x8xf32>
    %439 = arith.addf %435, %438 : vector<64x8xf32>
    %c0_544 = arith.constant 0 : index
    %c0_545 = arith.constant 0 : index
    %440 = vector.load %arg10[%c0_544, %c0_545] : memref<64x8xf32, #tpu.memory_space<vmem>>, vector<64x8xf32>
    tpu.vector_store %arg10[%c0_544, %c0_545], %439 {strides = array<i32>} : memref<64x8xf32, #tpu.memory_space<vmem>>, vector<64x8xf32>,
    %c2_546 = arith.constant 2 : index
    %c0_547 = arith.constant 0 : index
    %c1_548 = arith.constant 1 : index
    %c0_549 = arith.constant 0 : index
    %441 = vector.load %arg8[%c2_546, %c0_547, %c1_548, %c0_549] : memref<4x9x9x4xf32, #tpu.memory_space<vmem>>, vector<1x8x8x4xf32>
    %442 = vector.shape_cast %441 : vector<1x8x8x4xf32> to vector<8x8x4xf32>
    %443 = vector.shape_cast %442 : vector<8x8x4xf32> to vector<64x4xf32>
    %c0_550 = arith.constant 0 : index
    %c0_551 = arith.constant 0 : index
    %444 = vector.load %arg10[%c0_550, %c0_551] : memref<64x8xf32, #tpu.memory_space<vmem>>, vector<64x8xf32>
    %c5_552 = arith.constant 5 : index
    %c0_553 = arith.constant 0 : index
    %c0_554 = arith.constant 0 : index
    %445 = vector.load %arg4[%c5_552, %c0_553, %c0_554] : memref<9x4x8xf32, #tpu.memory_space<vmem>>, vector<1x4x8xf32>
    %446 = vector.shape_cast %445 : vector<1x4x8xf32> to vector<4x8xf32>
    %cst_555 = arith.constant dense<0.000000e+00> : vector<64x8xf32>
    %447 = tpu.matmul %443, %446, %cst_555 {dimension_numbers = #tpu.dot_dimension_numbers<[1], [0], [0], [1], [0, 0, 1, 1], [], []>} : vector<64x4xf32>, vector<4x8xf32>, vector<64x8xf32> -> vector<64x8xf32>
    %448 = arith.addf %444, %447 : vector<64x8xf32>
    %c0_556 = arith.constant 0 : index
    %c0_557 = arith.constant 0 : index
    %449 = vector.load %arg10[%c0_556, %c0_557] : memref<64x8xf32, #tpu.memory_space<vmem>>, vector<64x8xf32>
    tpu.vector_store %arg10[%c0_556, %c0_557], %448 {strides = array<i32>} : memref<64x8xf32, #tpu.memory_space<vmem>>, vector<64x8xf32>,
    %c0_558 = arith.constant 0 : index
    %c1_559 = arith.constant 1 : index
    %c0_560 = arith.constant 0 : index
    %c0_561 = arith.constant 0 : index
    %450 = vector.load %arg8[%c0_558, %c1_559, %c0_560, %c0_561] : memref<4x9x9x4xf32, #tpu.memory_space<vmem>>, vector<1x8x8x4xf32>
    %451 = vector.shape_cast %450 : vector<1x8x8x4xf32> to vector<8x8x4xf32>
    %452 = vector.shape_cast %451 : vector<8x8x4xf32> to vector<64x4xf32>
    %c0_562 = arith.constant 0 : index
    %c0_563 = arith.constant 0 : index
    %453 = vector.load %arg10[%c0_562, %c0_563] : memref<64x8xf32, #tpu.memory_space<vmem>>, vector<64x8xf32>
    %c6_564 = arith.constant 6 : index
    %c0_565 = arith.constant 0 : index
    %c0_566 = arith.constant 0 : index
    %454 = vector.load %arg4[%c6_564, %c0_565, %c0_566] : memref<9x4x8xf32, #tpu.memory_space<vmem>>, vector<1x4x8xf32>
    %455 = vector.shape_cast %454 : vector<1x4x8xf32> to vector<4x8xf32>
    %cst_567 = arith.constant dense<0.000000e+00> : vector<64x8xf32>
    %456 = tpu.matmul %452, %455, %cst_567 {dimension_numbers = #tpu.dot_dimension_numbers<[1], [0], [0], [1], [0, 0, 1, 1], [], []>} : vector<64x4xf32>, vector<4x8xf32>, vector<64x8xf32> -> vector<64x8xf32>
    %457 = arith.addf %453, %456 : vector<64x8xf32>
    %c0_568 = arith.constant 0 : index
    %c0_569 = arith.constant 0 : index
    %458 = vector.load %arg10[%c0_568, %c0_569] : memref<64x8xf32, #tpu.memory_space<vmem>>, vector<64x8xf32>
    tpu.vector_store %arg10[%c0_568, %c0_569], %457 {strides = array<i32>} : memref<64x8xf32, #tpu.memory_space<vmem>>, vector<64x8xf32>,
    %c1_570 = arith.constant 1 : index
    %c1_571 = arith.constant 1 : index
    %c0_572 = arith.constant 0 : index
    %c0_573 = arith.constant 0 : index
    %459 = vector.load %arg8[%c1_570, %c1_571, %c0_572, %c0_573] : memref<4x9x9x4xf32, #tpu.memory_space<vmem>>, vector<1x8x8x4xf32>
    %460 = vector.shape_cast %459 : vector<1x8x8x4xf32> to vector<8x8x4xf32>
    %461 = vector.shape_cast %460 : vector<8x8x4xf32> to vector<64x4xf32>
    %c0_574 = arith.constant 0 : index
    %c0_575 = arith.constant 0 : index
    %462 = vector.load %arg10[%c0_574, %c0_575] : memref<64x8xf32, #tpu.memory_space<vmem>>, vector<64x8xf32>
    %c7_576 = arith.constant 7 : index
    %c0_577 = arith.constant 0 : index
    %c0_578 = arith.constant 0 : index
    %463 = vector.load %arg4[%c7_576, %c0_577, %c0_578] : memref<9x4x8xf32, #tpu.memory_space<vmem>>, vector<1x4x8xf32>
    %464 = vector.shape_cast %463 : vector<1x4x8xf32> to vector<4x8xf32>
    %cst_579 = arith.constant dense<0.000000e+00> : vector<64x8xf32>
    %465 = tpu.matmul %461, %464, %cst_579 {dimension_numbers = #tpu.dot_dimension_numbers<[1], [0], [0], [1], [0, 0, 1, 1], [], []>} : vector<64x4xf32>, vector<4x8xf32>, vector<64x8xf32> -> vector<64x8xf32>
    %466 = arith.addf %462, %465 : vector<64x8xf32>
    %c0_580 = arith.constant 0 : index
    %c0_581 = arith.constant 0 : index
    %467 = vector.load %arg10[%c0_580, %c0_581] : memref<64x8xf32, #tpu.memory_space<vmem>>, vector<64x8xf32>
    tpu.vector_store %arg10[%c0_580, %c0_581], %466 {strides = array<i32>} : memref<64x8xf32, #tpu.memory_space<vmem>>, vector<64x8xf32>,
    %c0_582 = arith.constant 0 : index
    %c1_583 = arith.constant 1 : index
    %c1_584 = arith.constant 1 : index
    %c0_585 = arith.constant 0 : index
    %468 = vector.load %arg8[%c0_582, %c1_583, %c1_584, %c0_585] : memref<4x9x9x4xf32, #tpu.memory_space<vmem>>, vector<1x8x8x4xf32>
    %469 = vector.shape_cast %468 : vector<1x8x8x4xf32> to vector<8x8x4xf32>
    %470 = vector.shape_cast %469 : vector<8x8x4xf32> to vector<64x4xf32>
    %c0_586 = arith.constant 0 : index
    %c0_587 = arith.constant 0 : index
    %471 = vector.load %arg10[%c0_586, %c0_587] : memref<64x8xf32, #tpu.memory_space<vmem>>, vector<64x8xf32>
    %c8_588 = arith.constant 8 : index
    %c0_589 = arith.constant 0 : index
    %c0_590 = arith.constant 0 : index
    %472 = vector.load %arg4[%c8_588, %c0_589, %c0_590] : memref<9x4x8xf32, #tpu.memory_space<vmem>>, vector<1x4x8xf32>
    %473 = vector.shape_cast %472 : vector<1x4x8xf32> to vector<4x8xf32>
    %cst_591 = arith.constant dense<0.000000e+00> : vector<64x8xf32>
    %474 = tpu.matmul %470, %473, %cst_591 {dimension_numbers = #tpu.dot_dimension_numbers<[1], [0], [0], [1], [0, 0, 1, 1], [], []>} : vector<64x4xf32>, vector<4x8xf32>, vector<64x8xf32> -> vector<64x8xf32>
    %475 = arith.addf %471, %474 : vector<64x8xf32>
    %c0_592 = arith.constant 0 : index
    %c0_593 = arith.constant 0 : index
    %476 = vector.load %arg10[%c0_592, %c0_593] : memref<64x8xf32, #tpu.memory_space<vmem>>, vector<64x8xf32>
    tpu.vector_store %arg10[%c0_592, %c0_593], %475 {strides = array<i32>} : memref<64x8xf32, #tpu.memory_space<vmem>>, vector<64x8xf32>,
    %c0_594 = arith.constant 0 : index
    %c0_595 = arith.constant 0 : index
    %477 = vector.load %arg10[%c0_594, %c0_595] : memref<64x8xf32, #tpu.memory_space<vmem>>, vector<64x8xf32>
    %c0_596 = arith.constant 0 : index
    %c0_597 = arith.constant 0 : index
    %478 = vector.load %arg5[%c0_596, %c0_597] : memref<1x8xf32, #tpu.memory_space<vmem>>, vector<1x8xf32>
    %479 = vector.broadcast %478 : vector<1x8xf32> to vector<64x8xf32>
    %480 = arith.addf %477, %479 : vector<64x8xf32>
    %cst_598 = arith.constant 0.000000e+00 : f32
    %481 = vector.broadcast %cst_598 : f32 to vector<64x8xf32>
    %482 = arith.cmpf ogt, %480, %481 : vector<64x8xf32>
    %cst_599 = arith.constant 2.000000e-01 : f32
    %483 = vector.broadcast %cst_599 : f32 to vector<64x8xf32>
    %484 = arith.mulf %483, %480 : vector<64x8xf32>
    %485 = arith.select %482, %480, %484 : vector<64x8xi1>, vector<64x8xf32>
    %cst_600 = arith.constant 1.41421354 : f32
    %486 = vector.broadcast %cst_600 : f32 to vector<64x8xf32>
    %487 = arith.mulf %485, %486 : vector<64x8xf32>
    %c3_601 = arith.constant 3 : index
    %c0_602 = arith.constant 0 : index
    %c0_603 = arith.constant 0 : index
    %c0_604 = arith.constant 0 : index
    %488 = vector.load %arg1[%c3_601, %c0_602, %c0_603, %c0_604] : memref<4x9x9x4xf32, #tpu.memory_space<vmem>>, vector<1x8x8x4xf32>
    %489 = vector.shape_cast %488 : vector<1x8x8x4xf32> to vector<8x8x4xf32>
    %490 = vector.shape_cast %489 : vector<8x8x4xf32> to vector<64x4xf32>
    %c0_605 = arith.constant 0 : index
    %c0_606 = arith.constant 0 : index
    %491 = vector.load %arg6[%c0_605, %c0_606] : memref<4x8xf32, #tpu.memory_space<vmem>>, vector<4x8xf32>
    %cst_607 = arith.constant dense<0.000000e+00> : vector<64x8xf32>
    %492 = tpu.matmul %490, %491, %cst_607 {dimension_numbers = #tpu.dot_dimension_numbers<[1], [0], [0], [1], [0, 0, 1, 1], [], []>} : vector<64x4xf32>, vector<4x8xf32>, vector<64x8xf32> -> vector<64x8xf32>
    %493 = arith.addf %487, %492 : vector<64x8xf32>
    %cst_608 = arith.constant 0.707106769 : f32
    %494 = vector.broadcast %cst_608 : f32 to vector<64x8xf32>
    %495 = arith.mulf %493, %494 : vector<64x8xf32>
    %496 = vector.shape_cast %495 : vector<64x8xf32> to vector<8x8x8xf32>
    %c0_609 = arith.constant 0 : index
    %c0_610 = arith.constant 0 : index
    %c0_611 = arith.constant 0 : index
    %c0_612 = arith.constant 0 : index
    %497 = vector.load %arg7[%c0_609, %c0_610, %c0_611, %c0_612] : memref<1x8x8x8xf32, #tpu.memory_space<vmem>>, vector<1x8x8x8xf32>
    %498 = vector.shape_cast %497 : vector<1x8x8x8xf32> to vector<8x8x8xf32>
    %499 = vector.shape_cast %496 : vector<8x8x8xf32> to vector<1x8x8x8xf32>
    tpu.vector_store %arg7[%c0_609, %c0_610, %c0_611, %c0_612], %499 {strides = array<i32>} : memref<1x8x8x8xf32, #tpu.memory_space<vmem>>, vector<1x8x8x8xf32>,
    return
  }
  func.func @transform_0(%arg0: i32) -> (i32, i32, i32, i32) {
    %c0_i32 = arith.constant 0 : i32
    %c0_i32_0 = arith.constant 0 : i32
    %c0_i32_1 = arith.constant 0 : i32
    %c0_i32_2 = arith.constant 0 : i32
    return %arg0, %c0_i32, %c0_i32_0, %c0_i32_1 : i32, i32, i32, i32
  }
  func.func @transform_1(%arg0: i32) -> (i32, i32, i32) {
    %c0_i32 = arith.constant 0 : i32
    %c0_i32_0 = arith.constant 0 : i32
    %c0_i32_1 = arith.constant 0 : i32
    %c0_i32_2 = arith.constant 0 : i32
    return %c0_i32, %c0_i32_0, %c0_i32_1 : i32, i32, i32
  }
  func.func @transform_2(%arg0: i32) -> (i32, i32) {
    %c0_i32 = arith.constant 0 : i32
    %c0_i32_0 = arith.constant 0 : i32
    %c0_i32_1 = arith.constant 0 : i32
    return %c0_i32, %c0_i32_0 : i32, i32
  }
  func.func @transform_3(%arg0: i32) -> (i32, i32, i32) {
    %c0_i32 = arith.constant 0 : i32
    %c0_i32_0 = arith.constant 0 : i32
    %c0_i32_1 = arith.constant 0 : i32
    %c0_i32_2 = arith.constant 0 : i32
    return %c0_i32, %c0_i32_0, %c0_i32_1 : i32, i32, i32
  }
  func.func @transform_4(%arg0: i32) -> (i32, i32) {
    %c0_i32 = arith.constant 0 : i32
    %c0_i32_0 = arith.constant 0 : i32
    %c0_i32_1 = arith.constant 0 : i32
    return %c0_i32, %c0_i32_0 : i32, i32
  }
  func.func @transform_5(%arg0: i32) -> (i32, i32) {
    %c0_i32 = arith.constant 0 : i32
    %c0_i32_0 = arith.constant 0 : i32
    %c0_i32_1 = arith.constant 0 : i32
    return %c0_i32, %c0_i32_0 : i32, i32
  }
  func.func @transform_6(%arg0: i32) -> (i32, i32, i32, i32) {
    %c0_i32 = arith.constant 0 : i32
    %c0_i32_0 = arith.constant 0 : i32
    %c0_i32_1 = arith.constant 0 : i32
    %c0_i32_2 = arith.constant 0 : i32
    return %arg0, %c0_i32, %c0_i32_0, %c0_i32_1 : i32, i32, i32, i32
  }
}

</mosaic_0001>

<bundles_post_ra>
// kernel: sp_norm_res_block.1
= control target key start
LH: loop header
LB: loop body
LE: loop exit
PB: predicated region body
PF: predicated region fallthrough
CT: control target
= control target key end

     0   :  { %s10208_s21 = smov 0   ;;  %s12903_s0 = inlined_call_operand.vmem [shape: f32[8,9,9,4], index: 0, kind: input, shape index: {}]   ;;  %s12904_s1 = inlined_call_operand.vmem [shape: f32[9,4,4], index: 1, kind: input, shape index: {}]   ;;  %s12905_s2 = inlined_call_operand.vmem [shape: f32[1,4], index: 2, kind: input, shape index: {}]   ;;  %s12906_s3 = inlined_call_operand.vmem [shape: f32[9,4,8], index: 3, kind: input, shape index: {}]   ;;  %s12907_s4 = inlined_call_operand.vmem [shape: f32[1,8], index: 4, kind: input, shape index: {}]   ;;  %s12908_s5 = inlined_call_operand.vmem [shape: f32[4,8], index: 5, kind: input, shape index: {}]   ;;  %s12909_s6 = inlined_call_operand.vmem [shape: f32[2,8,8,8], index: 6, kind: output, shape index: {}]  }
   0x1 LB: > { %s10214_s22 = sadd.s32 4294967295, %s10170_s21   ;;  %p8357_p0 = scmp.ge.s32.totalorder %s10170_s21, 1  ;;  %s10170_s21 = sphi %s10208_s21, %s16_s21  }
   0x2   : > { %p214_p1 = scmp.lt.s32.totalorder %s10170_s21, 3 }
   0x4   : > { %p215_p2 = pnand %p8357_p0, %p214_p1 }
   0x6   : > { %218 = sbr.rel (%p215_p2) target bundleno = 927 (0x39f), region = 44 }
   0xd   : > { %v365_v0 = vld [vmem:[%s12904_s1] sm:$0xf]  ;;  %vm390_vm0 = vcmask 1043456   ;;  %s8358_s25 = sshll.u32 %s10214_s22, 2  ;;  %v8405_v1 = vld [vmem:[%s12904_s1 + $0x8] sm:$0xf] }
   0xe   : > { %9510 = vmatprep.subr.msk.mxu0 %vm390_vm0, %v365_v0  ;;  %p246_p3 = scmp.lt.s32.totalorder %s8358_s25, 7  ;;  %v8387_v2 = vld [vmem:[%s12904_s1 + $0x4] sm:$0xf]  ;;  %v8423_v3 = vld [vmem:[%s12904_s1 + $0xc] sm:$0xf]  ;;  %vm257_vm1 = vcmask 31744  }
   0xf   : > { %9511 = vmatpush3.msk.msra.mxu0 %vm390_vm0, %v365_v0  ;;  %9524 = vmatprep.subr.msk.mxu1 %vm390_vm0, %v8387_v2  ;;  %v8441_v7 = vld [vmem:[%s12904_s1 + $0x10] sm:$0xf]  ;;  %v8459_v13 = vld [vmem:[%s12904_s1 + $0x14] sm:$0xf]  ;;  %v8477_v26 = vld [vmem:[%s12904_s1 + $0x18] sm:$0xf] }
  0x10   : > { %s12995_s25 = smov (!%p246_p3, %s8358_s25), 7  ;;  %9538 = vmatprep.subr.msk.mxu0 %vm390_vm0, %v8405_v1  ;;  %9525 = vmatpush3.msk.msra.mxu1 %vm390_vm0, %v8387_v2  ;;  %v8495_v31 = vld [vmem:[%s12904_s1 + $0x1c] sm:$0xf]  ;;  %v8513_v44 = vld [vmem:[%s12904_s1 + $0x20] sm:$0xf]  ;;  %v12910_v60 = vmov 0.0  }
  0x11   : > { %9552 = vmatprep.subr.msk.mxu1 %vm390_vm0, %v8423_v3  ;;  %s10154_s8 = smul.u32 144, %s12995_s25  ;;  %v1936_v49 = vld [vmem:[%s12904_s1] sm:$0xf]  ;;  %v10511_v58 = vld [vmem:[%s12904_s1 + $0x4] sm:$0xf]  ;;  %341 = vst.msk [vmem:[#allocation3 + $0x8] sm:$0xff] %vm257_vm1, %v12910_v60 }
  0x12   : > { %v10527_v59 = vld [vmem:[%s12904_s1 + $0x8] sm:$0xf]  ;;  %258 = vst.msk [vmem:[#allocation2] sm:$0xff] %vm257_vm1, %v12910_v60  ;;  %261 = vst.msk [vmem:[#allocation2 + $0x10] sm:$0xff] %vm257_vm1, %v12910_v60  ;;  %v8585_v0 = vld [vmem:[%s12904_s1 + $0xc] sm:$0xf] }
  0x13   : > { %s10240_s11 = scalar_lea.vmem %s12903_s0, %s10154_s8  ;;  %263 = vst.msk [vmem:[#allocation2 + $0x20] sm:$0xff] %vm257_vm1, %v12910_v60  ;;  %265 = vst.msk [vmem:[#allocation2 + $0x30] sm:$0xff] %vm257_vm1, %v12910_v60  ;;  %vm259_vm2 = vcmask 24576   ;;  %vm331_vm11 = vcmask 64512   ;;  %p252_p4 = scmp.lt.s32.totalorder %s10214_s22, 1 }
  0x14   : > { %v10243_v4 = vld [vmem:[%s10240_s11 + $0x1b0] sm:$0xff]  ;;  %v10246_v5 = vld [vmem:[%s10240_s11 + $0x1c0] sm:$0xff]  ;;  %267 = vst.msk [vmem:[#allocation2 + $0x40] sm:$0xff] %vm257_vm1, %v12910_v60  ;;  %269 = vst.msk [vmem:[#allocation2 + $0x50] sm:$0xff] %vm257_vm1, %v12910_v60 }
  0x15   : > { %v10249_v6 = vld [vmem:[%s10240_s11 + $0x1d0] sm:$0xff]  ;;  %9512 = vmatprep.mubr.msk.f32.mxu0 %vm257_vm1, %v10243_v4  ;;  %v10259_v8 = vld [vmem:[%s10240_s11 + $0x121] sm:$0xff]  ;;  %271 = vst.msk [vmem:[#allocation2 + $0x60] sm:$0xff] %vm257_vm1, %v12910_v60  ;;  %273 = vst.msk [vmem:[#allocation2 + $0x70] sm:$0xff] %vm257_vm1, %v12910_v60  ;;  %s12997_s22 = smov (!%p252_p4, %s10214_s22), 1 }
  0x16   : > { %9513 = vmatmul.mubr.msk.f32.vlgmr.msra.gmra.mrb[0].mxu0 %vm257_vm1, %v10246_v5  ;;  %v10262_v9 = vld [vmem:[%s10240_s11 + $0x131] sm:$0xff]  ;;  %v10267_v10 = vld [vmem:[%s10240_s11 + $0x1e0] sm:$0xff]  ;;  %9526 = vmatprep.mubr.msk.f32.mxu1 %vm257_vm1, %v10259_v8  ;;  %275 = vst.msk [vmem:[#allocation2 + $0x80] sm:$0xff] %vm257_vm1, %v12910_v60  ;;  %277 = vst.msk [vmem:[#allocation2 + $0x90] sm:$0xff] %vm257_vm1, %v12910_v60  ;;  %s9095_s17 = sshll.u32 %s12997_s22, 6 }
  0x17   : > { %9515 = vmatprep.mubr.msk.f32.mxu0 %vm257_vm1, %v10249_v6  ;;  %9539 = vmatpush3.msk.msra.mxu0 %vm390_vm0, %v8405_v1  ;;  %v10271_v11 = vld [vmem:[%s10240_s11 + $0x141] sm:$0xff]  ;;  %v10274_v12 = vld [vmem:[%s10240_s11 + $0x1f0] sm:$0xff]  ;;  %279 = vst.msk [vmem:[#allocation2 + $0xa0] sm:$0xff] %vm257_vm1, %v12910_v60  ;;  %281 = vst.msk [vmem:[#allocation2 + $0xb0] sm:$0xff] %vm257_vm1, %v12910_v60  ;;  %s12875_s20 = scalar_lea.vmem %s12909_s6, %s9095_s17 }
  0x18   : > { %9566 = vmatprep.subr.msk.mxu0 %vm390_vm0, %v8441_v7  ;;  %9527 = vmatmul.mubr.msk.f32.vlgmr.msra.gmra.mrb[0].mxu1 %vm257_vm1, %v10262_v9  ;;  %v10289_v14 = vld [vmem:[%s10240_s11 + $0x151] sm:$0xff]  ;;  %v10294_v15 = vld [vmem:[%s10240_s11 + $0x200] sm:$0xff]  ;;  %283 = vst.msk [vmem:[#allocation2 + $0xc0] sm:$0xff] %vm257_vm1, %v12910_v60  ;;  %285 = vst.msk [vmem:[#allocation2 + $0xd0] sm:$0xff] %vm257_vm1, %v12910_v60 }
  0x19   : > { %9529 = vmatprep.mubr.msk.f32.mxu1 %vm257_vm1, %v10271_v11  ;;  %9553 = vmatpush3.msk.msra.mxu1 %vm390_vm0, %v8423_v3  ;;  %v10298_v16 = vld [vmem:[%s10240_s11 + $0x161] sm:$0xff]  ;;  %v10301_v17 = vld [vmem:[%s10240_s11 + $0x210] sm:$0xff]  ;;  %287 = vst.msk [vmem:[#allocation2 + $0xe0] sm:$0xff] %vm257_vm1, %v12910_v60  ;;  %289 = vst.msk [vmem:[#allocation2 + $0xf0] sm:$0xff] %vm257_vm1, %v12910_v60 }
  0x1a   : > { %9516 = vmatmul.mubr.msk.f32.gmra.mrb[2].mxu0 %vm257_vm1, %v10267_v10  ;;  %9580 = vmatprep.subr.msk.mxu1 %vm390_vm0, %v8459_v13  ;;  %v10311_v18 = vld [vmem:[%s10240_s11 + $0x171] sm:$0xff]  ;;  %v10316_v19 = vld [vmem:[%s10240_s11 + $0x220] sm:$0xff]  ;;  %291 = vst.msk [vmem:[#allocation2 + $0x100] sm:$0xff] %vm257_vm1, %v12910_v60  ;;  %293 = vst.msk [vmem:[#allocation2 + $0x110] sm:$0xff] %vm257_vm1, %v12910_v60 }
  0x1b   : > { %9518 = vmatprep.mubr.msk.f32.mxu0 %vm257_vm1, %v10274_v12  ;;  %v10319_v20 = vld [vmem:[%s10240_s11 + $0x181] sm:$0xff]  ;;  %v8397_v21 = vld [vmem:[%s10240_s11 + $0x1b1] sm:$0xff]  ;;  %295 = vst.msk [vmem:[#allocation2 + $0x120] sm:$0xff] %vm257_vm1, %v12910_v60  ;;  %297 = vst.msk [vmem:[#allocation2 + $0x130] sm:$0xff] %vm257_vm1, %v12910_v60 }
  0x1c   : > { %9530 = vmatmul.mubr.msk.f32.gmra.mrb[2].mxu1 %vm257_vm1, %v10289_v14  ;;  %v10329_v22 = vld [vmem:[%s10240_s11 + $0x191] sm:$0xff]  ;;  %v10333_v23 = vld [vmem:[%s10240_s11 + $0x1c1] sm:$0xff]  ;;  %299 = vst.msk [vmem:[#allocation2 + $0x140] sm:$0xff] %vm257_vm1, %v12910_v60  ;;  %301 = vst.msk [vmem:[#allocation2 + $0x150] sm:$0xff] %vm257_vm1, %v12910_v60 }
  0x1d   : > { %9532 = vmatprep.mubr.msk.f32.mxu1 %vm257_vm1, %v10298_v16  ;;  %v10336_v24 = vld [vmem:[%s10240_s11 + $0xa0] sm:$0xff]  ;;  %v10339_v25 = vld [vmem:[%s10240_s11 + $0x1d1] sm:$0xff]  ;;  %303 = vst.msk [vmem:[#allocation2 + $0x160] sm:$0xff] %vm257_vm1, %v12910_v60  ;;  %305 = vst.msk [vmem:[#allocation2 + $0x170] sm:$0xff] %vm257_vm1, %v12910_v60 }
  0x1e   : > { %9519 = vmatmul.mubr.msk.f32.gmra.mrb[4].mxu0 %vm257_vm1, %v10294_v15  ;;  %v10351_v27 = vld [vmem:[%s10240_s11 + $0xb0] sm:$0xff]  ;;  %v10356_v28 = vld [vmem:[%s10240_s11 + $0x1e1] sm:$0xff]  ;;  %307 = vst.msk [vmem:[#allocation2 + $0x180] sm:$0xff] %vm257_vm1, %v12910_v60  ;;  %309 = vst.msk [vmem:[#allocation2 + $0x190] sm:$0xff] %vm257_vm1, %v12910_v60 }
  0x1f   : > { %9521 = vmatprep.mubr.msk.f32.mxu0 %vm257_vm1, %v10301_v17  ;;  %v10360_v29 = vld [vmem:[%s10240_s11 + $0xc0] sm:$0xff]  ;;  %v10363_v30 = vld [vmem:[%s10240_s11 + $0x1f1] sm:$0xff]  ;;  %313 = vst.msk [vmem:[#allocation2 + $0x1b0] sm:$0xff] %vm257_vm1, %v12910_v60  ;;  %315 = vst.msk [vmem:[#allocation2 + $0x1c0] sm:$0xff] %vm257_vm1, %v12910_v60 }
  0x20   : > { %9533 = vmatmul.mubr.msk.f32.gmra.mrb[4].mxu1 %vm257_vm1, %v10311_v18  ;;  %v10376_v32 = vld [vmem:[%s10240_s11 + $0xd0] sm:$0xff]  ;;  %v10381_v33 = vld [vmem:[%s10240_s11 + $0x201] sm:$0xff]  ;;  %317 = vst.msk [vmem:[#allocation2 + $0x1d0] sm:$0xff] %vm257_vm1, %v12910_v60  ;;  %319 = vst.msk [vmem:[#allocation2 + $0x1e0] sm:$0xff] %vm257_vm1, %v12910_v60 }
  0x21   : > { %9535 = vmatprep.mubr.msk.f32.mxu1 %vm257_vm1, %v10319_v20  ;;  %v10385_v34 = vld [vmem:[%s10240_s11 + $0xe0] sm:$0xff]  ;;  %v10388_v35 = vld [vmem:[%s10240_s11 + $0x211] sm:$0xff]  ;;  %321 = vst.msk [vmem:[#allocation2 + $0x1f0] sm:$0xff] %vm257_vm1, %v12910_v60  ;;  %323 = vst.msk [vmem:[#allocation2 + $0x200] sm:$0xff] %vm257_vm1, %v12910_v60 }
  0x22   : > { %9522 = vmatmul.mubr.msk.f32.gmra.mrb[6].mxu0 %vm257_vm1, %v10316_v19  ;;  %v10398_v36 = vld [vmem:[%s10240_s11 + $0xf0] sm:$0xff]  ;;  %v10403_v37 = vld [vmem:[%s10240_s11 + $0x221] sm:$0xff]  ;;  %325 = vst.msk [vmem:[#allocation2 + $0x210] sm:$0xff] %vm257_vm1, %v12910_v60  ;;  %327 = vst.msk [vmem:[#allocation2 + $0x220] sm:$0xff] %vm257_vm1, %v12910_v60 }
  0x23   : > { %9540 = vmatprep.mubr.msk.f32.mxu0 %vm257_vm1, %v8397_v21  ;;  %v10406_v38 = vld [vmem:[%s10240_s11 + $0x100] sm:$0xff]  ;;  %v10409_v39 = vld [vmem:[%s10240_s11 + $0x11] sm:$0xff]  ;;  %340 = vst.msk [vmem:[#allocation3] sm:$0xff] %vm257_vm1, %v12910_v60  ;;  %342 = vst.msk [vmem:[#allocation3 + $0x10] sm:$0xff] %vm257_vm1, %v12910_v60 }
  0x24   : > { %9536 = vmatmul.mubr.msk.f32.gmra.mrb[6].mxu1 %vm257_vm1, %v10329_v22  ;;  %v10418_v40 = vld [vmem:[%s10240_s11 + $0x110] sm:$0xff]  ;;  %v10423_v41 = vld [vmem:[%s10240_s11 + $0x21] sm:$0xff]  ;;  %343 = vst.msk [vmem:[#allocation3 + $0x18] sm:$0xff] %vm257_vm1, %v12910_v60  ;;  %344 = vst.msk [vmem:[#allocation3 + $0x20] sm:$0xff] %vm257_vm1, %v12910_v60 }
  0x25   : > { %9554 = vmatprep.mubr.msk.f32.mxu1 %vm257_vm1, %v10336_v24  ;;  %v10426_v42 = vld [vmem:[%s10240_s11 + $0xa1] sm:$0xff]  ;;  %v10429_v43 = vld [vmem:[%s10240_s11 + $0x31] sm:$0xff]  ;;  %345 = vst.msk [vmem:[#allocation3 + $0x28] sm:$0xff] %vm257_vm1, %v12910_v60  ;;  %346 = vst.msk [vmem:[#allocation3 + $0x30] sm:$0xff] %vm257_vm1, %v12910_v60 }
  0x26   : > { %9541 = vmatmul.mubr.msk.f32.vlgmr.msra.gmra.mrb[8].mxu0 %vm257_vm1, %v10333_v23  ;;  %v10441_v45 = vld [vmem:[%s10240_s11 + $0xb1] sm:$0xff]  ;;  %v10446_v46 = vld [vmem:[%s10240_s11 + $0x41] sm:$0xff]  ;;  %347 = vst.msk [vmem:[#allocation3 + $0x38] sm:$0xff] %vm257_vm1, %v12910_v60 }
  0x27   : > { %9543 = vmatprep.mubr.msk.f32.mxu0 %vm257_vm1, %v10339_v25  ;;  %9567 = vmatpush3.msk.msra.mxu0 %vm390_vm0, %v8441_v7  ;;  %v10450_v47 = vld [vmem:[%s10240_s11 + $0xc1] sm:$0xff]  ;;  %v10453_v48 = vld [vmem:[%s10240_s11 + $0x51] sm:$0xff]  ;;  %264 = vst.msk [vmem:[#allocation2 + $0x28] sm:$0x1] %vm259_vm2, %v12910_v60  ;;  %260 = vst.msk [vmem:[#allocation2 + $0x8] sm:$0x1] %vm259_vm2, %v12910_v60 }
  0x28   : > { %9594 = vmatprep.subr.msk.mxu0 %vm390_vm0, %v8477_v26  ;;  %9555 = vmatmul.mubr.msk.f32.vlgmr.msra.gmra.mrb[8].mxu1 %vm257_vm1, %v10351_v27  ;;  %v10466_v50 = vld [vmem:[%s10240_s11 + $0xd1] sm:$0xff]  ;;  %v10471_v51 = vld [vmem:[%s10240_s11 + $0x61] sm:$0xff]  ;;  %262 = vst.msk [vmem:[#allocation2 + $0x18] sm:$0x1] %vm259_vm2, %v12910_v60  ;;  %266 = vst.msk [vmem:[#allocation2 + $0x38] sm:$0x1] %vm259_vm2, %v12910_v60 }
  0x29   : > { %9557 = vmatprep.mubr.msk.f32.mxu1 %vm257_vm1, %v10360_v29  ;;  %9581 = vmatpush3.msk.msra.mxu1 %vm390_vm0, %v8459_v13  ;;  %v10475_v52 = vld [vmem:[%s10240_s11 + $0xe1] sm:$0xff]  ;;  %v10478_v53 = vld [vmem:[%s10240_s11 + $0x71] sm:$0xff]  ;;  %268 = vst.msk [vmem:[#allocation2 + $0x48] sm:$0x1] %vm259_vm2, %v12910_v60  ;;  %270 = vst.msk [vmem:[#allocation2 + $0x58] sm:$0x1] %vm259_vm2, %v12910_v60 }
  0x2a   : > { %9544 = vmatmul.mubr.msk.f32.gmra.mrb[10].mxu0 %vm257_vm1, %v10356_v28  ;;  %9608 = vmatprep.subr.msk.mxu1 %vm390_vm0, %v8495_v31  ;;  %v10488_v54 = vld [vmem:[%s10240_s11 + $0xf1] sm:$0xff]  ;;  %v10493_v55 = vld [vmem:[%s10240_s11 + $0x81] sm:$0xff]  ;;  %272 = vst.msk [vmem:[#allocation2 + $0x68] sm:$0x1] %vm259_vm2, %v12910_v60  ;;  %274 = vst.msk [vmem:[#allocation2 + $0x78] sm:$0x1] %vm259_vm2, %v12910_v60 }
  0x2b   : > { %9546 = vmatprep.mubr.msk.f32.mxu0 %vm257_vm1, %v10363_v30  ;;  %v10496_v56 = vld [vmem:[%s10240_s11 + $0x101] sm:$0xff]  ;;  %v8458_v57 = vld [vmem:[%s10240_s11 + $0x111] sm:$0xff]  ;;  %276 = vst.msk [vmem:[#allocation2 + $0x88] sm:$0x1] %vm259_vm2, %v12910_v60  ;;  %296 = vst.msk [vmem:[#allocation2 + $0x128] sm:$0x1] %vm259_vm2, %v12910_v60 }
  0x2c   : > { %9558 = vmatmul.mubr.msk.f32.gmra.mrb[10].mxu1 %vm257_vm1, %v10376_v32  ;;  %v10631_v61 = vld [vmem:[%s10240_s11 + $0x230] sm:$0xff]  ;;  %v10640_v62 = vld [vmem:[%s10240_s11 + $0x1a1] sm:$0xff]  ;;  %298 = vst.msk [vmem:[#allocation2 + $0x138] sm:$0x1] %vm259_vm2, %v12910_v60  ;;  %300 = vst.msk [vmem:[#allocation2 + $0x148] sm:$0x1] %vm259_vm2, %v12910_v60 }
  0x2d   : > { %9560 = vmatprep.mubr.msk.f32.mxu1 %vm257_vm1, %v10385_v34  ;;  %v8524_v63 = vld [vmem:[%s10240_s11 + $0x120] sm:$0xff]  ;;  %v10654_v1 = vld [vmem:[%s10240_s11 + $0x130] sm:$0xff]  ;;  %302 = vst.msk [vmem:[#allocation2 + $0x158] sm:$0x1] %vm259_vm2, %v12910_v60  ;;  %304 = vst.msk [vmem:[#allocation2 + $0x168] sm:$0x1] %vm259_vm2, %v12910_v60 }
  0x2e   : > { %9547 = vmatmul.mubr.msk.f32.gmra.mrb[12].mxu0 %vm257_vm1, %v10381_v33  ;;  %v10661_v2 = vld [vmem:[%s10240_s11 + $0x140] sm:$0xff]  ;;  %v8603_v3 = vld [vmem:[%s12904_s1 + $0x10] sm:$0xf]  ;;  %306 = vst.msk [vmem:[#allocation2 + $0x178] sm:$0x1] %vm259_vm2, %v12910_v60 }
  0x2f   : > { %9549 = vmatprep.mubr.msk.f32.mxu0 %vm257_vm1, %v10388_v35  ;;  %v10674_v7 = vld [vmem:[%s10240_s11 + $0x150] sm:$0xff]  ;;  %v10681_v13 = vld [vmem:[%s10240_s11 + $0x160] sm:$0xff]  ;;  %308 = vst.msk [vmem:[#allocation2 + $0x188] sm:$0x1] %vm259_vm2, %v12910_v60  ;;  %310 = vst.msk [vmem:[#allocation2 + $0x198] sm:$0x1] %vm259_vm2, %v12910_v60 }
  0x30   : > { %9561 = vmatmul.mubr.msk.f32.gmra.mrb[12].mxu1 %vm257_vm1, %v10398_v36  ;;  %v10691_v21 = vld [vmem:[%s10240_s11 + $0x170] sm:$0xff]  ;;  %333 = vst.msk [vmem:[#allocation4 + $0x8] sm:$0xff] %vm331_vm11, %v12910_v60  ;;  %332 = vst.msk [vmem:[#allocation4] sm:$0xff] %vm331_vm11, %v12910_v60 }
  0x31   : > { %9563 = vmatprep.mubr.msk.f32.mxu1 %vm257_vm1, %v10406_v38  ;;  %334 = vst.msk [vmem:[#allocation4 + $0x10] sm:$0xff] %vm331_vm11, %v12910_v60  ;;  %335 = vst.msk [vmem:[#allocation4 + $0x18] sm:$0xff] %vm331_vm11, %v12910_v60 }
  0x32   : > { %9550 = vmatmul.mubr.msk.f32.gmra.mrb[14].mxu0 %vm257_vm1, %v10403_v37  ;;  %336 = vst.msk [vmem:[#allocation4 + $0x20] sm:$0xff] %vm331_vm11, %v12910_v60  ;;  %337 = vst.msk [vmem:[#allocation4 + $0x28] sm:$0xff] %vm331_vm11, %v12910_v60 }
  0x33   : > { %9568 = vmatprep.mubr.msk.f32.mxu0 %vm257_vm1, %v10409_v39  ;;  %338 = vst.msk [vmem:[#allocation4 + $0x30] sm:$0xff] %vm331_vm11, %v12910_v60  ;;  %339 = vst.msk [vmem:[#allocation4 + $0x38] sm:$0xff] %vm331_vm11, %v12910_v60 }
  0x34   : > { %9564 = vmatmul.mubr.msk.f32.gmra.mrb[14].mxu1 %vm257_vm1, %v10418_v40 }
  0x35   : > { %9582 = vmatprep.mubr.msk.f32.mxu1 %vm257_vm1, %v10426_v42 }
  0x36   : > { %9569 = vmatmul.mubr.msk.f32.vlgmr.msra.gmra.mrb[16].mxu0 %vm257_vm1, %v10423_v41 }
  0x37   : > { %9571 = vmatprep.mubr.msk.f32.mxu0 %vm257_vm1, %v10429_v43  ;;  %9595 = vmatpush3.msk.msra.mxu0 %vm390_vm0, %v8477_v26  ;;  %v10705_v26 = vld [vmem:[%s10240_s11 + $0x190] sm:$0xff] }
  0x38   : > { %9622 = vmatprep.subr.msk.mxu0 %vm390_vm0, %v8513_v44  ;;  %9583 = vmatmul.mubr.msk.f32.vlgmr.msra.gmra.mrb[16].mxu1 %vm257_vm1, %v10441_v45 }
  0x39   : > { %9585 = vmatprep.mubr.msk.f32.mxu1 %vm257_vm1, %v10450_v47  ;;  %9609 = vmatpush3.msk.msra.mxu1 %vm390_vm0, %v8495_v31  ;;  %v8578_v31 = vld [vmem:[%s10240_s11 + $0x20] sm:$0xff] }
  0x3a   : > { %9572 = vmatmul.mubr.msk.f32.gmra.mrb[18].mxu0 %vm257_vm1, %v10446_v46  ;;  %9636 = vmatprep.subr.msk.mxu1 %vm390_vm0, %v1936_v49 }
  0x3b   : > { %9574 = vmatprep.mubr.msk.f32.mxu0 %vm257_vm1, %v10453_v48 }
  0x3c   : > { %9586 = vmatmul.mubr.msk.f32.gmra.mrb[18].mxu1 %vm257_vm1, %v10466_v50 }
  0x3d   : > { %9588 = vmatprep.mubr.msk.f32.mxu1 %vm257_vm1, %v10475_v52 }
  0x3e   : > { %9575 = vmatmul.mubr.msk.f32.gmra.mrb[20].mxu0 %vm257_vm1, %v10471_v51 }
  0x3f   : > { %9577 = vmatprep.mubr.msk.f32.mxu0 %vm257_vm1, %v10478_v53 }
  0x40   : > { %9589 = vmatmul.mubr.msk.f32.gmra.mrb[20].mxu1 %vm257_vm1, %v10488_v54 }
  0x41   : > { %9591 = vmatprep.mubr.msk.f32.mxu1 %vm257_vm1, %v10496_v56 }
  0x42   : > { %9578 = vmatmul.mubr.msk.f32.gmra.mrb[22].mxu0 %vm257_vm1, %v10493_v55 }
  0x43   : > { %9596 = vmatprep.mubr.msk.f32.mxu0 %vm257_vm1, %v10246_v5 }
  0x44   : > { %9592 = vmatmul.mubr.msk.f32.gmra.mrb[22].mxu1 %vm257_vm1, %v8458_v57  ;;  %v8582_v57 = vld [vmem:[%s10240_s11 + $0x60] sm:$0xff] }
  0x45   : > { %9610 = vmatprep.mubr.msk.f32.mxu1 %vm257_vm1, %v10262_v9 }
  0x46   : > { %9597 = vmatmul.mubr.msk.f32.vlgmr.msra.gmra.mrb[24].mxu0 %vm257_vm1, %v10249_v6 }
  0x47   : > { %9599 = vmatprep.mubr.msk.f32.mxu0 %vm257_vm1, %v10267_v10  ;;  %9623 = vmatpush3.msk.msra.mxu0 %vm390_vm0, %v8513_v44  ;;  %v8581_v44 = vld [vmem:[%s10240_s11 + $0x50] sm:$0xff] }
  0x48   : > { %9650 = vmatprep.subr.msk.mxu0 %vm390_vm0, %v10511_v58  ;;  %9611 = vmatmul.mubr.msk.f32.vlgmr.msra.gmra.mrb[24].mxu1 %vm257_vm1, %v10271_v11 }
  0x49   : > { %9613 = vmatprep.mubr.msk.f32.mxu1 %vm257_vm1, %v10289_v14  ;;  %9637 = vmatpush3.msk.msra.mxu1 %vm390_vm0, %v1936_v49  ;;  %v8675_v49 = vld [vmem:[%s12904_s1 + $0x20] sm:$0xf] }
  0x4a   : > { %9600 = vmatmul.mubr.msk.f32.gmra.mrb[26].mxu0 %vm257_vm1, %v10274_v12  ;;  %9664 = vmatprep.subr.msk.mxu1 %vm390_vm0, %v10527_v59 }
  0x4b   : > { %9602 = vmatprep.mubr.msk.f32.mxu0 %vm257_vm1, %v10294_v15 }
  0x4c   : > { %9614 = vmatmul.mubr.msk.f32.gmra.mrb[26].mxu1 %vm257_vm1, %v10298_v16 }
  0x4d   : > { %9616 = vmatprep.mubr.msk.f32.mxu1 %vm257_vm1, %v10311_v18 }
  0x4e   : > { %9603 = vmatmul.mubr.msk.f32.gmra.mrb[28].mxu0 %vm257_vm1, %v10301_v17 }
  0x4f   : > { %9605 = vmatprep.mubr.msk.f32.mxu0 %vm257_vm1, %v10316_v19 }
  0x50   : > { %9617 = vmatmul.mubr.msk.f32.gmra.mrb[28].mxu1 %vm257_vm1, %v10319_v20 }
  0x51   : > { %9619 = vmatprep.mubr.msk.f32.mxu1 %vm257_vm1, %v10329_v22 }
  0x52   : > { %9606 = vmatmul.mubr.msk.f32.gmra.mrb[30].mxu0 %vm257_vm1, %v10631_v61 }
  0x53   : > { %9624 = vmatprep.mubr.msk.f32.mxu0 %vm257_vm1, %v10333_v23  ;;  %v8512_v23 = vld [vmem:[%s10240_s11 + $0x231] sm:$0xff] }
  0x54   : > { %9620 = vmatmul.mubr.msk.f32.gmra.mrb[30].mxu1 %vm257_vm1, %v10640_v62 }
  0x55   : > { %9638 = vmatprep.mubr.msk.f32.mxu1 %vm257_vm1, %v8524_v63  ;;  %v3494_v63 = vld [vmem:[%s12904_s1] sm:$0xf] }
  0x56   : > { %9625 = vmatmul.mubr.msk.f32.vlgmr.msra.gmra.mrb[32].mxu0 %vm257_vm1, %v10339_v25  ;;  %v10697_v25 = vld [vmem:[%s10240_s11 + $0x180] sm:$0xff] }
  0x57   : > { %9627 = vmatprep.mubr.msk.f32.mxu0 %vm257_vm1, %v10356_v28  ;;  %9651 = vmatpush3.msk.msra.mxu0 %vm390_vm0, %v10511_v58  ;;  %v8621_v28 = vld [vmem:[%s12904_s1 + $0x14] sm:$0xf] }
  0x58   : > { %9678 = vmatprep.subr.msk.mxu0 %vm390_vm0, %v8585_v0  ;;  %9639 = vmatmul.mubr.msk.f32.vlgmr.msra.gmra.mrb[32].mxu1 %vm257_vm1, %v10654_v1  ;;  %v8583_v58 = vld [vmem:[%s10240_s11 + $0x70] sm:$0xff] }
  0x59   : > { %9641 = vmatprep.mubr.msk.f32.mxu1 %vm257_vm1, %v10661_v2  ;;  %9665 = vmatpush3.msk.msra.mxu1 %vm390_vm0, %v10527_v59  ;;  %v8584_v59 = vld [vmem:[%s10240_s11 + $0x80] sm:$0xff] }
  0x5a   : > { %9628 = vmatmul.mubr.msk.f32.gmra.mrb[34].mxu0 %vm257_vm1, %v10363_v30  ;;  %9692 = vmatprep.subr.msk.mxu1 %vm390_vm0, %v8603_v3  ;;  %v8577_v30 = vld [vmem:[%s10240_s11 + $0x10] sm:$0xff] }
  0x5b   : > { %9630 = vmatprep.mubr.msk.f32.mxu0 %vm257_vm1, %v10381_v33  ;;  %v8579_v33 = vld [vmem:[%s10240_s11 + $0x30] sm:$0xff] }
  0x5c   : > { %9642 = vmatmul.mubr.msk.f32.gmra.mrb[34].mxu1 %vm257_vm1, %v10674_v7 }
  0x5d   : > { %9644 = vmatprep.mubr.msk.f32.mxu1 %vm257_vm1, %v10681_v13 }
  0x5e   : > { %9631 = vmatmul.mubr.msk.f32.gmra.mrb[36].mxu0 %vm257_vm1, %v10388_v35  ;;  %v8657_v35 = vld [vmem:[%s12904_s1 + $0x1c] sm:$0xf] }
  0x5f   : > { %9633 = vmatprep.mubr.msk.f32.mxu0 %vm257_vm1, %v10403_v37  ;;  %v8580_v37 = vld [vmem:[%s10240_s11 + $0x40] sm:$0xff] }
  0x60   : > { %9645 = vmatmul.mubr.msk.f32.gmra.mrb[36].mxu1 %vm257_vm1, %v10691_v21 }
  0x61   : > { %9647 = vmatprep.mubr.msk.f32.mxu1 %vm257_vm1, %v10697_v25 }
  0x62   : > { %9634 = vmatmul.mubr.msk.f32.gmra.mrb[38].mxu0 %vm257_vm1, %v8512_v23  ;;  %v357_v23 = vld [vmem:[#allocation3] sm:$0xff] }
  0x63   : > { %9652 = vmatprep.mubr.msk.f32.mxu0 %vm257_vm1, %v10243_v4  ;;  %v8639_v4 = vld [vmem:[%s12904_s1 + $0x18] sm:$0xf] }
  0x64   : > { %9648 = vmatmul.mubr.msk.f32.gmra.mrb[38].mxu1 %vm257_vm1, %v10705_v26 }
  0x65   : > { %9666 = vmatprep.mubr.msk.f32.mxu1 %vm257_vm1, %v10259_v8 }
  0x66   : > { %9653 = vmatmul.mubr.msk.f32.vlgmr.msra.gmra.mrb[40].mxu0 %vm257_vm1, %v10246_v5 }
  0x67   : > { %9655 = vmatprep.mubr.msk.f32.mxu0 %vm257_vm1, %v10249_v6  ;;  %9679 = vmatpush3.msk.msra.mxu0 %vm390_vm0, %v8585_v0  ;;  %v8703_v0 = vld [vmem:[%s12904_s1 + $0x4] sm:$0xf] }
  0x68   : > { %9706 = vmatprep.subr.msk.mxu0 %vm390_vm0, %v8621_v28  ;;  %9667 = vmatmul.mubr.msk.f32.vlgmr.msra.gmra.mrb[40].mxu1 %vm257_vm1, %v10262_v9 }
  0x69   : > { %9669 = vmatprep.mubr.msk.f32.mxu1 %vm257_vm1, %v10271_v11  ;;  %9693 = vmatpush3.msk.msra.mxu1 %vm390_vm0, %v8603_v3  ;;  %v8773_v3 = vld [vmem:[%s10240_s11 + $0x211] sm:$0xff] }
  0x6a   : > { %9656 = vmatmul.mubr.msk.f32.gmra.mrb[42].mxu0 %vm257_vm1, %v10267_v10  ;;  %9720 = vmatprep.subr.msk.mxu1 %vm390_vm0, %v8639_v4 }
  0x6b   : > { %9658 = vmatprep.mubr.msk.f32.mxu0 %vm257_vm1, %v10274_v12 }
  0x6c   : > { %9670 = vmatmul.mubr.msk.f32.gmra.mrb[42].mxu1 %vm257_vm1, %v10289_v14 }
  0x6d   : > { %9672 = vmatprep.mubr.msk.f32.mxu1 %vm257_vm1, %v10298_v16 }
  0x6e   : > { %9659 = vmatmul.mubr.msk.f32.gmra.mrb[44].mxu0 %vm257_vm1, %v10294_v15 }
  0x6f   : > { %9661 = vmatprep.mubr.msk.f32.mxu0 %vm257_vm1, %v10301_v17 }
  0x70   : > { %9673 = vmatmul.mubr.msk.f32.gmra.mrb[44].mxu1 %vm257_vm1, %v10311_v18 }
  0x71   : > { %9675 = vmatprep.mubr.msk.f32.mxu1 %vm257_vm1, %v10319_v20 }
  0x72   : > { %9662 = vmatmul.mubr.msk.f32.gmra.mrb[46].mxu0 %vm257_vm1, %v10316_v19 }
  0x73   : > { %9680 = vmatprep.mubr.msk.f32.mxu0 %vm257_vm1, %v8577_v30 }
  0x74   : > { %9676 = vmatmul.mubr.msk.f32.gmra.mrb[46].mxu1 %vm257_vm1, %v10329_v22 }
  0x75   : > { %9694 = vmatprep.mubr.msk.f32.mxu1 %vm257_vm1, %v10336_v24 }
  0x76   : > { %9681 = vmatmul.mubr.msk.f32.vlgmr.msra.gmra.mrb[48].mxu0 %vm257_vm1, %v8578_v31  ;;  %v360_v31 = vld [vmem:[#allocation3 + $0x18] sm:$0xff] }
  0x77   : > { %9683 = vmatprep.mubr.msk.f32.mxu0 %vm257_vm1, %v8579_v33  ;;  %9707 = vmatpush3.msk.msra.mxu0 %vm390_vm0, %v8621_v28  ;;  %v8826_v33 = vld [vmem:[%s10240_s11 + $0xf1] sm:$0xff] }
  0x78   : > { %9734 = vmatprep.subr.msk.mxu0 %vm390_vm0, %v8657_v35  ;;  %9695 = vmatmul.mubr.msk.f32.vlgmr.msra.gmra.mrb[48].mxu1 %vm257_vm1, %v10351_v27 }
  0x79   : > { %9697 = vmatprep.mubr.msk.f32.mxu1 %vm257_vm1, %v10360_v29  ;;  %9721 = vmatpush3.msk.msra.mxu1 %vm390_vm0, %v8639_v4  ;;  %v11138_v4 = vld [vmem:[%s10240_s11 + $0x30] sm:$0xff] }
  0x7a   : > { %9684 = vmatmul.mubr.msk.f32.gmra.mrb[50].mxu0 %vm257_vm1, %v8580_v37  ;;  %9748 = vmatprep.subr.msk.mxu1 %vm390_vm0, %v8675_v49  ;;  %v359_v37 = vld [vmem:[#allocation3 + $0x10] sm:$0xff] }
  0x7b   : > { %9686 = vmatprep.mubr.msk.f32.mxu0 %vm257_vm1, %v8581_v44  ;;  %v8827_v44 = vld [vmem:[%s10240_s11 + $0x101] sm:$0xff] }
  0x7c   : > { %9698 = vmatmul.mubr.msk.f32.gmra.mrb[50].mxu1 %vm257_vm1, %v10376_v32 }
  0x7d   : > { %9700 = vmatprep.mubr.msk.f32.mxu1 %vm257_vm1, %v10385_v34 }
  0x7e   : > { %9687 = vmatmul.mubr.msk.f32.gmra.mrb[52].mxu0 %vm257_vm1, %v8582_v57 }
  0x7f   : > { %9689 = vmatprep.mubr.msk.f32.mxu0 %vm257_vm1, %v8583_v58 }
  0x80   : > { %9701 = vmatmul.mubr.msk.f32.gmra.mrb[52].mxu1 %vm257_vm1, %v10398_v36 }
  0x81   : > { %9703 = vmatprep.mubr.msk.f32.mxu1 %vm257_vm1, %v10406_v38 }
  0x82   : > { %9690 = vmatmul.mubr.msk.f32.gmra.mrb[54].mxu0 %vm257_vm1, %v8584_v59 }
  0x83   : > { %9708 = vmatprep.mubr.msk.f32.mxu0 %vm257_vm1, %v10409_v39 }
  0x84   : > { %9704 = vmatmul.mubr.msk.f32.gmra.mrb[54].mxu1 %vm257_vm1, %v10418_v40 }
  0x85   : > { %9722 = vmatprep.mubr.msk.f32.mxu1 %vm257_vm1, %v10654_v1  ;;  %v8638_v1 = vld [vmem:[%s10240_s11 + $0x1a0] sm:$0xff] }
  0x86   : > { %9709 = vmatmul.mubr.msk.f32.vlgmr.msra.gmra.mrb[56].mxu0 %vm257_vm1, %v10423_v41 }
  0x87   : > { %9711 = vmatprep.mubr.msk.f32.mxu0 %vm257_vm1, %v10429_v43  ;;  %9735 = vmatpush3.msk.msra.mxu0 %vm390_vm0, %v8657_v35  ;;  %v11144_v35 = vld [vmem:[%s10240_s11 + $0x40] sm:$0xff] }
  0x88   : > { %9762 = vmatprep.subr.msk.mxu0 %vm390_vm0, %v3494_v63  ;;  %9723 = vmatmul.mubr.msk.f32.vlgmr.msra.gmra.mrb[56].mxu1 %vm257_vm1, %v10661_v2  ;;  %v8721_v2 = vld [vmem:[%s12904_s1 + $0x8] sm:$0xf] }
  0x89   : > { %9725 = vmatprep.mubr.msk.f32.mxu1 %vm257_vm1, %v10674_v7  ;;  %9749 = vmatpush3.msk.msra.mxu1 %vm390_vm0, %v8675_v49  ;;  %v11077_v7 = vld [vmem:[%s10240_s11 + $0x51] sm:$0xff] }
  0x8a   : > { %9712 = vmatmul.mubr.msk.f32.gmra.mrb[58].mxu0 %vm257_vm1, %v10446_v46  ;;  %9776 = vmatprep.subr.msk.mxu1 %vm390_vm0, %v8703_v0 }
  0x8b   : > { %9714 = vmatprep.mubr.msk.f32.mxu0 %vm257_vm1, %v10453_v48 }
  0x8c   : > { %9726 = vmatmul.mubr.msk.f32.gmra.mrb[58].mxu1 %vm257_vm1, %v10681_v13  ;;  %v5035_v13 = vld [vmem:[%s10240_s11] sm:$0xff] }
  0x8d   : > { %9728 = vmatprep.mubr.msk.f32.mxu1 %vm257_vm1, %v10691_v21  ;;  %v358_v21 = vld [vmem:[#allocation3 + $0x8] sm:$0xff] }
  0x8e   : > { %9715 = vmatmul.mubr.msk.f32.gmra.mrb[60].mxu0 %vm257_vm1, %v10471_v51 }
  0x8f   : > { %9717 = vmatprep.mubr.msk.f32.mxu0 %vm257_vm1, %v10478_v53 }
  0x90   : > { %9729 = vmatmul.mubr.msk.f32.gmra.mrb[60].mxu1 %vm257_vm1, %v10697_v25  ;;  %v8825_v25 = vld [vmem:[%s10240_s11 + $0xe1] sm:$0xff] }
  0x91   : > { %9731 = vmatprep.mubr.msk.f32.mxu1 %vm257_vm1, %v10705_v26 }
  0x92   : > { %9718 = vmatmul.mubr.msk.f32.gmra.mrb[62].mxu0 %vm257_vm1, %v10493_v55  ;;  %v8737_v55 = vld [vmem:[%s10240_s11 + $0x210] sm:$0xff] }
  0x93   : > { %9736 = vmatprep.mubr.msk.f32.mxu0 %vm257_vm1, %v10246_v5  ;;  %v8739_v5 = vld [vmem:[%s12904_s1 + $0xc] sm:$0xf] }
  0x94   : > { %9732 = vmatmul.mubr.msk.f32.gmra.mrb[62].mxu1 %vm257_vm1, %v8638_v1  ;;  %v362_v1 = vld [vmem:[#allocation3 + $0x28] sm:$0xff] }
  0x95   : > { %9750 = vmatprep.mubr.msk.f32.mxu1 %vm257_vm1, %v10262_v9 }
  0x96   : > { %9737 = vmatmul.mubr.msk.f32.vlgmr.msra.gmra.mrb[64].mxu0 %vm257_vm1, %v10249_v6  ;;  %v10870_v6 = vld [vmem:[%s10240_s11 + $0x90] sm:$0xff] }
  0x97   : > { %9739 = vmatprep.mubr.msk.f32.mxu0 %vm257_vm1, %v10267_v10  ;;  %9763 = vmatpush3.msk.msra.mxu0 %vm390_vm0, %v3494_v63  ;;  %v3643_v10 = vld [vmem:[%s10240_s11 + $0x1] sm:$0xff]  ;;  %v11157_v63 = vld [vmem:[%s10240_s11 + $0x50] sm:$0xff] }
  0x98   : > { %9790 = vmatprep.subr.msk.mxu0 %vm390_vm0, %v8721_v2  ;;  %9751 = vmatmul.mubr.msk.f32.vlgmr.msra.gmra.mrb[64].mxu1 %vm257_vm1, %v10271_v11 }
  0x99   : > { %9753 = vmatprep.mubr.msk.f32.mxu1 %vm257_vm1, %v10289_v14  ;;  %9777 = vmatpush3.msk.msra.mxu1 %vm390_vm0, %v8703_v0 }
  0x9a   : > { %9740 = vmatmul.mubr.msk.f32.gmra.mrb[66].mxu0 %vm257_vm1, %v10274_v12  ;;  %9804 = vmatprep.subr.msk.mxu1 %vm390_vm0, %v8739_v5  ;;  %v8757_v12 = vld [vmem:[%s12904_s1 + $0x10] sm:$0xf] }
  0x9b   : > { %9742 = vmatprep.mubr.msk.f32.mxu0 %vm257_vm1, %v10294_v15  ;;  %v8775_v15 = vld [vmem:[%s12904_s1 + $0x14] sm:$0xf] }
  0x9c   : > { %9754 = vmatmul.mubr.msk.f32.gmra.mrb[66].mxu1 %vm257_vm1, %v10298_v16 }
  0x9d   : > { %9756 = vmatprep.mubr.msk.f32.mxu1 %vm257_vm1, %v10311_v18 }
  0x9e   : > { %9743 = vmatmul.mubr.msk.f32.gmra.mrb[68].mxu0 %vm257_vm1, %v10301_v17  ;;  %v8713_v17 = vld [vmem:[%s10240_s11 + $0x91] sm:$0xff] }
  0x9f   : > { %9745 = vmatprep.mubr.msk.f32.mxu0 %vm257_vm1, %v10316_v19  ;;  %v8731_v19 = vld [vmem:[%s10240_s11 + $0x1b0] sm:$0xff] }
  0xa0   : > { %9757 = vmatmul.mubr.msk.f32.gmra.mrb[68].mxu1 %vm257_vm1, %v10319_v20 }
  0xa1   : > { %9759 = vmatprep.mubr.msk.f32.mxu1 %vm257_vm1, %v10329_v22 }
  0xa2   : > { %9746 = vmatmul.mubr.msk.f32.gmra.mrb[70].mxu0 %vm257_vm1, %v10631_v61  ;;  %v8738_v61 = vld [vmem:[%s10240_s11 + $0x220] sm:$0xff] }
  0xa3   : > { %9764 = vmatprep.mubr.msk.f32.mxu0 %vm257_vm1, %v10870_v6 }
  0xa4   : > { %9760 = vmatmul.mubr.msk.f32.gmra.mrb[70].mxu1 %vm257_vm1, %v10640_v62  ;;  %v8829_v62 = vld [vmem:[%s12904_s1 + $0x20] sm:$0xf] }
  0xa5   : > { %9778 = vmatprep.mubr.msk.f32.mxu1 %vm257_vm1, %v3643_v10  ;;  %v361_v10 = vld [vmem:[#allocation3 + $0x20] sm:$0xff] }
  0xa6   : > { %9765 = vmatmul.mubr.msk.f32.vlgmr.msra.gmra.mrb[72].mxu0 %vm257_vm1, %v10336_v24 }
  0xa7   : > { %9767 = vmatprep.mubr.msk.f32.mxu0 %vm257_vm1, %v10351_v27  ;;  %9791 = vmatpush3.msk.msra.mxu0 %vm390_vm0, %v8721_v2  ;;  %v8828_v2 = vld [vmem:[%s10240_s11 + $0x111] sm:$0xff] }
  0xa8   : > { %9818 = vmatprep.subr.msk.mxu0 %vm390_vm0, %v8757_v12  ;;  %9779 = vmatmul.mubr.msk.f32.vlgmr.msra.gmra.mrb[72].mxu1 %vm257_vm1, %v10409_v39  ;;  %v8793_v39 = vld [vmem:[%s12904_s1 + $0x18] sm:$0xf] }
  0xa9   : > { %9781 = vmatprep.mubr.msk.f32.mxu1 %vm257_vm1, %v10423_v41  ;;  %9805 = vmatpush3.msk.msra.mxu1 %vm390_vm0, %v8739_v5  ;;  %v8732_v41 = vld [vmem:[%s10240_s11 + $0x1c0] sm:$0xff] }
  0xaa   : > { %9768 = vmatmul.mubr.msk.f32.gmra.mrb[74].mxu0 %vm257_vm1, %v10360_v29  ;;  %9832 = vmatprep.subr.msk.mxu1 %vm390_vm0, %v8775_v15  ;;  %v11162_v5 = vld [vmem:[%s10240_s11 + $0x60] sm:$0xff] }
  0xab   : > { %9770 = vmatprep.mubr.msk.f32.mxu0 %vm257_vm1, %v10376_v32 }
  0xac   : > { %9782 = vmatmul.mubr.msk.f32.gmra.mrb[74].mxu1 %vm257_vm1, %v10429_v43  ;;  %v8733_v43 = vld [vmem:[%s10240_s11 + $0x1d0] sm:$0xff] }
  0xad   : > { %9784 = vmatprep.mubr.msk.f32.mxu1 %vm257_vm1, %v10446_v46  ;;  %v8811_v46 = vld [vmem:[%s12904_s1 + $0x1c] sm:$0xf] }
  0xae   : > { %9771 = vmatmul.mubr.msk.f32.gmra.mrb[76].mxu0 %vm257_vm1, %v10385_v34 }
  0xaf   : > { %9773 = vmatprep.mubr.msk.f32.mxu0 %vm257_vm1, %v10398_v36 }
  0xb0   : > { %9785 = vmatmul.mubr.msk.f32.gmra.mrb[76].mxu1 %vm257_vm1, %v10453_v48  ;;  %v8734_v48 = vld [vmem:[%s10240_s11 + $0x1e0] sm:$0xff] }
  0xb1   : > { %9787 = vmatprep.mubr.msk.f32.mxu1 %vm257_vm1, %v10471_v51  ;;  %v8735_v51 = vld [vmem:[%s10240_s11 + $0x1f0] sm:$0xff] }
  0xb2   : > { %9774 = vmatmul.mubr.msk.f32.gmra.mrb[78].mxu0 %vm257_vm1, %v10406_v38 }
  0xb3   : > { %9792 = vmatprep.mubr.msk.f32.mxu0 %vm257_vm1, %v8713_v17 }
  0xb4   : > { %9788 = vmatmul.mubr.msk.f32.gmra.mrb[78].mxu1 %vm257_vm1, %v10478_v53  ;;  %v8736_v53 = vld [vmem:[%s10240_s11 + $0x200] sm:$0xff] }
  0xb5   : > { %9806 = vmatprep.mubr.msk.f32.mxu1 %vm257_vm1, %v8731_v19 }
  0xb6   : > { %9793 = vmatmul.mubr.msk.f32.vlgmr.msra.gmra.mrb[80].mxu0 %vm257_vm1, %v10426_v42 }
  0xb7   : > { %9795 = vmatprep.mubr.msk.f32.mxu0 %vm257_vm1, %v10441_v45  ;;  %9819 = vmatpush3.msk.msra.mxu0 %vm390_vm0, %v8757_v12 }
  0xb8   : > { %9846 = vmatprep.subr.msk.mxu0 %vm390_vm0, %v8793_v39  ;;  %9807 = vmatmul.mubr.msk.f32.vlgmr.msra.gmra.mrb[80].mxu1 %vm257_vm1, %v8732_v41  ;;  %v364_v41 = vld [vmem:[#allocation3 + $0x38] sm:$0xff] }
  0xb9   : > { %9809 = vmatprep.mubr.msk.f32.mxu1 %vm257_vm1, %v8733_v43  ;;  %9833 = vmatpush3.msk.msra.mxu1 %vm390_vm0, %v8775_v15  ;;  %v11172_v43 = vld [vmem:[%s10240_s11 + $0x70] sm:$0xff] }
  0xba   : > { %9796 = vmatmul.mubr.msk.f32.gmra.mrb[82].mxu0 %vm257_vm1, %v10450_v47  ;;  %9860 = vmatprep.subr.msk.mxu1 %vm390_vm0, %v8811_v46 }
  0xbb   : > { %9798 = vmatprep.mubr.msk.f32.mxu0 %vm257_vm1, %v10466_v50 }
  0xbc   : > { %9810 = vmatmul.mubr.msk.f32.gmra.mrb[82].mxu1 %vm257_vm1, %v8734_v48 }
  0xbd   : > { %9812 = vmatprep.mubr.msk.f32.mxu1 %vm257_vm1, %v8735_v51  ;;  %v11177_v51 = vld [vmem:[%s10240_s11 + $0xa0] sm:$0xff] }
  0xbe   : > { %9799 = vmatmul.mubr.msk.f32.gmra.mrb[84].mxu0 %vm257_vm1, %v10475_v52  ;;  %v8767_v52 = vld [vmem:[%s10240_s11 + $0x1b1] sm:$0xff] }
  0xbf   : > { %9801 = vmatprep.mubr.msk.f32.mxu0 %vm257_vm1, %v10488_v54  ;;  %v8768_v54 = vld [vmem:[%s10240_s11 + $0x1c1] sm:$0xff] }
  0xc0   : > { %9813 = vmatmul.mubr.msk.f32.gmra.mrb[84].mxu1 %vm257_vm1, %v8736_v53  ;;  %v5365_v53 = vld [vmem:[%s10240_s11 + $0x1] sm:$0xff] }
  0xc1   : > { %9815 = vmatprep.mubr.msk.f32.mxu1 %vm257_vm1, %v8737_v55 }
  0xc2   : > { %9802 = vmatmul.mubr.msk.f32.gmra.mrb[86].mxu0 %vm257_vm1, %v10496_v56  ;;  %v5051_v56 = vld [vmem:[%s12904_s1] sm:$0xf] }
  0xc3   : > { %9820 = vmatprep.mubr.msk.f32.mxu0 %vm257_vm1, %v10259_v8  ;;  %v8769_v8 = vld [vmem:[%s10240_s11 + $0x1d1] sm:$0xff] }
  0xc4   : > { %9816 = vmatmul.mubr.msk.f32.gmra.mrb[86].mxu1 %vm257_vm1, %v8738_v61 }
  0xc5   : > { %9834 = vmatprep.mubr.msk.f32.mxu1 %vm257_vm1, %v8767_v52  ;;  %v363_v52 = vld [vmem:[#allocation3 + $0x30] sm:$0xff] }
  0xc6   : > { %9821 = vmatmul.mubr.msk.f32.vlgmr.msra.gmra.mrb[88].mxu0 %vm257_vm1, %v10262_v9  ;;  %v8770_v9 = vld [vmem:[%s10240_s11 + $0x1e1] sm:$0xff] }
  0xc7   : > { %9823 = vmatprep.mubr.msk.f32.mxu0 %vm257_vm1, %v10271_v11  ;;  %9847 = vmatpush3.msk.msra.mxu0 %vm390_vm0, %v8793_v39  ;;  %v8771_v11 = vld [vmem:[%s10240_s11 + $0x1f1] sm:$0xff] }
  0xc8   : > { %9874 = vmatprep.subr.msk.mxu0 %vm390_vm0, %v8829_v62  ;;  %9835 = vmatmul.mubr.msk.f32.vlgmr.msra.gmra.mrb[88].mxu1 %vm257_vm1, %v8768_v54  ;;  %v11182_v54 = vld [vmem:[%s10240_s11 + $0xb0] sm:$0xff] }
  0xc9   : > { %9837 = vmatprep.mubr.msk.f32.mxu1 %vm257_vm1, %v8769_v8  ;;  %9861 = vmatpush3.msk.msra.mxu1 %vm390_vm0, %v8811_v46 }
  0xca   : > { %9824 = vmatmul.mubr.msk.f32.gmra.mrb[90].mxu0 %vm257_vm1, %v10289_v14  ;;  %9888 = vmatprep.subr.msk.mxu1 %vm390_vm0, %v5051_v56  ;;  %v8772_v14 = vld [vmem:[%s10240_s11 + $0x201] sm:$0xff] }
  0xcb   : > { %9826 = vmatprep.mubr.msk.f32.mxu0 %vm257_vm1, %v10298_v16  ;;  %v8774_v16 = vld [vmem:[%s10240_s11 + $0x221] sm:$0xff] }
  0xcc   : > { %9838 = vmatmul.mubr.msk.f32.gmra.mrb[90].mxu1 %vm257_vm1, %v8770_v9 }
  0xcd   : > { %9840 = vmatprep.mubr.msk.f32.mxu1 %vm257_vm1, %v8771_v11 }
  0xce   : > { %9827 = vmatmul.mubr.msk.f32.gmra.mrb[92].mxu0 %vm257_vm1, %v10311_v18  ;;  %v11042_v18 = vld [vmem:[%s10240_s11 + $0x11] sm:$0xff] }
  0xcf   : > { %9829 = vmatprep.mubr.msk.f32.mxu0 %vm257_vm1, %v10319_v20  ;;  %v8857_v20 = vld [vmem:[%s12904_s1 + $0x4] sm:$0xf] }
  0xd0   : > { %9841 = vmatmul.mubr.msk.f32.gmra.mrb[92].mxu1 %vm257_vm1, %v8772_v14 }
  0xd1   : > { %9843 = vmatprep.mubr.msk.f32.mxu1 %vm257_vm1, %v8773_v3 }
  0xd2   : > { %9830 = vmatmul.mubr.msk.f32.gmra.mrb[94].mxu0 %vm257_vm1, %v10329_v22  ;;  %v11053_v22 = vld [vmem:[%s10240_s11 + $0x21] sm:$0xff] }
  0xd3   : > { %9848 = vmatprep.mubr.msk.f32.mxu0 %vm257_vm1, %v10336_v24  ;;  %v11059_v24 = vld [vmem:[%s10240_s11 + $0x31] sm:$0xff] }
  0xd4   : > { %9844 = vmatmul.mubr.msk.f32.gmra.mrb[94].mxu1 %vm257_vm1, %v8774_v16 }
  0xd5   : > { %9862 = vmatprep.mubr.msk.f32.mxu1 %vm257_vm1, %v11042_v18 }
  0xd6   : > { %9849 = vmatmul.mubr.msk.f32.vlgmr.msra.gmra.mrb[96].mxu0 %vm257_vm1, %v10351_v27  ;;  %v8867_v27 = vld [vmem:[%s12904_s1 + $0x8] sm:$0xf] }
  0xd7   : > { %9851 = vmatprep.mubr.msk.f32.mxu0 %vm257_vm1, %v10360_v29  ;;  %9875 = vmatpush3.msk.msra.mxu0 %vm390_vm0, %v8829_v62  ;;  %v11072_v29 = vld [vmem:[%s10240_s11 + $0x41] sm:$0xff] }
  0xd8   : > { %9902 = vmatprep.subr.msk.mxu0 %vm390_vm0, %v8857_v20  ;;  %9863 = vmatmul.mubr.msk.f32.vlgmr.msra.gmra.mrb[96].mxu1 %vm257_vm1, %v11053_v22 }
  0xd9   : > { %9865 = vmatprep.mubr.msk.f32.mxu1 %vm257_vm1, %v11059_v24  ;;  %9889 = vmatpush3.msk.msra.mxu1 %vm390_vm0, %v5051_v56 }
  0xda   : > { %9852 = vmatmul.mubr.msk.f32.gmra.mrb[98].mxu0 %vm257_vm1, %v10376_v32  ;;  %9916 = vmatprep.subr.msk.mxu1 %vm390_vm0, %v8867_v27  ;;  %v11088_v32 = vld [vmem:[%s10240_s11 + $0x61] sm:$0xff] }
  0xdb   : > { %9854 = vmatprep.mubr.msk.f32.mxu0 %vm257_vm1, %v10385_v34  ;;  %v11093_v34 = vld [vmem:[%s10240_s11 + $0x71] sm:$0xff] }
  0xdc   : > { %9866 = vmatmul.mubr.msk.f32.gmra.mrb[98].mxu1 %vm257_vm1, %v11072_v29 }
  0xdd   : > { %9868 = vmatprep.mubr.msk.f32.mxu1 %vm257_vm1, %v11077_v7 }
  0xde   : > { %9855 = vmatmul.mubr.msk.f32.gmra.mrb[100].mxu0 %vm257_vm1, %v10398_v36  ;;  %v8810_v36 = vld [vmem:[%s10240_s11 + $0x81] sm:$0xff] }
  0xdf   : > { %9857 = vmatprep.mubr.msk.f32.mxu0 %vm257_vm1, %v10406_v38  ;;  %v11108_v38 = vld [vmem:[%s12904_s1 + $0xc] sm:$0xf] }
  0xe0   : > { %9869 = vmatmul.mubr.msk.f32.gmra.mrb[100].mxu1 %vm257_vm1, %v11088_v32 }
  0xe1   : > { %9871 = vmatprep.mubr.msk.f32.mxu1 %vm257_vm1, %v11093_v34 }
  0xe2   : > { %9858 = vmatmul.mubr.msk.f32.gmra.mrb[102].mxu0 %vm257_vm1, %v10418_v40  ;;  %v11115_v40 = vld [vmem:[%s10240_s11 + $0x10] sm:$0xff] }
  0xe3   : > { %9876 = vmatprep.mubr.msk.f32.mxu0 %vm257_vm1, %v10426_v42  ;;  %v11121_v42 = vld [vmem:[%s10240_s11 + $0x20] sm:$0xff] }
  0xe4   : > { %9872 = vmatmul.mubr.msk.f32.gmra.mrb[102].mxu1 %vm257_vm1, %v8810_v36 }
  0xe5   : > { %9890 = vmatprep.mubr.msk.f32.mxu1 %vm257_vm1, %v5035_v13 }
  0xe6   : > { %9877 = vmatmul.mubr.msk.f32.vlgmr.msra.gmra.mrb[104].mxu0 %vm257_vm1, %v10441_v45 }
  0xe7   : > { %9879 = vmatprep.mubr.msk.f32.mxu0 %vm257_vm1, %v10450_v47  ;;  %9903 = vmatpush3.msk.msra.mxu0 %vm390_vm0, %v8857_v20  ;;  %v11131_v47 = vld [vmem:[%s12904_s1 + $0x10] sm:$0xf]  ;;  %v11200_v20 = vld [vmem:[%s10240_s11 + $0xc0] sm:$0xff] }
  0xe8   : > { %9930 = vmatprep.subr.msk.mxu0 %vm390_vm0, %v11108_v38  ;;  %9891 = vmatmul.mubr.msk.f32.vlgmr.msra.gmra.mrb[104].mxu1 %vm257_vm1, %v11115_v40 }
  0xe9   : > { %v9514_v45 = vpop.f32.mrb[0].mxu0  ;;  %9893 = vmatprep.mubr.msk.f32.mxu1 %vm257_vm1, %v11121_v42  ;;  %9917 = vmatpush3.msk.msra.mxu1 %vm390_vm0, %v8867_v27 }
  0xea   : > { %v500_v26 = vadd.f32 %v9514_v45, %v358_v21  ;;  %v460_v28 = vpop.f32.mrb[1].mxu0  ;;  %9880 = vmatmul.mubr.msk.f32.gmra.mrb[106].mxu0 %vm257_vm1, %v10466_v50  ;;  %9944 = vmatprep.subr.msk.mxu1 %vm390_vm0, %v11131_v47  ;;  %v11206_v21 = vld [vmem:[%s10240_s11 + $0xd0] sm:$0xff] }
  0xeb   : > { %v499_v30 = vadd.f32 %v460_v28, %v357_v23  ;;  %9882 = vmatprep.mubr.msk.f32.mxu0 %vm257_vm1, %v8825_v25  ;;  %v9528_v50 = vpop.f32.mrb[0].mxu1 }
  0xec   : > { %508 = vst.msk [vmem:[#allocation3 + $0x8] sm:$0xff] %vm257_vm1, %v500_v26  ;;  %v627_v57 = vpop.f32.mrb[1].mxu1  ;;  %9894 = vmatmul.mubr.msk.f32.gmra.mrb[106].mxu1 %vm257_vm1, %v11138_v4 }
  0xed   : > { %507 = vst.msk [vmem:[#allocation3] sm:$0xff] %vm257_vm1, %v499_v30  ;;  %v9517_v49 = vpop.f32.mrb[2].mxu0  ;;  %9896 = vmatprep.mubr.msk.f32.mxu1 %vm257_vm1, %v11144_v35 }
  0xee   : > { %v502_v58 = vadd.f32 %v9517_v49, %v360_v31  ;;  %v470_v59 = vpop.f32.mrb[3].mxu0  ;;  %9883 = vmatmul.mubr.msk.f32.gmra.mrb[108].mxu0 %vm257_vm1, %v8826_v33 }
  0xef   : > { %v501_v0 = vadd.f32 %v470_v59, %v359_v37  ;;  %9885 = vmatprep.mubr.msk.f32.mxu0 %vm257_vm1, %v8827_v44  ;;  %v9531_v12 = vpop.f32.mrb[2].mxu1  ;;  %v11234_v37 = vld [vmem:[%s10240_s11 + $0xf0] sm:$0xff] }
  0xf0   : > { %510 = vst.msk [vmem:[#allocation3 + $0x18] sm:$0xff] %vm257_vm1, %v502_v58  ;;  %v637_v17 = vpop.f32.mrb[3].mxu1  ;;  %9897 = vmatmul.mubr.msk.f32.gmra.mrb[108].mxu1 %vm257_vm1, %v11157_v63 }
  0xf1   : > { %509 = vst.msk [vmem:[#allocation3 + $0x10] sm:$0xff] %vm257_vm1, %v501_v0  ;;  %v9520_v15 = vpop.f32.mrb[4].mxu0  ;;  %9899 = vmatprep.mubr.msk.f32.mxu1 %vm257_vm1, %v11162_v5 }
  0xf2   : > { %v504_v19 = vadd.f32 %v9520_v15, %v362_v1  ;;  %v480_v39 = vpop.f32.mrb[5].mxu0  ;;  %9886 = vmatmul.mubr.msk.f32.gmra.mrb[110].mxu0 %vm257_vm1, %v8828_v2 }
  0xf3   : > { %v503_v46 = vadd.f32 %v480_v39, %v361_v10  ;;  %v525_v48 = vld [vmem:[#allocation3 + $0x8] sm:$0xff]  ;;  %9904 = vmatprep.mubr.msk.f32.mxu0 %vm257_vm1, %v10870_v6  ;;  %v9534_v62 = vpop.f32.mrb[4].mxu1  ;;  %v11188_v6 = vld [vmem:[%s12904_s1 + $0x14] sm:$0xf] }
  0xf4   : > { %512 = vst.msk [vmem:[#allocation3 + $0x28] sm:$0xff] %vm257_vm1, %v504_v19  ;;  %v667_v55 = vadd.f32 %v9528_v50, %v525_v48  ;;  %v524_v61 = vld [vmem:[#allocation3] sm:$0xff]  ;;  %v647_v9 = vpop.f32.mrb[5].mxu1  ;;  %9900 = vmatmul.mubr.msk.f32.gmra.mrb[110].mxu1 %vm257_vm1, %v11172_v43 }
  0xf5   : > { %511 = vst.msk [vmem:[#allocation3 + $0x20] sm:$0xff] %vm257_vm1, %v503_v46  ;;  %v666_v8 = vadd.f32 %v627_v57, %v524_v61  ;;  %v9523_v56 = vpop.f32.mrb[6].mxu0  ;;  %9918 = vmatprep.mubr.msk.f32.mxu1 %vm257_vm1, %v5365_v53  ;;  %v8878_v53 = vld [vmem:[%s10240_s11 + $0x130] sm:$0xff]  ;;  %v8879_v61 = vld [vmem:[%s10240_s11 + $0x140] sm:$0xff] }
  0xf6   : > { %675 = vst.msk [vmem:[#allocation3 + $0x8] sm:$0xff] %vm257_vm1, %v667_v55  ;;  %v506_v11 = vadd.f32 %v9523_v56, %v364_v41  ;;  %v490_v14 = vpop.f32.mrb[7].mxu0  ;;  %9905 = vmatmul.mubr.msk.f32.vlgmr.msra.gmra.mrb[112].mxu0 %vm257_vm1, %v11177_v51  ;;  %v8895_v55 = vld [vmem:[%s10240_s11 + $0x1b0] sm:$0xff] }
  0xf7   : > { %674 = vst.msk [vmem:[#allocation3] sm:$0xff] %vm257_vm1, %v666_v8  ;;  %v505_v3 = vadd.f32 %v490_v14, %v363_v52  ;;  %v527_v16 = vld [vmem:[#allocation3 + $0x18] sm:$0xff]  ;;  %9907 = vmatprep.mubr.msk.f32.mxu0 %vm257_vm1, %v11182_v54  ;;  %9931 = vmatpush3.msk.msra.mxu0 %vm390_vm0, %v11108_v38  ;;  %v9537_v13 = vpop.f32.mrb[6].mxu1  ;;  %v8896_v14 = vld [vmem:[%s10240_s11 + $0x1c0] sm:$0xff] }
  0xf8   : > { %514 = vst.msk [vmem:[#allocation3 + $0x38] sm:$0xff] %vm257_vm1, %v506_v11  ;;  %v669_v27 = vadd.f32 %v9531_v12, %v527_v16  ;;  %v526_v36 = vld [vmem:[#allocation3 + $0x10] sm:$0xff]  ;;  %9958 = vmatprep.subr.msk.mxu0 %vm390_vm0, %v11188_v6  ;;  %v657_v45 = vpop.f32.mrb[7].mxu1  ;;  %9919 = vmatmul.mubr.msk.f32.vlgmr.msra.gmra.mrb[112].mxu1 %vm257_vm1, %v11042_v18  ;;  %v11216_v38 = vld [vmem:[%s12904_s1 + $0x18] sm:$0xf]  ;;  %v11227_v18 = vld [vmem:[%s10240_s11 + $0xe0] sm:$0xff] }
  0xf9   : > { %513 = vst.msk [vmem:[#allocation3 + $0x30] sm:$0xff] %vm257_vm1, %v505_v3  ;;  %v668_v23 = vadd.f32 %v637_v17, %v526_v36  ;;  %v9542_v25 = vpop.f32.mrb[8].mxu0  ;;  %9921 = vmatprep.mubr.msk.f32.mxu1 %vm257_vm1, %v11053_v22  ;;  %9945 = vmatpush3.msk.msra.mxu1 %vm390_vm0, %v11131_v47  ;;  %v8877_v12 = vld [vmem:[%s10240_s11 + $0x120] sm:$0xff]  ;;  %v11281_v8 = vld [vmem:[%s12904_s1 + $0x1c] sm:$0xf]  ;;  %v8897_v36 = vld [vmem:[%s10240_s11 + $0x1d0] sm:$0xff] }
  0xfa   : > { %677 = vst.msk [vmem:[#allocation3 + $0x18] sm:$0xff] %vm257_vm1, %v669_v27  ;;  %v793_v26 = vpop.f32.mrb[9].mxu0  ;;  %9908 = vmatmul.mubr.msk.f32.gmra.mrb[114].mxu0 %vm257_vm1, %v11200_v20  ;;  %9972 = vmatprep.subr.msk.mxu1 %vm390_vm0, %v11216_v38  ;;  %v8880_v27 = vld [vmem:[%s10240_s11 + $0x150] sm:$0xff] }
  0xfb   : > { %676 = vst.msk [vmem:[#allocation3 + $0x10] sm:$0xff] %vm257_vm1, %v668_v23  ;;  %v529_v28 = vld [vmem:[#allocation3 + $0x28] sm:$0xff]  ;;  %9910 = vmatprep.mubr.msk.f32.mxu0 %vm257_vm1, %v11206_v21  ;;  %v11231_v33 = vpop.f32.mrb[8].mxu1 }
  0xfc   : > { %v671_v30 = vadd.f32 %v9534_v62, %v529_v28  ;;  %v528_v31 = vld [vmem:[#allocation3 + $0x20] sm:$0xff]  ;;  %v11238_v49 = vpop.f32.mrb[9].mxu1  ;;  %9922 = vmatmul.mubr.msk.f32.gmra.mrb[114].mxu1 %vm257_vm1, %v11059_v24 }
  0xfd   : > { %v670_v22 = vadd.f32 %v647_v9, %v528_v31  ;;  %v691_v50 = vld [vmem:[#allocation3 + $0x8] sm:$0xff]  ;;  %v9545_v44 = vpop.f32.mrb[10].mxu0  ;;  %9924 = vmatprep.mubr.msk.f32.mxu1 %vm257_vm1, %v11072_v29  ;;  %v11251_v24 = vld [vmem:[%s10240_s11 + $0x100] sm:$0xff] }
  0xfe   : > { %679 = vst.msk [vmem:[#allocation3 + $0x28] sm:$0xff] %vm257_vm1, %v671_v30  ;;  %v833_v47 = vadd.f32 %v9542_v25, %v691_v50  ;;  %v690_v57 = vld [vmem:[#allocation3] sm:$0xff]  ;;  %v803_v58 = vpop.f32.mrb[11].mxu0  ;;  %9911 = vmatmul.mubr.msk.f32.gmra.mrb[116].mxu0 %vm257_vm1, %v11227_v18 }
  0xff   : > { %678 = vst.msk [vmem:[#allocation3 + $0x20] sm:$0xff] %vm257_vm1, %v670_v22  ;;  %v832_v59 = vadd.f32 %v793_v26, %v690_v57  ;;  %v531_v0 = vld [vmem:[#allocation3 + $0x38] sm:$0xff]  ;;  %9913 = vmatprep.mubr.msk.f32.mxu0 %vm257_vm1, %v11234_v37  ;;  %v11254_v10 = vpop.f32.mrb[10].mxu1  ;;  %v8881_v25 = vld [vmem:[%s10240_s11 + $0x160] sm:$0xff]  ;;  %v8899_v57 = vld [vmem:[%s10240_s11 + $0x1f0] sm:$0xff] }
 0x100   : > { %841 = vst.msk [vmem:[#allocation3 + $0x8] sm:$0xff] %vm257_vm1, %v833_v47  ;;  %v673_v1 = vadd.f32 %v9537_v13, %v531_v0  ;;  %v530_v2 = vld [vmem:[#allocation3 + $0x30] sm:$0xff]  ;;  %v11258_v19 = vpop.f32.mrb[11].mxu1  ;;  %9925 = vmatmul.mubr.msk.f32.gmra.mrb[116].mxu1 %vm257_vm1, %v11077_v7  ;;  %v11308_v30 = vld [vmem:[%s12904_s1 + $0x20] sm:$0xf] }
 0x101   : > { %840 = vst.msk [vmem:[#allocation3] sm:$0xff] %vm257_vm1, %v832_v59  ;;  %v672_v29 = vadd.f32 %v657_v45, %v530_v2  ;;  %v693_v15 = vld [vmem:[#allocation3 + $0x18] sm:$0xff]  ;;  %v9548_v17 = vpop.f32.mrb[12].mxu0  ;;  %9927 = vmatprep.mubr.msk.f32.mxu1 %vm257_vm1, %v11088_v32  ;;  %v8898_v50 = vld [vmem:[%s10240_s11 + $0x1e0] sm:$0xff]  ;;  %v8882_v47 = vld [vmem:[%s10240_s11 + $0x170] sm:$0xff] }
 0x102   : > { %681 = vst.msk [vmem:[#allocation3 + $0x38] sm:$0xff] %vm257_vm1, %v673_v1  ;;  %v835_v39 = vadd.f32 %v9545_v44, %v693_v15  ;;  %v692_v41 = vld [vmem:[#allocation3 + $0x10] sm:$0xff]  ;;  %v813_v46 = vpop.f32.mrb[13].mxu0  ;;  %9914 = vmatmul.mubr.msk.f32.gmra.mrb[118].mxu0 %vm257_vm1, %v11251_v24  ;;  %v8883_v1 = vld [vmem:[%s10240_s11 + $0x180] sm:$0xff] }
 0x103   : > { %680 = vst.msk [vmem:[#allocation3 + $0x30] sm:$0xff] %vm257_vm1, %v672_v29  ;;  %v834_v48 = vadd.f32 %v803_v58, %v692_v41  ;;  %9932 = vmatprep.mubr.msk.f32.mxu0 %vm257_vm1, %v8877_v12  ;;  %v11272_v7 = vpop.f32.mrb[12].mxu1  ;;  %v8900_v29 = vld [vmem:[%s10240_s11 + $0x200] sm:$0xff] }
 0x104   : > { %843 = vst.msk [vmem:[#allocation3 + $0x18] sm:$0xff] %vm257_vm1, %v835_v39  ;;  %v11276_v32 = vpop.f32.mrb[13].mxu1  ;;  %9928 = vmatmul.mubr.msk.f32.gmra.mrb[118].mxu1 %vm257_vm1, %v11093_v34 }
 0x105   : > { %842 = vst.msk [vmem:[#allocation3 + $0x10] sm:$0xff] %vm257_vm1, %v834_v48  ;;  %v695_v52 = vld [vmem:[#allocation3 + $0x28] sm:$0xff]  ;;  %v9551_v62 = vpop.f32.mrb[14].mxu0  ;;  %9946 = vmatprep.mubr.msk.f32.mxu1 %vm257_vm1, %v8895_v55 }
 0x106   : > { %v837_v56 = vadd.f32 %v9548_v17, %v695_v52  ;;  %v694_v9 = vld [vmem:[#allocation3 + $0x20] sm:$0xff]  ;;  %v823_v11 = vpop.f32.mrb[15].mxu0  ;;  %9933 = vmatmul.mubr.msk.f32.vlgmr.msra.gmra.mrb[120].mxu0 %vm257_vm1, %v8878_v53  ;;  %v8884_v17 = vld [vmem:[%s10240_s11 + $0x190] sm:$0xff] }
 0x107   : > { %v836_v3 = vadd.f32 %v813_v46, %v694_v9  ;;  %v858_v16 = vld [vmem:[#allocation3 + $0x8] sm:$0xff]  ;;  %9935 = vmatprep.mubr.msk.f32.mxu0 %vm257_vm1, %v8879_v61  ;;  %9959 = vmatpush3.msk.msra.mxu0 %vm390_vm0, %v11188_v6  ;;  %v11295_v23 = vpop.f32.mrb[14].mxu1 }
 0x108   : > { %845 = vst.msk [vmem:[#allocation3 + $0x28] sm:$0xff] %vm257_vm1, %v837_v56  ;;  %v1000_v34 = vadd.f32 %v11231_v33, %v858_v16  ;;  %v857_v13 = vld [vmem:[#allocation3] sm:$0xff]  ;;  %9986 = vmatprep.subr.msk.mxu0 %vm390_vm0, %v11281_v8  ;;  %v11302_v28 = vpop.f32.mrb[15].mxu1  ;;  %9947 = vmatmul.mubr.msk.f32.vlgmr.msra.gmra.mrb[120].mxu1 %vm257_vm1, %v8896_v14  ;;  %v8914_v14 = vld [vmem:[%s10240_s11 + $0x131] sm:$0xff] }
 0x109   : > { %844 = vst.msk [vmem:[#allocation3 + $0x20] sm:$0xff] %vm257_vm1, %v836_v3  ;;  %v999_v45 = vadd.f32 %v11238_v49, %v857_v13  ;;  %v697_v26 = vld [vmem:[#allocation3 + $0x38] sm:$0xff]  ;;  %v9570_v6 = vpop.f32.mrb[16].mxu0  ;;  %9949 = vmatprep.mubr.msk.f32.mxu1 %vm257_vm1, %v8897_v36  ;;  %9973 = vmatpush3.msk.msra.mxu1 %vm390_vm0, %v11216_v38  ;;  %v8913_v48 = vld [vmem:[%s10240_s11 + $0x121] sm:$0xff] }
 0x10a   : > { %1008 = vst.msk [vmem:[#allocation3 + $0x8] sm:$0xff] %vm257_vm1, %v1000_v34  ;;  %v839_v31 = vadd.f32 %v9551_v62, %v697_v26  ;;  %v696_v33 = vld [vmem:[#allocation3 + $0x30] sm:$0xff]  ;;  %v1127_v22 = vpop.f32.mrb[17].mxu0  ;;  %9936 = vmatmul.mubr.msk.f32.gmra.mrb[122].mxu0 %vm257_vm1, %v8880_v27  ;;  %10000 = vmatprep.subr.msk.mxu1 %vm390_vm0, %v11308_v30  ;;  %v8915_v36 = vld [vmem:[%s10240_s11 + $0x141] sm:$0xff] }
 0x10b   : > { %1007 = vst.msk [vmem:[#allocation3] sm:$0xff] %vm257_vm1, %v999_v45  ;;  %v838_v44 = vadd.f32 %v823_v11, %v696_v33  ;;  %v860_v49 = vld [vmem:[#allocation3 + $0x18] sm:$0xff]  ;;  %9938 = vmatprep.mubr.msk.f32.mxu0 %vm257_vm1, %v8881_v25  ;;  %v11322_v0 = vpop.f32.mrb[16].mxu1  ;;  %v11367_v26 = vld [vmem:[%s12906_s3] sm:$0xf] }
 0x10c   : > { %847 = vst.msk [vmem:[#allocation3 + $0x38] sm:$0xff] %vm257_vm1, %v839_v31  ;;  %v1002_v58 = vadd.f32 %v11254_v10, %v860_v49  ;;  %v859_v59 = vld [vmem:[#allocation3 + $0x10] sm:$0xff]  ;;  %v11329_v12 = vpop.f32.mrb[17].mxu1  ;;  %9950 = vmatmul.mubr.msk.f32.gmra.mrb[122].mxu1 %vm257_vm1, %v8898_v50  ;;  %v8917_v50 = vld [vmem:[%s10240_s11 + $0x161] sm:$0xff] }
 0x10d   : > { %846 = vst.msk [vmem:[#allocation3 + $0x30] sm:$0xff] %vm257_vm1, %v838_v44  ;;  %v1001_v2 = vadd.f32 %v11258_v19, %v859_v59  ;;  %v9573_v38 = vpop.f32.mrb[18].mxu0  ;;  %9952 = vmatprep.mubr.msk.f32.mxu1 %vm257_vm1, %v8899_v57  ;;  %v8901_v19 = vld [vmem:[%s10240_s11 + $0x210] sm:$0xff] }
 0x10e   : > { %1010 = vst.msk [vmem:[#allocation3 + $0x18] sm:$0xff] %vm257_vm1, %v1002_v58  ;;  %v1137_v10 = vpop.f32.mrb[19].mxu0  ;;  %9939 = vmatmul.mubr.msk.f32.gmra.mrb[124].mxu0 %vm257_vm1, %v8882_v47  ;;  %v8916_v33 = vld [vmem:[%s10240_s11 + $0x151] sm:$0xff] }
 0x10f   : > { %1009 = vst.msk [vmem:[#allocation3 + $0x10] sm:$0xff] %vm257_vm1, %v1001_v2  ;;  %v862_v15 = vld [vmem:[#allocation3 + $0x28] sm:$0xff]  ;;  %9941 = vmatprep.mubr.msk.f32.mxu0 %vm257_vm1, %v8883_v1  ;;  %v11341_v46 = vpop.f32.mrb[18].mxu1  ;;  %v8918_v1 = vld [vmem:[%s10240_s11 + $0x171] sm:$0xff] }
 0x110   : > { %v1004_v39 = vadd.f32 %v11272_v7, %v862_v15  ;;  %v861_v41 = vld [vmem:[#allocation3 + $0x20] sm:$0xff]  ;;  %v11345_v52 = vpop.f32.mrb[19].mxu1  ;;  %9953 = vmatmul.mubr.msk.f32.gmra.mrb[124].mxu1 %vm257_vm1, %v8900_v29 }
 0x111   : > { %v1003_v53 = vadd.f32 %v11276_v32, %v861_v41  ;;  %v1025_v55 = vld [vmem:[#allocation3 + $0x8] sm:$0xff]  ;;  %v9576_v61 = vpop.f32.mrb[20].mxu0  ;;  %9955 = vmatprep.mubr.msk.f32.mxu1 %vm257_vm1, %v8901_v19  ;;  %v8902_v7 = vld [vmem:[%s10240_s11 + $0x220] sm:$0xff]  ;;  %v8920_v41 = vld [vmem:[%s10240_s11 + $0x191] sm:$0xff] }
 0x112   : > { %1012 = vst.msk [vmem:[#allocation3 + $0x28] sm:$0xff] %vm257_vm1, %v1004_v39  ;;  %v1167_v62 = vadd.f32 %v9570_v6, %v1025_v55  ;;  %v1024_v56 = vld [vmem:[#allocation3] sm:$0xff]  ;;  %v1147_v9 = vpop.f32.mrb[21].mxu0  ;;  %9942 = vmatmul.mubr.msk.f32.gmra.mrb[126].mxu0 %vm257_vm1, %v8884_v17 }
 0x113   : > { %1011 = vst.msk [vmem:[#allocation3 + $0x20] sm:$0xff] %vm257_vm1, %v1003_v53  ;;  %v1166_v32 = vadd.f32 %v1127_v22, %v1024_v56  ;;  %v864_v11 = vld [vmem:[#allocation3 + $0x38] sm:$0xff]  ;;  %9960 = vmatprep.mubr.msk.f32.mxu0 %vm257_vm1, %v8913_v48  ;;  %v11357_v27 = vpop.f32.mrb[20].mxu1 }
 0x114   : > { %1175 = vst.msk [vmem:[#allocation3 + $0x8] sm:$0xff] %vm257_vm1, %v1167_v62  ;;  %v1006_v3 = vadd.f32 %v11295_v23, %v864_v11  ;;  %v863_v16 = vld [vmem:[#allocation3 + $0x30] sm:$0xff]  ;;  %v11362_v45 = vpop.f32.mrb[21].mxu1  ;;  %9956 = vmatmul.mubr.msk.f32.gmra.mrb[126].mxu1 %vm257_vm1, %v8902_v7 }
 0x115   : > { %1174 = vst.msk [vmem:[#allocation3] sm:$0xff] %vm257_vm1, %v1166_v32  ;;  %v1005_v34 = vadd.f32 %v11302_v28, %v863_v16  ;;  %v1027_v13 = vld [vmem:[#allocation3 + $0x18] sm:$0xff]  ;;  %v9579_v25 = vpop.f32.mrb[22].mxu0  ;;  %9974 = vmatprep.mubr.msk.f32.mxu1 %vm257_vm1, %v11115_v40 }
 0x116   : > { %1014 = vst.msk [vmem:[#allocation3 + $0x38] sm:$0xff] %vm257_vm1, %v1006_v3  ;;  %v1169_v23 = vadd.f32 %v9573_v38, %v1027_v13  ;;  %v1026_v6 = vld [vmem:[#allocation3 + $0x10] sm:$0xff]  ;;  %v1157_v31 = vpop.f32.mrb[23].mxu0  ;;  %9961 = vmatmul.mubr.msk.f32.vlgmr.msra.gmra.mrb[128].mxu0 %vm257_vm1, %v8914_v14  ;;  %v11457_v3 = vld [vmem:[%s12906_s3 + $0x8] sm:$0xf] }
 0x117   : > { %1013 = vst.msk [vmem:[#allocation3 + $0x30] sm:$0xff] %vm257_vm1, %v1005_v34  ;;  %v1168_v28 = vadd.f32 %v1137_v10, %v1026_v6  ;;  %9963 = vmatprep.mubr.msk.f32.mxu0 %vm257_vm1, %v8915_v36  ;;  %9987 = vmatpush3.msk.msra.mxu0 %vm390_vm0, %v11281_v8  ;;  %v11380_v22 = vpop.f32.mrb[22].mxu1  ;;  %v8919_v10 = vld [vmem:[%s10240_s11 + $0x181] sm:$0xff]  ;;  %v8967_v56 = vld [vmem:[%s10240_s11 + $0x11] sm:$0xff] }
 0x118   : > { %1177 = vst.msk [vmem:[#allocation3 + $0x18] sm:$0xff] %vm257_vm1, %v1169_v23  ;;  %10014 = vmatprep.subr.msk.mxu0 %vm390_vm0, %v11367_v26  ;;  %v11388_v49 = vpop.f32.mrb[23].mxu1  ;;  %9975 = vmatmul.mubr.msk.f32.vlgmr.msra.gmra.mrb[128].mxu1 %vm257_vm1, %v11121_v42  ;;  %v8968_v36 = vld [vmem:[%s10240_s11 + $0x21] sm:$0xff] }
 0x119   : > { %1176 = vst.msk [vmem:[#allocation3 + $0x10] sm:$0xff] %vm257_vm1, %v1168_v28  ;;  %v1029_v40 = vld [vmem:[#allocation3 + $0x28] sm:$0xff]  ;;  %v11386_v44 = vpop.f32.mrb[24].mxu0  ;;  %9977 = vmatprep.mubr.msk.f32.mxu1 %vm257_vm1, %v11138_v4  ;;  %10001 = vmatpush3.msk.msra.mxu1 %vm390_vm0, %v11308_v30 }
 0x11a   : > { %v1171_v8 = vadd.f32 %v9576_v61, %v1029_v40  ;;  %v1028_v47 = vld [vmem:[#allocation3 + $0x20] sm:$0xff]  ;;  %v11392_v57 = vpop.f32.mrb[25].mxu0  ;;  %9964 = vmatmul.mubr.msk.f32.gmra.mrb[130].mxu0 %vm257_vm1, %v8916_v33 }
 0x11b   : > { %v1170_v58 = vadd.f32 %v1147_v9, %v1028_v47  ;;  %v1191_v59 = vld [vmem:[#allocation3 + $0x8] sm:$0xff]  ;;  %9966 = vmatprep.mubr.msk.f32.mxu0 %vm257_vm1, %v8917_v50  ;;  %v11403_v38 = vpop.f32.mrb[24].mxu1 }
 0x11c   : > { %1179 = vst.msk [vmem:[#allocation3 + $0x28] sm:$0xff] %vm257_vm1, %v1171_v8  ;;  %v1333_v42 = vadd.f32 %v11322_v0, %v1191_v59  ;;  %v1190_v2 = vld [vmem:[#allocation3] sm:$0xff]  ;;  %v11410_v17 = vpop.f32.mrb[25].mxu1  ;;  %9978 = vmatmul.mubr.msk.f32.gmra.mrb[130].mxu1 %vm257_vm1, %v11144_v35 }
 0x11d   : > { %1178 = vst.msk [vmem:[#allocation3 + $0x20] sm:$0xff] %vm257_vm1, %v1170_v58  ;;  %v1332_v4 = vadd.f32 %v11329_v12, %v1190_v2  ;;  %v1031_v29 = vld [vmem:[#allocation3 + $0x38] sm:$0xff]  ;;  %v11408_v15 = vpop.f32.mrb[26].mxu0  ;;  %9980 = vmatprep.mubr.msk.f32.mxu1 %vm257_vm1, %v11157_v63  ;;  %v8970_v50 = vld [vmem:[%s10240_s11 + $0x41] sm:$0xff]  ;;  %v8956_v2 = vld [vmem:[%s10240_s11 + $0x110] sm:$0xff] }
 0x11e   : > { %1341 = vst.msk [vmem:[#allocation3 + $0x8] sm:$0xff] %vm257_vm1, %v1333_v42  ;;  %v1173_v30 = vadd.f32 %v9579_v25, %v1031_v29  ;;  %v1030_v0 = vld [vmem:[#allocation3 + $0x30] sm:$0xff]  ;;  %v11415_v19 = vpop.f32.mrb[27].mxu0  ;;  %9967 = vmatmul.mubr.msk.f32.gmra.mrb[132].mxu0 %vm257_vm1, %v8918_v1  ;;  %v8972_v59 = vld [vmem:[%s10240_s11 + $0x61] sm:$0xff] }
 0x11f   : > { %1340 = vst.msk [vmem:[#allocation3] sm:$0xff] %vm257_vm1, %v1332_v4  ;;  %v1172_v12 = vadd.f32 %v1157_v31, %v1030_v0  ;;  %v1193_v39 = vld [vmem:[#allocation3 + $0x18] sm:$0xff]  ;;  %9969 = vmatprep.mubr.msk.f32.mxu0 %vm257_vm1, %v8919_v10  ;;  %v11425_v53 = vpop.f32.mrb[26].mxu1 }
 0x120   : > { %1181 = vst.msk [vmem:[#allocation3 + $0x38] sm:$0xff] %vm257_vm1, %v1173_v30  ;;  %v1335_v35 = vadd.f32 %v11341_v46, %v1193_v39  ;;  %v1192_v48 = vld [vmem:[#allocation3 + $0x10] sm:$0xff]  ;;  %v11431_v61 = vpop.f32.mrb[27].mxu1  ;;  %9981 = vmatmul.mubr.msk.f32.gmra.mrb[132].mxu1 %vm257_vm1, %v11162_v5  ;;  %v8938_v46 = vld [vmem:[%s10240_s11 + $0x80] sm:$0xff] }
 0x121   : > { %1180 = vst.msk [vmem:[#allocation3 + $0x30] sm:$0xff] %vm257_vm1, %v1172_v12  ;;  %v1334_v63 = vadd.f32 %v11345_v52, %v1192_v48  ;;  %v11429_v55 = vpop.f32.mrb[28].mxu0  ;;  %9983 = vmatprep.mubr.msk.f32.mxu1 %vm257_vm1, %v11172_v43  ;;  %v8969_v25 = vld [vmem:[%s10240_s11 + $0x31] sm:$0xff]  ;;  %v8995_v48 = vld [vmem:[%s12906_s3 + $0x4] sm:$0xf] }
 0x122   : > { %1343 = vst.msk [vmem:[#allocation3 + $0x18] sm:$0xff] %vm257_vm1, %v1335_v35  ;;  %v11436_v62 = vpop.f32.mrb[29].mxu0  ;;  %9970 = vmatmul.mubr.msk.f32.gmra.mrb[134].mxu0 %vm257_vm1, %v8920_v41  ;;  %v8973_v10 = vld [vmem:[%s10240_s11 + $0x71] sm:$0xff]  ;;  %v8974_v41 = vld [vmem:[%s10240_s11 + $0x81] sm:$0xff]  ;;  %10028 = vmatprep.subr.msk.mxu1 %vm390_vm0, %v8995_v48 }
 0x123   : > { %1342 = vst.msk [vmem:[#allocation3 + $0x10] sm:$0xff] %vm257_vm1, %v1334_v63  ;;  %v1195_v52 = vld [vmem:[#allocation3 + $0x28] sm:$0xff]  ;;  %9988 = vmatprep.mubr.msk.f32.mxu0 %vm257_vm1, %v11177_v51  ;;  %v11447_v7 = vpop.f32.mrb[28].mxu1 }
 0x124   : > { %v1337_v5 = vadd.f32 %v11357_v27, %v1195_v52  ;;  %v1194_v9 = vld [vmem:[#allocation3 + $0x20] sm:$0xff]  ;;  %v11452_v43 = vpop.f32.mrb[29].mxu1  ;;  %9984 = vmatmul.mubr.msk.f32.gmra.mrb[134].mxu1 %vm257_vm1, %v8938_v46  ;;  %v6750_v46 = vld [vmem:[#allocation2 + $0x90] sm:$0xff] }
 0x125   : > { %v1336_v32 = vadd.f32 %v11362_v45, %v1194_v9  ;;  %v1358_v11 = vld [vmem:[#allocation3 + $0x8] sm:$0xff]  ;;  %v11450_v14 = vpop.f32.mrb[30].mxu0  ;;  %10002 = vmatprep.mubr.msk.f32.mxu1 %vm257_vm1, %v8967_v56 }
 0x126   : > { %1345 = vst.msk [vmem:[#allocation3 + $0x28] sm:$0xff] %vm257_vm1, %v1337_v5  ;;  %v1500_v51 = vadd.f32 %v11386_v44, %v1358_v11  ;;  %v1357_v16 = vld [vmem:[#allocation3] sm:$0xff]  ;;  %v11462_v27 = vpop.f32.mrb[31].mxu0  ;;  %9989 = vmatmul.mubr.msk.f32.vlgmr.msra.gmra.mrb[136].mxu0 %vm257_vm1, %v11182_v54  ;;  %v8971_v44 = vld [vmem:[%s10240_s11 + $0x51] sm:$0xff] }
 0x127   : > { %1344 = vst.msk [vmem:[#allocation3 + $0x20] sm:$0xff] %vm257_vm1, %v1336_v32  ;;  %v1499_v34 = vadd.f32 %v11392_v57, %v1357_v16  ;;  %v1197_v13 = vld [vmem:[#allocation3 + $0x38] sm:$0xff]  ;;  %9991 = vmatprep.mubr.msk.f32.mxu0 %vm257_vm1, %v11200_v20  ;;  %10015 = vmatpush3.msk.msra.mxu0 %vm390_vm0, %v11367_v26  ;;  %v11477_v23 = vpop.f32.mrb[30].mxu1 }
 0x128   : > { %1508 = vst.msk [vmem:[#allocation3 + $0x8] sm:$0xff] %vm257_vm1, %v1500_v51  ;;  %v1339_v45 = vadd.f32 %v11380_v22, %v1197_v13  ;;  %v1196_v54 = vld [vmem:[#allocation3 + $0x30] sm:$0xff]  ;;  %10042 = vmatprep.subr.msk.mxu0 %vm390_vm0, %v11457_v3  ;;  %v11485_v26 = vpop.f32.mrb[31].mxu1  ;;  %10003 = vmatmul.mubr.msk.f32.vlgmr.msra.gmra.mrb[136].mxu1 %vm257_vm1, %v8968_v36 }
 0x129   : > { %1507 = vst.msk [vmem:[#allocation3] sm:$0xff] %vm257_vm1, %v1499_v34  ;;  %v1338_v20 = vadd.f32 %v11388_v49, %v1196_v54  ;;  %v1360_v6 = vld [vmem:[#allocation3 + $0x18] sm:$0xff]  ;;  %v11483_v31 = vpop.f32.mrb[32].mxu0  ;;  %10005 = vmatprep.mubr.msk.f32.mxu1 %vm257_vm1, %v8969_v25  ;;  %10029 = vmatpush3.msk.msra.mxu1 %vm390_vm0, %v8995_v48 }
 0x12a   : > { %1347 = vst.msk [vmem:[#allocation3 + $0x38] sm:$0xff] %vm257_vm1, %v1339_v45  ;;  %v1502_v28 = vadd.f32 %v11408_v15, %v1360_v6  ;;  %v1359_v33 = vld [vmem:[#allocation3 + $0x10] sm:$0xff]  ;;  %v11490_v22 = vpop.f32.mrb[33].mxu0  ;;  %9992 = vmatmul.mubr.msk.f32.gmra.mrb[138].mxu0 %vm257_vm1, %v11206_v21 }
 0x12b   : > { %1346 = vst.msk [vmem:[#allocation3 + $0x30] sm:$0xff] %vm257_vm1, %v1338_v20  ;;  %v1501_v40 = vadd.f32 %v11415_v19, %v1359_v33  ;;  %9994 = vmatprep.mubr.msk.f32.mxu0 %vm257_vm1, %v11227_v18  ;;  %v11502_v49 = vpop.f32.mrb[32].mxu1 }
 0x12c   : > { %1510 = vst.msk [vmem:[#allocation3 + $0x18] sm:$0xff] %vm257_vm1, %v1502_v28  ;;  %v11507_v47 = vpop.f32.mrb[33].mxu1  ;;  %10006 = vmatmul.mubr.msk.f32.gmra.mrb[138].mxu1 %vm257_vm1, %v8970_v50 }
 0x12d   : > { %1509 = vst.msk [vmem:[#allocation3 + $0x10] sm:$0xff] %vm257_vm1, %v1501_v40  ;;  %v1362_v21 = vld [vmem:[#allocation3 + $0x28] sm:$0xff]  ;;  %v11505_v8 = vpop.f32.mrb[34].mxu0  ;;  %10008 = vmatprep.mubr.msk.f32.mxu1 %vm257_vm1, %v8971_v44  ;;  %v11597_v44 = vld [vmem:[%s12905_s2] ss:$0 sm:$0xff] }
 0x12e   : > { %v1504_v57 = vadd.f32 %v11429_v55, %v1362_v21  ;;  %v1361_v58 = vld [vmem:[#allocation3 + $0x20] sm:$0xff]  ;;  %v11511_v18 = vpop.f32.mrb[35].mxu0  ;;  %9995 = vmatmul.mubr.msk.f32.gmra.mrb[140].mxu0 %vm257_vm1, %v11234_v37 }
 0x12f   : > { %v1503_v1 = vadd.f32 %v11436_v62, %v1361_v58  ;;  %v1525_v42 = vld [vmem:[#allocation3 + $0x8] sm:$0xff]  ;;  %9997 = vmatprep.mubr.msk.f32.mxu0 %vm257_vm1, %v11251_v24  ;;  %v11524_v15 = vpop.f32.mrb[34].mxu1  ;;  %v6584_v37 = vld [vmem:[#allocation2] sm:$0xff] }
 0x130   : > { %1512 = vst.msk [vmem:[#allocation3 + $0x28] sm:$0xff] %vm257_vm1, %v1504_v57  ;;  %v1667_v4 = vadd.f32 %v11403_v38, %v1525_v42  ;;  %v1524_v29 = vld [vmem:[#allocation3] sm:$0xff]  ;;  %v11530_v12 = vpop.f32.mrb[35].mxu1  ;;  %10009 = vmatmul.mubr.msk.f32.gmra.mrb[140].mxu1 %vm257_vm1, %v8972_v59 }
 0x131   : > { %1511 = vst.msk [vmem:[#allocation3 + $0x20] sm:$0xff] %vm257_vm1, %v1503_v1  ;;  %v1666_v30 = vadd.f32 %v11410_v17, %v1524_v29  ;;  %v1364_v0 = vld [vmem:[#allocation3 + $0x38] sm:$0xff]  ;;  %v11528_v19 = vpop.f32.mrb[36].mxu0  ;;  %10011 = vmatprep.mubr.msk.f32.mxu1 %vm257_vm1, %v8973_v10 }
 0x132   : > { %1675 = vst.msk [vmem:[#allocation3 + $0x8] sm:$0xff] %vm257_vm1, %v1667_v4  ;;  %v1506_v24 = vadd.f32 %v11450_v14, %v1364_v0  ;;  %v1363_v38 = vld [vmem:[#allocation3 + $0x30] sm:$0xff]  ;;  %v11535_v39 = vpop.f32.mrb[37].mxu0  ;;  %9998 = vmatmul.mubr.msk.f32.gmra.mrb[142].mxu0 %vm257_vm1, %v8956_v2 }
 0x133   : > { %1674 = vst.msk [vmem:[#allocation3] sm:$0xff] %vm257_vm1, %v1666_v30  ;;  %v1505_v17 = vadd.f32 %v11462_v27, %v1363_v38  ;;  %v1527_v35 = vld [vmem:[#allocation3 + $0x18] sm:$0xff]  ;;  %10016 = vmatprep.mubr.msk.f32.mxu0 %vm257_vm1, %v6584_v37  ;;  %v11548_v62 = vpop.f32.mrb[36].mxu1 }
 0x134   : > { %1514 = vst.msk [vmem:[#allocation3 + $0x38] sm:$0xff] %vm257_vm1, %v1506_v24  ;;  %v1669_v63 = vadd.f32 %v11425_v53, %v1527_v35  ;;  %v1526_v55 = vld [vmem:[#allocation3 + $0x10] sm:$0xff]  ;;  %v11553_v5 = vpop.f32.mrb[37].mxu1  ;;  %10012 = vmatmul.mubr.msk.f32.gmra.mrb[142].mxu1 %vm257_vm1, %v8974_v41 }
 0x135   : > { %1513 = vst.msk [vmem:[#allocation3 + $0x30] sm:$0xff] %vm257_vm1, %v1505_v17  ;;  %v1668_v52 = vadd.f32 %v11431_v61, %v1526_v55  ;;  %v9635_v56 = vpop.f32.mrb[38].mxu0  ;;  %10030 = vmatprep.mubr.msk.f32.mxu1 %vm257_vm1, %v6750_v46 }
 0x136   : > { %1677 = vst.msk [vmem:[#allocation3 + $0x18] sm:$0xff] %vm257_vm1, %v1669_v63  ;;  %v1823_v9 = vpop.f32.mrb[39].mxu0 }
 0x137   : > { %1676 = vst.msk [vmem:[#allocation3 + $0x10] sm:$0xff] %vm257_vm1, %v1668_v52  ;;  %v1529_v53 = vld [vmem:[#allocation3 + $0x28] sm:$0xff]  ;;  %v11561_v14 = vpop.f32.mrb[38].mxu1 }
 0x138   : > { %v1671_v32 = vadd.f32 %v11447_v7, %v1529_v53  ;;  %v1528_v11 = vld [vmem:[#allocation3 + $0x20] sm:$0xff]  ;;  %v11566_v27 = vpop.f32.mrb[39].mxu1 }
 0x139   : > { %v1670_v61 = vadd.f32 %v11452_v43, %v1528_v11  ;;  %v1691_v51 = vld [vmem:[#allocation3 + $0x8] sm:$0xff]  ;;  %v11564_v16 = vpop.f32.mrb[40].mxu0 }
 0x13a   : > { %1679 = vst.msk [vmem:[#allocation3 + $0x28] sm:$0xff] %vm257_vm1, %v1671_v32  ;;  %v1833_v36 = vadd.f32 %v11483_v31, %v1691_v51  ;;  %v1690_v34 = vld [vmem:[#allocation3] sm:$0xff]  ;;  %v11570_v13 = vpop.f32.mrb[41].mxu0 }
 0x13b   : > { %1678 = vst.msk [vmem:[#allocation3 + $0x20] sm:$0xff] %vm257_vm1, %v1670_v61  ;;  %v1832_v7 = vadd.f32 %v11490_v22, %v1690_v34  ;;  %v1531_v25 = vld [vmem:[#allocation3 + $0x38] sm:$0xff]  ;;  %v11576_v54 = vpop.f32.mrb[40].mxu1 }
 0x13c   : > { %1841 = vst.msk [vmem:[#allocation3 + $0x8] sm:$0xff] %vm257_vm1, %v1833_v36  ;;  %v1673_v43 = vadd.f32 %v11477_v23, %v1531_v25  ;;  %v1530_v45 = vld [vmem:[#allocation3 + $0x30] sm:$0xff]  ;;  %v11582_v28 = vpop.f32.mrb[41].mxu1 }
 0x13d   : > { %1840 = vst.msk [vmem:[#allocation3] sm:$0xff] %vm257_vm1, %v1832_v7  ;;  %v1672_v20 = vadd.f32 %v11485_v26, %v1530_v45  ;;  %v1693_v6 = vld [vmem:[#allocation3 + $0x18] sm:$0xff]  ;;  %v11580_v31 = vpop.f32.mrb[42].mxu0 }
 0x13e   : > { %1681 = vst.msk [vmem:[#allocation3 + $0x38] sm:$0xff] %vm257_vm1, %v1673_v43  ;;  %v1835_v33 = vadd.f32 %v11505_v8, %v1693_v6  ;;  %v1692_v22 = vld [vmem:[#allocation3 + $0x10] sm:$0xff]  ;;  %v11586_v50 = vpop.f32.mrb[43].mxu0 }
 0x13f   : > { %1680 = vst.msk [vmem:[#allocation3 + $0x30] sm:$0xff] %vm257_vm1, %v1672_v20  ;;  %v1834_v23 = vadd.f32 %v11511_v18, %v1692_v22  ;;  %v11591_v40 = vpop.f32.mrb[42].mxu1 }
 0x140   : > { %1843 = vst.msk [vmem:[#allocation3 + $0x18] sm:$0xff] %vm257_vm1, %v1835_v33  ;;  %v11601_v8 = vpop.f32.mrb[43].mxu1 }
 0x141   : > { %1842 = vst.msk [vmem:[#allocation3 + $0x10] sm:$0xff] %vm257_vm1, %v1834_v23  ;;  %v1695_v26 = vld [vmem:[#allocation3 + $0x28] sm:$0xff]  ;;  %v11599_v21 = vpop.f32.mrb[44].mxu0 }
 0x142   : > { %v1837_v57 = vadd.f32 %v11528_v19, %v1695_v26  ;;  %v1694_v58 = vld [vmem:[#allocation3 + $0x20] sm:$0xff]  ;;  %v11604_v18 = vpop.f32.mrb[45].mxu0 }
 0x143   : > { %v1836_v59 = vadd.f32 %v11535_v39, %v1694_v58  ;;  %v1849_v1 = vld [vmem:[#allocation3 + $0x8] sm:$0xff]  ;;  %v11611_v10 = vpop.f32.mrb[44].mxu1 }
 0x144   : > { %1845 = vst.msk [vmem:[#allocation3 + $0x28] sm:$0xff] %vm257_vm1, %v1837_v57  ;;  %v1864_v42 = vadd.f32 %v11597_v44, %v1849_v1  ;;  %1913 = vst.msk [vmem:[#allocation3 + $0x8] sm:$0xff] %vm257_vm1, %v12910_v60  ;;  %v1848_v2 = vld [vmem:[#allocation3] sm:$0xff]  ;;  %v11619_v30 = vpop.f32.mrb[45].mxu1 }
 0x145   : > { %1844 = vst.msk [vmem:[#allocation3 + $0x20] sm:$0xff] %vm257_vm1, %v1836_v59  ;;  %v1697_v4 = vld [vmem:[#allocation3 + $0x38] sm:$0xff]  ;;  %v1863_v29 = vadd.f32 %v11597_v44, %v1848_v2  ;;  %1912 = vst.msk [vmem:[#allocation3] sm:$0xff] %vm257_vm1, %v12910_v60  ;;  %v11617_v37 = vpop.f32.mrb[46].mxu0 }
 0x146   : > { %v1839_v0 = vadd.f32 %v9635_v56, %v1697_v4  ;;  %v1696_v19 = vld [vmem:[#allocation3 + $0x30] sm:$0xff]  ;;  %vm1872_vm3 = vcmp.gt.f32.partialorder %v1864_v42, 0.0  ;;  %v1880_v24 = vmul.f32 0.2, %v1864_v42  ;;  %v11621_v38 = vpop.f32.mrb[47].mxu0 }
 0x147   : > { %v1838_v39 = vadd.f32 %v1823_v9, %v1696_v19  ;;  %vm1871_vm4 = vcmp.gt.f32.partialorder %v1863_v29, 0.0  ;;  %v1879_v41 = vmul.f32 0.2, %v1863_v29  ;;  %v1851_v17 = vld [vmem:[#allocation3 + $0x18] sm:$0xff]  ;;  %v11627_v55 = vpop.f32.mrb[46].mxu1 }
 0x148   : > { %1847 = vst.msk [vmem:[#allocation3 + $0x38] sm:$0xff] %vm257_vm1, %v1839_v0  ;;  %v1888_v35 = vsel %vm1872_vm3, %v1864_v42, %v1880_v24  ;;  %v1866_v48 = vadd.f32 %v11597_v44, %v1851_v17  ;;  %1915 = vst.msk [vmem:[#allocation3 + $0x18] sm:$0xff] %vm257_vm1, %v12910_v60  ;;  %v1850_v63 = vld [vmem:[#allocation3 + $0x10] sm:$0xff]  ;;  %v11635_v53 = vpop.f32.mrb[47].mxu1 }
 0x149   : > { %1846 = vst.msk [vmem:[#allocation3 + $0x30] sm:$0xff] %vm257_vm1, %v1838_v39  ;;  %v1896_v46 = vmul.f32 1.4142135, %v1888_v35  ;;  %v1887_v52 = vsel %vm1871_vm4, %v1863_v29, %v1879_v41  ;;  %v1865_v56 = vadd.f32 %v11597_v44, %v1850_v63  ;;  %1914 = vst.msk [vmem:[#allocation3 + $0x10] sm:$0xff] %vm257_vm1, %v12910_v60  ;;  %v11633_v9 = vpop.f32.mrb[48].mxu0 }
 0x14a   : > { %v1895_v32 = vmul.f32 1.4142135, %v1887_v52  ;;  %vm1874_vm5 = vcmp.gt.f32.partialorder %v1866_v48, 0.0  ;;  %v1882_v11 = vmul.f32 0.2, %v1866_v48  ;;  %v11637_v61 = vpop.f32.mrb[49].mxu0 }
 0x14b   : > { %1905 = vst.msk [vmem:[#allocation2 + $0x21] sm:$0xff] %vm257_vm1, %v1896_v46  ;;  %v1929_v51 = vld [vmem:[#allocation3 + $0x8] sm:$0xff]  ;;  %vm1873_vm6 = vcmp.gt.f32.partialorder %v1865_v56, 0.0  ;;  %v1881_v36 = vmul.f32 0.2, %v1865_v56  ;;  %v11645_v6 = vpop.f32.mrb[48].mxu1 }
 0x14c   : > { %v1853_v34 = vld [vmem:[#allocation3 + $0x28] sm:$0xff]  ;;  %v2070_v7 = vadd.f32 %v11502_v49, %v1929_v51  ;;  %1904 = vst.msk [vmem:[#allocation2 + $0x11] sm:$0xff] %vm257_vm1, %v1895_v32  ;;  %v1928_v25 = vld [vmem:[#allocation3] sm:$0xff]  ;;  %v1890_v43 = vsel %vm1874_vm5, %v1866_v48, %v1882_v11  ;;  %v11653_v57 = vpop.f32.mrb[49].mxu1 }
 0x14d   : > { %v1868_v45 = vadd.f32 %v11597_v44, %v1853_v34  ;;  %1917 = vst.msk [vmem:[#allocation3 + $0x28] sm:$0xff] %vm257_vm1, %v12910_v60  ;;  %v1852_v20 = vld [vmem:[#allocation3 + $0x20] sm:$0xff]  ;;  %v2069_v33 = vadd.f32 %v11507_v47, %v1928_v25  ;;  %v1898_v22 = vmul.f32 1.4142135, %v1890_v43  ;;  %v1889_v23 = vsel %vm1873_vm6, %v1865_v56, %v1881_v36  ;;  %v11651_v49 = vpop.f32.mrb[50].mxu0 }
 0x14e   : > { %v1867_v26 = vadd.f32 %v11597_v44, %v1852_v20  ;;  %1916 = vst.msk [vmem:[#allocation3 + $0x20] sm:$0xff] %vm257_vm1, %v12910_v60  ;;  %2078 = vst.msk [vmem:[#allocation3 + $0x8] sm:$0xff] %vm257_vm1, %v2070_v7  ;;  %v1897_v58 = vmul.f32 1.4142135, %v1889_v23  ;;  %v11656_v1 = vpop.f32.mrb[51].mxu0 }
 0x14f   : > { %vm1876_vm7 = vcmp.gt.f32.partialorder %v1868_v45, 0.0  ;;  %v1884_v59 = vmul.f32 0.2, %v1868_v45  ;;  %v1855_v42 = vld [vmem:[#allocation3 + $0x38] sm:$0xff]  ;;  %2077 = vst.msk [vmem:[#allocation3] sm:$0xff] %vm257_vm1, %v2069_v33  ;;  %1907 = vst.msk [vmem:[#allocation2 + $0x41] sm:$0xff] %vm257_vm1, %v1898_v22 }
 0x150   : > { %v1931_v47 = vld [vmem:[#allocation3 + $0x18] sm:$0xff]  ;;  %vm1875_vm8 = vcmp.gt.f32.partialorder %v1867_v26, 0.0  ;;  %v1883_v2 = vmul.f32 0.2, %v1867_v26  ;;  %1919 = vst.msk [vmem:[#allocation3 + $0x38] sm:$0xff] %vm257_vm1, %v12910_v60  ;;  %v1870_v4 = vadd.f32 %v11597_v44, %v1855_v42  ;;  %1906 = vst.msk [vmem:[#allocation2 + $0x31] sm:$0xff] %vm257_vm1, %v1897_v58 }
 0x151   : > { %v2072_v29 = vadd.f32 %v11524_v15, %v1931_v47  ;;  %v1930_v0 = vld [vmem:[#allocation3 + $0x10] sm:$0xff]  ;;  %v1892_v19 = vsel %vm1876_vm7, %v1868_v45, %v1884_v59  ;;  %v11665_v39 = vpop.f32.mrb[50].mxu1  ;;  %v11671_v63 = vpop.f32.mrb[52].mxu0 }
 0x152   : > { %v1854_v24 = vld [vmem:[#allocation3 + $0x30] sm:$0xff]  ;;  %v2071_v41 = vadd.f32 %v11530_v12, %v1930_v0  ;;  %v1900_v17 = vmul.f32 1.4142135, %v1892_v19  ;;  %v1891_v35 = vsel %vm1875_vm8, %v1867_v26, %v1883_v2  ;;  %v11673_v46 = vpop.f32.mrb[51].mxu1  ;;  %v11676_v52 = vpop.f32.mrb[53].mxu0  ;;  %v6586_v36 = vld [vmem:[#allocation2 + $0x20] sm:$0xff] }
 0x153   : > { %v1869_v48 = vadd.f32 %v11597_v44, %v1854_v24  ;;  %1918 = vst.msk [vmem:[#allocation3 + $0x30] sm:$0xff] %vm257_vm1, %v12910_v60  ;;  %2080 = vst.msk [vmem:[#allocation3 + $0x18] sm:$0xff] %vm257_vm1, %v2072_v29  ;;  %v1899_v15 = vmul.f32 1.4142135, %v1891_v35  ;;  %v6585_v56 = vld [vmem:[#allocation2 + $0x10] sm:$0xff]  ;;  %v11683_v34 = vpop.f32.mrb[52].mxu1 }
 0x154   : > { %2079 = vst.msk [vmem:[#allocation3 + $0x10] sm:$0xff] %vm257_vm1, %v2071_v41  ;;  %1909 = vst.msk [vmem:[#allocation2 + $0x61] sm:$0xff] %vm257_vm1, %v1900_v17  ;;  %v1933_v12 = vld [vmem:[#allocation3 + $0x28] sm:$0xff]  ;;  %10017 = vmatmul.mubr.msk.f32.vlgmr.msra.gmra.mrb[144].mxu0 %vm257_vm1, %v6585_v56  ;;  %vm1878_vm10 = vcmp.gt.f32.partialorder %v1870_v4, 0.0  ;;  %v1886_v7 = vmul.f32 0.2, %v1870_v4 }
 0x155   : > { %vm1877_vm9 = vcmp.gt.f32.partialorder %v1869_v48, 0.0  ;;  %v1885_v32 = vmul.f32 0.2, %v1869_v48  ;;  %v2074_v11 = vadd.f32 %v11548_v62, %v1933_v12  ;;  %1908 = vst.msk [vmem:[#allocation2 + $0x51] sm:$0xff] %vm257_vm1, %v1899_v15  ;;  %v1932_v51 = vld [vmem:[#allocation3 + $0x20] sm:$0xff]  ;;  %v2094_v43 = vld [vmem:[#allocation3 + $0x8] sm:$0xff]  ;;  %10019 = vmatprep.mubr.msk.f32.mxu0 %vm257_vm1, %v6586_v36  ;;  %10043 = vmatpush3.msk.msra.mxu0 %vm390_vm0, %v11457_v3 }
 0x156   : > { %v2073_v25 = vadd.f32 %v11553_v5, %v1932_v51  ;;  %v11689_v62 = vpop.f32.mrb[54].mxu0  ;;  %v11691_v20 = vpop.f32.mrb[53].mxu1  ;;  %v2235_v33 = vadd.f32 %v11564_v16, %v2094_v43  ;;  %v2093_v22 = vld [vmem:[#allocation3] sm:$0xff]  ;;  %v1894_v5 = vsel %vm1878_vm10, %v1870_v4, %v1886_v7 }
 0x157   : > { %v1893_v45 = vsel %vm1877_vm9, %v1869_v48, %v1885_v32  ;;  %2082 = vst.msk [vmem:[#allocation3 + $0x28] sm:$0xff] %vm257_vm1, %v2074_v11  ;;  %v11695_v26 = vpop.f32.mrb[55].mxu0  ;;  %v2234_v58 = vadd.f32 %v11570_v13, %v2093_v22  ;;  %v1935_v59 = vld [vmem:[#allocation3 + $0x38] sm:$0xff]  ;;  %v6587_v42 = vld [vmem:[#allocation2 + $0x30] sm:$0xff]  ;;  %v1902_v3 = vmul.f32 1.4142135, %v1894_v5 }
 0x158   : > { %v1901_v23 = vmul.f32 1.4142135, %v1893_v45  ;;  %2081 = vst.msk [vmem:[#allocation3 + $0x20] sm:$0xff] %vm257_vm1, %v2073_v25  ;;  %2243 = vst.msk [vmem:[#allocation3 + $0x8] sm:$0xff] %vm257_vm1, %v2235_v33  ;;  %v2076_v47 = vadd.f32 %v11561_v14, %v1935_v59  ;;  %10020 = vmatmul.mubr.msk.f32.gmra.mrb[146].mxu0 %vm257_vm1, %v6587_v42  ;;  %v6588_v16 = vld [vmem:[#allocation2 + $0x40] sm:$0xff]  ;;  %v11703_v29 = vpop.f32.mrb[54].mxu1 }
 0x159   : > { %2242 = vst.msk [vmem:[#allocation3] sm:$0xff] %vm257_vm1, %v2234_v58  ;;  %10022 = vmatprep.mubr.msk.f32.mxu0 %vm257_vm1, %v6588_v16  ;;  %v11708_v0 = vpop.f32.mrb[56].mxu0  ;;  %v11710_v19 = vpop.f32.mrb[55].mxu1  ;;  %1911 = vst.msk [vmem:[#allocation2 + $0x81] sm:$0xff] %vm257_vm1, %v1902_v3  ;;  %v6916_v32 = vld [vmem:[#allocation2 + $0x1] sm:$0xff] }
 0x15a   : > { %1910 = vst.msk [vmem:[#allocation2 + $0x71] sm:$0xff] %vm257_vm1, %v1901_v23  ;;  %v1934_v2 = vld [vmem:[#allocation3 + $0x30] sm:$0xff]  ;;  %v2096_v13 = vld [vmem:[#allocation3 + $0x18] sm:$0xff]  ;;  %2084 = vst.msk [vmem:[#allocation3 + $0x38] sm:$0xff] %vm257_vm1, %v2076_v47  ;;  %v11715_v41 = vpop.f32.mrb[57].mxu0 }
 0x15b   : > { %v2075_v4 = vadd.f32 %v11566_v27, %v1934_v2  ;;  %v2237_v14 = vadd.f32 %v11580_v31, %v2096_v13  ;;  %v2095_v24 = vld [vmem:[#allocation3 + $0x10] sm:$0xff]  ;;  %v6590_v35 = vld [vmem:[#allocation2 + $0x60] sm:$0xff]  ;;  %v11721_v48 = vpop.f32.mrb[56].mxu1 }
 0x15c   : > { %v2236_v27 = vadd.f32 %v11586_v50, %v2095_v24  ;;  %v6589_v17 = vld [vmem:[#allocation2 + $0x50] sm:$0xff]  ;;  %v11727_v12 = vpop.f32.mrb[57].mxu1  ;;  %v6918_v47 = vld [vmem:[#allocation2 + $0x21] sm:$0xff] }
 0x15d   : > { %2083 = vst.msk [vmem:[#allocation3 + $0x30] sm:$0xff] %vm257_vm1, %v2075_v4  ;;  %2245 = vst.msk [vmem:[#allocation3 + $0x18] sm:$0xff] %vm257_vm1, %v2237_v14  ;;  %10023 = vmatmul.mubr.msk.f32.gmra.mrb[148].mxu0 %vm257_vm1, %v6589_v17  ;;  %v11725_v31 = vpop.f32.mrb[58].mxu0  ;;  %v6919_v13 = vld [vmem:[#allocation2 + $0x31] sm:$0xff] }
 0x15e   : > { %2244 = vst.msk [vmem:[#allocation3 + $0x10] sm:$0xff] %vm257_vm1, %v2236_v27  ;;  %v2098_v15 = vld [vmem:[#allocation3 + $0x28] sm:$0xff]  ;;  %10025 = vmatprep.mubr.msk.f32.mxu0 %vm257_vm1, %v6590_v35  ;;  %v11730_v11 = vpop.f32.mrb[59].mxu0 }
 0x15f   : > { %v2239_v56 = vadd.f32 %v11599_v21, %v2098_v15  ;;  %v2097_v50 = vld [vmem:[#allocation3 + $0x20] sm:$0xff]  ;;  %v2259_v36 = vld [vmem:[#allocation3 + $0x8] sm:$0xff]  ;;  %v11736_v45 = vpop.f32.mrb[58].mxu1 }
 0x160   : > { %v2238_v51 = vadd.f32 %v11604_v18, %v2097_v50  ;;  %v2400_v25 = vadd.f32 %v11576_v54, %v2259_v36  ;;  %v2258_v43 = vld [vmem:[#allocation3] sm:$0xff]  ;;  %v11743_v18 = vpop.f32.mrb[59].mxu1 }
 0x161   : > { %v6591_v7 = vld [vmem:[#allocation2 + $0x70] sm:$0xff]  ;;  %2247 = vst.msk [vmem:[#allocation3 + $0x28] sm:$0xff] %vm257_vm1, %v2239_v56  ;;  %v2399_v21 = vadd.f32 %v11582_v28, %v2258_v43  ;;  %v2100_v33 = vld [vmem:[#allocation3 + $0x38] sm:$0xff]  ;;  %v11741_v22 = vpop.f32.mrb[60].mxu0  ;;  %v6922_v43 = vld [vmem:[#allocation2 + $0x61] sm:$0xff] }
 0x162   : > { %10026 = vmatmul.mubr.msk.f32.gmra.mrb[150].mxu0 %vm257_vm1, %v6591_v7  ;;  %2246 = vst.msk [vmem:[#allocation3 + $0x20] sm:$0xff] %vm257_vm1, %v2238_v51  ;;  %2408 = vst.msk [vmem:[#allocation3 + $0x8] sm:$0xff] %vm257_vm1, %v2400_v25  ;;  %v2241_v54 = vadd.f32 %v11617_v37, %v2100_v33  ;;  %v11747_v5 = vpop.f32.mrb[61].mxu0  ;;  %v6917_v28 = vld [vmem:[#allocation2 + $0x11] sm:$0xff] }
 0x163   : > { %10044 = vmatprep.mubr.msk.f32.mxu0 %vm257_vm1, %v6916_v32  ;;  %2407 = vst.msk [vmem:[#allocation3] sm:$0xff] %vm257_vm1, %v2399_v21  ;;  %v11754_v2 = vpop.f32.mrb[60].mxu1 }
 0x164   : > { %v2099_v23 = vld [vmem:[#allocation3 + $0x30] sm:$0xff]  ;;  %v2261_v59 = vld [vmem:[#allocation3 + $0x18] sm:$0xff]  ;;  %2249 = vst.msk [vmem:[#allocation3 + $0x38] sm:$0xff] %vm257_vm1, %v2241_v54 }
 0x165   : > { %v2240_v58 = vadd.f32 %v11621_v38, %v2099_v23  ;;  %v2402_v42 = vadd.f32 %v11591_v40, %v2261_v59  ;;  %v2260_v3 = vld [vmem:[#allocation3 + $0x10] sm:$0xff]  ;;  %v11759_v16 = vpop.f32.mrb[62].mxu0  ;;  %v11761_v38 = vpop.f32.mrb[61].mxu1 }
 0x166   : > { %10045 = vmatmul.mubr.msk.f32.vlgmr.msra.gmra.mrb[152].mxu0 %vm257_vm1, %v6917_v28  ;;  %v2401_v37 = vadd.f32 %v11601_v8, %v2260_v3  ;;  %v11764_v4 = vpop.f32.mrb[63].mxu0  ;;  %v6920_v8 = vld [vmem:[#allocation2 + $0x41] sm:$0xff]  ;;  %v6923_v28 = vld [vmem:[#allocation2 + $0x71] sm:$0xff] }
 0x167   : > { %2248 = vst.msk [vmem:[#allocation3 + $0x30] sm:$0xff] %vm257_vm1, %v2240_v58  ;;  %10047 = vmatprep.mubr.msk.f32.mxu0 %vm257_vm1, %v6918_v47  ;;  %2410 = vst.msk [vmem:[#allocation3 + $0x18] sm:$0xff] %vm257_vm1, %v2402_v42  ;;  %v11769_v27 = vpop.f32.mrb[62].mxu1 }
 0x168   : > { %2409 = vst.msk [vmem:[#allocation3 + $0x10] sm:$0xff] %vm257_vm1, %v2401_v37  ;;  %v2263_v40 = vld [vmem:[#allocation3 + $0x28] sm:$0xff]  ;;  %v11775_v56 = vpop.f32.mrb[63].mxu1 }
 0x169   : > { %v2404_v14 = vadd.f32 %v11611_v10, %v2263_v40  ;;  %v2262_v24 = vld [vmem:[#allocation3 + $0x20] sm:$0xff]  ;;  %v2424_v35 = vld [vmem:[#allocation3 + $0x8] sm:$0xff]  ;;  %v11773_v15 = vpop.f32.mrb[64].mxu0 }
 0x16a   : > { %10048 = vmatmul.mubr.msk.f32.gmra.mrb[154].mxu0 %vm257_vm1, %v6919_v13  ;;  %v2403_v17 = vadd.f32 %v11619_v30, %v2262_v24  ;;  %v2565_v50 = vadd.f32 %v11633_v9, %v2424_v35  ;;  %v2423_v10 = vld [vmem:[#allocation3] sm:$0xff]  ;;  %v11779_v32 = vpop.f32.mrb[65].mxu0  ;;  %v6921_v30 = vld [vmem:[#allocation2 + $0x51] sm:$0xff] }
 0x16b   : > { %10050 = vmatprep.mubr.msk.f32.mxu0 %vm257_vm1, %v6920_v8  ;;  %2412 = vst.msk [vmem:[#allocation3 + $0x28] sm:$0xff] %vm257_vm1, %v2404_v14  ;;  %v2564_v51 = vadd.f32 %v11637_v61, %v2423_v10  ;;  %v2265_v36 = vld [vmem:[#allocation3 + $0x38] sm:$0xff]  ;;  %v11786_v21 = vpop.f32.mrb[64].mxu1 }
 0x16c   : > { %2411 = vst.msk [vmem:[#allocation3 + $0x20] sm:$0xff] %vm257_vm1, %v2403_v17  ;;  %2573 = vst.msk [vmem:[#allocation3 + $0x8] sm:$0xff] %vm257_vm1, %v2565_v50  ;;  %v2406_v7 = vadd.f32 %v11627_v55, %v2265_v36  ;;  %v11793_v54 = vpop.f32.mrb[65].mxu1 }
 0x16d   : > { %2572 = vst.msk [vmem:[#allocation3] sm:$0xff] %vm257_vm1, %v2564_v51  ;;  %v11791_v61 = vpop.f32.mrb[66].mxu0 }
 0x16e   : > { %v2264_v25 = vld [vmem:[#allocation3 + $0x30] sm:$0xff]  ;;  %10051 = vmatmul.mubr.msk.f32.gmra.mrb[156].mxu0 %vm257_vm1, %v6921_v30  ;;  %v2426_v33 = vld [vmem:[#allocation3 + $0x18] sm:$0xff]  ;;  %2414 = vst.msk [vmem:[#allocation3 + $0x38] sm:$0xff] %vm257_vm1, %v2406_v7  ;;  %v11797_v58 = vpop.f32.mrb[67].mxu0 }
 0x16f   : > { %v2405_v9 = vadd.f32 %v11635_v53, %v2264_v25  ;;  %10053 = vmatprep.mubr.msk.f32.mxu0 %vm257_vm1, %v6922_v43  ;;  %v2567_v55 = vadd.f32 %v11651_v49, %v2426_v33  ;;  %v2425_v23 = vld [vmem:[#allocation3 + $0x10] sm:$0xff]  ;;  %v11803_v53 = vpop.f32.mrb[66].mxu1 }
 0x170   : > { %v2566_v59 = vadd.f32 %v11656_v1, %v2425_v23  ;;  %v11808_v49 = vpop.f32.mrb[67].mxu1 }
 0x171   : > { %2413 = vst.msk [vmem:[#allocation3 + $0x30] sm:$0xff] %vm257_vm1, %v2405_v9  ;;  %2575 = vst.msk [vmem:[#allocation3 + $0x18] sm:$0xff] %vm257_vm1, %v2567_v55  ;;  %v11806_v3 = vpop.f32.mrb[68].mxu0 }
 0x172   : > { %10054 = vmatmul.mubr.msk.f32.gmra.mrb[158].mxu0 %vm257_vm1, %v6923_v28  ;;  %2574 = vst.msk [vmem:[#allocation3 + $0x10] sm:$0xff] %vm257_vm1, %v2566_v59  ;;  %v2428_v42 = vld [vmem:[#allocation3 + $0x28] sm:$0xff]  ;;  %v11811_v40 = vpop.f32.mrb[69].mxu0 }
 0x173   : > { %v2569_v47 = vadd.f32 %v11671_v63, %v2428_v42  ;;  %v2427_v37 = vld [vmem:[#allocation3 + $0x20] sm:$0xff]  ;;  %v2589_v13 = vld [vmem:[#allocation3 + $0x8] sm:$0xff]  ;;  %v11816_v8 = vpop.f32.mrb[68].mxu1 }
 0x174   : > { %v2568_v1 = vadd.f32 %v11676_v52, %v2427_v37  ;;  %v2730_v14 = vadd.f32 %v11645_v6, %v2589_v13  ;;  %v2588_v24 = vld [vmem:[#allocation3] sm:$0xff]  ;;  %v11822_v63 = vpop.f32.mrb[69].mxu1 }
 0x175   : > { %2577 = vst.msk [vmem:[#allocation3 + $0x28] sm:$0xff] %vm257_vm1, %v2569_v47  ;;  %v2729_v17 = vadd.f32 %v11653_v57, %v2588_v24  ;;  %v2430_v35 = vld [vmem:[#allocation3 + $0x38] sm:$0xff]  ;;  %v11820_v50 = vpop.f32.mrb[70].mxu0 }
 0x176   : > { %2576 = vst.msk [vmem:[#allocation3 + $0x20] sm:$0xff] %vm257_vm1, %v2568_v1  ;;  %2738 = vst.msk [vmem:[#allocation3 + $0x8] sm:$0xff] %vm257_vm1, %v2730_v14  ;;  %v2571_v52 = vadd.f32 %v11689_v62, %v2430_v35  ;;  %v11826_v51 = vpop.f32.mrb[71].mxu0 }
 0x177   : > { %2737 = vst.msk [vmem:[#allocation3] sm:$0xff] %vm257_vm1, %v2729_v17  ;;  %v11832_v7 = vpop.f32.mrb[70].mxu1 }
 0x178   : > { %v2429_v10 = vld [vmem:[#allocation3 + $0x30] sm:$0xff]  ;;  %v2591_v36 = vld [vmem:[#allocation3 + $0x18] sm:$0xff]  ;;  %2579 = vst.msk [vmem:[#allocation3 + $0x38] sm:$0xff] %vm257_vm1, %v2571_v52  ;;  %v11836_v62 = vpop.f32.mrb[71].mxu1 }
 0x179   : > { %v2570_v6 = vadd.f32 %v11695_v26, %v2429_v10  ;;  %v2732_v57 = vadd.f32 %v11665_v39, %v2591_v36  ;;  %v2590_v30 = vld [vmem:[#allocation3 + $0x10] sm:$0xff]  ;;  %v11838_v43 = vpop.f32.mrb[72].mxu0 }
 0x17a   : > { %v2731_v25 = vadd.f32 %v11673_v46, %v2590_v30  ;;  %v11841_v9 = vpop.f32.mrb[73].mxu0 }
 0x17b   : > { %2578 = vst.msk [vmem:[#allocation3 + $0x30] sm:$0xff] %vm257_vm1, %v2570_v6  ;;  %2740 = vst.msk [vmem:[#allocation3 + $0x18] sm:$0xff] %vm257_vm1, %v2732_v57  ;;  %v11845_v55 = vpop.f32.mrb[72].mxu1 }
 0x17c   : > { %2739 = vst.msk [vmem:[#allocation3 + $0x10] sm:$0xff] %vm257_vm1, %v2731_v25  ;;  %v2593_v26 = vld [vmem:[#allocation3 + $0x28] sm:$0xff]  ;;  %v11850_v28 = vpop.f32.mrb[73].mxu1 }
 0x17d   : > { %v2734_v39 = vadd.f32 %v11683_v34, %v2593_v26  ;;  %v2592_v33 = vld [vmem:[#allocation3 + $0x20] sm:$0xff]  ;;  %v2754_v59 = vld [vmem:[#allocation3 + $0x8] sm:$0xff]  ;;  %v11848_v46 = vpop.f32.mrb[74].mxu0 }
 0x17e   : > { %v2733_v23 = vadd.f32 %v11691_v20, %v2592_v33  ;;  %v2895_v42 = vadd.f32 %v11708_v0, %v2754_v59  ;;  %v2753_v47 = vld [vmem:[#allocation3] sm:$0xff]  ;;  %v11854_v37 = vpop.f32.mrb[75].mxu0 }
 0x17f   : > { %2742 = vst.msk [vmem:[#allocation3 + $0x28] sm:$0xff] %vm257_vm1, %v2734_v39  ;;  %v2894_v34 = vadd.f32 %v11715_v41, %v2753_v47  ;;  %v2595_v1 = vld [vmem:[#allocation3 + $0x38] sm:$0xff]  ;;  %v11860_v14 = vpop.f32.mrb[74].mxu1 }
 0x180   : > { %2741 = vst.msk [vmem:[#allocation3 + $0x20] sm:$0xff] %vm257_vm1, %v2733_v23  ;;  %2903 = vst.msk [vmem:[#allocation3 + $0x8] sm:$0xff] %vm257_vm1, %v2895_v42  ;;  %v2736_v20 = vadd.f32 %v11703_v29, %v2595_v1  ;;  %v11866_v35 = vpop.f32.mrb[75].mxu1 }
 0x181   : > { %2902 = vst.msk [vmem:[#allocation3] sm:$0xff] %vm257_vm1, %v2894_v34  ;;  %v11864_v17 = vpop.f32.mrb[76].mxu0 }
 0x182   : > { %v2594_v13 = vld [vmem:[#allocation3 + $0x30] sm:$0xff]  ;;  %v2756_v0 = vld [vmem:[#allocation3 + $0x18] sm:$0xff]  ;;  %2744 = vst.msk [vmem:[#allocation3 + $0x38] sm:$0xff] %vm257_vm1, %v2736_v20  ;;  %v11870_v10 = vpop.f32.mrb[77].mxu0 }
 0x183   : > { %v2735_v24 = vadd.f32 %v11710_v19, %v2594_v13  ;;  %v2897_v41 = vadd.f32 %v11725_v31, %v2756_v0  ;;  %v2755_v52 = vld [vmem:[#allocation3 + $0x10] sm:$0xff]  ;;  %v11875_v6 = vpop.f32.mrb[76].mxu1 }
 0x184   : > { %v2896_v29 = vadd.f32 %v11730_v11, %v2755_v52  ;;  %v11880_v57 = vpop.f32.mrb[77].mxu1 }
 0x185   : > { %2743 = vst.msk [vmem:[#allocation3 + $0x30] sm:$0xff] %vm257_vm1, %v2735_v24  ;;  %2905 = vst.msk [vmem:[#allocation3 + $0x18] sm:$0xff] %vm257_vm1, %v2897_v41  ;;  %v11878_v36 = vpop.f32.mrb[78].mxu0 }
 0x186   : > { %2904 = vst.msk [vmem:[#allocation3 + $0x10] sm:$0xff] %vm257_vm1, %v2896_v29  ;;  %v2758_v19 = vld [vmem:[#allocation3 + $0x28] sm:$0xff]  ;;  %v11883_v25 = vpop.f32.mrb[79].mxu0 }
 0x187   : > { %v2899_v31 = vadd.f32 %v11741_v22, %v2758_v19  ;;  %v2757_v30 = vld [vmem:[#allocation3 + $0x20] sm:$0xff]  ;;  %v2919_v39 = vld [vmem:[#allocation3 + $0x8] sm:$0xff]  ;;  %v11888_v23 = vpop.f32.mrb[78].mxu1 }
 0x188   : > { %v2898_v26 = vadd.f32 %v11747_v5, %v2757_v30  ;;  %v3060_v11 = vadd.f32 %v11721_v48, %v2919_v39  ;;  %v2918_v33 = vld [vmem:[#allocation3] sm:$0xff]  ;;  %v11894_v22 = vpop.f32.mrb[79].mxu1 }
 0x189   : > { %2907 = vst.msk [vmem:[#allocation3 + $0x28] sm:$0xff] %vm257_vm1, %v2899_v31  ;;  %v3059_v59 = vadd.f32 %v11727_v12, %v2918_v33  ;;  %v2760_v42 = vld [vmem:[#allocation3 + $0x38] sm:$0xff]  ;;  %v11892_v47 = vpop.f32.mrb[80].mxu0 }
 0x18a   : > { %2906 = vst.msk [vmem:[#allocation3 + $0x20] sm:$0xff] %vm257_vm1, %v2898_v26  ;;  %3068 = vst.msk [vmem:[#allocation3 + $0x8] sm:$0xff] %vm257_vm1, %v3060_v11  ;;  %v2901_v5 = vadd.f32 %v11759_v16, %v2760_v42  ;;  %v11898_v1 = vpop.f32.mrb[81].mxu0 }
 0x18b   : > { %3067 = vst.msk [vmem:[#allocation3] sm:$0xff] %vm257_vm1, %v3059_v59  ;;  %v11904_v24 = vpop.f32.mrb[80].mxu1 }
 0x18c   : > { %v2759_v34 = vld [vmem:[#allocation3 + $0x30] sm:$0xff]  ;;  %v2921_v20 = vld [vmem:[#allocation3 + $0x18] sm:$0xff]  ;;  %2909 = vst.msk [vmem:[#allocation3 + $0x38] sm:$0xff] %vm257_vm1, %v2901_v5  ;;  %v11910_v41 = vpop.f32.mrb[81].mxu1 }
 0x18d   : > { %v2900_v48 = vadd.f32 %v11764_v4, %v2759_v34  ;;  %v3062_v12 = vadd.f32 %v11736_v45, %v2921_v20  ;;  %v2920_v13 = vld [vmem:[#allocation3 + $0x10] sm:$0xff]  ;;  %v11908_v16 = vpop.f32.mrb[82].mxu0 }
 0x18e   : > { %v3061_v0 = vadd.f32 %v11743_v18, %v2920_v13  ;;  %v11913_v52 = vpop.f32.mrb[83].mxu0 }
 0x18f   : > { %2908 = vst.msk [vmem:[#allocation3 + $0x30] sm:$0xff] %vm257_vm1, %v2900_v48  ;;  %3070 = vst.msk [vmem:[#allocation3 + $0x18] sm:$0xff] %vm257_vm1, %v3062_v12  ;;  %v11917_v19 = vpop.f32.mrb[82].mxu1 }
 0x190   : > { %3069 = vst.msk [vmem:[#allocation3 + $0x10] sm:$0xff] %vm257_vm1, %v3061_v0  ;;  %v2923_v4 = vld [vmem:[#allocation3 + $0x28] sm:$0xff]  ;;  %v11922_v26 = vpop.f32.mrb[83].mxu1 }
 0x191   : > { %v3064_v45 = vadd.f32 %v11754_v2, %v2923_v4  ;;  %v2922_v29 = vld [vmem:[#allocation3 + $0x20] sm:$0xff]  ;;  %v3084_v30 = vld [vmem:[#allocation3 + $0x8] sm:$0xff]  ;;  %v11920_v18 = vpop.f32.mrb[84].mxu0 }
 0x192   : > { %v3063_v31 = vadd.f32 %v11761_v38, %v2922_v29  ;;  %v3225_v39 = vadd.f32 %v11773_v15, %v3084_v30  ;;  %v3083_v11 = vld [vmem:[#allocation3] sm:$0xff]  ;;  %v11926_v33 = vpop.f32.mrb[85].mxu0 }
 0x193   : > { %3072 = vst.msk [vmem:[#allocation3 + $0x28] sm:$0xff] %vm257_vm1, %v3064_v45  ;;  %v3224_v2 = vadd.f32 %v11779_v32, %v3083_v11  ;;  %v2925_v59 = vld [vmem:[#allocation3 + $0x38] sm:$0xff]  ;;  %v11932_v5 = vpop.f32.mrb[84].mxu1 }
 0x194   : > { %3071 = vst.msk [vmem:[#allocation3 + $0x20] sm:$0xff] %vm257_vm1, %v3063_v31  ;;  %3233 = vst.msk [vmem:[#allocation3 + $0x8] sm:$0xff] %vm257_vm1, %v3225_v39  ;;  %v3066_v38 = vadd.f32 %v11769_v27, %v2925_v59  ;;  %v11938_v20 = vpop.f32.mrb[85].mxu1  ;;  %v11947_v27 = vld [vmem:[%s12906_s3 + $0xc] sm:$0xf] }
 0x195   : > { %3232 = vst.msk [vmem:[#allocation3] sm:$0xff] %vm257_vm1, %v3224_v2  ;;  %v11936_v48 = vpop.f32.mrb[86].mxu0  ;;  %10056 = vmatprep.subr.msk.mxu1 %vm390_vm0, %v11947_v27 }
 0x196   : > { %v2924_v42 = vld [vmem:[#allocation3 + $0x30] sm:$0xff]  ;;  %v3086_v15 = vld [vmem:[#allocation3 + $0x18] sm:$0xff]  ;;  %3074 = vst.msk [vmem:[#allocation3 + $0x38] sm:$0xff] %vm257_vm1, %v3066_v38  ;;  %v11942_v13 = vpop.f32.mrb[87].mxu0 }
 0x197   : > { %v3065_v34 = vadd.f32 %v11775_v56, %v2924_v42  ;;  %v3227_v32 = vadd.f32 %v11791_v61, %v3086_v15  ;;  %v3085_v12 = vld [vmem:[#allocation3 + $0x10] sm:$0xff]  ;;  %v11954_v0 = vpop.f32.mrb[86].mxu1 }
 0x198   : > { %v3226_v56 = vadd.f32 %v11797_v58, %v3085_v12  ;;  %v11959_v45 = vpop.f32.mrb[87].mxu1 }
 0x199   : > { %3073 = vst.msk [vmem:[#allocation3 + $0x30] sm:$0xff] %vm257_vm1, %v3065_v34  ;;  %3235 = vst.msk [vmem:[#allocation3 + $0x18] sm:$0xff] %vm257_vm1, %v3227_v32  ;;  %v11957_v4 = vpop.f32.mrb[88].mxu0 }
 0x19a   : > { %3234 = vst.msk [vmem:[#allocation3 + $0x10] sm:$0xff] %vm257_vm1, %v3226_v56  ;;  %v3088_v61 = vld [vmem:[#allocation3 + $0x28] sm:$0xff]  ;;  %v11962_v30 = vpop.f32.mrb[89].mxu0 }
 0x19b   : > { %v3229_v29 = vadd.f32 %v11806_v3, %v3088_v61  ;;  %v3087_v31 = vld [vmem:[#allocation3 + $0x20] sm:$0xff]  ;;  %v3249_v39 = vld [vmem:[#allocation3 + $0x8] sm:$0xff]  ;;  %v11967_v59 = vpop.f32.mrb[88].mxu1 }
 0x19c   : > { %v3228_v58 = vadd.f32 %v11811_v40, %v3087_v31  ;;  %v3390_v11 = vadd.f32 %v11786_v21, %v3249_v39  ;;  %v3248_v2 = vld [vmem:[#allocation3] sm:$0xff]  ;;  %v11973_v3 = vpop.f32.mrb[89].mxu1 }
 0x19d   : > { %3237 = vst.msk [vmem:[#allocation3 + $0x28] sm:$0xff] %vm257_vm1, %v3229_v29  ;;  %v3389_v38 = vadd.f32 %v11793_v54, %v3248_v2  ;;  %v3090_v42 = vld [vmem:[#allocation3 + $0x38] sm:$0xff]  ;;  %v11971_v34 = vpop.f32.mrb[90].mxu0 }
 0x19e   : > { %3236 = vst.msk [vmem:[#allocation3 + $0x20] sm:$0xff] %vm257_vm1, %v3228_v58  ;;  %3398 = vst.msk [vmem:[#allocation3 + $0x8] sm:$0xff] %vm257_vm1, %v3390_v11  ;;  %v3231_v40 = vadd.f32 %v11820_v50, %v3090_v42  ;;  %v11977_v32 = vpop.f32.mrb[91].mxu0 }
 0x19f   : > { %3397 = vst.msk [vmem:[#allocation3] sm:$0xff] %vm257_vm1, %v3389_v38  ;;  %v11983_v61 = vpop.f32.mrb[90].mxu1 }
 0x1a0   : > { %v3089_v15 = vld [vmem:[#allocation3 + $0x30] sm:$0xff]  ;;  %v3251_v12 = vld [vmem:[#allocation3 + $0x18] sm:$0xff]  ;;  %3239 = vst.msk [vmem:[#allocation3 + $0x38] sm:$0xff] %vm257_vm1, %v3231_v40 }
 0x1a1   : > { %v3230_v21 = vadd.f32 %v11826_v51, %v3089_v15  ;;  %v3392_v54 = vadd.f32 %v11803_v53, %v3251_v12  ;;  %v3250_v56 = vld [vmem:[#allocation3 + $0x10] sm:$0xff]  ;;  %v12003_v50 = vpop.f32.mrb[92].mxu0  ;;  %v12005_v51 = vpop.f32.mrb[91].mxu1 }
 0x1a2   : > { %v3391_v53 = vadd.f32 %v11808_v49, %v3250_v56  ;;  %v12008_v29 = vpop.f32.mrb[93].mxu0 }
 0x1a3   : > { %3238 = vst.msk [vmem:[#allocation3 + $0x30] sm:$0xff] %vm257_vm1, %v3230_v21  ;;  %3400 = vst.msk [vmem:[#allocation3 + $0x18] sm:$0xff] %vm257_vm1, %v3392_v54  ;;  %v12012_v11 = vpop.f32.mrb[92].mxu1 }
 0x1a4   : > { %3399 = vst.msk [vmem:[#allocation3 + $0x10] sm:$0xff] %vm257_vm1, %v3391_v53  ;;  %v3253_v31 = vld [vmem:[#allocation3 + $0x28] sm:$0xff]  ;;  %12914 = vst [vmem:[#allocation5_spill] sm:$0xff] %v12012_v11  ;;  %v12017_v42 = vpop.f32.mrb[93].mxu1 }
 0x1a5   : > { %v3394_v58 = vadd.f32 %v11816_v8, %v3253_v31  ;;  %v3252_v39 = vld [vmem:[#allocation3 + $0x20] sm:$0xff]  ;;  %v3406_v38 = vld [vmem:[#allocation3 + $0x8] sm:$0xff]  ;;  %v12015_v49 = vpop.f32.mrb[94].mxu0  ;;  %12915 = vst [vmem:[#allocation6_spill] sm:$0xff] %v12017_v42 }
 0x1a6   : > { %v3393_v2 = vadd.f32 %v11822_v63, %v3252_v39  ;;  %v3421_v40 = vadd.f32 %v11597_v44, %v3406_v38  ;;  %3470 = vst.msk [vmem:[#allocation3 + $0x8] sm:$0xff] %vm257_vm1, %v12910_v60  ;;  %v3405_v15 = vld [vmem:[#allocation3] sm:$0xff]  ;;  %v12023_v21 = vpop.f32.mrb[95].mxu0 }
 0x1a7   : > { %3402 = vst.msk [vmem:[#allocation3 + $0x28] sm:$0xff] %vm257_vm1, %v3394_v58  ;;  %v3255_v8 = vld [vmem:[#allocation3 + $0x38] sm:$0xff]  ;;  %v3420_v63 = vadd.f32 %v11597_v44, %v3405_v15  ;;  %3469 = vst.msk [vmem:[#allocation3] sm:$0xff] %vm257_vm1, %v12910_v60  ;;  %v12030_v53 = vpop.f32.mrb[94].mxu1 }
 0x1a8   : > { %3401 = vst.msk [vmem:[#allocation3 + $0x20] sm:$0xff] %vm257_vm1, %v3393_v2  ;;  %v3396_v12 = vadd.f32 %v11832_v7, %v3255_v8  ;;  %vm3429_vm12 = vcmp.gt.f32.partialorder %v3421_v40, 0.0  ;;  %v3437_v56 = vmul.f32 0.2, %v3421_v40  ;;  %12916 = vst [vmem:[#allocation7_spill] sm:$0xff] %v12030_v53  ;;  %v12035_v2 = vpop.f32.mrb[95].mxu1 }
 0x1a9   : > { %vm3428_vm13 = vcmp.gt.f32.partialorder %v3420_v63, 0.0  ;;  %v3436_v58 = vmul.f32 0.2, %v3420_v63  ;;  %v12033_v38 = vpop.f32.mrb[96].mxu0  ;;  %12918 = vst [vmem:[#allocation9_spill] sm:$0xff] %v12035_v2  ;;  %v12919_v7 = vmov 0.0  }
 0x1aa   : > { %v3254_v54 = vld [vmem:[#allocation3 + $0x30] sm:$0xff]  ;;  %v3408_v39 = vld [vmem:[#allocation3 + $0x18] sm:$0xff]  ;;  %12917 = vst [vmem:[#allocation8_spill] sm:$0xff] %v12033_v38  ;;  %3404 = vst.msk [vmem:[#allocation3 + $0x38] sm:$0xff] %vm257_vm1, %v3396_v12  ;;  %v3445_v15 = vsel %vm3429_vm12, %v3421_v40, %v3437_v56  ;;  %v12041_v42 = vpop.f32.mrb[97].mxu0 }
 0x1ab   : > { %v3395_v31 = vadd.f32 %v11836_v62, %v3254_v54  ;;  %v3423_v60 = vadd.f32 %v11597_v44, %v3408_v39  ;;  %3472 = vst.msk [vmem:[#allocation3 + $0x18] sm:$0xff] %vm257_vm1, %v12919_v7  ;;  %v3407_v8 = vld [vmem:[#allocation3 + $0x10] sm:$0xff]  ;;  %12920 = vst [vmem:[#allocation10_spill] sm:$0xff] %v12041_v42  ;;  %v3453_v62 = vmul.f32 1.4142135, %v3445_v15  ;;  %v3444_v54 = vsel %vm3428_vm13, %v3420_v63, %v3436_v58  ;;  %v12047_v12 = vpop.f32.mrb[96].mxu1 }
 0x1ac   : > { %v3422_v53 = vadd.f32 %v11597_v44, %v3407_v8  ;;  %3471 = vst.msk [vmem:[#allocation3 + $0x10] sm:$0xff] %vm257_vm1, %v12919_v7  ;;  %v3452_v2 = vmul.f32 1.4142135, %v3444_v54  ;;  %12921 = vst [vmem:[#allocation11_spill] sm:$0xff] %v12047_v12 }
 0x1ad   : > { %3403 = vst.msk [vmem:[#allocation3 + $0x30] sm:$0xff] %vm257_vm1, %v3395_v31  ;;  %vm3431_vm14 = vcmp.gt.f32.partialorder %v3423_v60, 0.0  ;;  %v3439_v40 = vmul.f32 0.2, %v3423_v60  ;;  %3462 = vst.msk [vmem:[#allocation2 + $0xb0] sm:$0xff] %vm257_vm1, %v3453_v62  ;;  %v3487_v56 = vld [vmem:[#allocation3 + $0x8] sm:$0xff] }
 0x1ae   : > { %vm3430_vm15 = vcmp.gt.f32.partialorder %v3422_v53, 0.0  ;;  %v3438_v39 = vmul.f32 0.2, %v3422_v53  ;;  %v3410_v42 = vld [vmem:[#allocation3 + $0x28] sm:$0xff]  ;;  %v12050_v38 = vpop.f32.mrb[98].mxu0  ;;  %v3628_v63 = vadd.f32 %v11838_v43, %v3487_v56  ;;  %3461 = vst.msk [vmem:[#allocation2 + $0xa0] sm:$0xff] %vm257_vm1, %v3452_v2 }
 0x1af   : > { %12922 = vst [vmem:[#allocation12_spill] sm:$0xff] %v12050_v38  ;;  %v3486_v31 = vld [vmem:[#allocation3] sm:$0xff]  ;;  %v3447_v58 = vsel %vm3431_vm14, %v3423_v60, %v3439_v40  ;;  %v3425_v15 = vadd.f32 %v11597_v44, %v3410_v42  ;;  %3474 = vst.msk [vmem:[#allocation3 + $0x28] sm:$0xff] %vm257_vm1, %v12919_v7  ;;  %v12057_v54 = vpop.f32.mrb[99].mxu0  ;;  %v12059_v62 = vpop.f32.mrb[97].mxu1 }
 0x1b0   : > { %v3409_v8 = vld [vmem:[#allocation3 + $0x20] sm:$0xff]  ;;  %12923 = vst [vmem:[#allocation13_spill] sm:$0xff] %v12059_v62  ;;  %v3627_v12 = vadd.f32 %v11841_v9, %v3486_v31  ;;  %v3455_v11 = vmul.f32 1.4142135, %v3447_v58  ;;  %v3446_v38 = vsel %vm3430_vm15, %v3422_v53, %v3438_v39  ;;  %3636 = vst.msk [vmem:[#allocation3 + $0x8] sm:$0xff] %vm257_vm1, %v3628_v63  ;;  %v12066_v2 = vpop.f32.mrb[98].mxu1 }
 0x1b1   : > { %v3424_v43 = vadd.f32 %v11597_v44, %v3409_v8  ;;  %3473 = vst.msk [vmem:[#allocation3 + $0x20] sm:$0xff] %vm257_vm1, %v12919_v7  ;;  %v3454_v60 = vmul.f32 1.4142135, %v3446_v38  ;;  %vm3433_vm2 = vcmp.gt.f32.partialorder %v3425_v15, 0.0  ;;  %v3441_v42 = vmul.f32 0.2, %v3425_v15 }
 0x1b2   : > { %12924 = vst [vmem:[#allocation14_spill] sm:$0xff] %v12066_v2  ;;  %3635 = vst.msk [vmem:[#allocation3] sm:$0xff] %vm257_vm1, %v3627_v12  ;;  %v3489_v40 = vld [vmem:[#allocation3 + $0x18] sm:$0xff]  ;;  %v12070_v56 = vpop.f32.mrb[100].mxu0 }
 0x1b3   : > { %3464 = vst.msk [vmem:[#allocation2 + $0xd0] sm:$0xff] %vm257_vm1, %v3455_v11  ;;  %vm3432_vm3 = vcmp.gt.f32.partialorder %v3424_v43, 0.0  ;;  %v3440_v9 = vmul.f32 0.2, %v3424_v43  ;;  %v3412_v53 = vld [vmem:[#allocation3 + $0x38] sm:$0xff]  ;;  %v3630_v39 = vadd.f32 %v11848_v46, %v3489_v40  ;;  %3463 = vst.msk [vmem:[#allocation2 + $0xc0] sm:$0xff] %vm257_vm1, %v3454_v60  ;;  %v3449_v38 = vsel %vm3433_vm2, %v3425_v15, %v3441_v42 }
 0x1b4   : > { %v3488_v63 = vld [vmem:[#allocation3 + $0x10] sm:$0xff]  ;;  %v3427_v31 = vadd.f32 %v11597_v44, %v3412_v53  ;;  %3476 = vst.msk [vmem:[#allocation3 + $0x38] sm:$0xff] %vm257_vm1, %v12919_v7  ;;  %v12077_v58 = vpop.f32.mrb[101].mxu0  ;;  %v12079_v11 = vpop.f32.mrb[99].mxu1  ;;  %v3457_v2 = vmul.f32 1.4142135, %v3449_v38 }
 0x1b5   : > { %v3411_v12 = vld [vmem:[#allocation3 + $0x30] sm:$0xff]  ;;  %12925 = vst [vmem:[#allocation15_spill] sm:$0xff] %v12079_v11  ;;  %v3629_v8 = vadd.f32 %v11854_v37, %v3488_v63  ;;  %v3448_v62 = vsel %vm3432_vm3, %v3424_v43, %v3440_v9  ;;  %3638 = vst.msk [vmem:[#allocation3 + $0x18] sm:$0xff] %vm257_vm1, %v3630_v39  ;;  %v6751_v43 = vld [vmem:[#allocation2 + $0xa0] sm:$0xff]  ;;  %v12093_v40 = vpop.f32.mrb[102].mxu0  ;;  %v12100_v38 = vpop.f32.mrb[100].mxu1 }
 0x1b6   : > { %v3426_v46 = vadd.f32 %v11597_v44, %v3411_v12  ;;  %3475 = vst.msk [vmem:[#allocation3 + $0x30] sm:$0xff] %vm257_vm1, %v12919_v7  ;;  %v12088_v15 = vld [vmem:[%s12906_s3 + $0x14] sm:$0xf]  ;;  %v3456_v60 = vmul.f32 1.4142135, %v3448_v62  ;;  %vm3435_vm4 = vcmp.gt.f32.partialorder %v3427_v31, 0.0  ;;  %10031 = vmatmul.mubr.msk.f32.vlgmr.msra.gmra.mrb[144].mxu1 %vm257_vm1, %v6751_v43 }
 0x1b7   : > { %v3443_v42 = vmul.f32 0.2, %v3427_v31  ;;  %3637 = vst.msk [vmem:[#allocation3 + $0x10] sm:$0xff] %vm257_vm1, %v3629_v8  ;;  %3466 = vst.msk [vmem:[#allocation2 + $0xf0] sm:$0xff] %vm257_vm1, %v3457_v2  ;;  %v3491_v37 = vld [vmem:[#allocation3 + $0x28] sm:$0xff]  ;;  %v6752_v62 = vld [vmem:[#allocation2 + $0xb0] sm:$0xff]  ;;  %10057 = vmatpush3.msk.msra.mxu1 %vm390_vm0, %v11947_v27 }
 0x1b8   : > { %vm3434_vm5 = vcmp.gt.f32.partialorder %v3426_v46, 0.0  ;;  %v3442_v44 = vmul.f32 0.2, %v3426_v46  ;;  %v3632_v9 = vadd.f32 %v11864_v17, %v3491_v37  ;;  %3465 = vst.msk [vmem:[#allocation2 + $0xe0] sm:$0xff] %vm257_vm1, %v3456_v60  ;;  %v3490_v53 = vld [vmem:[#allocation3 + $0x20] sm:$0xff]  ;;  %v12098_v63 = vpop.f32.mrb[103].mxu0  ;;  %10033 = vmatprep.mubr.msk.f32.mxu1 %vm257_vm1, %v6752_v62  ;;  %10084 = vmatprep.subr.msk.mxu1 %vm390_vm0, %v12088_v15 }
 0x1b9   : > { %v3451_v39 = vsel %vm3435_vm4, %v3427_v31, %v3443_v42  ;;  %v3631_v2 = vadd.f32 %v11870_v10, %v3490_v53  ;;  %v3652_v12 = vld [vmem:[#allocation3 + $0x8] sm:$0xff]  ;;  %v12104_v11 = vpop.f32.mrb[101].mxu1  ;;  %v3651_v31 = vld [vmem:[#allocation3] sm:$0xff]  ;;  %v12117_v27 = vpop.f32.mrb[104].mxu0 }
 0x1ba   : > { %v3459_v8 = vmul.f32 1.4142135, %v3451_v39  ;;  %v3450_v7 = vsel %vm3434_vm5, %v3426_v46, %v3442_v44  ;;  %3640 = vst.msk [vmem:[#allocation3 + $0x28] sm:$0xff] %vm257_vm1, %v3632_v9  ;;  %v3793_v17 = vadd.f32 %v11845_v55, %v3652_v12  ;;  %v12110_v42 = vpop.f32.mrb[102].mxu1  ;;  %v3792_v10 = vadd.f32 %v11850_v28, %v3651_v31  ;;  %v6753_v37 = vld [vmem:[#allocation2 + $0xc0] sm:$0xff]  ;;  %v6754_v44 = vld [vmem:[#allocation2 + $0xd0] sm:$0xff] }
 0x1bb   : > { %v3458_v60 = vmul.f32 1.4142135, %v3450_v7  ;;  %3639 = vst.msk [vmem:[#allocation3 + $0x20] sm:$0xff] %vm257_vm1, %v3631_v2  ;;  %v3493_v46 = vld [vmem:[#allocation3 + $0x38] sm:$0xff]  ;;  %v12119_v43 = vpop.f32.mrb[103].mxu1  ;;  %10034 = vmatmul.mubr.msk.f32.gmra.mrb[146].mxu1 %vm257_vm1, %v6753_v37  ;;  %v12125_v9 = vpop.f32.mrb[105].mxu0 }
 0x1bc   : > { %3468 = vst.msk [vmem:[#allocation2 + $0x110] sm:$0xff] %vm257_vm1, %v3459_v8  ;;  %3801 = vst.msk [vmem:[#allocation3 + $0x8] sm:$0xff] %vm257_vm1, %v3793_v17  ;;  %v3634_v55 = vadd.f32 %v11878_v36, %v3493_v46  ;;  %v3654_v53 = vld [vmem:[#allocation3 + $0x18] sm:$0xff]  ;;  %10036 = vmatprep.mubr.msk.f32.mxu1 %vm257_vm1, %v6754_v44  ;;  %v12132_v39 = vpop.f32.mrb[104].mxu1 }
 0x1bd   : > { %3467 = vst.msk [vmem:[#allocation2 + $0x100] sm:$0xff] %vm257_vm1, %v3458_v60  ;;  %v3492_v7 = vld [vmem:[#allocation3 + $0x30] sm:$0xff]  ;;  %3800 = vst.msk [vmem:[#allocation3] sm:$0xff] %vm257_vm1, %v3792_v10  ;;  %v3795_v62 = vadd.f32 %v11860_v14, %v3654_v53  ;;  %v12136_v8 = vpop.f32.mrb[106].mxu0  ;;  %v12138_v17 = vpop.f32.mrb[105].mxu1 }
 0x1be   : > { %v3633_v28 = vadd.f32 %v11883_v25, %v3492_v7  ;;  %3642 = vst.msk [vmem:[#allocation3 + $0x38] sm:$0xff] %vm257_vm1, %v3634_v55  ;;  %v3653_v36 = vld [vmem:[#allocation3 + $0x10] sm:$0xff]  ;;  %v12142_v31 = vpop.f32.mrb[107].mxu0 }
 0x1bf   : > { %v3794_v2 = vadd.f32 %v11866_v35, %v3653_v36  ;;  %v6755_v12 = vld [vmem:[#allocation2 + $0xe0] sm:$0xff]  ;;  %3803 = vst.msk [vmem:[#allocation3 + $0x18] sm:$0xff] %vm257_vm1, %v3795_v62  ;;  %v6756_v25 = vld [vmem:[#allocation2 + $0xf0] sm:$0xff]  ;;  %v12147_v10 = vpop.f32.mrb[106].mxu1 }
 0x1c0   : > { %3641 = vst.msk [vmem:[#allocation3 + $0x30] sm:$0xff] %vm257_vm1, %v3633_v28  ;;  %10037 = vmatmul.mubr.msk.f32.gmra.mrb[148].mxu1 %vm257_vm1, %v6755_v12  ;;  %v12152_v44 = vpop.f32.mrb[107].mxu1 }
 0x1c1   : > { %3802 = vst.msk [vmem:[#allocation3 + $0x10] sm:$0xff] %vm257_vm1, %v3794_v2  ;;  %v3656_v14 = vld [vmem:[#allocation3 + $0x28] sm:$0xff]  ;;  %10039 = vmatprep.mubr.msk.f32.mxu1 %vm257_vm1, %v6756_v25  ;;  %v12150_v7 = vpop.f32.mrb[108].mxu0 }
 0x1c2   : > { %v3797_v60 = vadd.f32 %v11875_v6, %v3656_v14  ;;  %v3655_v35 = vld [vmem:[#allocation3 + $0x20] sm:$0xff]  ;;  %v12157_v62 = vpop.f32.mrb[109].mxu0 }
 0x1c3   : > { %v3796_v46 = vadd.f32 %v11880_v57, %v3655_v35  ;;  %v3817_v37 = vld [vmem:[#allocation3 + $0x8] sm:$0xff]  ;;  %v12163_v12 = vpop.f32.mrb[108].mxu1 }
 0x1c4   : > { %v6757_v55 = vld [vmem:[#allocation2 + $0x100] sm:$0xff]  ;;  %3805 = vst.msk [vmem:[#allocation3 + $0x28] sm:$0xff] %vm257_vm1, %v3797_v60  ;;  %v3958_v28 = vadd.f32 %v11892_v47, %v3817_v37  ;;  %v12169_v60 = vpop.f32.mrb[109].mxu1 }
 0x1c5   : > { %v3816_v53 = vld [vmem:[#allocation3] sm:$0xff]  ;;  %10040 = vmatmul.mubr.msk.f32.gmra.mrb[150].mxu1 %vm257_vm1, %v6757_v55  ;;  %3804 = vst.msk [vmem:[#allocation3 + $0x20] sm:$0xff] %vm257_vm1, %v3796_v46  ;;  %v3658_v57 = vld [vmem:[#allocation3 + $0x38] sm:$0xff]  ;;  %v12167_v14 = vpop.f32.mrb[110].mxu0 }
 0x1c6   : > { %v3957_v6 = vadd.f32 %v11898_v1, %v3816_v53  ;;  %3966 = vst.msk [vmem:[#allocation3 + $0x8] sm:$0xff] %vm257_vm1, %v3958_v28  ;;  %v3799_v36 = vadd.f32 %v11888_v23, %v3658_v57  ;;  %v3819_v25 = vld [vmem:[#allocation3 + $0x18] sm:$0xff]  ;;  %v12173_v46 = vpop.f32.mrb[111].mxu0 }
 0x1c7   : > { %v3657_v2 = vld [vmem:[#allocation3 + $0x30] sm:$0xff]  ;;  %v3960_v1 = vadd.f32 %v11908_v16, %v3819_v25  ;;  %v12178_v37 = vpop.f32.mrb[110].mxu1 }
 0x1c8   : > { %3965 = vst.msk [vmem:[#allocation3] sm:$0xff] %vm257_vm1, %v3957_v6  ;;  %v3798_v47 = vadd.f32 %v11894_v22, %v3657_v2  ;;  %3807 = vst.msk [vmem:[#allocation3 + $0x38] sm:$0xff] %vm257_vm1, %v3799_v36  ;;  %v3818_v35 = vld [vmem:[#allocation3 + $0x10] sm:$0xff]  ;;  %v12183_v28 = vpop.f32.mrb[111].mxu1 }
 0x1c9   : > { %v3959_v23 = vadd.f32 %v11913_v52, %v3818_v35  ;;  %3968 = vst.msk [vmem:[#allocation3 + $0x18] sm:$0xff] %vm257_vm1, %v3960_v1  ;;  %v12181_v55 = vpop.f32.mrb[112].mxu0 }
 0x1ca   : > { %3806 = vst.msk [vmem:[#allocation3 + $0x30] sm:$0xff] %vm257_vm1, %v3798_v47  ;;  %v12186_v6 = vpop.f32.mrb[113].mxu0 }
 0x1cb   : > { %3967 = vst.msk [vmem:[#allocation3 + $0x10] sm:$0xff] %vm257_vm1, %v3959_v23  ;;  %v3821_v22 = vld [vmem:[#allocation3 + $0x28] sm:$0xff]  ;;  %v12191_v47 = vpop.f32.mrb[112].mxu1 }
 0x1cc   : > { %v3962_v16 = vadd.f32 %v11920_v18, %v3821_v22  ;;  %v3820_v53 = vld [vmem:[#allocation3 + $0x20] sm:$0xff]  ;;  %v12197_v18 = vpop.f32.mrb[113].mxu1 }
 0x1cd   : > { %v3961_v57 = vadd.f32 %v11926_v33, %v3820_v53  ;;  %v3982_v36 = vld [vmem:[#allocation3 + $0x8] sm:$0xff]  ;;  %v12195_v35 = vpop.f32.mrb[114].mxu0 }
 0x1ce   : > { %3970 = vst.msk [vmem:[#allocation3 + $0x28] sm:$0xff] %vm257_vm1, %v3962_v16  ;;  %v4123_v52 = vadd.f32 %v11904_v24, %v3982_v36  ;;  %v12201_v22 = vpop.f32.mrb[115].mxu0 }
 0x1cf   : > { %v3981_v2 = vld [vmem:[#allocation3] sm:$0xff]  ;;  %3969 = vst.msk [vmem:[#allocation3 + $0x20] sm:$0xff] %vm257_vm1, %v3961_v57  ;;  %v3823_v1 = vld [vmem:[#allocation3 + $0x38] sm:$0xff]  ;;  %v12207_v57 = vpop.f32.mrb[114].mxu1 }
 0x1d0   : > { %v4122_v25 = vadd.f32 %v11910_v41, %v3981_v2  ;;  %4131 = vst.msk [vmem:[#allocation3 + $0x8] sm:$0xff] %vm257_vm1, %v4123_v52  ;;  %v3964_v33 = vadd.f32 %v11936_v48, %v3823_v1  ;;  %v3984_v16 = vld [vmem:[#allocation3 + $0x18] sm:$0xff]  ;;  %v12213_v52 = vpop.f32.mrb[115].mxu1 }
 0x1d1   : > { %v3822_v23 = vld [vmem:[#allocation3 + $0x30] sm:$0xff]  ;;  %v4125_v41 = vadd.f32 %v11917_v19, %v3984_v16  ;;  %v12211_v48 = vpop.f32.mrb[116].mxu0 }
 0x1d2   : > { %4130 = vst.msk [vmem:[#allocation3] sm:$0xff] %vm257_vm1, %v4122_v25  ;;  %v3963_v24 = vadd.f32 %v11942_v13, %v3822_v23  ;;  %3972 = vst.msk [vmem:[#allocation3 + $0x38] sm:$0xff] %vm257_vm1, %v3964_v33  ;;  %v3983_v53 = vld [vmem:[#allocation3 + $0x10] sm:$0xff]  ;;  %v12216_v2 = vpop.f32.mrb[117].mxu0 }
 0x1d3   : > { %v4124_v36 = vadd.f32 %v11922_v26, %v3983_v53  ;;  %4133 = vst.msk [vmem:[#allocation3 + $0x18] sm:$0xff] %vm257_vm1, %v4125_v41  ;;  %v12220_v1 = vpop.f32.mrb[116].mxu1 }
 0x1d4   : > { %3971 = vst.msk [vmem:[#allocation3 + $0x30] sm:$0xff] %vm257_vm1, %v3963_v24  ;;  %v12225_v24 = vpop.f32.mrb[117].mxu1 }
 0x1d5   : > { %4132 = vst.msk [vmem:[#allocation3 + $0x10] sm:$0xff] %vm257_vm1, %v4124_v36  ;;  %v3986_v13 = vld [vmem:[#allocation3 + $0x28] sm:$0xff]  ;;  %v12223_v26 = vpop.f32.mrb[118].mxu0  ;;  %12926 = vst [vmem:[#allocation16_spill] sm:$0xff] %v12225_v24 }
 0x1d6   : > { %v4127_v19 = vadd.f32 %v11932_v5, %v3986_v13  ;;  %v3985_v25 = vld [vmem:[#allocation3 + $0x20] sm:$0xff]  ;;  %v12229_v53 = vpop.f32.mrb[119].mxu0 }
 0x1d7   : > { %v4126_v33 = vadd.f32 %v11938_v20, %v3985_v25  ;;  %v4147_v23 = vld [vmem:[#allocation3 + $0x8] sm:$0xff]  ;;  %v12235_v25 = vpop.f32.mrb[118].mxu1 }
 0x1d8   : > { %4135 = vst.msk [vmem:[#allocation3 + $0x28] sm:$0xff] %vm257_vm1, %v4127_v19  ;;  %v4288_v16 = vadd.f32 %v11957_v4, %v4147_v23  ;;  %v12241_v24 = vpop.f32.mrb[119].mxu1 }
 0x1d9   : > { %v4146_v41 = vld [vmem:[#allocation3] sm:$0xff]  ;;  %4134 = vst.msk [vmem:[#allocation3 + $0x20] sm:$0xff] %vm257_vm1, %v4126_v33  ;;  %v3988_v36 = vld [vmem:[#allocation3 + $0x38] sm:$0xff]  ;;  %v12239_v23 = vpop.f32.mrb[120].mxu0 }
 0x1da   : > { %v4287_v5 = vadd.f32 %v11962_v30, %v4146_v41  ;;  %4296 = vst.msk [vmem:[#allocation3 + $0x8] sm:$0xff] %vm257_vm1, %v4288_v16  ;;  %v4129_v20 = vadd.f32 %v11954_v0, %v3988_v36  ;;  %v4149_v4 = vld [vmem:[#allocation3 + $0x18] sm:$0xff]  ;;  %v12245_v16 = vpop.f32.mrb[121].mxu0 }
 0x1db   : > { %v3987_v13 = vld [vmem:[#allocation3 + $0x30] sm:$0xff]  ;;  %v4290_v30 = vadd.f32 %v11971_v34, %v4149_v4  ;;  %v12250_v41 = vpop.f32.mrb[120].mxu1 }
 0x1dc   : > { %4295 = vst.msk [vmem:[#allocation3] sm:$0xff] %vm257_vm1, %v4287_v5  ;;  %v4128_v19 = vadd.f32 %v11959_v45, %v3987_v13  ;;  %4137 = vst.msk [vmem:[#allocation3 + $0x38] sm:$0xff] %vm257_vm1, %v4129_v20  ;;  %v4148_v33 = vld [vmem:[#allocation3 + $0x10] sm:$0xff]  ;;  %v12255_v36 = vpop.f32.mrb[121].mxu1 }
 0x1dd   : > { %v4289_v0 = vadd.f32 %v11977_v32, %v4148_v33  ;;  %4298 = vst.msk [vmem:[#allocation3 + $0x18] sm:$0xff] %vm257_vm1, %v4290_v30  ;;  %12927 = vst [vmem:[#allocation17_spill] sm:$0xff] %v12250_v41  ;;  %v12253_v5 = vpop.f32.mrb[122].mxu0 }
 0x1de   : > { %4136 = vst.msk [vmem:[#allocation3 + $0x30] sm:$0xff] %vm257_vm1, %v4128_v19  ;;  %12928 = vst [vmem:[#allocation18_spill] sm:$0xff] %v12255_v36  ;;  %v12258_v13 = vpop.f32.mrb[123].mxu0 }
 0x1df   : > { %4297 = vst.msk [vmem:[#allocation3 + $0x10] sm:$0xff] %vm257_vm1, %v4289_v0  ;;  %v4151_v45 = vld [vmem:[#allocation3 + $0x28] sm:$0xff]  ;;  %v12263_v33 = vpop.f32.mrb[122].mxu1 }
 0x1e0   : > { %v4292_v34 = vadd.f32 %v12003_v50, %v4151_v45  ;;  %v4150_v20 = vld [vmem:[#allocation3 + $0x20] sm:$0xff]  ;;  %12929 = vst [vmem:[#allocation19_spill] sm:$0xff] %v12263_v33  ;;  %v12269_v50 = vpop.f32.mrb[123].mxu1 }
 0x1e1   : > { %v4291_v19 = vadd.f32 %v12008_v29, %v4150_v20  ;;  %v4312_v4 = vld [vmem:[#allocation3 + $0x8] sm:$0xff]  ;;  %v12267_v41 = vpop.f32.mrb[124].mxu0  ;;  %12930 = vst [vmem:[#allocation20_spill] sm:$0xff] %v12269_v50 }
 0x1e2   : > { %4300 = vst.msk [vmem:[#allocation3 + $0x28] sm:$0xff] %vm257_vm1, %v4292_v34  ;;  %v4453_v32 = vadd.f32 %v11967_v59, %v4312_v4  ;;  %v12273_v34 = vpop.f32.mrb[125].mxu0 }
 0x1e3   : > { %v4311_v30 = vld [vmem:[#allocation3] sm:$0xff]  ;;  %4299 = vst.msk [vmem:[#allocation3 + $0x20] sm:$0xff] %vm257_vm1, %v4291_v19  ;;  %v4153_v36 = vld [vmem:[#allocation3 + $0x38] sm:$0xff]  ;;  %v12279_v4 = vpop.f32.mrb[124].mxu1 }
 0x1e4   : > { %v4452_v0 = vadd.f32 %v11973_v3, %v4311_v30  ;;  %4461 = vst.msk [vmem:[#allocation3 + $0x8] sm:$0xff] %vm257_vm1, %v4453_v32  ;;  %v4294_v29 = vadd.f32 %v12015_v49, %v4153_v36  ;;  %v4314_v20 = vld [vmem:[#allocation3 + $0x18] sm:$0xff]  ;;  %12931 = vst [vmem:[#allocation21_spill] sm:$0xff] %v12279_v4  ;;  %v12285_v36 = vpop.f32.mrb[125].mxu1 }
 0x1e5   : > { %v4152_v45 = vld [vmem:[#allocation3 + $0x30] sm:$0xff]  ;;  %v4455_v3 = vadd.f32 %v11983_v61, %v4314_v20  ;;  %v12283_v49 = vpop.f32.mrb[126].mxu0  ;;  %12932 = vst [vmem:[#allocation22_spill] sm:$0xff] %v12285_v36  ;;  %v12935_v20 = vld [vmem:[#allocation6_spill] sm:$0xff] }
 0x1e6   : > { %4460 = vst.msk [vmem:[#allocation3] sm:$0xff] %vm257_vm1, %v4452_v0  ;;  %v4293_v59 = vadd.f32 %v12023_v21, %v4152_v45  ;;  %4302 = vst.msk [vmem:[#allocation3 + $0x38] sm:$0xff] %vm257_vm1, %v4294_v29  ;;  %v4313_v19 = vld [vmem:[#allocation3 + $0x10] sm:$0xff]  ;;  %v12288_v30 = vpop.f32.mrb[127].mxu0  ;;  %v12933_v0 = vld [vmem:[#allocation5_spill] sm:$0xff] }
 0x1e7   : > { %v4454_v32 = vadd.f32 %v12005_v51, %v4313_v19  ;;  %4463 = vst.msk [vmem:[#allocation3 + $0x18] sm:$0xff] %vm257_vm1, %v4455_v3  ;;  %v12292_v45 = vpop.f32.mrb[126].mxu1  ;;  %v12938_v3 = vld [vmem:[#allocation8_spill] sm:$0xff] }
 0x1e8   : > { %4301 = vst.msk [vmem:[#allocation3 + $0x30] sm:$0xff] %vm257_vm1, %v4293_v59  ;;  %12934 = vst [vmem:[#allocation5_spill] sm:$0xff] %v12292_v45  ;;  %v12297_v19 = vpop.f32.mrb[127].mxu1 }
 0x1e9   : > { %4462 = vst.msk [vmem:[#allocation3 + $0x10] sm:$0xff] %vm257_vm1, %v4454_v32  ;;  %v4316_v21 = vld [vmem:[#allocation3 + $0x28] sm:$0xff]  ;;  %v12295_v51 = vpop.f32.mrb[128].mxu0  ;;  %12937 = vst [vmem:[#allocation23_spill] sm:$0xff] %v12297_v19 }
 0x1ea   : > { %v4457_v61 = vadd.f32 %v12933_v0, %v4316_v21  ;;  %v4315_v29 = vld [vmem:[#allocation3 + $0x20] sm:$0xff]  ;;  %12936 = vst [vmem:[#allocation6_spill] sm:$0xff] %v12295_v51  ;;  %v12301_v33 = vpop.f32.mrb[129].mxu0  ;;  %v12940_v32 = vld [vmem:[#allocation10_spill] sm:$0xff] }
 0x1eb   : > { %v4456_v59 = vadd.f32 %v12935_v20, %v4315_v29  ;;  %v4477_v4 = vld [vmem:[#allocation3 + $0x8] sm:$0xff]  ;;  %12939 = vst [vmem:[#allocation8_spill] sm:$0xff] %v12301_v33  ;;  %v12941_v29 = vld [vmem:[#allocation7_spill] sm:$0xff]  ;;  %v12307_v51 = vpop.f32.mrb[128].mxu1 }
 0x1ec   : > { %4465 = vst.msk [vmem:[#allocation3 + $0x28] sm:$0xff] %vm257_vm1, %v4457_v61  ;;  %v4618_v36 = vadd.f32 %v12938_v3, %v4477_v4  ;;  %12942 = vst [vmem:[#allocation10_spill] sm:$0xff] %v12307_v51  ;;  %v12943_v61 = vld [vmem:[#allocation9_spill] sm:$0xff]  ;;  %v12313_v33 = vpop.f32.mrb[129].mxu1 }
 0x1ed   : > { %v4476_v50 = vld [vmem:[#allocation3] sm:$0xff]  ;;  %4464 = vst.msk [vmem:[#allocation3 + $0x20] sm:$0xff] %vm257_vm1, %v4456_v59  ;;  %v4318_v0 = vld [vmem:[#allocation3 + $0x38] sm:$0xff]  ;;  %v12311_v3 = vpop.f32.mrb[130].mxu0  ;;  %12944 = vst [vmem:[#allocation7_spill] sm:$0xff] %v12313_v33 }
 0x1ee   : > { %v4617_v21 = vadd.f32 %v12940_v32, %v4476_v50  ;;  %4626 = vst.msk [vmem:[#allocation3 + $0x8] sm:$0xff] %vm257_vm1, %v4618_v36  ;;  %v4459_v20 = vadd.f32 %v12941_v29, %v4318_v0  ;;  %v4479_v4 = vld [vmem:[#allocation3 + $0x18] sm:$0xff]  ;;  %v12317_v36 = vpop.f32.mrb[131].mxu0 }
 0x1ef   : > { %v4317_v45 = vld [vmem:[#allocation3 + $0x30] sm:$0xff]  ;;  %v12945_v50 = vld [vmem:[#allocation12_spill] sm:$0xff] }
 0x1f0   : > { %4625 = vst.msk [vmem:[#allocation3] sm:$0xff] %vm257_vm1, %v4617_v21  ;;  %v4458_v19 = vadd.f32 %v12943_v61, %v4317_v45  ;;  %4467 = vst.msk [vmem:[#allocation3 + $0x38] sm:$0xff] %vm257_vm1, %v4459_v20  ;;  %v4620_v59 = vadd.f32 %v12945_v50, %v4479_v4  ;;  %v4478_v32 = vld [vmem:[#allocation3 + $0x10] sm:$0xff]  ;;  %v12322_v21 = vpop.f32.mrb[130].mxu1 }
 0x1f1   : > { %v4619_v0 = vadd.f32 %v12057_v54, %v4478_v32  ;;  %12946 = vst [vmem:[#allocation9_spill] sm:$0xff] %v12322_v21  ;;  %v12325_v29 = vpop.f32.mrb[132].mxu0  ;;  %v12327_v61 = vpop.f32.mrb[131].mxu1  ;;  %v12949_v54 = vld [vmem:[#allocation11_spill] sm:$0xff] }
 0x1f2   : > { %4466 = vst.msk [vmem:[#allocation3 + $0x30] sm:$0xff] %vm257_vm1, %v4458_v19  ;;  %4628 = vst.msk [vmem:[#allocation3 + $0x18] sm:$0xff] %vm257_vm1, %v4620_v59  ;;  %v12330_v50 = vpop.f32.mrb[133].mxu0 }
 0x1f3   : > { %4627 = vst.msk [vmem:[#allocation3 + $0x10] sm:$0xff] %vm257_vm1, %v4619_v0  ;;  %v4481_v45 = vld [vmem:[#allocation3 + $0x28] sm:$0xff]  ;;  %12947 = vst [vmem:[#allocation12_spill] sm:$0xff] %v12325_v29  ;;  %v12335_v21 = vpop.f32.mrb[132].mxu1  ;;  %v12950_v0 = vld [vmem:[#allocation13_spill] sm:$0xff] }
 0x1f4   : > { %12948 = vst [vmem:[#allocation24_spill] sm:$0xff] %v12327_v61  ;;  %v4622_v20 = vadd.f32 %v12070_v56, %v4481_v45  ;;  %v4480_v4 = vld [vmem:[#allocation3 + $0x20] sm:$0xff]  ;;  %v12341_v56 = vpop.f32.mrb[133].mxu1 }
 0x1f5   : > { %v4621_v19 = vadd.f32 %v12077_v58, %v4480_v4  ;;  %v4642_v33 = vld [vmem:[#allocation3 + $0x8] sm:$0xff]  ;;  %v12339_v29 = vpop.f32.mrb[134].mxu0  ;;  %12951 = vst [vmem:[#allocation11_spill] sm:$0xff] %v12341_v56 }
 0x1f6   : > { %4630 = vst.msk [vmem:[#allocation3 + $0x28] sm:$0xff] %vm257_vm1, %v4622_v20  ;;  %v4783_v59 = vadd.f32 %v12949_v54, %v4642_v33  ;;  %v12345_v20 = vpop.f32.mrb[135].mxu0 }
 0x1f7   : > { %v4641_v32 = vld [vmem:[#allocation3] sm:$0xff]  ;;  %4629 = vst.msk [vmem:[#allocation3 + $0x20] sm:$0xff] %vm257_vm1, %v4621_v19  ;;  %v4483_v61 = vld [vmem:[#allocation3 + $0x38] sm:$0xff]  ;;  %v12952_v19 = vld [vmem:[#allocation14_spill] sm:$0xff] }
 0x1f8   : > { %v4782_v51 = vadd.f32 %v12950_v0, %v4641_v32  ;;  %4791 = vst.msk [vmem:[#allocation3 + $0x8] sm:$0xff] %vm257_vm1, %v4783_v59  ;;  %v4624_v58 = vadd.f32 %v12093_v40, %v4483_v61  ;;  %v12351_v0 = vpop.f32.mrb[134].mxu1  ;;  %v9025_v59 = vld [vmem:[%s12906_s3 + $0x10] sm:$0xf] }
 0x1f9   : > { %v4482_v45 = vld [vmem:[#allocation3 + $0x30] sm:$0xff]  ;;  %v4644_v4 = vld [vmem:[#allocation3 + $0x18] sm:$0xff]  ;;  %12953 = vst [vmem:[#allocation13_spill] sm:$0xff] %v12351_v0  ;;  %v12358_v56 = vpop.f32.mrb[136].mxu0  ;;  %10070 = vmatprep.subr.msk.mxu0 %vm390_vm0, %v9025_v59 }
 0x1fa   : > { %4790 = vst.msk [vmem:[#allocation3] sm:$0xff] %vm257_vm1, %v4782_v51  ;;  %v4623_v33 = vadd.f32 %v12098_v63, %v4482_v45  ;;  %4632 = vst.msk [vmem:[#allocation3 + $0x38] sm:$0xff] %vm257_vm1, %v4624_v58  ;;  %v4785_v54 = vadd.f32 %v12952_v19, %v4644_v4  ;;  %v4643_v32 = vld [vmem:[#allocation3 + $0x10] sm:$0xff]  ;;  %v12360_v51 = vpop.f32.mrb[135].mxu1  ;;  %v12364_v63 = vpop.f32.mrb[137].mxu0  ;;  %10071 = vmatpush3.msk.msra.mxu0 %vm390_vm0, %v9025_v59 }
 0x1fb   : > { %v12954_v40 = vld [vmem:[#allocation15_spill] sm:$0xff]  ;;  %12955 = vst [vmem:[#allocation14_spill] sm:$0xff] %v12360_v51  ;;  %v12369_v4 = vpop.f32.mrb[136].mxu1 }
 0x1fc   : > { %4631 = vst.msk [vmem:[#allocation3 + $0x30] sm:$0xff] %vm257_vm1, %v4623_v33  ;;  %v4784_v61 = vadd.f32 %v12954_v40, %v4643_v32  ;;  %4793 = vst.msk [vmem:[#allocation3 + $0x18] sm:$0xff] %vm257_vm1, %v4785_v54  ;;  %v12374_v51 = vpop.f32.mrb[137].mxu1 }
 0x1fd   : > { %v4646_v58 = vld [vmem:[#allocation3 + $0x28] sm:$0xff]  ;;  %v12372_v40 = vpop.f32.mrb[138].mxu0  ;;  %12956 = vst [vmem:[#allocation15_spill] sm:$0xff] %v12374_v51 }
 0x1fe   : > { %4792 = vst.msk [vmem:[#allocation3 + $0x10] sm:$0xff] %vm257_vm1, %v4784_v61  ;;  %v4787_v45 = vadd.f32 %v12100_v38, %v4646_v58  ;;  %v4645_v33 = vld [vmem:[#allocation3 + $0x20] sm:$0xff]  ;;  %v12378_v0 = vpop.f32.mrb[139].mxu0  ;;  %v12383_v38 = vld [vmem:[%s12906_s3 + $0x18] sm:$0xf] }
 0x1ff   : > { %v4786_v19 = vadd.f32 %v12104_v11, %v4645_v33  ;;  %v4807_v32 = vld [vmem:[#allocation3 + $0x8] sm:$0xff]  ;;  %12957 = vst [vmem:[#allocation25_spill] sm:$0xff] %v12383_v38  ;;  %10098 = vmatprep.subr.msk.mxu0 %vm390_vm0, %v12383_v38 }
 0x200   : > { %4795 = vst.msk [vmem:[#allocation3 + $0x28] sm:$0xff] %vm257_vm1, %v4787_v45  ;;  %v4948_v54 = vadd.f32 %v12117_v27, %v4807_v32  ;;  %v12391_v45 = vpop.f32.mrb[138].mxu1 }
 0x201   : > { %v4806_v59 = vld [vmem:[#allocation3] sm:$0xff]  ;;  %4794 = vst.msk [vmem:[#allocation3 + $0x20] sm:$0xff] %vm257_vm1, %v4786_v19  ;;  %v4648_v61 = vld [vmem:[#allocation3 + $0x38] sm:$0xff]  ;;  %12958 = vst [vmem:[#allocation26_spill] sm:$0xff] %v12391_v45  ;;  %v12395_v51 = vpop.f32.mrb[140].mxu0  ;;  %v12397_v19 = vpop.f32.mrb[139].mxu1 }
 0x202   : > { %v4947_v11 = vadd.f32 %v12125_v9, %v4806_v59  ;;  %4956 = vst.msk [vmem:[#allocation3 + $0x8] sm:$0xff] %vm257_vm1, %v4948_v54  ;;  %v4789_v27 = vadd.f32 %v12110_v42, %v4648_v61  ;;  %12959 = vst [vmem:[#allocation27_spill] sm:$0xff] %v12397_v19  ;;  %v12401_v54 = vpop.f32.mrb[141].mxu0  ;;  %v12412_v61 = vld [vmem:[%s12905_s2] ss:$0 sm:$0xff] }
 0x203   : > { %v4647_v58 = vld [vmem:[#allocation3 + $0x30] sm:$0xff]  ;;  %v4809_v32 = vld [vmem:[#allocation3 + $0x18] sm:$0xff] }
 0x204   : > { %4955 = vst.msk [vmem:[#allocation3] sm:$0xff] %vm257_vm1, %v4947_v11  ;;  %v4788_v33 = vadd.f32 %v12119_v43, %v4647_v58  ;;  %4797 = vst.msk [vmem:[#allocation3 + $0x38] sm:$0xff] %vm257_vm1, %v4789_v27  ;;  %v4950_v9 = vadd.f32 %v12136_v8, %v4809_v32  ;;  %v12406_v11 = vpop.f32.mrb[140].mxu1 }
 0x205   : > { %v4808_v59 = vld [vmem:[#allocation3 + $0x10] sm:$0xff]  ;;  %12960 = vst [vmem:[#allocation28_spill] sm:$0xff] %v12406_v11  ;;  %v12414_v8 = vpop.f32.mrb[142].mxu0  ;;  %v12416_v27 = vpop.f32.mrb[141].mxu1 }
 0x206   : > { %4796 = vst.msk [vmem:[#allocation3 + $0x30] sm:$0xff] %vm257_vm1, %v4788_v33  ;;  %v4949_v42 = vadd.f32 %v12142_v31, %v4808_v59  ;;  %4958 = vst.msk [vmem:[#allocation3 + $0x18] sm:$0xff] %vm257_vm1, %v4950_v9  ;;  %v12419_v31 = vpop.f32.mrb[143].mxu0 }
 0x207   : > { %v4811_v43 = vld [vmem:[#allocation3 + $0x28] sm:$0xff]  ;;  %12961 = vst [vmem:[#allocation29_spill] sm:$0xff] %v12416_v27  ;;  %12962 = vst [vmem:[#allocation30_spill] sm:$0xff] %v12419_v31  ;;  %v12426_v11 = vpop.f32.mrb[142].mxu1 }
 0x208   : > { %4957 = vst.msk [vmem:[#allocation3 + $0x10] sm:$0xff] %vm257_vm1, %v4949_v42  ;;  %v4952_v58 = vadd.f32 %v12150_v7, %v4811_v43  ;;  %v4810_v33 = vld [vmem:[#allocation3 + $0x20] sm:$0xff]  ;;  %v12963_v42 = vmov 0.0   ;;  %12964 = vst [vmem:[#allocation31_spill] sm:$0xff] %v12426_v11 }
 0x209   : > { %v4951_v32 = vadd.f32 %v12157_v62, %v4810_v33  ;;  %v4964_v9 = vld [vmem:[#allocation3 + $0x8] sm:$0xff]  ;;  %v12432_v62 = vpop.f32.mrb[143].mxu1 }
 0x20a   : > { %4960 = vst.msk [vmem:[#allocation3 + $0x28] sm:$0xff] %vm257_vm1, %v4952_v58  ;;  %v4979_v59 = vadd.f32 %v12412_v61, %v4964_v9  ;;  %5028 = vst.msk [vmem:[#allocation3 + $0x8] sm:$0xff] %vm257_vm1, %v12963_v42 }
 0x20b   : > { %v4963_v38 = vld [vmem:[#allocation3] sm:$0xff]  ;;  %4959 = vst.msk [vmem:[#allocation3 + $0x20] sm:$0xff] %vm257_vm1, %v4951_v32  ;;  %v4813_v27 = vld [vmem:[#allocation3 + $0x38] sm:$0xff]  ;;  %12965 = vst [vmem:[#allocation32_spill] sm:$0xff] %v12432_v62 }
 0x20c   : > { %v4978_v7 = vadd.f32 %v12412_v61, %v4963_v38  ;;  %5027 = vst.msk [vmem:[#allocation3] sm:$0xff] %vm257_vm1, %v12963_v42  ;;  %v4954_v43 = vadd.f32 %v12167_v14, %v4813_v27  ;;  %vm4987_vm6 = vcmp.gt.f32.partialorder %v4979_v59, 0.0  ;;  %v4995_v33 = vmul.f32 0.2, %v4979_v59 }
 0x20d   : > { %v4812_v58 = vld [vmem:[#allocation3 + $0x30] sm:$0xff]  ;;  %v4966_v11 = vld [vmem:[#allocation3 + $0x18] sm:$0xff] }
 0x20e   : > { %v4953_v9 = vadd.f32 %v12173_v46, %v4812_v58  ;;  %vm4986_vm7 = vcmp.gt.f32.partialorder %v4978_v7, 0.0  ;;  %v4994_v19 = vmul.f32 0.2, %v4978_v7  ;;  %4962 = vst.msk [vmem:[#allocation3 + $0x38] sm:$0xff] %vm257_vm1, %v4954_v43  ;;  %v5003_v32 = vsel %vm4987_vm6, %v4979_v59, %v4995_v33  ;;  %5030 = vst.msk [vmem:[#allocation3 + $0x18] sm:$0xff] %vm257_vm1, %v12963_v42 }
 0x20f   : > { %v4981_v38 = vadd.f32 %v12412_v61, %v4966_v11  ;;  %v4965_v45 = vld [vmem:[#allocation3 + $0x10] sm:$0xff]  ;;  %v5011_v14 = vmul.f32 1.4142135, %v5003_v32 }
 0x210   : > { %4961 = vst.msk [vmem:[#allocation3 + $0x30] sm:$0xff] %vm257_vm1, %v4953_v9  ;;  %v5002_v27 = vsel %vm4986_vm7, %v4978_v7, %v4994_v19  ;;  %v4980_v62 = vadd.f32 %v12412_v61, %v4965_v45  ;;  %5029 = vst.msk [vmem:[#allocation3 + $0x10] sm:$0xff] %vm257_vm1, %v12963_v42 }
 0x211   : > { %v5010_v46 = vmul.f32 1.4142135, %v5002_v27  ;;  %vm4989_vm8 = vcmp.gt.f32.partialorder %v4981_v38, 0.0  ;;  %v4997_v58 = vmul.f32 0.2, %v4981_v38  ;;  %5020 = vst.msk [vmem:[#allocation2 + $0x131] sm:$0xff] %vm257_vm1, %v5011_v14 }
 0x212   : > { %v5044_v59 = vld [vmem:[#allocation3 + $0x8] sm:$0xff]  ;;  %vm4988_vm9 = vcmp.gt.f32.partialorder %v4980_v62, 0.0  ;;  %v4996_v11 = vmul.f32 0.2, %v4980_v62  ;;  %v4967_v7 = vld [vmem:[#allocation3 + $0x20] sm:$0xff] }
 0x213   : > { %v4968_v43 = vld [vmem:[#allocation3 + $0x28] sm:$0xff]  ;;  %v5185_v33 = vadd.f32 %v12132_v39, %v5044_v59  ;;  %5019 = vst.msk [vmem:[#allocation2 + $0x121] sm:$0xff] %vm257_vm1, %v5010_v46  ;;  %v5043_v9 = vld [vmem:[#allocation3] sm:$0xff]  ;;  %v5005_v19 = vsel %vm4989_vm8, %v4981_v38, %v4997_v58  ;;  %v4982_v31 = vadd.f32 %v12412_v61, %v4967_v7  ;;  %5031 = vst.msk [vmem:[#allocation3 + $0x20] sm:$0xff] %vm257_vm1, %v12963_v42 }
 0x214   : > { %v4983_v45 = vadd.f32 %v12412_v61, %v4968_v43  ;;  %5032 = vst.msk [vmem:[#allocation3 + $0x28] sm:$0xff] %vm257_vm1, %v12963_v42  ;;  %v5184_v32 = vadd.f32 %v12138_v17, %v5043_v9  ;;  %v5013_v27 = vmul.f32 1.4142135, %v5005_v19  ;;  %v5004_v14 = vsel %vm4988_vm9, %v4980_v62, %v4996_v11 }
 0x215   : > { %5193 = vst.msk [vmem:[#allocation3 + $0x8] sm:$0xff] %vm257_vm1, %v5185_v33  ;;  %v5012_v39 = vmul.f32 1.4142135, %v5004_v14  ;;  %v5046_v46 = vld [vmem:[#allocation3 + $0x18] sm:$0xff]  ;;  %vm4990_vm12 = vcmp.gt.f32.partialorder %v4982_v31, 0.0 }
 0x216   : > { %vm4991_vm10 = vcmp.gt.f32.partialorder %v4983_v45, 0.0  ;;  %v4999_v38 = vmul.f32 0.2, %v4983_v45  ;;  %5192 = vst.msk [vmem:[#allocation3] sm:$0xff] %vm257_vm1, %v5184_v32  ;;  %5022 = vst.msk [vmem:[#allocation2 + $0x151] sm:$0xff] %vm257_vm1, %v5013_v27  ;;  %v4970_v17 = vld [vmem:[#allocation3 + $0x38] sm:$0xff]  ;;  %v5187_v62 = vadd.f32 %v12147_v10, %v5046_v46 }
 0x217   : > { %v4998_v58 = vmul.f32 0.2, %v4982_v31  ;;  %5021 = vst.msk [vmem:[#allocation2 + $0x141] sm:$0xff] %vm257_vm1, %v5012_v39  ;;  %v5045_v59 = vld [vmem:[#allocation3 + $0x10] sm:$0xff]  ;;  %v4985_v43 = vadd.f32 %v12412_v61, %v4970_v17  ;;  %5034 = vst.msk [vmem:[#allocation3 + $0x38] sm:$0xff] %vm257_vm1, %v12963_v42 }
 0x218   : > { %v5007_v11 = vsel %vm4991_vm10, %v4983_v45, %v4999_v38  ;;  %v4969_v33 = vld [vmem:[#allocation3 + $0x30] sm:$0xff]  ;;  %v5186_v9 = vadd.f32 %v12152_v44, %v5045_v59  ;;  %5195 = vst.msk [vmem:[#allocation3 + $0x18] sm:$0xff] %vm257_vm1, %v5187_v62  ;;  %v12475_v46 = vld [vmem:[%s12906_s3 + $0x1c] sm:$0xf] }
 0x219   : > { %v5015_v19 = vmul.f32 1.4142135, %v5007_v11  ;;  %v5006_v7 = vsel %vm4990_vm12, %v4982_v31, %v4998_v58  ;;  %v4984_v32 = vadd.f32 %v12412_v61, %v4969_v33  ;;  %5033 = vst.msk [vmem:[#allocation3 + $0x30] sm:$0xff] %vm257_vm1, %v12963_v42  ;;  %vm4993_vm13 = vcmp.gt.f32.partialorder %v4985_v43, 0.0  ;;  %v7083_v42 = vld [vmem:[#allocation2 + $0x130] sm:$0xff] }
 0x21a   : > { %v5014_v10 = vmul.f32 1.4142135, %v5006_v7  ;;  %v5001_v45 = vmul.f32 0.2, %v4985_v43  ;;  %5194 = vst.msk [vmem:[#allocation3 + $0x10] sm:$0xff] %vm257_vm1, %v5186_v9  ;;  %v7082_v14 = vld [vmem:[#allocation2 + $0x120] sm:$0xff] }
 0x21b   : > { %5024 = vst.msk [vmem:[#allocation2 + $0x171] sm:$0xff] %vm257_vm1, %v5015_v19  ;;  %v5048_v27 = vld [vmem:[#allocation3 + $0x28] sm:$0xff]  ;;  %vm4992_vm14 = vcmp.gt.f32.partialorder %v4984_v32, 0.0  ;;  %v5000_v44 = vmul.f32 0.2, %v4984_v32  ;;  %v5047_v39 = vld [vmem:[#allocation3 + $0x20] sm:$0xff]  ;;  %10058 = vmatprep.mubr.msk.f32.mxu1 %vm257_vm1, %v7082_v14 }
 0x21c   : > { %v5189_v31 = vadd.f32 %v12163_v12, %v5048_v27  ;;  %5023 = vst.msk [vmem:[#allocation2 + $0x161] sm:$0xff] %vm257_vm1, %v5014_v10  ;;  %v5009_v38 = vsel %vm4993_vm13, %v4985_v43, %v5001_v45  ;;  %v5188_v58 = vadd.f32 %v12169_v60, %v5047_v39  ;;  %10059 = vmatmul.mubr.msk.f32.vlgmr.msra.gmra.mrb[152].mxu1 %vm257_vm1, %v7083_v42  ;;  %v5209_v59 = vld [vmem:[#allocation3 + $0x8] sm:$0xff] }
 0x21d   : > { %v5017_v17 = vmul.f32 1.4142135, %v5009_v38  ;;  %v5008_v62 = vsel %vm4992_vm14, %v4984_v32, %v5000_v44  ;;  %v5350_v11 = vadd.f32 %v12181_v55, %v5209_v59  ;;  %v5208_v33 = vld [vmem:[#allocation3] sm:$0xff]  ;;  %10085 = vmatpush3.msk.msra.mxu1 %vm390_vm0, %v12088_v15  ;;  %v7085_v7 = vld [vmem:[#allocation2 + $0x150] sm:$0xff] }
 0x21e   : > { %5197 = vst.msk [vmem:[#allocation3 + $0x28] sm:$0xff] %vm257_vm1, %v5189_v31  ;;  %v5016_v12 = vmul.f32 1.4142135, %v5008_v62  ;;  %5196 = vst.msk [vmem:[#allocation3 + $0x20] sm:$0xff] %vm257_vm1, %v5188_v58  ;;  %v5050_v43 = vld [vmem:[#allocation3 + $0x38] sm:$0xff]  ;;  %v7084_v60 = vld [vmem:[#allocation2 + $0x140] sm:$0xff]  ;;  %v5349_v9 = vadd.f32 %v12186_v6, %v5208_v33  ;;  %10112 = vmatprep.subr.msk.mxu1 %vm390_vm0, %v12475_v46 }
 0x21f   : > { %5026 = vst.msk [vmem:[#allocation2 + $0x191] sm:$0xff] %vm257_vm1, %v5017_v17  ;;  %v5191_v19 = vadd.f32 %v12178_v37, %v5050_v43  ;;  %10061 = vmatprep.mubr.msk.f32.mxu1 %vm257_vm1, %v7084_v60  ;;  %5358 = vst.msk [vmem:[#allocation3 + $0x8] sm:$0xff] %vm257_vm1, %v5350_v11  ;;  %v5211_v6 = vld [vmem:[#allocation3 + $0x18] sm:$0xff]  ;;  %v7414_v17 = vld [vmem:[#allocation2 + $0x121] sm:$0xff] }
 0x220   : > { %5025 = vst.msk [vmem:[#allocation2 + $0x181] sm:$0xff] %vm257_vm1, %v5016_v12  ;;  %v5049_v55 = vld [vmem:[#allocation3 + $0x30] sm:$0xff]  ;;  %10062 = vmatmul.mubr.msk.f32.gmra.mrb[154].mxu1 %vm257_vm1, %v7085_v7  ;;  %5357 = vst.msk [vmem:[#allocation3] sm:$0xff] %vm257_vm1, %v5349_v9  ;;  %v5352_v32 = vadd.f32 %v12195_v35, %v5211_v6  ;;  %v6593_v62 = vld [vmem:[#allocation4 + $0x8] sm:$0xff] }
 0x221   : > { %v5190_v15 = vadd.f32 %v12183_v28, %v5049_v55  ;;  %5199 = vst.msk [vmem:[#allocation3 + $0x38] sm:$0xff] %vm257_vm1, %v5191_v19  ;;  %v5210_v37 = vld [vmem:[#allocation3 + $0x10] sm:$0xff]  ;;  %v12521_v55 = vld [vmem:[%s12908_s5] sm:$0xf] }
 0x222   : > { %v5351_v45 = vadd.f32 %v12201_v22, %v5210_v37  ;;  %v7087_v27 = vld [vmem:[#allocation2 + $0x170] sm:$0xff]  ;;  %5360 = vst.msk [vmem:[#allocation3 + $0x18] sm:$0xff] %vm257_vm1, %v5352_v32 }
 0x223   : > { %5198 = vst.msk [vmem:[#allocation3 + $0x30] sm:$0xff] %vm257_vm1, %v5190_v15  ;;  %v7086_v10 = vld [vmem:[#allocation2 + $0x160] sm:$0xff]  ;;  %v7415_v19 = vld [vmem:[#allocation2 + $0x131] sm:$0xff] }
 0x224   : > { %10064 = vmatprep.mubr.msk.f32.mxu1 %vm257_vm1, %v7086_v10  ;;  %5359 = vst.msk [vmem:[#allocation3 + $0x10] sm:$0xff] %vm257_vm1, %v5351_v45  ;;  %v7416_v15 = vld [vmem:[#allocation2 + $0x141] sm:$0xff] }
 0x225   : > { %10065 = vmatmul.mubr.msk.f32.gmra.mrb[156].mxu1 %vm257_vm1, %v7087_v27  ;;  %v5213_v28 = vld [vmem:[#allocation3 + $0x28] sm:$0xff]  ;;  %v5212_v44 = vld [vmem:[#allocation3 + $0x20] sm:$0xff]  ;;  %v7417_v27 = vld [vmem:[#allocation2 + $0x151] sm:$0xff] }
 0x226   : > { %v5354_v14 = vadd.f32 %v12211_v48, %v5213_v28  ;;  %v5374_v35 = vld [vmem:[#allocation3 + $0x8] sm:$0xff]  ;;  %v5353_v39 = vadd.f32 %v12216_v2, %v5212_v44  ;;  %v7089_v38 = vld [vmem:[#allocation2 + $0x190] sm:$0xff]  ;;  %v12966_v28 = vld [vmem:[#allocation16_spill] sm:$0xff] }
 0x227   : > { %v7088_v31 = vld [vmem:[#allocation2 + $0x180] sm:$0xff]  ;;  %v5515_v42 = vadd.f32 %v12191_v47, %v5374_v35  ;;  %v10018_v11 = vpop.f32.mrb[144].mxu0  ;;  %v6597_v35 = vld [vmem:[#allocation4 + $0x28] sm:$0xff] }
 0x228   : > { %v5373_v22 = vld [vmem:[#allocation3] sm:$0xff]  ;;  %10067 = vmatprep.mubr.msk.f32.mxu1 %vm257_vm1, %v7088_v31  ;;  %5362 = vst.msk [vmem:[#allocation3 + $0x28] sm:$0xff] %vm257_vm1, %v5354_v14  ;;  %5361 = vst.msk [vmem:[#allocation3 + $0x20] sm:$0xff] %vm257_vm1, %v5353_v39  ;;  %v5215_v48 = vld [vmem:[#allocation3 + $0x38] sm:$0xff]  ;;  %v6734_v60 = vadd.f32 %v10018_v11, %v6593_v62  ;;  %v6694_v9 = vpop.f32.mrb[145].mxu0 }
 0x229   : > { %v5514_v58 = vadd.f32 %v12197_v18, %v5373_v22  ;;  %10068 = vmatmul.mubr.msk.f32.gmra.mrb[158].mxu1 %vm257_vm1, %v7089_v38  ;;  %5523 = vst.msk [vmem:[#allocation3 + $0x8] sm:$0xff] %vm257_vm1, %v5515_v42  ;;  %v6592_v47 = vld [vmem:[#allocation4] sm:$0xff]  ;;  %v5356_v2 = vadd.f32 %v12223_v26, %v5215_v48  ;;  %v5376_v12 = vld [vmem:[#allocation3 + $0x18] sm:$0xff] }
 0x22a   : > { %10086 = vmatprep.mubr.msk.f32.mxu1 %vm257_vm1, %v7414_v17  ;;  %v5214_v59 = vld [vmem:[#allocation3 + $0x30] sm:$0xff]  ;;  %v5517_v33 = vadd.f32 %v12207_v57, %v5376_v12  ;;  %v6733_v7 = vadd.f32 %v6694_v9, %v6592_v47  ;;  %6742 = vst.msk [vmem:[#allocation4 + $0x8] sm:$0xff] %vm331_vm11, %v6734_v60  ;;  %v6596_v39 = vld [vmem:[#allocation4 + $0x20] sm:$0xff]  ;;  %v6599_v11 = vld [vmem:[#allocation4 + $0x38] sm:$0xff] }
 0x22b   : > { %5522 = vst.msk [vmem:[#allocation3] sm:$0xff] %vm257_vm1, %v5514_v58  ;;  %v5355_v18 = vadd.f32 %v12229_v53, %v5214_v59  ;;  %v5375_v43 = vld [vmem:[#allocation3 + $0x10] sm:$0xff]  ;;  %5364 = vst.msk [vmem:[#allocation3 + $0x38] sm:$0xff] %vm257_vm1, %v5356_v2  ;;  %v6595_v53 = vld [vmem:[#allocation4 + $0x18] sm:$0xff]  ;;  %v10021_v6 = vpop.f32.mrb[146].mxu0 }
 0x22c   : > { %v5516_v26 = vadd.f32 %v12213_v52, %v5375_v43  ;;  %5525 = vst.msk [vmem:[#allocation3 + $0x18] sm:$0xff] %vm257_vm1, %v5517_v33  ;;  %v6594_v57 = vld [vmem:[#allocation4 + $0x10] sm:$0xff]  ;;  %v6736_v10 = vadd.f32 %v10021_v6, %v6595_v53  ;;  %v6704_v45 = vpop.f32.mrb[147].mxu0  ;;  %v7420_v12 = vld [vmem:[#allocation2 + $0x181] sm:$0xff] }
 0x22d   : > { %10087 = vmatmul.mubr.msk.f32.vlgmr.msra.gmra.mrb[160].mxu1 %vm257_vm1, %v7415_v19  ;;  %5363 = vst.msk [vmem:[#allocation3 + $0x30] sm:$0xff] %vm257_vm1, %v5355_v18  ;;  %v6735_v44 = vadd.f32 %v6704_v45, %v6594_v57  ;;  %v7419_v2 = vld [vmem:[#allocation2 + $0x171] sm:$0xff]  ;;  %v12967_v6 = vld [vmem:[#allocation17_spill] sm:$0xff] }
 0x22e   : > { %10089 = vmatprep.mubr.msk.f32.mxu1 %vm257_vm1, %v7416_v15  ;;  %10113 = vmatpush3.msk.msra.mxu1 %vm390_vm0, %v12475_v46  ;;  %5524 = vst.msk [vmem:[#allocation3 + $0x10] sm:$0xff] %vm257_vm1, %v5516_v26  ;;  %v7418_v46 = vld [vmem:[#allocation2 + $0x161] sm:$0xff]  ;;  %v7421_v19 = vld [vmem:[#allocation2 + $0x191] sm:$0xff] }
 0x22f   : > { %6741 = vst.msk [vmem:[#allocation4] sm:$0xff] %vm331_vm11, %v6733_v7  ;;  %v5378_v52 = vld [vmem:[#allocation3 + $0x28] sm:$0xff]  ;;  %10140 = vmatprep.subr.msk.mxu1 %vm390_vm0, %v12521_v55  ;;  %v5377_v37 = vld [vmem:[#allocation3 + $0x20] sm:$0xff]  ;;  %6744 = vst.msk [vmem:[#allocation4 + $0x18] sm:$0xff] %vm331_vm11, %v6736_v10 }
 0x230   : > { %v5519_v32 = vadd.f32 %v12220_v1, %v5378_v52  ;;  %v5518_v14 = vadd.f32 %v12966_v28, %v5377_v37  ;;  %v5539_v31 = vld [vmem:[#allocation3 + $0x8] sm:$0xff]  ;;  %6743 = vst.msk [vmem:[#allocation4 + $0x10] sm:$0xff] %vm331_vm11, %v6735_v44  ;;  %v10024_v38 = vpop.f32.mrb[148].mxu0  ;;  %v7746_v7 = vld [vmem:[#allocation2 + $0xa0] sm:$0xff]  ;;  %v7747_v45 = vld [vmem:[#allocation2 + $0xb0] sm:$0xff] }
 0x231   : > { %10090 = vmatmul.mubr.msk.f32.gmra.mrb[162].mxu1 %vm257_vm1, %v7417_v27  ;;  %v5680_v1 = vadd.f32 %v12239_v23, %v5539_v31  ;;  %v6738_v48 = vadd.f32 %v10024_v38, %v6597_v35  ;;  %v6714_v47 = vpop.f32.mrb[149].mxu0  ;;  %v12968_v27 = vld [vmem:[#allocation18_spill] sm:$0xff]  ;;  %v7749_v38 = vld [vmem:[#allocation2 + $0xd0] sm:$0xff] }
 0x232   : > { %5527 = vst.msk [vmem:[#allocation3 + $0x28] sm:$0xff] %vm257_vm1, %v5519_v32  ;;  %10092 = vmatprep.mubr.msk.f32.mxu1 %vm257_vm1, %v7418_v46  ;;  %v5538_v42 = vld [vmem:[#allocation3] sm:$0xff]  ;;  %5526 = vst.msk [vmem:[#allocation3 + $0x20] sm:$0xff] %vm257_vm1, %v5518_v14  ;;  %v5380_v22 = vld [vmem:[#allocation3 + $0x38] sm:$0xff]  ;;  %v6737_v23 = vadd.f32 %v6714_v47, %v6596_v39 }
 0x233   : > { %v5679_v58 = vadd.f32 %v12245_v16, %v5538_v42  ;;  %v5521_v17 = vadd.f32 %v12235_v25, %v5380_v22  ;;  %5688 = vst.msk [vmem:[#allocation3 + $0x8] sm:$0xff] %vm257_vm1, %v5680_v1  ;;  %v5541_v18 = vld [vmem:[#allocation3 + $0x18] sm:$0xff]  ;;  %v6598_v25 = vld [vmem:[#allocation4 + $0x30] sm:$0xff] }
 0x234   : > { %v5379_v62 = vld [vmem:[#allocation3 + $0x30] sm:$0xff]  ;;  %6746 = vst.msk [vmem:[#allocation4 + $0x28] sm:$0xff] %vm331_vm11, %v6738_v48  ;;  %v5682_v16 = vadd.f32 %v12253_v5, %v5541_v18  ;;  %6745 = vst.msk [vmem:[#allocation4 + $0x20] sm:$0xff] %vm331_vm11, %v6737_v23  ;;  %v12972_v23 = vld [vmem:[#allocation22_spill] sm:$0xff] }
 0x235   : > { %v5520_v59 = vadd.f32 %v12241_v24, %v5379_v62  ;;  %10093 = vmatmul.mubr.msk.f32.gmra.mrb[164].mxu1 %vm257_vm1, %v7419_v2  ;;  %5687 = vst.msk [vmem:[#allocation3] sm:$0xff] %vm257_vm1, %v5679_v58  ;;  %5529 = vst.msk [vmem:[#allocation3 + $0x38] sm:$0xff] %vm257_vm1, %v5521_v17  ;;  %v5540_v33 = vld [vmem:[#allocation3 + $0x10] sm:$0xff]  ;;  %v10027_v24 = vpop.f32.mrb[150].mxu0  ;;  %v12971_v62 = vld [vmem:[#allocation21_spill] sm:$0xff] }
 0x236   : > { %10095 = vmatprep.mubr.msk.f32.mxu1 %vm257_vm1, %v7420_v12  ;;  %v5681_v43 = vadd.f32 %v12258_v13, %v5540_v33  ;;  %v6740_v60 = vadd.f32 %v10027_v24, %v6599_v11  ;;  %v6724_v9 = vpop.f32.mrb[151].mxu0  ;;  %5690 = vst.msk [vmem:[#allocation3 + $0x18] sm:$0xff] %vm257_vm1, %v5682_v16  ;;  %v12969_v39 = vld [vmem:[#allocation19_spill] sm:$0xff]  ;;  %v7752_v11 = vld [vmem:[#allocation2 + $0x100] sm:$0xff] }
 0x237   : > { %5528 = vst.msk [vmem:[#allocation3 + $0x30] sm:$0xff] %vm257_vm1, %v5520_v59  ;;  %v6739_v26 = vadd.f32 %v6724_v9, %v6598_v25  ;;  %v7751_v59 = vld [vmem:[#allocation2 + $0xf0] sm:$0xff]  ;;  %v12973_v25 = vld [vmem:[#allocation6_spill] sm:$0xff] }
 0x238   : > { %5689 = vst.msk [vmem:[#allocation3 + $0x10] sm:$0xff] %vm257_vm1, %v5681_v43 }
 0x239   : > { %10096 = vmatmul.mubr.msk.f32.gmra.mrb[166].mxu1 %vm257_vm1, %v7421_v19  ;;  %v5543_v5 = vld [vmem:[#allocation3 + $0x28] sm:$0xff]  ;;  %6748 = vst.msk [vmem:[#allocation4 + $0x38] sm:$0xff] %vm331_vm11, %v6740_v60  ;;  %v5542_v53 = vld [vmem:[#allocation3 + $0x20] sm:$0xff]  ;;  %6747 = vst.msk [vmem:[#allocation4 + $0x30] sm:$0xff] %vm331_vm11, %v6739_v26  ;;  %v12564_v57 = vpop.f32.mrb[152].mxu0 }
 0x23a   : > { %10114 = vmatprep.mubr.msk.f32.mxu1 %vm257_vm1, %v7746_v7  ;;  %v5684_v15 = vadd.f32 %v12267_v41, %v5543_v5  ;;  %v5704_v13 = vld [vmem:[#allocation3 + $0x8] sm:$0xff]  ;;  %v5683_v52 = vadd.f32 %v12273_v34, %v5542_v53  ;;  %v12568_v10 = vpop.f32.mrb[153].mxu0  ;;  %v7748_v41 = vld [vmem:[#allocation2 + $0xc0] sm:$0xff]  ;;  %v12974_v60 = vld [vmem:[#allocation8_spill] sm:$0xff] }
 0x23b   : > { %v5845_v32 = vadd.f32 %v12967_v6, %v5704_v13  ;;  %v9076_v19 = vld [vmem:[%s10240_s11 + $0x1b0] sm:$0xff]  ;;  %v12975_v26 = vld [vmem:[#allocation5_spill] sm:$0xff] }
 0x23c   : > { %v5703_v37 = vld [vmem:[#allocation3] sm:$0xff]  ;;  %5692 = vst.msk [vmem:[#allocation3 + $0x28] sm:$0xff] %vm257_vm1, %v5684_v15  ;;  %5691 = vst.msk [vmem:[#allocation3 + $0x20] sm:$0xff] %vm257_vm1, %v5683_v52  ;;  %v5545_v14 = vld [vmem:[#allocation3 + $0x38] sm:$0xff] }
 0x23d   : > { %v5844_v28 = vadd.f32 %v12968_v27, %v5703_v37  ;;  %10115 = vmatmul.mubr.msk.f32.vlgmr.msra.gmra.mrb[168].mxu1 %vm257_vm1, %v7747_v45  ;;  %5853 = vst.msk [vmem:[#allocation3 + $0x8] sm:$0xff] %vm257_vm1, %v5845_v32  ;;  %v5686_v34 = vadd.f32 %v12283_v49, %v5545_v14  ;;  %v5706_v46 = vld [vmem:[#allocation3 + $0x18] sm:$0xff]  ;;  %v12580_v35 = vpop.f32.mrb[154].mxu0  ;;  %v7753_v53 = vld [vmem:[#allocation2 + $0x110] sm:$0xff]  ;;  %v9077_v45 = vld [vmem:[%s10240_s11 + $0x1c0] sm:$0xff] }
 0x23e   : > { %10117 = vmatprep.mubr.msk.f32.mxu1 %vm257_vm1, %v7748_v41  ;;  %v5544_v44 = vld [vmem:[#allocation3 + $0x30] sm:$0xff]  ;;  %10141 = vmatpush3.msk.msra.mxu1 %vm390_vm0, %v12521_v55  ;;  %v5847_v1 = vadd.f32 %v12969_v39, %v5706_v46  ;;  %v12584_v22 = vpop.f32.mrb[155].mxu0  ;;  %v12970_v49 = vld [vmem:[#allocation20_spill] sm:$0xff]  ;;  %v7750_v55 = vld [vmem:[#allocation2 + $0xe0] sm:$0xff] }
 0x23f   : > { %5852 = vst.msk [vmem:[#allocation3] sm:$0xff] %vm257_vm1, %v5844_v28  ;;  %v5685_v31 = vadd.f32 %v12288_v30, %v5544_v44  ;;  %v5705_v42 = vld [vmem:[#allocation3 + $0x10] sm:$0xff]  ;;  %5694 = vst.msk [vmem:[#allocation3 + $0x38] sm:$0xff] %vm257_vm1, %v5686_v34  ;;  %v12977_v14 = vld [vmem:[#allocation12_spill] sm:$0xff] }
 0x240   : > { %v5846_v58 = vadd.f32 %v12970_v49, %v5705_v42  ;;  %5855 = vst.msk [vmem:[#allocation3 + $0x18] sm:$0xff] %vm257_vm1, %v5847_v1  ;;  %v12976_v13 = vld [vmem:[#allocation23_spill] sm:$0xff]  ;;  %v9079_v44 = vld [vmem:[%s10240_s11 + $0x1e0] sm:$0xff] }
 0x241   : > { %10118 = vmatmul.mubr.msk.f32.gmra.mrb[170].mxu1 %vm257_vm1, %v7749_v38  ;;  %5693 = vst.msk [vmem:[#allocation3 + $0x30] sm:$0xff] %vm257_vm1, %v5685_v31  ;;  %v12593_v17 = vpop.f32.mrb[156].mxu0  ;;  %v9078_v28 = vld [vmem:[%s10240_s11 + $0x1d0] sm:$0xff] }
 0x242   : > { %10120 = vmatprep.mubr.msk.f32.mxu1 %vm257_vm1, %v7750_v55  ;;  %5854 = vst.msk [vmem:[#allocation3 + $0x10] sm:$0xff] %vm257_vm1, %v5846_v58  ;;  %v12596_v2 = vpop.f32.mrb[157].mxu0  ;;  %v9080_v39 = vld [vmem:[%s10240_s11 + $0x1f0] sm:$0xff] }
 0x243   : > { %v5708_v30 = vld [vmem:[#allocation3 + $0x28] sm:$0xff]  ;;  %v5707_v47 = vld [vmem:[#allocation3 + $0x20] sm:$0xff]  ;;  %v12979_v38 = vld [vmem:[#allocation7_spill] sm:$0xff] }
 0x244   : > { %v5849_v48 = vadd.f32 %v12971_v62, %v5708_v30  ;;  %v5848_v12 = vadd.f32 %v12972_v23, %v5707_v47  ;;  %v5869_v18 = vld [vmem:[#allocation3 + $0x8] sm:$0xff]  ;;  %v9081_v30 = vld [vmem:[%s10240_s11 + $0x200] sm:$0xff]  ;;  %v9082_v47 = vld [vmem:[%s10240_s11 + $0x210] sm:$0xff] }
 0x245   : > { %10121 = vmatmul.mubr.msk.f32.gmra.mrb[172].mxu1 %vm257_vm1, %v7751_v59  ;;  %v6010_v16 = vadd.f32 %v12973_v25, %v5869_v18  ;;  %v12604_v43 = vpop.f32.mrb[158].mxu0  ;;  %v12980_v59 = vld [vmem:[#allocation9_spill] sm:$0xff] }
 0x246   : > { %5857 = vst.msk [vmem:[#allocation3 + $0x28] sm:$0xff] %vm257_vm1, %v5849_v48  ;;  %10123 = vmatprep.mubr.msk.f32.mxu1 %vm257_vm1, %v7752_v11  ;;  %v5868_v33 = vld [vmem:[#allocation3] sm:$0xff]  ;;  %5856 = vst.msk [vmem:[#allocation3 + $0x20] sm:$0xff] %vm257_vm1, %v5848_v12  ;;  %v5710_v24 = vld [vmem:[#allocation3 + $0x38] sm:$0xff]  ;;  %v12609_v15 = vpop.f32.mrb[159].mxu0 }
 0x247   : > { %v6009_v9 = vadd.f32 %v12974_v60, %v5868_v33  ;;  %v5851_v7 = vadd.f32 %v12975_v26, %v5710_v24  ;;  %6018 = vst.msk [vmem:[#allocation3 + $0x8] sm:$0xff] %vm257_vm1, %v6010_v16  ;;  %v5871_v6 = vld [vmem:[#allocation3 + $0x18] sm:$0xff]  ;;  %v12982_v33 = vld [vmem:[#allocation11_spill] sm:$0xff] }
 0x248   : > { %v5709_v5 = vld [vmem:[#allocation3 + $0x30] sm:$0xff]  ;;  %v6012_v32 = vadd.f32 %v12311_v3, %v5871_v6  ;;  %v12981_v11 = vld [vmem:[#allocation24_spill] sm:$0xff] }
 0x249   : > { %v5850_v52 = vadd.f32 %v12976_v13, %v5709_v5  ;;  %10124 = vmatmul.mubr.msk.f32.gmra.mrb[174].mxu1 %vm257_vm1, %v7753_v53  ;;  %6017 = vst.msk [vmem:[#allocation3] sm:$0xff] %vm257_vm1, %v6009_v9  ;;  %5859 = vst.msk [vmem:[#allocation3 + $0x38] sm:$0xff] %vm257_vm1, %v5851_v7  ;;  %v5870_v37 = vld [vmem:[#allocation3 + $0x10] sm:$0xff]  ;;  %v12983_v5 = vld [vmem:[#allocation13_spill] sm:$0xff] }
 0x24a   : > { %10142 = vmatprep.mubr.msk.f32.mxu1 %vm257_vm1, %v9076_v19  ;;  %v6011_v27 = vadd.f32 %v12317_v36, %v5870_v37  ;;  %6020 = vst.msk [vmem:[#allocation3 + $0x18] sm:$0xff] %vm257_vm1, %v6012_v32  ;;  %v12978_v36 = vld [vmem:[#allocation10_spill] sm:$0xff] }
 0x24b   : > { %5858 = vst.msk [vmem:[#allocation3 + $0x30] sm:$0xff] %vm257_vm1, %v5850_v52 }
 0x24c   : > { %6019 = vst.msk [vmem:[#allocation3 + $0x10] sm:$0xff] %vm257_vm1, %v6011_v27 }
 0x24d   : > { %v5873_v41 = vld [vmem:[#allocation3 + $0x28] sm:$0xff]  ;;  %10143 = vmatmul.mubr.msk.f32.vlgmr.msra.gmra.mrb[176].mxu1 %vm257_vm1, %v9077_v45  ;;  %v5872_v3 = vld [vmem:[#allocation3 + $0x20] sm:$0xff] }
 0x24e   : > { %v6014_v34 = vadd.f32 %v12977_v14, %v5873_v41  ;;  %10145 = vmatprep.mubr.msk.f32.mxu1 %vm257_vm1, %v9078_v28  ;;  %v6034_v46 = vld [vmem:[#allocation3 + $0x8] sm:$0xff]  ;;  %v6013_v31 = vadd.f32 %v12330_v50, %v5872_v3 }
 0x24f   : > { %v6175_v1 = vadd.f32 %v12978_v36, %v6034_v46 }
 0x250   : > { %v6033_v42 = vld [vmem:[#allocation3] sm:$0xff]  ;;  %6022 = vst.msk [vmem:[#allocation3 + $0x28] sm:$0xff] %vm257_vm1, %v6014_v34  ;;  %6021 = vst.msk [vmem:[#allocation3 + $0x20] sm:$0xff] %vm257_vm1, %v6013_v31  ;;  %v5875_v58 = vld [vmem:[#allocation3 + $0x38] sm:$0xff] }
 0x251   : > { %v6174_v49 = vadd.f32 %v12979_v38, %v6033_v42  ;;  %10146 = vmatmul.mubr.msk.f32.gmra.mrb[178].mxu1 %vm257_vm1, %v9079_v44  ;;  %6183 = vst.msk [vmem:[#allocation3 + $0x8] sm:$0xff] %vm257_vm1, %v6175_v1  ;;  %v6016_v55 = vadd.f32 %v12339_v29, %v5875_v58  ;;  %v6036_v62 = vld [vmem:[#allocation3 + $0x18] sm:$0xff]  ;;  %v9083_v29 = vld [vmem:[%s10240_s11 + $0x220] sm:$0xff]  ;;  %v12986_v31 = vld [vmem:[#allocation30_spill] sm:$0xff] }
 0x252   : > { %v5874_v50 = vld [vmem:[#allocation3 + $0x30] sm:$0xff]  ;;  %10148 = vmatprep.mubr.msk.f32.mxu1 %vm257_vm1, %v9080_v39  ;;  %v6177_v23 = vadd.f32 %v12980_v59, %v6036_v62  ;;  %v12987_v39 = vld [vmem:[#allocation26_spill] sm:$0xff]  ;;  %v12989_v38 = vld [vmem:[#allocation28_spill] sm:$0xff] }
 0x253   : > { %6182 = vst.msk [vmem:[#allocation3] sm:$0xff] %vm257_vm1, %v6174_v49  ;;  %v6015_v48 = vadd.f32 %v12345_v20, %v5874_v50  ;;  %v6035_v12 = vld [vmem:[#allocation3 + $0x10] sm:$0xff]  ;;  %6024 = vst.msk [vmem:[#allocation3 + $0x38] sm:$0xff] %vm257_vm1, %v6016_v55  ;;  %v12990_v50 = vld [vmem:[#allocation29_spill] sm:$0xff] }
 0x254   : > { %v6176_v18 = vadd.f32 %v12981_v11, %v6035_v12  ;;  %6185 = vst.msk [vmem:[#allocation3 + $0x18] sm:$0xff] %vm257_vm1, %v6177_v23  ;;  %v12988_v1 = vld [vmem:[#allocation27_spill] sm:$0xff] }
 0x255   : > { %6023 = vst.msk [vmem:[#allocation3 + $0x30] sm:$0xff] %vm257_vm1, %v6015_v48  ;;  %10149 = vmatmul.mubr.msk.f32.gmra.mrb[180].mxu1 %vm257_vm1, %v9081_v30  ;;  %v12991_v12 = vld [vmem:[#allocation31_spill] sm:$0xff] }
 0x256   : > { %10151 = vmatprep.mubr.msk.f32.mxu1 %vm257_vm1, %v9082_v47  ;;  %6184 = vst.msk [vmem:[#allocation3 + $0x10] sm:$0xff] %vm257_vm1, %v6176_v18 }
 0x257   : > { %v6038_v20 = vld [vmem:[#allocation3 + $0x28] sm:$0xff]  ;;  %v6037_v16 = vld [vmem:[#allocation3 + $0x20] sm:$0xff] }
 0x258   : > { %v6179_v25 = vadd.f32 %v12335_v21, %v6038_v20  ;;  %v6178_v24 = vadd.f32 %v12982_v33, %v6037_v16  ;;  %v6199_v60 = vld [vmem:[#allocation3 + $0x8] sm:$0xff] }
 0x259   : > { %10152 = vmatmul.mubr.msk.f32.gmra.mrb[182].mxu1 %vm257_vm1, %v9083_v29  ;;  %v6340_v9 = vadd.f32 %v12358_v56, %v6199_v60  ;;  %v12984_v21 = vld [vmem:[#allocation14_spill] sm:$0xff] }
 0x25a   : > { %6187 = vst.msk [vmem:[#allocation3 + $0x28] sm:$0xff] %vm257_vm1, %v6179_v25  ;;  %v6198_v19 = vld [vmem:[#allocation3] sm:$0xff]  ;;  %6186 = vst.msk [vmem:[#allocation3 + $0x20] sm:$0xff] %vm257_vm1, %v6178_v24  ;;  %v6040_v26 = vld [vmem:[#allocation3 + $0x38] sm:$0xff] }
 0x25b   : > { %v6339_v7 = vadd.f32 %v12364_v63, %v6198_v19  ;;  %v6181_v53 = vadd.f32 %v12983_v5, %v6040_v26  ;;  %6348 = vst.msk [vmem:[#allocation3 + $0x8] sm:$0xff] %vm257_vm1, %v6340_v9  ;;  %v6201_v6 = vld [vmem:[#allocation3 + $0x18] sm:$0xff] }
 0x25c   : > { %v6039_v13 = vld [vmem:[#allocation3 + $0x30] sm:$0xff]  ;;  %v6342_v56 = vadd.f32 %v12372_v40, %v6201_v6  ;;  %v12992_v25 = vld [vmem:[#allocation32_spill] sm:$0xff] }
 0x25d   : > { %v6180_v52 = vadd.f32 %v12984_v21, %v6039_v13  ;;  %6347 = vst.msk [vmem:[#allocation3] sm:$0xff] %vm257_vm1, %v6339_v7  ;;  %6189 = vst.msk [vmem:[#allocation3 + $0x38] sm:$0xff] %vm257_vm1, %v6181_v53  ;;  %v6200_v32 = vld [vmem:[#allocation3 + $0x10] sm:$0xff] }
 0x25e   : > { %v6341_v37 = vadd.f32 %v12378_v0, %v6200_v32  ;;  %6350 = vst.msk [vmem:[#allocation3 + $0x18] sm:$0xff] %vm257_vm1, %v6342_v56  ;;  %v12985_v40 = vld [vmem:[#allocation15_spill] sm:$0xff] }
 0x25f   : > { %6188 = vst.msk [vmem:[#allocation3 + $0x30] sm:$0xff] %vm257_vm1, %v6180_v52 }
 0x260   : > { %6349 = vst.msk [vmem:[#allocation3 + $0x10] sm:$0xff] %vm257_vm1, %v6341_v37 }
 0x261   : > { %v6203_v63 = vld [vmem:[#allocation3 + $0x28] sm:$0xff]  ;;  %v6202_v27 = vld [vmem:[#allocation3 + $0x20] sm:$0xff] }
 0x262   : > { %v6344_v45 = vadd.f32 %v12395_v51, %v6203_v63  ;;  %v6364_v28 = vld [vmem:[#allocation3 + $0x8] sm:$0xff]  ;;  %v6343_v41 = vadd.f32 %v12401_v54, %v6202_v27 }
 0x263   : > { %v6505_v14 = vadd.f32 %v12369_v4, %v6364_v28 }
 0x264   : > { %v6363_v34 = vld [vmem:[#allocation3] sm:$0xff]  ;;  %6352 = vst.msk [vmem:[#allocation3 + $0x28] sm:$0xff] %vm257_vm1, %v6344_v45  ;;  %6351 = vst.msk [vmem:[#allocation3 + $0x20] sm:$0xff] %vm257_vm1, %v6343_v41  ;;  %v6205_v0 = vld [vmem:[#allocation3 + $0x38] sm:$0xff] }
 0x265   : > { %v6504_v3 = vadd.f32 %v12985_v40, %v6363_v34  ;;  %6513 = vst.msk [vmem:[#allocation3 + $0x8] sm:$0xff] %vm257_vm1, %v6505_v14  ;;  %v6346_v44 = vadd.f32 %v12414_v8, %v6205_v0  ;;  %v6366_v51 = vld [vmem:[#allocation3 + $0x18] sm:$0xff] }
 0x266   : > { %v6204_v46 = vld [vmem:[#allocation3 + $0x30] sm:$0xff]  ;;  %v6507_v4 = vadd.f32 %v12987_v39, %v6366_v51 }
 0x267   : > { %6512 = vst.msk [vmem:[#allocation3] sm:$0xff] %vm257_vm1, %v6504_v3  ;;  %v6345_v54 = vadd.f32 %v12986_v31, %v6204_v46  ;;  %v6365_v36 = vld [vmem:[#allocation3 + $0x10] sm:$0xff]  ;;  %6354 = vst.msk [vmem:[#allocation3 + $0x38] sm:$0xff] %vm257_vm1, %v6346_v44 }
 0x268   : > { %v6506_v42 = vadd.f32 %v12988_v1, %v6365_v36  ;;  %6515 = vst.msk [vmem:[#allocation3 + $0x18] sm:$0xff] %vm257_vm1, %v6507_v4  ;;  %v12993_v1 = vld [vmem:[#allocation25_spill] sm:$0xff] }
 0x269   : > { %6353 = vst.msk [vmem:[#allocation3 + $0x30] sm:$0xff] %vm257_vm1, %v6345_v54 }
 0x26a   : > { %6514 = vst.msk [vmem:[#allocation3 + $0x10] sm:$0xff] %vm257_vm1, %v6506_v42 }
 0x26b   : > { %v6368_v8 = vld [vmem:[#allocation3 + $0x28] sm:$0xff]  ;;  %v6367_v58 = vld [vmem:[#allocation3 + $0x20] sm:$0xff] }
 0x26c   : > { %v6509_v49 = vadd.f32 %v12989_v38, %v6368_v8  ;;  %v6521_v55 = vld [vmem:[#allocation3 + $0x8] sm:$0xff]  ;;  %v6508_v30 = vadd.f32 %v12990_v50, %v6367_v58 }
 0x26d   : > { %v6536_v62 = vadd.f32 %v12412_v61, %v6521_v55 }
 0x26e   : > { %v6520_v48 = vld [vmem:[#allocation3] sm:$0xff]  ;;  %6517 = vst.msk [vmem:[#allocation3 + $0x28] sm:$0xff] %vm257_vm1, %v6509_v49  ;;  %6516 = vst.msk [vmem:[#allocation3 + $0x20] sm:$0xff] %vm257_vm1, %v6508_v30  ;;  %v6370_v59 = vld [vmem:[#allocation3 + $0x38] sm:$0xff] }
 0x26f   : > { %v6535_v47 = vadd.f32 %v12412_v61, %v6520_v48  ;;  %vm6544_vm15 = vcmp.gt.f32.partialorder %v6536_v62, 0.0  ;;  %v6552_v23 = vmul.f32 0.2, %v6536_v62  ;;  %v6511_v11 = vadd.f32 %v12991_v12, %v6370_v59  ;;  %v6523_v20 = vld [vmem:[#allocation3 + $0x18] sm:$0xff]  ;;  %v7580_v30 = vld [vmem:[#allocation2 + $0x10] sm:$0xff]  ;;  %v6758_v59 = vld [vmem:[#allocation4] sm:$0xff] }
 0x270   : > { %v6369_v18 = vld [vmem:[#allocation3 + $0x30] sm:$0xff]  ;;  %v6538_v24 = vadd.f32 %v12412_v61, %v6523_v20  ;;  %v7581_v12 = vld [vmem:[#allocation2 + $0x20] sm:$0xff] }
 0x271   : > { %v6551_v29 = vmul.f32 0.2, %v6535_v47  ;;  %v6510_v16 = vadd.f32 %v12992_v25, %v6369_v18  ;;  %vm6543_vm2 = vcmp.gt.f32.partialorder %v6535_v47, 0.0  ;;  %v6560_v33 = vsel %vm6544_vm15, %v6536_v62, %v6552_v23  ;;  %v6522_v60 = vld [vmem:[#allocation3 + $0x10] sm:$0xff]  ;;  %6519 = vst.msk [vmem:[#allocation3 + $0x38] sm:$0xff] %vm257_vm1, %v6511_v11  ;;  %v6759_v62 = vld [vmem:[#allocation4 + $0x8] sm:$0xff] }
 0x272   : > { %v6568_v9 = vmul.f32 1.4142135, %v6560_v33  ;;  %v6537_v19 = vadd.f32 %v12412_v61, %v6522_v60  ;;  %v6554_v7 = vmul.f32 0.2, %v6538_v24  ;;  %vm6546_vm3 = vcmp.gt.f32.partialorder %v6538_v24, 0.0  ;;  %v7582_v18 = vld [vmem:[#allocation2 + $0x30] sm:$0xff] }
 0x273   : > { %6518 = vst.msk [vmem:[#allocation3 + $0x30] sm:$0xff] %vm257_vm1, %v6510_v16  ;;  %v6559_v26 = vsel %vm6543_vm2, %v6535_v47, %v6551_v29  ;;  %v6761_v29 = vld [vmem:[#allocation4 + $0x18] sm:$0xff]  ;;  %v6760_v16 = vld [vmem:[#allocation4 + $0x10] sm:$0xff] }
 0x274   : > { %v6567_v5 = vmul.f32 1.4142135, %v6559_v26  ;;  %6577 = vst.msk [vmem:[#allocation2 + $0x1c0] sm:$0xff] %vm257_vm1, %v6568_v9  ;;  %v6553_v53 = vmul.f32 0.2, %v6537_v19  ;;  %vm6545_vm4 = vcmp.gt.f32.partialorder %v6537_v19, 0.0  ;;  %v6562_v6 = vsel %vm6546_vm3, %v6538_v24, %v6554_v7 }
 0x275   : > { %v6525_v13 = vld [vmem:[#allocation3 + $0x28] sm:$0xff]  ;;  %v6524_v52 = vld [vmem:[#allocation3 + $0x20] sm:$0xff]  ;;  %v6570_v37 = vmul.f32 1.4142135, %v6562_v6  ;;  %v7584_v9 = vld [vmem:[#allocation2 + $0x50] sm:$0xff] }
 0x276   : > { %v6540_v21 = vadd.f32 %v12412_v61, %v6525_v13  ;;  %6576 = vst.msk [vmem:[#allocation2 + $0x1b0] sm:$0xff] %vm257_vm1, %v6567_v5  ;;  %v6539_v56 = vadd.f32 %v12412_v61, %v6524_v52  ;;  %v6561_v32 = vsel %vm6545_vm4, %v6537_v19, %v6553_v53  ;;  %v7583_v24 = vld [vmem:[#allocation2 + $0x40] sm:$0xff]  ;;  %v6763_v19 = vld [vmem:[#allocation4 + $0x28] sm:$0xff]  ;;  %v7586_v52 = vld [vmem:[#allocation2 + $0x70] sm:$0xff] }
 0x277   : > { %v6569_v45 = vmul.f32 1.4142135, %v6561_v32  ;;  %6579 = vst.msk [vmem:[#allocation2 + $0x1e0] sm:$0xff] %vm257_vm1, %v6570_v37  ;;  %v6762_v5 = vld [vmem:[#allocation4 + $0x20] sm:$0xff]  ;;  %v6765_v37 = vld [vmem:[#allocation4 + $0x38] sm:$0xff] }
 0x278   : > { %v6556_v63 = vmul.f32 0.2, %v6540_v21  ;;  %vm6548_vm5 = vcmp.gt.f32.partialorder %v6540_v21, 0.0  ;;  %v6555_v27 = vmul.f32 0.2, %v6539_v56  ;;  %v6527_v28 = vld [vmem:[#allocation3 + $0x38] sm:$0xff] }
 0x279   : > { %vm6547_vm6 = vcmp.gt.f32.partialorder %v6539_v56, 0.0  ;;  %v6542_v41 = vadd.f32 %v12412_v61, %v6527_v28  ;;  %6578 = vst.msk [vmem:[#allocation2 + $0x1d0] sm:$0xff] %vm257_vm1, %v6569_v45  ;;  %v7585_v13 = vld [vmem:[#allocation2 + $0x60] sm:$0xff]  ;;  %v6764_v28 = vld [vmem:[#allocation4 + $0x30] sm:$0xff] }
 0x27a   : > { %v6526_v14 = vld [vmem:[#allocation3 + $0x30] sm:$0xff]  ;;  %v6564_v34 = vsel %vm6548_vm5, %v6540_v21, %v6556_v63  ;;  %v6563_v3 = vsel %vm6547_vm6, %v6539_v56, %v6555_v27 }
 0x27b   : > { %v6541_v40 = vadd.f32 %v12412_v61, %v6526_v14  ;;  %v6572_v0 = vmul.f32 1.4142135, %v6564_v34  ;;  %v6558_v44 = vmul.f32 0.2, %v6542_v41  ;;  %v6571_v46 = vmul.f32 1.4142135, %v6563_v3 }
 0x27c   : > { %vm6550_vm7 = vcmp.gt.f32.partialorder %v6542_v41, 0.0  ;;  %v7249_v54 = vld [vmem:[#allocation2 + $0x1c0] sm:$0xff] }
 0x27d   : > { %v6557_v51 = vmul.f32 0.2, %v6541_v40  ;;  %v7248_v31 = vld [vmem:[#allocation2 + $0x1b0] sm:$0xff]  ;;  %6581 = vst.msk [vmem:[#allocation2 + $0x200] sm:$0xff] %vm257_vm1, %v6572_v0  ;;  %vm6549_vm8 = vcmp.gt.f32.partialorder %v6541_v40, 0.0  ;;  %6580 = vst.msk [vmem:[#allocation2 + $0x1f0] sm:$0xff] %vm257_vm1, %v6571_v46  ;;  %v6566_v39 = vsel %vm6550_vm7, %v6542_v41, %v6558_v44 }
 0x27e   : > { %10072 = vmatprep.mubr.msk.f32.mxu0 %vm257_vm1, %v7248_v31  ;;  %v9065_v61 = vld [vmem:[%s12906_s3 + $0x20] sm:$0xf]  ;;  %v6574_v36 = vmul.f32 1.4142135, %v6566_v39  ;;  %v7914_v46 = vld [vmem:[#allocation2 + $0x31] sm:$0xff] }
 0x27f   : > { %10073 = vmatmul.mubr.msk.f32.vlgmr.msra.gmra.mrb[160].mxu0 %vm257_vm1, %v7249_v54  ;;  %v6565_v4 = vsel %vm6549_vm8, %v6541_v40, %v6557_v51  ;;  %v7251_v38 = vld [vmem:[#allocation2 + $0x1e0] sm:$0xff]  ;;  %v7912_v40 = vld [vmem:[#allocation2 + $0x11] sm:$0xff] }
 0x280   : > { %10099 = vmatpush3.msk.msra.mxu0 %vm390_vm0, %v12993_v1  ;;  %v6573_v42 = vmul.f32 1.4142135, %v6565_v4  ;;  %v7250_v8 = vld [vmem:[#allocation2 + $0x1d0] sm:$0xff]  ;;  %6583 = vst.msk [vmem:[#allocation2 + $0x220] sm:$0xff] %vm257_vm1, %v6574_v36  ;;  %v7587_v14 = vld [vmem:[#allocation2 + $0x80] sm:$0xff] }
 0x281   : > { %10126 = vmatprep.subr.msk.mxu0 %vm390_vm0, %v9065_v61  ;;  %10075 = vmatprep.mubr.msk.f32.mxu0 %vm257_vm1, %v7250_v8  ;;  %v7913_v44 = vld [vmem:[#allocation2 + $0x21] sm:$0xff] }
 0x282   : > { %6582 = vst.msk [vmem:[#allocation2 + $0x210] sm:$0xff] %vm257_vm1, %v6573_v42  ;;  %v7915_v39 = vld [vmem:[#allocation2 + $0x41] sm:$0xff] }
 0x283   : > { %10076 = vmatmul.mubr.msk.f32.gmra.mrb[162].mxu0 %vm257_vm1, %v7251_v38  ;;  %v7919_v42 = vld [vmem:[#allocation2 + $0x81] sm:$0xff] }
 0x284   : > { %v7252_v49 = vld [vmem:[#allocation2 + $0x1f0] sm:$0xff]  ;;  %v7253_v58 = vld [vmem:[#allocation2 + $0x200] sm:$0xff] }
 0x285   : > { %10078 = vmatprep.mubr.msk.f32.mxu0 %vm257_vm1, %v7252_v49 }
 0x287   : > { %10079 = vmatmul.mubr.msk.f32.gmra.mrb[164].mxu0 %vm257_vm1, %v7253_v58  ;;  %v7255_v50 = vld [vmem:[#allocation2 + $0x220] sm:$0xff] }
 0x289   : > { %v7254_v55 = vld [vmem:[#allocation2 + $0x210] sm:$0xff]  ;;  %v10032_v48 = vpop.f32.mrb[144].mxu1 }
 0x28a   : > { %10081 = vmatprep.mubr.msk.f32.mxu0 %vm257_vm1, %v7254_v55  ;;  %v6901_v47 = vadd.f32 %v10032_v48, %v6759_v62  ;;  %v6861_v23 = vpop.f32.mrb[145].mxu1 }
 0x28b   : > { %10082 = vmatmul.mubr.msk.f32.gmra.mrb[166].mxu0 %vm257_vm1, %v7255_v50  ;;  %v6900_v11 = vadd.f32 %v6861_v23, %v6758_v59 }
 0x28c   : > { %10100 = vmatprep.mubr.msk.f32.mxu0 %vm257_vm1, %v7580_v30  ;;  %6909 = vst.msk [vmem:[#allocation4 + $0x8] sm:$0xff] %vm331_vm11, %v6901_v47 }
 0x28d   : > { %6908 = vst.msk [vmem:[#allocation4] sm:$0xff] %vm331_vm11, %v6900_v11 }
 0x28e   : > { %v10035_v20 = vpop.f32.mrb[146].mxu1 }
 0x28f   : > { %10101 = vmatmul.mubr.msk.f32.vlgmr.msra.gmra.mrb[168].mxu0 %vm257_vm1, %v7581_v12  ;;  %v6903_v25 = vadd.f32 %v10035_v20, %v6761_v29  ;;  %v6871_v33 = vpop.f32.mrb[147].mxu1 }
 0x290   : > { %10103 = vmatprep.mubr.msk.f32.mxu0 %vm257_vm1, %v7582_v18  ;;  %10127 = vmatpush3.msk.msra.mxu0 %vm390_vm0, %v9065_v61  ;;  %v6902_v60 = vadd.f32 %v6871_v33, %v6760_v16 }
 0x291   : > { %6911 = vst.msk [vmem:[#allocation4 + $0x18] sm:$0xff] %vm331_vm11, %v6903_v25 }
 0x292   : > { %6910 = vst.msk [vmem:[#allocation4 + $0x10] sm:$0xff] %vm331_vm11, %v6902_v60 }
 0x293   : > { %10104 = vmatmul.mubr.msk.f32.gmra.mrb[170].mxu0 %vm257_vm1, %v7583_v24  ;;  %v10038_v26 = vpop.f32.mrb[148].mxu1  ;;  %v6925_v6 = vld [vmem:[#allocation4 + $0x8] sm:$0xff] }
 0x294   : > { %10106 = vmatprep.mubr.msk.f32.mxu0 %vm257_vm1, %v7584_v9  ;;  %v6905_v7 = vadd.f32 %v10038_v26, %v6763_v19  ;;  %v6881_v53 = vpop.f32.mrb[149].mxu1  ;;  %v7067_v56 = vadd.f32 %v12564_v57, %v6925_v6  ;;  %v6924_v32 = vld [vmem:[#allocation4] sm:$0xff] }
 0x295   : > { %v6904_v21 = vadd.f32 %v6881_v53, %v6762_v5  ;;  %v7066_v45 = vadd.f32 %v12568_v10, %v6924_v32 }
 0x296   : > { %6913 = vst.msk [vmem:[#allocation4 + $0x28] sm:$0xff] %vm331_vm11, %v6905_v7  ;;  %7075 = vst.msk [vmem:[#allocation4 + $0x8] sm:$0xff] %vm331_vm11, %v7067_v56 }
 0x297   : > { %10107 = vmatmul.mubr.msk.f32.gmra.mrb[172].mxu0 %vm257_vm1, %v7585_v13  ;;  %6912 = vst.msk [vmem:[#allocation4 + $0x20] sm:$0xff] %vm331_vm11, %v6904_v21  ;;  %7074 = vst.msk [vmem:[#allocation4] sm:$0xff] %vm331_vm11, %v7066_v45 }
 0x298   : > { %10109 = vmatprep.mubr.msk.f32.mxu0 %vm257_vm1, %v7586_v52  ;;  %v10041_v63 = vpop.f32.mrb[150].mxu1  ;;  %v6927_v57 = vld [vmem:[#allocation4 + $0x18] sm:$0xff] }
 0x299   : > { %v6907_v27 = vadd.f32 %v10041_v63, %v6765_v37  ;;  %v6891_v41 = vpop.f32.mrb[151].mxu1  ;;  %v7069_v3 = vadd.f32 %v12580_v35, %v6927_v57  ;;  %v6926_v10 = vld [vmem:[#allocation4 + $0x10] sm:$0xff] }
 0x29a   : > { %v6906_v34 = vadd.f32 %v6891_v41, %v6764_v28  ;;  %v7068_v0 = vadd.f32 %v12584_v22, %v6926_v10  ;;  %v7916_v22 = vld [vmem:[#allocation2 + $0x51] sm:$0xff] }
 0x29b   : > { %10110 = vmatmul.mubr.msk.f32.gmra.mrb[174].mxu0 %vm257_vm1, %v7587_v14  ;;  %6915 = vst.msk [vmem:[#allocation4 + $0x38] sm:$0xff] %vm331_vm11, %v6907_v27  ;;  %7077 = vst.msk [vmem:[#allocation4 + $0x18] sm:$0xff] %vm331_vm11, %v7069_v3 }
 0x29c   : > { %10128 = vmatprep.mubr.msk.f32.mxu0 %vm257_vm1, %v7912_v40  ;;  %6914 = vst.msk [vmem:[#allocation4 + $0x30] sm:$0xff] %vm331_vm11, %v6906_v34  ;;  %7076 = vst.msk [vmem:[#allocation4 + $0x10] sm:$0xff] %vm331_vm11, %v7068_v0 }
 0x29d   : > { %v6929_v51 = vld [vmem:[#allocation4 + $0x28] sm:$0xff] }
 0x29e   : > { %v7071_v31 = vadd.f32 %v12593_v17, %v6929_v51  ;;  %v6928_v54 = vld [vmem:[#allocation4 + $0x20] sm:$0xff]  ;;  %v7091_v8 = vld [vmem:[#allocation4 + $0x8] sm:$0xff] }
 0x29f   : > { %10129 = vmatmul.mubr.msk.f32.vlgmr.msra.gmra.mrb[176].mxu0 %vm257_vm1, %v7913_v44  ;;  %v7070_v35 = vadd.f32 %v12596_v2, %v6928_v54  ;;  %v7917_v17 = vld [vmem:[#allocation2 + $0x61] sm:$0xff]  ;;  %v7918_v2 = vld [vmem:[#allocation2 + $0x71] sm:$0xff] }
 0x2a0   : > { %10131 = vmatprep.mubr.msk.f32.mxu0 %vm257_vm1, %v7914_v46  ;;  %7079 = vst.msk [vmem:[#allocation4 + $0x28] sm:$0xff] %vm331_vm11, %v7071_v31 }
 0x2a1   : > { %7078 = vst.msk [vmem:[#allocation4 + $0x20] sm:$0xff] %vm331_vm11, %v7070_v35 }
 0x2a2   : > { %v6931_v61 = vld [vmem:[#allocation4 + $0x38] sm:$0xff] }
 0x2a3   : > { %10132 = vmatmul.mubr.msk.f32.gmra.mrb[178].mxu0 %vm257_vm1, %v7915_v39  ;;  %v7073_v4 = vadd.f32 %v12604_v43, %v6931_v61  ;;  %v6930_v36 = vld [vmem:[#allocation4 + $0x30] sm:$0xff]  ;;  %v7090_v43 = vld [vmem:[#allocation4] sm:$0xff] }
 0x2a4   : > { %10134 = vmatprep.mubr.msk.f32.mxu0 %vm257_vm1, %v7916_v22  ;;  %v7072_v1 = vadd.f32 %v12609_v15, %v6930_v36  ;;  %v7093_v15 = vld [vmem:[#allocation4 + $0x18] sm:$0xff]  ;;  %v7092_v62 = vld [vmem:[#allocation4 + $0x10] sm:$0xff] }
 0x2a5   : > { %7081 = vst.msk [vmem:[#allocation4 + $0x38] sm:$0xff] %vm331_vm11, %v7073_v4 }
 0x2a6   : > { %7080 = vst.msk [vmem:[#allocation4 + $0x30] sm:$0xff] %vm331_vm11, %v7072_v1 }
 0x2a7   : > { %10135 = vmatmul.mubr.msk.f32.gmra.mrb[180].mxu0 %vm257_vm1, %v7917_v17  ;;  %v7095_v59 = vld [vmem:[#allocation4 + $0x28] sm:$0xff] }
 0x2a8   : > { %10137 = vmatprep.mubr.msk.f32.mxu0 %vm257_vm1, %v7918_v2  ;;  %v7094_v11 = vld [vmem:[#allocation4 + $0x20] sm:$0xff] }
 0x2ab   : > { %10138 = vmatmul.mubr.msk.f32.gmra.mrb[182].mxu0 %vm257_vm1, %v7919_v42 }
 0x2ac   : > { %v7097_v20 = vld [vmem:[#allocation4 + $0x38] sm:$0xff] }
 0x2ad   : > { %v7096_v33 = vld [vmem:[#allocation4 + $0x30] sm:$0xff] }
 0x2ef   : > { %v10060_v38 = vpop.f32.mrb[152].mxu1 }
 0x2f0   : > { %v7233_v49 = vadd.f32 %v10060_v38, %v7091_v8  ;;  %v7193_v58 = vpop.f32.mrb[153].mxu1 }
 0x2f1   : > { %v7232_v55 = vadd.f32 %v7193_v58, %v7090_v43 }
 0x2f2   : > { %7241 = vst.msk [vmem:[#allocation4 + $0x8] sm:$0xff] %vm331_vm11, %v7233_v49 }
 0x2f3   : > { %7240 = vst.msk [vmem:[#allocation4] sm:$0xff] %vm331_vm11, %v7232_v55  ;;  %v10063_v50 = vpop.f32.mrb[154].mxu1 }
 0x2f4   : > { %v7235_v30 = vadd.f32 %v10063_v50, %v7093_v15  ;;  %v7203_v48 = vpop.f32.mrb[155].mxu1 }
 0x2f5   : > { %v7234_v47 = vadd.f32 %v7203_v48, %v7092_v62 }
 0x2f6   : > { %7243 = vst.msk [vmem:[#allocation4 + $0x18] sm:$0xff] %vm331_vm11, %v7235_v30 }
 0x2f7   : > { %7242 = vst.msk [vmem:[#allocation4 + $0x10] sm:$0xff] %vm331_vm11, %v7234_v47 }
 0x2f8   : > { %v10066_v23 = vpop.f32.mrb[156].mxu1 }
 0x2f9   : > { %v7237_v12 = vadd.f32 %v10066_v23, %v7095_v59  ;;  %v7213_v18 = vpop.f32.mrb[157].mxu1  ;;  %v7257_v0 = vld [vmem:[#allocation4 + $0x8] sm:$0xff] }
 0x2fa   : > { %v7236_v29 = vadd.f32 %v7213_v18, %v7094_v11  ;;  %v7256_v51 = vld [vmem:[#allocation4] sm:$0xff] }
 0x2fb   : > { %7245 = vst.msk [vmem:[#allocation4 + $0x28] sm:$0xff] %vm331_vm11, %v7237_v12 }
 0x2fc   : > { %7244 = vst.msk [vmem:[#allocation4 + $0x20] sm:$0xff] %vm331_vm11, %v7236_v29  ;;  %v10069_v25 = vpop.f32.mrb[158].mxu1 }
 0x2fd   : > { %v7239_v16 = vadd.f32 %v10069_v25, %v7097_v20  ;;  %v7223_v24 = vpop.f32.mrb[159].mxu1  ;;  %v7259_v35 = vld [vmem:[#allocation4 + $0x18] sm:$0xff] }
 0x2fe   : > { %v7238_v60 = vadd.f32 %v7223_v24, %v7096_v33  ;;  %v7258_v61 = vld [vmem:[#allocation4 + $0x10] sm:$0xff] }
 0x2ff   : > { %7247 = vst.msk [vmem:[#allocation4 + $0x38] sm:$0xff] %vm331_vm11, %v7239_v16 }
 0x300   : > { %7246 = vst.msk [vmem:[#allocation4 + $0x30] sm:$0xff] %vm331_vm11, %v7238_v60  ;;  %v10088_v9 = vpop.f32.mrb[160].mxu1 }
 0x301   : > { %v7525_v19 = vpop.f32.mrb[161].mxu1 }
 0x302   : > { %v7261_v1 = vld [vmem:[#allocation4 + $0x28] sm:$0xff] }
 0x303   : > { %v7260_v42 = vld [vmem:[#allocation4 + $0x20] sm:$0xff] }
 0x304   : > { %v10091_v26 = vpop.f32.mrb[162].mxu1 }
 0x305   : > { %v12771_v7 = vpop.f32.mrb[163].mxu1 }
 0x306   : > { %v7263_v55 = vld [vmem:[#allocation4 + $0x38] sm:$0xff] }
 0x307   : > { %v7262_v62 = vld [vmem:[#allocation4 + $0x30] sm:$0xff] }
 0x308   : > { %v12773_v5 = vpop.f32.mrb[164].mxu1 }
 0x309   : > { %v12775_v53 = vpop.f32.mrb[165].mxu1 }
 0x30c   : > { %v12777_v13 = vpop.f32.mrb[166].mxu1 }
 0x30d   : > { %v12779_v21 = vpop.f32.mrb[167].mxu1 }
 0x310   : > { %v12781_v52 = vpop.f32.mrb[168].mxu1 }
 0x311   : > { %v12783_v6 = vpop.f32.mrb[169].mxu1 }
 0x314   : > { %v12785_v56 = vpop.f32.mrb[170].mxu1 }
 0x315   : > { %v12787_v32 = vpop.f32.mrb[171].mxu1 }
 0x318   : > { %v12789_v37 = vpop.f32.mrb[172].mxu1 }
 0x319   : > { %v12791_v63 = vpop.f32.mrb[173].mxu1 }
 0x31c   : > { %v12793_v45 = vpop.f32.mrb[174].mxu1 }
 0x31d   : > { %v12795_v27 = vpop.f32.mrb[175].mxu1 }
 0x320   : > { %v12797_v28 = vpop.f32.mrb[176].mxu1 }
 0x321   : > { %v12799_v41 = vpop.f32.mrb[177].mxu1 }
 0x324   : > { %v12801_v14 = vpop.f32.mrb[178].mxu1 }
 0x325   : > { %v12803_v34 = vpop.f32.mrb[179].mxu1 }
 0x328   : > { %v12805_v40 = vpop.f32.mrb[180].mxu1 }
 0x329   : > { %v12807_v57 = vpop.f32.mrb[181].mxu1 }
 0x32c   : > { %v12809_v3 = vpop.f32.mrb[182].mxu1 }
 0x32d   : > { %v12811_v10 = vpop.f32.mrb[183].mxu1 }
 0x352   : > { %v10074_v44 = vpop.f32.mrb[160].mxu0 }
 0x353   : > { %v7399_v46 = vadd.f32 %v10074_v44, %v7257_v0  ;;  %v7359_v31 = vpop.f32.mrb[161].mxu0 }
 0x354   : > { %v7398_v54 = vadd.f32 %v7359_v31, %v7256_v51 }
 0x355   : > { %7407 = vst.msk [vmem:[#allocation4 + $0x8] sm:$0xff] %vm331_vm11, %v7399_v46 }
 0x356   : > { %7406 = vst.msk [vmem:[#allocation4] sm:$0xff] %vm331_vm11, %v7398_v54  ;;  %v10077_v39 = vpop.f32.mrb[162].mxu0 }
 0x357   : > { %v7401_v22 = vadd.f32 %v10077_v39, %v7259_v35  ;;  %v7369_v4 = vpop.f32.mrb[163].mxu0 }
 0x358   : > { %v7400_v36 = vadd.f32 %v7369_v4, %v7258_v61 }
 0x359   : > { %7409 = vst.msk [vmem:[#allocation4 + $0x18] sm:$0xff] %vm331_vm11, %v7401_v22 }
 0x35a   : > { %7408 = vst.msk [vmem:[#allocation4 + $0x10] sm:$0xff] %vm331_vm11, %v7400_v36  ;;  %v10080_v17 = vpop.f32.mrb[164].mxu0 }
 0x35b   : > { %v7403_v2 = vadd.f32 %v10080_v17, %v7261_v1  ;;  %v7379_v8 = vpop.f32.mrb[165].mxu0 }
 0x35c   : > { %v7402_v38 = vadd.f32 %v7379_v8, %v7260_v42  ;;  %v7423_v49 = vld [vmem:[#allocation4 + $0x8] sm:$0xff] }
 0x35d   : > { %7411 = vst.msk [vmem:[#allocation4 + $0x28] sm:$0xff] %vm331_vm11, %v7403_v2  ;;  %v7565_v43 = vadd.f32 %v10088_v9, %v7423_v49  ;;  %v7422_v58 = vld [vmem:[#allocation4] sm:$0xff] }
 0x35e   : > { %7410 = vst.msk [vmem:[#allocation4 + $0x20] sm:$0xff] %vm331_vm11, %v7402_v38  ;;  %v10083_v15 = vpop.f32.mrb[166].mxu0  ;;  %v7564_v50 = vadd.f32 %v7525_v19, %v7422_v58 }
 0x35f   : > { %v7405_v30 = vadd.f32 %v10083_v15, %v7263_v55  ;;  %v7389_v48 = vpop.f32.mrb[167].mxu0  ;;  %7573 = vst.msk [vmem:[#allocation4 + $0x8] sm:$0xff] %vm331_vm11, %v7565_v43 }
 0x360   : > { %v7404_v47 = vadd.f32 %v7389_v48, %v7262_v62  ;;  %7572 = vst.msk [vmem:[#allocation4] sm:$0xff] %vm331_vm11, %v7564_v50  ;;  %v7425_v59 = vld [vmem:[#allocation4 + $0x18] sm:$0xff] }
 0x361   : > { %7413 = vst.msk [vmem:[#allocation4 + $0x38] sm:$0xff] %vm331_vm11, %v7405_v30  ;;  %v7567_v23 = vadd.f32 %v10091_v26, %v7425_v59  ;;  %v7424_v12 = vld [vmem:[#allocation4 + $0x10] sm:$0xff] }
 0x362   : > { %7412 = vst.msk [vmem:[#allocation4 + $0x30] sm:$0xff] %vm331_vm11, %v7404_v47  ;;  %v10102_v11 = vpop.f32.mrb[168].mxu0  ;;  %v7566_v18 = vadd.f32 %v12771_v7, %v7424_v12 }
 0x363   : > { %v7691_v29 = vpop.f32.mrb[169].mxu0  ;;  %7575 = vst.msk [vmem:[#allocation4 + $0x18] sm:$0xff] %vm331_vm11, %v7567_v23 }
 0x364   : > { %7574 = vst.msk [vmem:[#allocation4 + $0x10] sm:$0xff] %vm331_vm11, %v7566_v18  ;;  %v7427_v20 = vld [vmem:[#allocation4 + $0x28] sm:$0xff] }
 0x365   : > { %v7569_v25 = vadd.f32 %v12773_v5, %v7427_v20  ;;  %v7426_v16 = vld [vmem:[#allocation4 + $0x20] sm:$0xff] }
 0x366   : > { %v7589_v33 = vld [vmem:[#allocation4 + $0x8] sm:$0xff]  ;;  %v10105_v24 = vpop.f32.mrb[170].mxu0  ;;  %v7568_v60 = vadd.f32 %v12775_v53, %v7426_v16 }
 0x367   : > { %v7731_v9 = vadd.f32 %v10102_v11, %v7589_v33  ;;  %v7588_v19 = vld [vmem:[#allocation4] sm:$0xff]  ;;  %v7701_v26 = vpop.f32.mrb[171].mxu0  ;;  %7577 = vst.msk [vmem:[#allocation4 + $0x28] sm:$0xff] %vm331_vm11, %v7569_v25 }
 0x368   : > { %v7730_v0 = vadd.f32 %v7691_v29, %v7588_v19  ;;  %7576 = vst.msk [vmem:[#allocation4 + $0x20] sm:$0xff] %vm331_vm11, %v7568_v60  ;;  %v7429_v7 = vld [vmem:[#allocation4 + $0x38] sm:$0xff] }
 0x369   : > { %7739 = vst.msk [vmem:[#allocation4 + $0x8] sm:$0xff] %vm331_vm11, %v7731_v9  ;;  %v7571_v44 = vadd.f32 %v12777_v13, %v7429_v7  ;;  %v7428_v46 = vld [vmem:[#allocation4 + $0x30] sm:$0xff] }
 0x36a   : > { %7738 = vst.msk [vmem:[#allocation4] sm:$0xff] %vm331_vm11, %v7730_v0  ;;  %v7591_v5 = vld [vmem:[#allocation4 + $0x18] sm:$0xff]  ;;  %v10108_v51 = vpop.f32.mrb[172].mxu0  ;;  %v7570_v53 = vadd.f32 %v12779_v21, %v7428_v46 }
 0x36b   : > { %v7733_v31 = vadd.f32 %v10105_v24, %v7591_v5  ;;  %v7590_v54 = vld [vmem:[#allocation4 + $0x10] sm:$0xff]  ;;  %v7711_v35 = vpop.f32.mrb[173].mxu0  ;;  %7579 = vst.msk [vmem:[#allocation4 + $0x38] sm:$0xff] %vm331_vm11, %v7571_v44 }
 0x36c   : > { %v7732_v39 = vadd.f32 %v7701_v26, %v7590_v54  ;;  %7578 = vst.msk [vmem:[#allocation4 + $0x30] sm:$0xff] %vm331_vm11, %v7570_v53  ;;  %v9075_v26 = vld [vmem:[%s12907_s4] ss:$0 sm:$0xff] }
 0x36d   : > { %7741 = vst.msk [vmem:[#allocation4 + $0x18] sm:$0xff] %vm331_vm11, %v7733_v31 }
 0x36e   : > { %7740 = vst.msk [vmem:[#allocation4 + $0x10] sm:$0xff] %vm331_vm11, %v7732_v39  ;;  %v7593_v13 = vld [vmem:[#allocation4 + $0x28] sm:$0xff]  ;;  %v10111_v22 = vpop.f32.mrb[174].mxu0 }
 0x36f   : > { %v7735_v61 = vadd.f32 %v10108_v51, %v7593_v13  ;;  %v7592_v4 = vld [vmem:[#allocation4 + $0x20] sm:$0xff]  ;;  %v7721_v36 = vpop.f32.mrb[175].mxu0 }
 0x370   : > { %v7734_v1 = vadd.f32 %v7711_v35, %v7592_v4  ;;  %v7755_v17 = vld [vmem:[#allocation4 + $0x8] sm:$0xff] }
 0x371   : > { %7743 = vst.msk [vmem:[#allocation4 + $0x28] sm:$0xff] %vm331_vm11, %v7735_v61  ;;  %v7897_v21 = vadd.f32 %v12781_v52, %v7755_v17  ;;  %v7754_v2 = vld [vmem:[#allocation4] sm:$0xff] }
 0x372   : > { %7742 = vst.msk [vmem:[#allocation4 + $0x20] sm:$0xff] %vm331_vm11, %v7734_v1  ;;  %v7595_v42 = vld [vmem:[#allocation4 + $0x38] sm:$0xff]  ;;  %v10130_v8 = vpop.f32.mrb[176].mxu0  ;;  %v7896_v38 = vadd.f32 %v12783_v6, %v7754_v2 }
 0x373   : > { %v7737_v49 = vadd.f32 %v10111_v22, %v7595_v42  ;;  %v7594_v43 = vld [vmem:[#allocation4 + $0x30] sm:$0xff]  ;;  %7905 = vst.msk [vmem:[#allocation4 + $0x8] sm:$0xff] %vm331_vm11, %v7897_v21  ;;  %v8023_v58 = vpop.f32.mrb[177].mxu0 }
 0x374   : > { %v7736_v55 = vadd.f32 %v7721_v36, %v7594_v43  ;;  %7904 = vst.msk [vmem:[#allocation4] sm:$0xff] %vm331_vm11, %v7896_v38  ;;  %v7757_v15 = vld [vmem:[#allocation4 + $0x18] sm:$0xff] }
 0x375   : > { %7745 = vst.msk [vmem:[#allocation4 + $0x38] sm:$0xff] %vm331_vm11, %v7737_v49  ;;  %v7899_v52 = vadd.f32 %v12785_v56, %v7757_v15  ;;  %v7756_v50 = vld [vmem:[#allocation4 + $0x10] sm:$0xff] }
 0x376   : > { %7744 = vst.msk [vmem:[#allocation4 + $0x30] sm:$0xff] %vm331_vm11, %v7736_v55  ;;  %v10133_v30 = vpop.f32.mrb[178].mxu0  ;;  %v7898_v62 = vadd.f32 %v12787_v32, %v7756_v50 }
 0x377   : > { %7907 = vst.msk [vmem:[#allocation4 + $0x18] sm:$0xff] %vm331_vm11, %v7899_v52  ;;  %v8033_v6 = vpop.f32.mrb[179].mxu0 }
 0x378   : > { %7906 = vst.msk [vmem:[#allocation4 + $0x10] sm:$0xff] %vm331_vm11, %v7898_v62  ;;  %v7759_v48 = vld [vmem:[#allocation4 + $0x28] sm:$0xff] }
 0x379   : > { %v7901_v47 = vadd.f32 %v12789_v37, %v7759_v48  ;;  %v7758_v59 = vld [vmem:[#allocation4 + $0x20] sm:$0xff] }
 0x37a   : > { %v7921_v23 = vld [vmem:[#allocation4 + $0x8] sm:$0xff]  ;;  %v10136_v12 = vpop.f32.mrb[180].mxu0  ;;  %v7900_v11 = vadd.f32 %v12791_v63, %v7758_v59 }
 0x37b   : > { %v8063_v56 = vadd.f32 %v10130_v8, %v7921_v23  ;;  %v7920_v18 = vld [vmem:[#allocation4] sm:$0xff]  ;;  %7909 = vst.msk [vmem:[#allocation4 + $0x28] sm:$0xff] %vm331_vm11, %v7901_v47  ;;  %v8043_v29 = vpop.f32.mrb[181].mxu0 }
 0x37c   : > { %v8062_v20 = vadd.f32 %v8023_v58, %v7920_v18  ;;  %7908 = vst.msk [vmem:[#allocation4 + $0x20] sm:$0xff] %vm331_vm11, %v7900_v11  ;;  %v7761_v32 = vld [vmem:[#allocation4 + $0x38] sm:$0xff] }
 0x37d   : > { %8071 = vst.msk [vmem:[#allocation4 + $0x8] sm:$0xff] %vm331_vm11, %v8063_v56  ;;  %v7903_v25 = vadd.f32 %v12793_v45, %v7761_v32  ;;  %v7760_v37 = vld [vmem:[#allocation4 + $0x30] sm:$0xff] }
 0x37e   : > { %8070 = vst.msk [vmem:[#allocation4] sm:$0xff] %vm331_vm11, %v8062_v20  ;;  %v7923_v16 = vld [vmem:[#allocation4 + $0x18] sm:$0xff]  ;;  %v10139_v33 = vpop.f32.mrb[182].mxu0  ;;  %v7902_v63 = vadd.f32 %v12795_v27, %v7760_v37 }
 0x37f   : > { %v8065_v24 = vadd.f32 %v10133_v30, %v7923_v16  ;;  %v7922_v60 = vld [vmem:[#allocation4 + $0x10] sm:$0xff]  ;;  %7911 = vst.msk [vmem:[#allocation4 + $0x38] sm:$0xff] %vm331_vm11, %v7903_v25  ;;  %v8053_v9 = vpop.f32.mrb[183].mxu0 }
 0x380   : > { %v8064_v19 = vadd.f32 %v8033_v6, %v7922_v60  ;;  %7910 = vst.msk [vmem:[#allocation4 + $0x30] sm:$0xff] %vm331_vm11, %v7902_v63 }
 0x381   : > { %8073 = vst.msk [vmem:[#allocation4 + $0x18] sm:$0xff] %vm331_vm11, %v8065_v24 }
 0x382   : > { %8072 = vst.msk [vmem:[#allocation4 + $0x10] sm:$0xff] %vm331_vm11, %v8064_v19  ;;  %v7925_v45 = vld [vmem:[#allocation4 + $0x28] sm:$0xff] }
 0x383   : > { %v8067_v27 = vadd.f32 %v10136_v12, %v7925_v45  ;;  %v7924_v0 = vld [vmem:[#allocation4 + $0x20] sm:$0xff] }
 0x384   : > { %v8066_v7 = vadd.f32 %v8043_v29, %v7924_v0  ;;  %v8079_v44 = vld [vmem:[#allocation4 + $0x8] sm:$0xff] }
 0x385   : > { %8075 = vst.msk [vmem:[#allocation4 + $0x28] sm:$0xff] %vm331_vm11, %v8067_v27  ;;  %v8094_v46 = vadd.f32 %v9075_v26, %v8079_v44  ;;  %v8078_v5 = vld [vmem:[#allocation4] sm:$0xff] }
 0x386   : > { %8074 = vst.msk [vmem:[#allocation4 + $0x20] sm:$0xff] %vm331_vm11, %v8066_v7  ;;  %v7927_v51 = vld [vmem:[#allocation4 + $0x38] sm:$0xff]  ;;  %v8093_v53 = vadd.f32 %v9075_v26, %v8078_v5 }
 0x387   : > { %v8069_v31 = vadd.f32 %v10139_v33, %v7927_v51  ;;  %v7926_v54 = vld [vmem:[#allocation4 + $0x30] sm:$0xff]  ;;  %vm8102_vm0 = vcmp.gt.f32.partialorder %v8094_v46, 0.0  ;;  %v8110_v35 = vmul.f32 0.2, %v8094_v46 }
 0x388   : > { %v8068_v39 = vadd.f32 %v8053_v9, %v7926_v54  ;;  %vm8101_vm1 = vcmp.gt.f32.partialorder %v8093_v53, 0.0  ;;  %v8109_v13 = vmul.f32 0.2, %v8093_v53  ;;  %v8081_v22 = vld [vmem:[#allocation4 + $0x18] sm:$0xff] }
 0x389   : > { %8077 = vst.msk [vmem:[#allocation4 + $0x38] sm:$0xff] %vm331_vm11, %v8069_v31  ;;  %v8118_v61 = vsel %vm8102_vm0, %v8094_v46, %v8110_v35  ;;  %v8096_v4 = vadd.f32 %v9075_v26, %v8081_v22  ;;  %v8080_v36 = vld [vmem:[#allocation4 + $0x10] sm:$0xff] }
 0x38a   : > { %8076 = vst.msk [vmem:[#allocation4 + $0x30] sm:$0xff] %vm331_vm11, %v8068_v39  ;;  %v8126_v1 = vmul.f32 1.4142135, %v8118_v61  ;;  %v8117_v17 = vsel %vm8101_vm1, %v8093_v53, %v8109_v13  ;;  %v8095_v21 = vadd.f32 %v9075_v26, %v8080_v36 }
 0x38b   : > { %v8125_v2 = vmul.f32 1.4142135, %v8117_v17  ;;  %vm8104_vm9 = vcmp.gt.f32.partialorder %v8096_v4, 0.0  ;;  %v8112_v42 = vmul.f32 0.2, %v8096_v4 }
 0x38c   : > { %v8275_v8 = vadd.f32 %v12797_v28, %v8126_v1  ;;  %vm8103_vm10 = vcmp.gt.f32.partialorder %v8095_v21, 0.0  ;;  %v8111_v38 = vmul.f32 0.2, %v8095_v21  ;;  %v8083_v49 = vld [vmem:[#allocation4 + $0x28] sm:$0xff] }
 0x38d   : > { %v8274_v43 = vadd.f32 %v12799_v41, %v8125_v2  ;;  %v8120_v58 = vsel %vm8104_vm9, %v8096_v4, %v8112_v42  ;;  %v8098_v55 = vadd.f32 %v9075_v26, %v8083_v49  ;;  %v8082_v15 = vld [vmem:[#allocation4 + $0x20] sm:$0xff] }
 0x38e   : > { %v8283_v52 = vmul.f32 0.70710677, %v8275_v8  ;;  %v8128_v50 = vmul.f32 1.4142135, %v8120_v58  ;;  %v8119_v30 = vsel %vm8103_vm10, %v8095_v21, %v8111_v38  ;;  %v8097_v62 = vadd.f32 %v9075_v26, %v8082_v15 }
 0x38f   : > { %v8282_v28 = vmul.f32 0.70710677, %v8274_v43  ;;  %v8127_v6 = vmul.f32 1.4142135, %v8119_v30  ;;  %vm8106_vm12 = vcmp.gt.f32.partialorder %v8098_v55, 0.0 }
 0x390   : > { %8291 = vst.msk [vmem:[%s12875_s20 + $0x8] sm:$0xff] %vm331_vm11, %v8283_v52  ;;  %v8277_v48 = vadd.f32 %v12801_v14, %v8128_v50  ;;  %v8114_v47 = vmul.f32 0.2, %v8098_v55  ;;  %vm8105_vm13 = vcmp.gt.f32.partialorder %v8097_v62, 0.0  ;;  %v8113_v59 = vmul.f32 0.2, %v8097_v62 }
 0x391   : > { %v8085_v41 = vld [vmem:[#allocation4 + $0x38] sm:$0xff]  ;;  %8290 = vst.msk [vmem:[%s12875_s20] sm:$0xff] %vm331_vm11, %v8282_v28  ;;  %v8276_v23 = vadd.f32 %v12803_v34, %v8127_v6  ;;  %v8084_v11 = vld [vmem:[#allocation4 + $0x30] sm:$0xff] }
 0x392   : > { %v8100_v12 = vadd.f32 %v9075_v26, %v8085_v41  ;;  %v8285_v56 = vmul.f32 0.70710677, %v8277_v48  ;;  %v8122_v18 = vsel %vm8106_vm12, %v8098_v55, %v8114_v47  ;;  %v8121_v29 = vsel %vm8105_vm13, %v8097_v62, %v8113_v59 }
 0x393   : > { %v8099_v20 = vadd.f32 %v9075_v26, %v8084_v11  ;;  %v8284_v32 = vmul.f32 0.70710677, %v8276_v23  ;;  %v8130_v25 = vmul.f32 1.4142135, %v8122_v18  ;;  %v8129_v14 = vmul.f32 1.4142135, %v8121_v29 }
 0x394   : > { %8293 = vst.msk [vmem:[%s12875_s20 + $0x18] sm:$0xff] %vm331_vm11, %v8285_v56  ;;  %vm8108_vm14 = vcmp.gt.f32.partialorder %v8100_v12, 0.0  ;;  %v8116_v37 = vmul.f32 0.2, %v8100_v12 }
 0x395   : > { %vm8107_vm15 = vcmp.gt.f32.partialorder %v8099_v20, 0.0  ;;  %v8115_v16 = vmul.f32 0.2, %v8099_v20  ;;  %8292 = vst.msk [vmem:[%s12875_s20 + $0x10] sm:$0xff] %vm331_vm11, %v8284_v32  ;;  %v8279_v34 = vadd.f32 %v12805_v40, %v8130_v25  ;;  %v8278_v33 = vadd.f32 %v12807_v57, %v8129_v14 }
 0x396   : > { %v8124_v63 = vsel %vm8108_vm14, %v8100_v12, %v8116_v37 }
 0x397   : > { %v8123_v24 = vsel %vm8107_vm15, %v8099_v20, %v8115_v16  ;;  %v8287_v60 = vmul.f32 0.70710677, %v8279_v34  ;;  %v8286_v9 = vmul.f32 0.70710677, %v8278_v33  ;;  %v8132_v19 = vmul.f32 1.4142135, %v8124_v63 }
 0x398   : > { %v8131_v45 = vmul.f32 1.4142135, %v8123_v24 }
 0x399   : > { %8295 = vst.msk [vmem:[%s12875_s20 + $0x28] sm:$0xff] %vm331_vm11, %v8287_v60  ;;  %8294 = vst.msk [vmem:[%s12875_s20 + $0x20] sm:$0xff] %vm331_vm11, %v8286_v9  ;;  %v8281_v26 = vadd.f32 %v12809_v3, %v8132_v19 }
 0x39a   : > { %v8280_v27 = vadd.f32 %v12811_v10, %v8131_v45 }
 0x39b   : > { %v8289_v0 = vmul.f32 0.70710677, %v8281_v26 }
 0x39c   : > { %v8288_v7 = vmul.f32 0.70710677, %v8280_v27 }
 0x39d   : > { %8297 = vst.msk [vmem:[%s12875_s20 + $0x38] sm:$0xff] %vm331_vm11, %v8289_v0 }
 0x39e   : > { %8296 = vst.msk [vmem:[%s12875_s20 + $0x30] sm:$0xff] %vm331_vm11, %v8288_v7 }
 0x39f PF: > { %s16_s21 = sadd.s32 1, %s10170_s21  }
 0x3a0   : > { %p13_p5 = scmp.ge.s32.totalorder %s16_s21, 4  }
 0x3a2   :  { %15 = sbr.rel (!%p13_p5) target bundleno = 1 (0x1), region = 102 }

</bundles_post_ra>
